<compile_context>
chip_gen: v7x
topology: tpu7x:2x2x1
jax: 0.10.0
libtpu: 0.0.40
codegen_flags: <defaults>
</compile_context>

<pallas_src>
import functools

import jax
import jax.numpy as jnp
from jax.experimental import pallas as pl
from jax.experimental.pallas import tpu as pltpu


# -----------------------------------------------------------------------------
# Fused kernel: LSTM stack (both directions) + MLP head, activations in VMEM.
# -----------------------------------------------------------------------------
def fused_seq_classifier_kernel(*refs, num_layers, seq_len, hidden):
    T, H = seq_len, hidden
    n_lstm = num_layers * 2 * 3

    x_ref = refs[0]                                    # (T, Bt, E)  bf16
    lstm_refs = refs[1:1 + n_lstm]                     # per (layer, dir): wih, whh, b
    w1_ref, b1_ref, w2_ref, b2_ref, w3_ref, b3_ref = refs[1 + n_lstm:7 + n_lstm]
    o_ref = refs[7 + n_lstm]                           # (Bt, num_class) f32
    g_scr = refs[8 + n_lstm:10 + n_lstm]               # 2 x (T, Bt, 4H) f32 hoisted gates
    act_scr = refs[10 + n_lstm:12 + n_lstm]            # 2 x (T, Bt, 2H) f32 ping-pong slabs

    Bt = o_ref.shape[0]

    def weights(layer, d):
        base = (layer * 2 + d) * 3
        return lstm_refs[base], lstm_refs[base + 1], lstm_refs[base + 2]

    for layer in range(num_layers):
        # ---- hoisted input projections (both directions): completely off the
        #      serial critical path; bf16 MXU operands, f32 accumulation. ----
        # TODO(synk): v7x VMEM-tight variant: run dir 0 projection+recurrence,
        #             then dir 1, reusing a single (T, Bt, 4H) gate slab.
        for d in range(2):
            wih_ref, _, b_ref = weights(layer, d)
            wih = wih_ref[...]                         # (in_dim, 4H) bf16
            bias = b_ref[...]                          # (1, 4H)      f32
            for t in range(T):
                if layer == 0:
                    xt = x_ref[t]                                        # (Bt, E) bf16
                else:
                    xt = act_scr[(layer - 1) % 2][t].astype(jnp.bfloat16)  # (Bt, 2H)
                g_scr[d][t] = (
                    jnp.dot(xt, wih, preferred_element_type=jnp.float32) + bias)

        # ---- interleaved fwd/bwd recurrences: two independent dependence
        #      chains per step; h/c carried as f32 register values. ----
        whh_f = weights(layer, 0)[1][...]              # (H, 4H) bf16
        whh_b = weights(layer, 1)[1][...]
        h_f = jnp.zeros((Bt, H), jnp.float32)
        c_f = jnp.zeros((Bt, H), jnp.float32)
        h_b = jnp.zeros((Bt, H), jnp.float32)
        c_b = jnp.zeros((Bt, H), jnp.float32)
        out_slab = act_scr[layer % 2]

        def cell(g_in, h, c, whh):
            gates = g_in + jnp.dot(h.astype(jnp.bfloat16), whh,
                                   preferred_element_type=jnp.float32)
            # EUP trimmed: sigmoid on i/f (2H) + o (H), tanh on g (H) + c (H).
            # NOTE: at production make H a multiple of 128 so slices are
            # lane-aligned.
            sg_if = jax.nn.sigmoid(gates[:, 0:2 * H])
            o_g = jax.nn.sigmoid(gates[:, 3 * H:4 * H])
            g_g = jnp.tanh(gates[:, 2 * H:3 * H])
            c = sg_if[:, H:2 * H] * c + sg_if[:, 0:H] * g_g
            h = o_g * jnp.tanh(c)
            return h, c

        # TODO(synk): at production T replace the static unroll with
        #             lax.fori_loop(..., unroll=4..8) carrying (h_f,c_f,h_b,c_b).
        for t in range(T):
            tb = T - 1 - t                             # backward dir: reversed time
            h_f, c_f = cell(g_scr[0][t], h_f, c_f, whh_f)
            h_b, c_b = cell(g_scr[1][tb], h_b, c_b, whh_b)
            out_slab[t, :, 0:H] = h_f                  # time-major store (fwd half)
            out_slab[tb, :, H:2 * H] = h_b             # time-major store (bwd half)

    # ---- MLP head (nn.Dropout = inference identity).  First matmul is
    #      K-accumulated over time blocks of the time-major slab with W1
    #      pre-reordered to (T, 2H, H): no flatten slab, no narrow column
    #      stores, and the head's K dim is naturally tiled. ----
    final = act_scr[(num_layers - 1) % 2]
    y = jnp.zeros((Bt, w1_ref.shape[2]), jnp.float32)
    for t in range(T):
        y += jnp.dot(final[t].astype(jnp.bfloat16), w1_ref[t],
                     preferred_element_type=jnp.float32)
    y = y + b1_ref[...]
    y = jnp.dot(y.astype(jnp.bfloat16), w2_ref[...],
                preferred_element_type=jnp.float32) + b2_ref[...]
    o_ref[...] = jnp.dot(y.astype(jnp.bfloat16), w3_ref[...],
                         preferred_element_type=jnp.float32) + b3_ref[...]


# -----------------------------------------------------------------------------
# Wrapper
# -----------------------------------------------------------------------------
def seq_classifier_forward(prepared, batch):
    """Fused Pallas forward. `prepared` = output of prepare_params() (one-time)."""
    B, T = batch.shape
    emb = prepared["embeddings"]                       # (vocab, E) bf16
    E = emb.shape[1]
    H = prepared["lstm"][0][0]["w_hh_t"].shape[0]
    num_layers = len(prepared["lstm"])
    num_class = prepared["w3_t"].shape[1]

    # Embedding gather emitted in bf16, time-major (T, B, E).
    # TODO(synk): fold the gather into the kernel (PrefetchScalarGridSpec +
    #             pl.Element row index_map) to avoid the HBM round-trip.
    x_tbe = emb[batch.T]                               # (T, B, E) bf16

    args = [x_tbe]
    for dirs in prepared["lstm"]:
        for lp in dirs:
            args += [lp["w_ih_t"], lp["w_hh_t"], lp["b"]]
    args += [prepared["w1_t3"], prepared["b1"],
             prepared["w2_t"], prepared["b2"],
             prepared["w3_t"], prepared["b3"]]

    # Batch grid axis ("parallel"): scaffold for v7x's 2 TensorCores and for
    # batch tiling within the VMEM budget at production shapes.
    # TODO(synk): production: B_TILE = 128-256 (multiple of 8 sublanes), and
    #             stream LSTM weights per layer instead of full residency.
    B_TILE = B
    grid = (pl.cdiv(B, B_TILE),)

    def full_spec(a):
        zero = (0,) * a.ndim
        return pl.BlockSpec(a.shape, lambda b, _z=zero: _z)

    in_specs = [pl.BlockSpec((T, B_TILE, E), lambda b: (0, b, 0))]
    in_specs += [full_spec(a) for a in args[1:]]

    kernel = functools.partial(
        fused_seq_classifier_kernel, num_layers=num_layers, seq_len=T, hidden=H)

    return pl.pallas_call(
        kernel,
        out_shape=jax.ShapeDtypeStruct((B, num_class), jnp.float32),
        grid=grid,
        in_specs=in_specs,
        out_specs=pl.BlockSpec((B_TILE, num_class), lambda b: (b, 0)),
        scratch_shapes=[
            pltpu.VMEM((T, B_TILE, 4 * H), jnp.float32),   # hoisted gates, fwd dir
            pltpu.VMEM((T, B_TILE, 4 * H), jnp.float32),   # hoisted gates, bwd dir
            pltpu.VMEM((T, B_TILE, 2 * H), jnp.float32),   # layer-output slab (ping)
            pltpu.VMEM((T, B_TILE, 2 * H), jnp.float32),   # layer-output slab (pong)
        ],
        compiler_params=pltpu.CompilerParams(
            dimension_semantics=("parallel",),
            # per-generation budget: ~100 MiB fits v5e/v6e (128 MiB physical),
            # keep <= ~56 MiB on v7x (64 MiB physical); 64 MiB is safe here.
            vmem_limit_bytes=64 * 1024 * 1024,
        ),
    )(*args)


# -----------------------------------------------------------------------------
# Parameters (PyTorch layout for the reference) + one-time preprocessing
# -----------------------------------------------------------------------------
def init_params(key, *, vocab, emb_dim, hidden, num_layers, num_class, seq_len):
    keys = iter(jax.random.split(key, 64))
    p = {}
    p["embeddings"] = jax.random.normal(next(keys), (vocab, emb_dim), jnp.float32) * 0.1
    num_dirs = 2  # bidirectional=True
    p["lstm"] = []
    for layer in range(num_layers):
        in_dim = emb_dim if layer == 0 else hidden * num_dirs
        dirs = []
        for _ in range(num_dirs):
            dirs.append(dict(
                w_ih=jax.random.normal(next(keys), (4 * hidden, in_dim), jnp.float32) * 0.1,
                w_hh=jax.random.normal(next(keys), (4 * hidden, hidden), jnp.float32) * 0.1,
                b_ih=jax.random.normal(next(keys), (4 * hidden,), jnp.float32) * 0.1,
                b_hh=jax.random.normal(next(keys), (4 * hidden,), jnp.float32) * 0.1,
            ))
        p["lstm"].append(dirs)
    clf_in = seq_len * hidden * num_dirs
    p["w1"] = jax.random.normal(next(keys), (hidden, clf_in), jnp.float32) * 0.05
    p["b1"] = jax.random.normal(next(keys), (hidden,), jnp.float32) * 0.05
    p["w2"] = jax.random.normal(next(keys), (hidden // 4, hidden), jnp.float32) * 0.05
    p["b2"] = jax.random.normal(next(keys), (hidden // 4,), jnp.float32) * 0.05
    p["w3"] = jax.random.normal(next(keys), (num_class, hidden // 4), jnp.float32) * 0.05
    p["b3"] = jax.random.normal(next(keys), (num_class,), jnp.float32) * 0.05
    return p


def prepare_params(p):
    """One-time weight preprocessing (outside the forward): pre-transpose every
    weight to (in, out) layout, pre-combine LSTM biases, store matmul operands
    as bf16, and reorder W1 to (T, 2H, H) for the time-block K-accumulated head."""
    hidden = p["lstm"][0][0]["w_hh"].shape[1]
    seq_len = p["w1"].shape[1] // (2 * hidden)
    prep = {"embeddings": p["embeddings"].astype(jnp.bfloat16), "lstm": []}
    for dirs in p["lstm"]:
        pd = []
        for lp in dirs:
            pd.append(dict(
                w_ih_t=jnp.asarray(lp["w_ih"].T, jnp.bfloat16),
                w_hh_t=jnp.asarray(lp["w_hh"].T, jnp.bfloat16),
                b=(lp["b_ih"] + lp["b_hh"]).reshape(1, -1).astype(jnp.float32),
            ))
        prep["lstm"].append(pd)
    prep["w1_t3"] = jnp.asarray(
        p["w1"].T.reshape(seq_len, 2 * hidden, hidden), jnp.bfloat16)
    prep["b1"] = p["b1"].reshape(1, -1).astype(jnp.float32)
    prep["w2_t"] = jnp.asarray(p["w2"].T, jnp.bfloat16)
    prep["b2"] = p["b2"].reshape(1, -1).astype(jnp.float32)
    prep["w3_t"] = jnp.asarray(p["w3"].T, jnp.bfloat16)
    prep["b3"] = p["b3"].reshape(1, -1).astype(jnp.float32)
    return prep


# -----------------------------------------------------------------------------
# Pure-JAX f32 reference (for correctness check)
# -----------------------------------------------------------------------------
def _lstm_dir_ref(x_bt, w_ih, w_hh, b_ih, b_hh):
    B, T, _ = x_bt.shape
    H = w_hh.shape[1]
    h = jnp.zeros((B, H), jnp.float32)
    c = jnp.zeros((B, H), jnp.float32)
    outs = []
    for t in range(T):
        gates = x_bt[:, t, :] @ w_ih.T + h @ w_hh.T + b_ih + b_hh
        i = jax.nn.sigmoid(gates[:, :H])
        f = jax.nn.sigmoid(gates[:, H:2 * H])
        g = jnp.tanh(gates[:, 2 * H:3 * H])
        o = jax.nn.sigmoid(gates[:, 3 * H:])
        c = f * c + i * g
        h = o * jnp.tanh(c)
        outs.append(h)
    return jnp.stack(outs, axis=1)


def seq_classifier_ref(params, batch):
    x = params["embeddings"][batch]
    for layer_params in params["lstm"]:
        outs = []
        for d, lp in enumerate(layer_params):
            x_dir = x if d == 0 else x[:, ::-1, :]
            h = _lstm_dir_ref(x_dir, lp["w_ih"], lp["w_hh"], lp["b_ih"], lp["b_hh"])
            if d == 1:
                h = h[:, ::-1, :]
            outs.append(h)
        x = jnp.concatenate(outs, axis=-1)
    flat = x.reshape(x.shape[0], -1)
    y = flat @ params["w1"].T + params["b1"]
    y = y @ params["w2"].T + params["b2"]
    return y @ params["w3"].T + params["b3"]


# -----------------------------------------------------------------------------
if __name__ == "__main__":
    VOCAB, EMB_DIM = 50, 16
    HIDDEN, NUM_LAYERS = 32, 2
    SEQ_LEN = 8          # == `input_size` in the PyTorch module (flatten uses T * 2H)
    NUM_CLASS = 4
    BATCH = 2            # production: raise toward 128-256 MXU rows per tile

    key = jax.random.PRNGKey(0)
    k_param, k_ids = jax.random.split(key)
    params = init_params(
        k_param, vocab=VOCAB, emb_dim=EMB_DIM, hidden=HIDDEN,
        num_layers=NUM_LAYERS, num_class=NUM_CLASS, seq_len=SEQ_LEN,
    )
    prepared = prepare_params(params)   # one-time weight prep, not per forward call
    batch = jax.random.randint(k_ids, (BATCH, SEQ_LEN), 0, VOCAB, dtype=jnp.int32)

    fwd = jax.jit(seq_classifier_forward)
    logits = jax.block_until_ready(fwd(prepared, batch))
    ref = jax.block_until_ready(seq_classifier_ref(params, batch))

    assert logits.shape == (BATCH, NUM_CLASS), logits.shape
    # Tolerance loosened vs. the pure-f32 version because MXU operands are bf16.
    assert jnp.allclose(logits, ref, atol=5e-2, rtol=5e-2), (
        f"max abs err {jnp.max(jnp.abs(logits - ref))}"
    )
    print("KERNEL_OK")
</pallas_src>

<mosaic_0001>
module attributes {stable_mosaic.version = 11 : i64} {
  func.func @fused_seq_classifier_kernel(%arg0: i32, %arg1: memref<8x2x16xbf16, #tpu.memory_space<vmem>>, %arg2: memref<16x128xbf16, #tpu.memory_space<vmem>>, %arg3: memref<32x128xbf16, #tpu.memory_space<vmem>>, %arg4: memref<1x128xf32, #tpu.memory_space<vmem>>, %arg5: memref<16x128xbf16, #tpu.memory_space<vmem>>, %arg6: memref<32x128xbf16, #tpu.memory_space<vmem>>, %arg7: memref<1x128xf32, #tpu.memory_space<vmem>>, %arg8: memref<64x128xbf16, #tpu.memory_space<vmem>>, %arg9: memref<32x128xbf16, #tpu.memory_space<vmem>>, %arg10: memref<1x128xf32, #tpu.memory_space<vmem>>, %arg11: memref<64x128xbf16, #tpu.memory_space<vmem>>, %arg12: memref<32x128xbf16, #tpu.memory_space<vmem>>, %arg13: memref<1x128xf32, #tpu.memory_space<vmem>>, %arg14: memref<8x64x32xbf16, #tpu.memory_space<vmem>>, %arg15: memref<1x32xf32, #tpu.memory_space<vmem>>, %arg16: memref<32x8xbf16, #tpu.memory_space<vmem>>, %arg17: memref<1x8xf32, #tpu.memory_space<vmem>>, %arg18: memref<8x4xbf16, #tpu.memory_space<vmem>>, %arg19: memref<1x4xf32, #tpu.memory_space<vmem>>, %arg20: memref<2x4xf32, #tpu.memory_space<vmem>>, %arg21: memref<8x2x128xf32, #tpu.memory_space<vmem>>, %arg22: memref<8x2x128xf32, #tpu.memory_space<vmem>>, %arg23: memref<8x2x64xf32, #tpu.memory_space<vmem>>, %arg24: memref<8x2x64xf32, #tpu.memory_space<vmem>>) attributes {dimension_semantics = [#tpu.dimension_semantics<parallel>], iteration_bounds = array<i64: 1>, scalar_prefetch = 0 : i64, scratch_operands = 4 : i64, tpu.core_type = #tpu.core_type<tc>, window_params = [{transform_indices = @transform_0, window_bounds = array<i64: 8, 2, 16>}, {pipeline_mode = #tpu.pipeline_mode<synchronous>, transform_indices = @transform_1, window_bounds = array<i64: 16, 128>}, {pipeline_mode = #tpu.pipeline_mode<synchronous>, transform_indices = @transform_2, window_bounds = array<i64: 32, 128>}, {pipeline_mode = #tpu.pipeline_mode<synchronous>, transform_indices = @transform_3, window_bounds = array<i64: 1, 128>}, {pipeline_mode = #tpu.pipeline_mode<synchronous>, transform_indices = @transform_4, window_bounds = array<i64: 16, 128>}, {pipeline_mode = #tpu.pipeline_mode<synchronous>, transform_indices = @transform_5, window_bounds = array<i64: 32, 128>}, {pipeline_mode = #tpu.pipeline_mode<synchronous>, transform_indices = @transform_6, window_bounds = array<i64: 1, 128>}, {pipeline_mode = #tpu.pipeline_mode<synchronous>, transform_indices = @transform_7, window_bounds = array<i64: 64, 128>}, {pipeline_mode = #tpu.pipeline_mode<synchronous>, transform_indices = @transform_8, window_bounds = array<i64: 32, 128>}, {pipeline_mode = #tpu.pipeline_mode<synchronous>, transform_indices = @transform_9, window_bounds = array<i64: 1, 128>}, {pipeline_mode = #tpu.pipeline_mode<synchronous>, transform_indices = @transform_10, window_bounds = array<i64: 64, 128>}, {pipeline_mode = #tpu.pipeline_mode<synchronous>, transform_indices = @transform_11, window_bounds = array<i64: 32, 128>}, {pipeline_mode = #tpu.pipeline_mode<synchronous>, transform_indices = @transform_12, window_bounds = array<i64: 1, 128>}, {pipeline_mode = #tpu.pipeline_mode<synchronous>, transform_indices = @transform_13, window_bounds = array<i64: 8, 64, 32>}, {pipeline_mode = #tpu.pipeline_mode<synchronous>, transform_indices = @transform_14, window_bounds = array<i64: 1, 32>}, {pipeline_mode = #tpu.pipeline_mode<synchronous>, transform_indices = @transform_15, window_bounds = array<i64: 32, 8>}, {pipeline_mode = #tpu.pipeline_mode<synchronous>, transform_indices = @transform_16, window_bounds = array<i64: 1, 8>}, {pipeline_mode = #tpu.pipeline_mode<synchronous>, transform_indices = @transform_17, window_bounds = array<i64: 8, 4>}, {pipeline_mode = #tpu.pipeline_mode<synchronous>, transform_indices = @transform_18, window_bounds = array<i64: 1, 4>}, {transform_indices = @transform_19, window_bounds = array<i64: 2, 4>}]} {
    %c0 = arith.constant 0 : index
    %c0_0 = arith.constant 0 : index
    %0 = vector.load %arg2[%c0, %c0_0] : memref<16x128xbf16, #tpu.memory_space<vmem>>, vector<16x128xbf16>
    %c0_1 = arith.constant 0 : index
    %c0_2 = arith.constant 0 : index
    %1 = vector.load %arg4[%c0_1, %c0_2] : memref<1x128xf32, #tpu.memory_space<vmem>>, vector<1x128xf32>
    %c0_3 = arith.constant 0 : index
    %c0_4 = arith.constant 0 : index
    %c0_5 = arith.constant 0 : index
    %2 = vector.load %arg1[%c0_3, %c0_4, %c0_5] : memref<8x2x16xbf16, #tpu.memory_space<vmem>>, vector<1x2x16xbf16>
    %3 = vector.shape_cast %2 : vector<1x2x16xbf16> to vector<2x16xbf16>
    %cst = arith.constant dense<0.000000e+00> : vector<2x128xf32>
    %4 = tpu.matmul %3, %0, %cst {dimension_numbers = #tpu.dot_dimension_numbers<[1], [0], [0], [1], [0, 0, 1, 1], [], []>} : vector<2x16xbf16>, vector<16x128xbf16>, vector<2x128xf32> -> vector<2x128xf32>
    %5 = vector.broadcast %1 : vector<1x128xf32> to vector<2x128xf32>
    %6 = arith.addf %4, %5 : vector<2x128xf32>
    %c0_6 = arith.constant 0 : index
    %c0_7 = arith.constant 0 : index
    %c0_8 = arith.constant 0 : index
    %7 = vector.load %arg21[%c0_6, %c0_7, %c0_8] : memref<8x2x128xf32, #tpu.memory_space<vmem>>, vector<1x2x128xf32>
    %8 = vector.shape_cast %7 : vector<1x2x128xf32> to vector<2x128xf32>
    %9 = vector.shape_cast %6 : vector<2x128xf32> to vector<1x2x128xf32>
    tpu.vector_store %arg21[%c0_6, %c0_7, %c0_8], %9 {strides = array<i32>} : memref<8x2x128xf32, #tpu.memory_space<vmem>>, vector<1x2x128xf32>,
    %c1 = arith.constant 1 : index
    %c0_9 = arith.constant 0 : index
    %c0_10 = arith.constant 0 : index
    %10 = vector.load %arg1[%c1, %c0_9, %c0_10] : memref<8x2x16xbf16, #tpu.memory_space<vmem>>, vector<1x2x16xbf16>
    %11 = vector.shape_cast %10 : vector<1x2x16xbf16> to vector<2x16xbf16>
    %cst_11 = arith.constant dense<0.000000e+00> : vector<2x128xf32>
    %12 = tpu.matmul %11, %0, %cst_11 {dimension_numbers = #tpu.dot_dimension_numbers<[1], [0], [0], [1], [0, 0, 1, 1], [], []>} : vector<2x16xbf16>, vector<16x128xbf16>, vector<2x128xf32> -> vector<2x128xf32>
    %13 = vector.broadcast %1 : vector<1x128xf32> to vector<2x128xf32>
    %14 = arith.addf %12, %13 : vector<2x128xf32>
    %c1_12 = arith.constant 1 : index
    %c0_13 = arith.constant 0 : index
    %c0_14 = arith.constant 0 : index
    %15 = vector.load %arg21[%c1_12, %c0_13, %c0_14] : memref<8x2x128xf32, #tpu.memory_space<vmem>>, vector<1x2x128xf32>
    %16 = vector.shape_cast %15 : vector<1x2x128xf32> to vector<2x128xf32>
    %17 = vector.shape_cast %14 : vector<2x128xf32> to vector<1x2x128xf32>
    tpu.vector_store %arg21[%c1_12, %c0_13, %c0_14], %17 {strides = array<i32>} : memref<8x2x128xf32, #tpu.memory_space<vmem>>, vector<1x2x128xf32>,
    %c2 = arith.constant 2 : index
    %c0_15 = arith.constant 0 : index
    %c0_16 = arith.constant 0 : index
    %18 = vector.load %arg1[%c2, %c0_15, %c0_16] : memref<8x2x16xbf16, #tpu.memory_space<vmem>>, vector<1x2x16xbf16>
    %19 = vector.shape_cast %18 : vector<1x2x16xbf16> to vector<2x16xbf16>
    %cst_17 = arith.constant dense<0.000000e+00> : vector<2x128xf32>
    %20 = tpu.matmul %19, %0, %cst_17 {dimension_numbers = #tpu.dot_dimension_numbers<[1], [0], [0], [1], [0, 0, 1, 1], [], []>} : vector<2x16xbf16>, vector<16x128xbf16>, vector<2x128xf32> -> vector<2x128xf32>
    %21 = vector.broadcast %1 : vector<1x128xf32> to vector<2x128xf32>
    %22 = arith.addf %20, %21 : vector<2x128xf32>
    %c2_18 = arith.constant 2 : index
    %c0_19 = arith.constant 0 : index
    %c0_20 = arith.constant 0 : index
    %23 = vector.load %arg21[%c2_18, %c0_19, %c0_20] : memref<8x2x128xf32, #tpu.memory_space<vmem>>, vector<1x2x128xf32>
    %24 = vector.shape_cast %23 : vector<1x2x128xf32> to vector<2x128xf32>
    %25 = vector.shape_cast %22 : vector<2x128xf32> to vector<1x2x128xf32>
    tpu.vector_store %arg21[%c2_18, %c0_19, %c0_20], %25 {strides = array<i32>} : memref<8x2x128xf32, #tpu.memory_space<vmem>>, vector<1x2x128xf32>,
    %c3 = arith.constant 3 : index
    %c0_21 = arith.constant 0 : index
    %c0_22 = arith.constant 0 : index
    %26 = vector.load %arg1[%c3, %c0_21, %c0_22] : memref<8x2x16xbf16, #tpu.memory_space<vmem>>, vector<1x2x16xbf16>
    %27 = vector.shape_cast %26 : vector<1x2x16xbf16> to vector<2x16xbf16>
    %cst_23 = arith.constant dense<0.000000e+00> : vector<2x128xf32>
    %28 = tpu.matmul %27, %0, %cst_23 {dimension_numbers = #tpu.dot_dimension_numbers<[1], [0], [0], [1], [0, 0, 1, 1], [], []>} : vector<2x16xbf16>, vector<16x128xbf16>, vector<2x128xf32> -> vector<2x128xf32>
    %29 = vector.broadcast %1 : vector<1x128xf32> to vector<2x128xf32>
    %30 = arith.addf %28, %29 : vector<2x128xf32>
    %c3_24 = arith.constant 3 : index
    %c0_25 = arith.constant 0 : index
    %c0_26 = arith.constant 0 : index
    %31 = vector.load %arg21[%c3_24, %c0_25, %c0_26] : memref<8x2x128xf32, #tpu.memory_space<vmem>>, vector<1x2x128xf32>
    %32 = vector.shape_cast %31 : vector<1x2x128xf32> to vector<2x128xf32>
    %33 = vector.shape_cast %30 : vector<2x128xf32> to vector<1x2x128xf32>
    tpu.vector_store %arg21[%c3_24, %c0_25, %c0_26], %33 {strides = array<i32>} : memref<8x2x128xf32, #tpu.memory_space<vmem>>, vector<1x2x128xf32>,
    %c4 = arith.constant 4 : index
    %c0_27 = arith.constant 0 : index
    %c0_28 = arith.constant 0 : index
    %34 = vector.load %arg1[%c4, %c0_27, %c0_28] : memref<8x2x16xbf16, #tpu.memory_space<vmem>>, vector<1x2x16xbf16>
    %35 = vector.shape_cast %34 : vector<1x2x16xbf16> to vector<2x16xbf16>
    %cst_29 = arith.constant dense<0.000000e+00> : vector<2x128xf32>
    %36 = tpu.matmul %35, %0, %cst_29 {dimension_numbers = #tpu.dot_dimension_numbers<[1], [0], [0], [1], [0, 0, 1, 1], [], []>} : vector<2x16xbf16>, vector<16x128xbf16>, vector<2x128xf32> -> vector<2x128xf32>
    %37 = vector.broadcast %1 : vector<1x128xf32> to vector<2x128xf32>
    %38 = arith.addf %36, %37 : vector<2x128xf32>
    %c4_30 = arith.constant 4 : index
    %c0_31 = arith.constant 0 : index
    %c0_32 = arith.constant 0 : index
    %39 = vector.load %arg21[%c4_30, %c0_31, %c0_32] : memref<8x2x128xf32, #tpu.memory_space<vmem>>, vector<1x2x128xf32>
    %40 = vector.shape_cast %39 : vector<1x2x128xf32> to vector<2x128xf32>
    %41 = vector.shape_cast %38 : vector<2x128xf32> to vector<1x2x128xf32>
    tpu.vector_store %arg21[%c4_30, %c0_31, %c0_32], %41 {strides = array<i32>} : memref<8x2x128xf32, #tpu.memory_space<vmem>>, vector<1x2x128xf32>,
    %c5 = arith.constant 5 : index
    %c0_33 = arith.constant 0 : index
    %c0_34 = arith.constant 0 : index
    %42 = vector.load %arg1[%c5, %c0_33, %c0_34] : memref<8x2x16xbf16, #tpu.memory_space<vmem>>, vector<1x2x16xbf16>
    %43 = vector.shape_cast %42 : vector<1x2x16xbf16> to vector<2x16xbf16>
    %cst_35 = arith.constant dense<0.000000e+00> : vector<2x128xf32>
    %44 = tpu.matmul %43, %0, %cst_35 {dimension_numbers = #tpu.dot_dimension_numbers<[1], [0], [0], [1], [0, 0, 1, 1], [], []>} : vector<2x16xbf16>, vector<16x128xbf16>, vector<2x128xf32> -> vector<2x128xf32>
    %45 = vector.broadcast %1 : vector<1x128xf32> to vector<2x128xf32>
    %46 = arith.addf %44, %45 : vector<2x128xf32>
    %c5_36 = arith.constant 5 : index
    %c0_37 = arith.constant 0 : index
    %c0_38 = arith.constant 0 : index
    %47 = vector.load %arg21[%c5_36, %c0_37, %c0_38] : memref<8x2x128xf32, #tpu.memory_space<vmem>>, vector<1x2x128xf32>
    %48 = vector.shape_cast %47 : vector<1x2x128xf32> to vector<2x128xf32>
    %49 = vector.shape_cast %46 : vector<2x128xf32> to vector<1x2x128xf32>
    tpu.vector_store %arg21[%c5_36, %c0_37, %c0_38], %49 {strides = array<i32>} : memref<8x2x128xf32, #tpu.memory_space<vmem>>, vector<1x2x128xf32>,
    %c6 = arith.constant 6 : index
    %c0_39 = arith.constant 0 : index
    %c0_40 = arith.constant 0 : index
    %50 = vector.load %arg1[%c6, %c0_39, %c0_40] : memref<8x2x16xbf16, #tpu.memory_space<vmem>>, vector<1x2x16xbf16>
    %51 = vector.shape_cast %50 : vector<1x2x16xbf16> to vector<2x16xbf16>
    %cst_41 = arith.constant dense<0.000000e+00> : vector<2x128xf32>
    %52 = tpu.matmul %51, %0, %cst_41 {dimension_numbers = #tpu.dot_dimension_numbers<[1], [0], [0], [1], [0, 0, 1, 1], [], []>} : vector<2x16xbf16>, vector<16x128xbf16>, vector<2x128xf32> -> vector<2x128xf32>
    %53 = vector.broadcast %1 : vector<1x128xf32> to vector<2x128xf32>
    %54 = arith.addf %52, %53 : vector<2x128xf32>
    %c6_42 = arith.constant 6 : index
    %c0_43 = arith.constant 0 : index
    %c0_44 = arith.constant 0 : index
    %55 = vector.load %arg21[%c6_42, %c0_43, %c0_44] : memref<8x2x128xf32, #tpu.memory_space<vmem>>, vector<1x2x128xf32>
    %56 = vector.shape_cast %55 : vector<1x2x128xf32> to vector<2x128xf32>
    %57 = vector.shape_cast %54 : vector<2x128xf32> to vector<1x2x128xf32>
    tpu.vector_store %arg21[%c6_42, %c0_43, %c0_44], %57 {strides = array<i32>} : memref<8x2x128xf32, #tpu.memory_space<vmem>>, vector<1x2x128xf32>,
    %c7 = arith.constant 7 : index
    %c0_45 = arith.constant 0 : index
    %c0_46 = arith.constant 0 : index
    %58 = vector.load %arg1[%c7, %c0_45, %c0_46] : memref<8x2x16xbf16, #tpu.memory_space<vmem>>, vector<1x2x16xbf16>
    %59 = vector.shape_cast %58 : vector<1x2x16xbf16> to vector<2x16xbf16>
    %cst_47 = arith.constant dense<0.000000e+00> : vector<2x128xf32>
    %60 = tpu.matmul %59, %0, %cst_47 {dimension_numbers = #tpu.dot_dimension_numbers<[1], [0], [0], [1], [0, 0, 1, 1], [], []>} : vector<2x16xbf16>, vector<16x128xbf16>, vector<2x128xf32> -> vector<2x128xf32>
    %61 = vector.broadcast %1 : vector<1x128xf32> to vector<2x128xf32>
    %62 = arith.addf %60, %61 : vector<2x128xf32>
    %c7_48 = arith.constant 7 : index
    %c0_49 = arith.constant 0 : index
    %c0_50 = arith.constant 0 : index
    %63 = vector.load %arg21[%c7_48, %c0_49, %c0_50] : memref<8x2x128xf32, #tpu.memory_space<vmem>>, vector<1x2x128xf32>
    %64 = vector.shape_cast %63 : vector<1x2x128xf32> to vector<2x128xf32>
    %65 = vector.shape_cast %62 : vector<2x128xf32> to vector<1x2x128xf32>
    tpu.vector_store %arg21[%c7_48, %c0_49, %c0_50], %65 {strides = array<i32>} : memref<8x2x128xf32, #tpu.memory_space<vmem>>, vector<1x2x128xf32>,
    %c0_51 = arith.constant 0 : index
    %c0_52 = arith.constant 0 : index
    %66 = vector.load %arg5[%c0_51, %c0_52] : memref<16x128xbf16, #tpu.memory_space<vmem>>, vector<16x128xbf16>
    %c0_53 = arith.constant 0 : index
    %c0_54 = arith.constant 0 : index
    %67 = vector.load %arg7[%c0_53, %c0_54] : memref<1x128xf32, #tpu.memory_space<vmem>>, vector<1x128xf32>
    %c0_55 = arith.constant 0 : index
    %c0_56 = arith.constant 0 : index
    %c0_57 = arith.constant 0 : index
    %68 = vector.load %arg1[%c0_55, %c0_56, %c0_57] : memref<8x2x16xbf16, #tpu.memory_space<vmem>>, vector<1x2x16xbf16>
    %69 = vector.shape_cast %68 : vector<1x2x16xbf16> to vector<2x16xbf16>
    %cst_58 = arith.constant dense<0.000000e+00> : vector<2x128xf32>
    %70 = tpu.matmul %69, %66, %cst_58 {dimension_numbers = #tpu.dot_dimension_numbers<[1], [0], [0], [1], [0, 0, 1, 1], [], []>} : vector<2x16xbf16>, vector<16x128xbf16>, vector<2x128xf32> -> vector<2x128xf32>
    %71 = vector.broadcast %67 : vector<1x128xf32> to vector<2x128xf32>
    %72 = arith.addf %70, %71 : vector<2x128xf32>
    %c0_59 = arith.constant 0 : index
    %c0_60 = arith.constant 0 : index
    %c0_61 = arith.constant 0 : index
    %73 = vector.load %arg22[%c0_59, %c0_60, %c0_61] : memref<8x2x128xf32, #tpu.memory_space<vmem>>, vector<1x2x128xf32>
    %74 = vector.shape_cast %73 : vector<1x2x128xf32> to vector<2x128xf32>
    %75 = vector.shape_cast %72 : vector<2x128xf32> to vector<1x2x128xf32>
    tpu.vector_store %arg22[%c0_59, %c0_60, %c0_61], %75 {strides = array<i32>} : memref<8x2x128xf32, #tpu.memory_space<vmem>>, vector<1x2x128xf32>,
    %c1_62 = arith.constant 1 : index
    %c0_63 = arith.constant 0 : index
    %c0_64 = arith.constant 0 : index
    %76 = vector.load %arg1[%c1_62, %c0_63, %c0_64] : memref<8x2x16xbf16, #tpu.memory_space<vmem>>, vector<1x2x16xbf16>
    %77 = vector.shape_cast %76 : vector<1x2x16xbf16> to vector<2x16xbf16>
    %cst_65 = arith.constant dense<0.000000e+00> : vector<2x128xf32>
    %78 = tpu.matmul %77, %66, %cst_65 {dimension_numbers = #tpu.dot_dimension_numbers<[1], [0], [0], [1], [0, 0, 1, 1], [], []>} : vector<2x16xbf16>, vector<16x128xbf16>, vector<2x128xf32> -> vector<2x128xf32>
    %79 = vector.broadcast %67 : vector<1x128xf32> to vector<2x128xf32>
    %80 = arith.addf %78, %79 : vector<2x128xf32>
    %c1_66 = arith.constant 1 : index
    %c0_67 = arith.constant 0 : index
    %c0_68 = arith.constant 0 : index
    %81 = vector.load %arg22[%c1_66, %c0_67, %c0_68] : memref<8x2x128xf32, #tpu.memory_space<vmem>>, vector<1x2x128xf32>
    %82 = vector.shape_cast %81 : vector<1x2x128xf32> to vector<2x128xf32>
    %83 = vector.shape_cast %80 : vector<2x128xf32> to vector<1x2x128xf32>
    tpu.vector_store %arg22[%c1_66, %c0_67, %c0_68], %83 {strides = array<i32>} : memref<8x2x128xf32, #tpu.memory_space<vmem>>, vector<1x2x128xf32>,
    %c2_69 = arith.constant 2 : index
    %c0_70 = arith.constant 0 : index
    %c0_71 = arith.constant 0 : index
    %84 = vector.load %arg1[%c2_69, %c0_70, %c0_71] : memref<8x2x16xbf16, #tpu.memory_space<vmem>>, vector<1x2x16xbf16>
    %85 = vector.shape_cast %84 : vector<1x2x16xbf16> to vector<2x16xbf16>
    %cst_72 = arith.constant dense<0.000000e+00> : vector<2x128xf32>
    %86 = tpu.matmul %85, %66, %cst_72 {dimension_numbers = #tpu.dot_dimension_numbers<[1], [0], [0], [1], [0, 0, 1, 1], [], []>} : vector<2x16xbf16>, vector<16x128xbf16>, vector<2x128xf32> -> vector<2x128xf32>
    %87 = vector.broadcast %67 : vector<1x128xf32> to vector<2x128xf32>
    %88 = arith.addf %86, %87 : vector<2x128xf32>
    %c2_73 = arith.constant 2 : index
    %c0_74 = arith.constant 0 : index
    %c0_75 = arith.constant 0 : index
    %89 = vector.load %arg22[%c2_73, %c0_74, %c0_75] : memref<8x2x128xf32, #tpu.memory_space<vmem>>, vector<1x2x128xf32>
    %90 = vector.shape_cast %89 : vector<1x2x128xf32> to vector<2x128xf32>
    %91 = vector.shape_cast %88 : vector<2x128xf32> to vector<1x2x128xf32>
    tpu.vector_store %arg22[%c2_73, %c0_74, %c0_75], %91 {strides = array<i32>} : memref<8x2x128xf32, #tpu.memory_space<vmem>>, vector<1x2x128xf32>,
    %c3_76 = arith.constant 3 : index
    %c0_77 = arith.constant 0 : index
    %c0_78 = arith.constant 0 : index
    %92 = vector.load %arg1[%c3_76, %c0_77, %c0_78] : memref<8x2x16xbf16, #tpu.memory_space<vmem>>, vector<1x2x16xbf16>
    %93 = vector.shape_cast %92 : vector<1x2x16xbf16> to vector<2x16xbf16>
    %cst_79 = arith.constant dense<0.000000e+00> : vector<2x128xf32>
    %94 = tpu.matmul %93, %66, %cst_79 {dimension_numbers = #tpu.dot_dimension_numbers<[1], [0], [0], [1], [0, 0, 1, 1], [], []>} : vector<2x16xbf16>, vector<16x128xbf16>, vector<2x128xf32> -> vector<2x128xf32>
    %95 = vector.broadcast %67 : vector<1x128xf32> to vector<2x128xf32>
    %96 = arith.addf %94, %95 : vector<2x128xf32>
    %c3_80 = arith.constant 3 : index
    %c0_81 = arith.constant 0 : index
    %c0_82 = arith.constant 0 : index
    %97 = vector.load %arg22[%c3_80, %c0_81, %c0_82] : memref<8x2x128xf32, #tpu.memory_space<vmem>>, vector<1x2x128xf32>
    %98 = vector.shape_cast %97 : vector<1x2x128xf32> to vector<2x128xf32>
    %99 = vector.shape_cast %96 : vector<2x128xf32> to vector<1x2x128xf32>
    tpu.vector_store %arg22[%c3_80, %c0_81, %c0_82], %99 {strides = array<i32>} : memref<8x2x128xf32, #tpu.memory_space<vmem>>, vector<1x2x128xf32>,
    %c4_83 = arith.constant 4 : index
    %c0_84 = arith.constant 0 : index
    %c0_85 = arith.constant 0 : index
    %100 = vector.load %arg1[%c4_83, %c0_84, %c0_85] : memref<8x2x16xbf16, #tpu.memory_space<vmem>>, vector<1x2x16xbf16>
    %101 = vector.shape_cast %100 : vector<1x2x16xbf16> to vector<2x16xbf16>
    %cst_86 = arith.constant dense<0.000000e+00> : vector<2x128xf32>
    %102 = tpu.matmul %101, %66, %cst_86 {dimension_numbers = #tpu.dot_dimension_numbers<[1], [0], [0], [1], [0, 0, 1, 1], [], []>} : vector<2x16xbf16>, vector<16x128xbf16>, vector<2x128xf32> -> vector<2x128xf32>
    %103 = vector.broadcast %67 : vector<1x128xf32> to vector<2x128xf32>
    %104 = arith.addf %102, %103 : vector<2x128xf32>
    %c4_87 = arith.constant 4 : index
    %c0_88 = arith.constant 0 : index
    %c0_89 = arith.constant 0 : index
    %105 = vector.load %arg22[%c4_87, %c0_88, %c0_89] : memref<8x2x128xf32, #tpu.memory_space<vmem>>, vector<1x2x128xf32>
    %106 = vector.shape_cast %105 : vector<1x2x128xf32> to vector<2x128xf32>
    %107 = vector.shape_cast %104 : vector<2x128xf32> to vector<1x2x128xf32>
    tpu.vector_store %arg22[%c4_87, %c0_88, %c0_89], %107 {strides = array<i32>} : memref<8x2x128xf32, #tpu.memory_space<vmem>>, vector<1x2x128xf32>,
    %c5_90 = arith.constant 5 : index
    %c0_91 = arith.constant 0 : index
    %c0_92 = arith.constant 0 : index
    %108 = vector.load %arg1[%c5_90, %c0_91, %c0_92] : memref<8x2x16xbf16, #tpu.memory_space<vmem>>, vector<1x2x16xbf16>
    %109 = vector.shape_cast %108 : vector<1x2x16xbf16> to vector<2x16xbf16>
    %cst_93 = arith.constant dense<0.000000e+00> : vector<2x128xf32>
    %110 = tpu.matmul %109, %66, %cst_93 {dimension_numbers = #tpu.dot_dimension_numbers<[1], [0], [0], [1], [0, 0, 1, 1], [], []>} : vector<2x16xbf16>, vector<16x128xbf16>, vector<2x128xf32> -> vector<2x128xf32>
    %111 = vector.broadcast %67 : vector<1x128xf32> to vector<2x128xf32>
    %112 = arith.addf %110, %111 : vector<2x128xf32>
    %c5_94 = arith.constant 5 : index
    %c0_95 = arith.constant 0 : index
    %c0_96 = arith.constant 0 : index
    %113 = vector.load %arg22[%c5_94, %c0_95, %c0_96] : memref<8x2x128xf32, #tpu.memory_space<vmem>>, vector<1x2x128xf32>
    %114 = vector.shape_cast %113 : vector<1x2x128xf32> to vector<2x128xf32>
    %115 = vector.shape_cast %112 : vector<2x128xf32> to vector<1x2x128xf32>
    tpu.vector_store %arg22[%c5_94, %c0_95, %c0_96], %115 {strides = array<i32>} : memref<8x2x128xf32, #tpu.memory_space<vmem>>, vector<1x2x128xf32>,
    %c6_97 = arith.constant 6 : index
    %c0_98 = arith.constant 0 : index
    %c0_99 = arith.constant 0 : index
    %116 = vector.load %arg1[%c6_97, %c0_98, %c0_99] : memref<8x2x16xbf16, #tpu.memory_space<vmem>>, vector<1x2x16xbf16>
    %117 = vector.shape_cast %116 : vector<1x2x16xbf16> to vector<2x16xbf16>
    %cst_100 = arith.constant dense<0.000000e+00> : vector<2x128xf32>
    %118 = tpu.matmul %117, %66, %cst_100 {dimension_numbers = #tpu.dot_dimension_numbers<[1], [0], [0], [1], [0, 0, 1, 1], [], []>} : vector<2x16xbf16>, vector<16x128xbf16>, vector<2x128xf32> -> vector<2x128xf32>
    %119 = vector.broadcast %67 : vector<1x128xf32> to vector<2x128xf32>
    %120 = arith.addf %118, %119 : vector<2x128xf32>
    %c6_101 = arith.constant 6 : index
    %c0_102 = arith.constant 0 : index
    %c0_103 = arith.constant 0 : index
    %121 = vector.load %arg22[%c6_101, %c0_102, %c0_103] : memref<8x2x128xf32, #tpu.memory_space<vmem>>, vector<1x2x128xf32>
    %122 = vector.shape_cast %121 : vector<1x2x128xf32> to vector<2x128xf32>
    %123 = vector.shape_cast %120 : vector<2x128xf32> to vector<1x2x128xf32>
    tpu.vector_store %arg22[%c6_101, %c0_102, %c0_103], %123 {strides = array<i32>} : memref<8x2x128xf32, #tpu.memory_space<vmem>>, vector<1x2x128xf32>,
    %c7_104 = arith.constant 7 : index
    %c0_105 = arith.constant 0 : index
    %c0_106 = arith.constant 0 : index
    %124 = vector.load %arg1[%c7_104, %c0_105, %c0_106] : memref<8x2x16xbf16, #tpu.memory_space<vmem>>, vector<1x2x16xbf16>
    %125 = vector.shape_cast %124 : vector<1x2x16xbf16> to vector<2x16xbf16>
    %cst_107 = arith.constant dense<0.000000e+00> : vector<2x128xf32>
    %126 = tpu.matmul %125, %66, %cst_107 {dimension_numbers = #tpu.dot_dimension_numbers<[1], [0], [0], [1], [0, 0, 1, 1], [], []>} : vector<2x16xbf16>, vector<16x128xbf16>, vector<2x128xf32> -> vector<2x128xf32>
    %127 = vector.broadcast %67 : vector<1x128xf32> to vector<2x128xf32>
    %128 = arith.addf %126, %127 : vector<2x128xf32>
    %c7_108 = arith.constant 7 : index
    %c0_109 = arith.constant 0 : index
    %c0_110 = arith.constant 0 : index
    %129 = vector.load %arg22[%c7_108, %c0_109, %c0_110] : memref<8x2x128xf32, #tpu.memory_space<vmem>>, vector<1x2x128xf32>
    %130 = vector.shape_cast %129 : vector<1x2x128xf32> to vector<2x128xf32>
    %131 = vector.shape_cast %128 : vector<2x128xf32> to vector<1x2x128xf32>
    tpu.vector_store %arg22[%c7_108, %c0_109, %c0_110], %131 {strides = array<i32>} : memref<8x2x128xf32, #tpu.memory_space<vmem>>, vector<1x2x128xf32>,
    %c0_111 = arith.constant 0 : index
    %c0_112 = arith.constant 0 : index
    %132 = vector.load %arg3[%c0_111, %c0_112] : memref<32x128xbf16, #tpu.memory_space<vmem>>, vector<32x128xbf16>
    %c0_113 = arith.constant 0 : index
    %c0_114 = arith.constant 0 : index
    %133 = vector.load %arg6[%c0_113, %c0_114] : memref<32x128xbf16, #tpu.memory_space<vmem>>, vector<32x128xbf16>
    %cst_115 = arith.constant 0.000000e+00 : f32
    %134 = vector.broadcast %cst_115 : f32 to vector<2x32xf32>
    %cst_116 = arith.constant 0.000000e+00 : f32
    %135 = vector.broadcast %cst_116 : f32 to vector<2x32xf32>
    %cst_117 = arith.constant 0.000000e+00 : f32
    %136 = vector.broadcast %cst_117 : f32 to vector<2x32xf32>
    %cst_118 = arith.constant 0.000000e+00 : f32
    %137 = vector.broadcast %cst_118 : f32 to vector<2x32xf32>
    %c0_119 = arith.constant 0 : index
    %c0_120 = arith.constant 0 : index
    %c0_121 = arith.constant 0 : index
    %138 = vector.load %arg21[%c0_119, %c0_120, %c0_121] : memref<8x2x128xf32, #tpu.memory_space<vmem>>, vector<1x2x128xf32>
    %139 = vector.shape_cast %138 : vector<1x2x128xf32> to vector<2x128xf32>
    %140 = arith.truncf %134 : vector<2x32xf32> to vector<2x32xbf16>
    %cst_122 = arith.constant dense<0.000000e+00> : vector<2x128xf32>
    %141 = tpu.matmul %140, %132, %cst_122 {dimension_numbers = #tpu.dot_dimension_numbers<[1], [0], [0], [1], [0, 0, 1, 1], [], []>} : vector<2x32xbf16>, vector<32x128xbf16>, vector<2x128xf32> -> vector<2x128xf32>
    %142 = arith.addf %139, %141 : vector<2x128xf32>
    %143 = vector.extract_strided_slice %142 {offsets = [0, 0], sizes = [2, 64], strides = [1, 1]} : vector<2x128xf32> to vector<2x64xf32>
    %144 = arith.negf %143 : vector<2x64xf32>
    %145 = math.exp %144 : vector<2x64xf32>
    %cst_123 = arith.constant 1.000000e+00 : f32
    %146 = vector.broadcast %cst_123 : f32 to vector<2x64xf32>
    %147 = arith.addf %146, %145 : vector<2x64xf32>
    %148 = arith.divf %146, %147 : vector<2x64xf32>
    %149 = vector.extract_strided_slice %142 {offsets = [0, 96], sizes = [2, 32], strides = [1, 1]} : vector<2x128xf32> to vector<2x32xf32>
    %150 = arith.negf %149 : vector<2x32xf32>
    %151 = math.exp %150 : vector<2x32xf32>
    %cst_124 = arith.constant 1.000000e+00 : f32
    %152 = vector.broadcast %cst_124 : f32 to vector<2x32xf32>
    %153 = arith.addf %152, %151 : vector<2x32xf32>
    %154 = arith.divf %152, %153 : vector<2x32xf32>
    %155 = vector.extract_strided_slice %142 {offsets = [0, 64], sizes = [2, 32], strides = [1, 1]} : vector<2x128xf32> to vector<2x32xf32>
    %156 = math.tanh %155 : vector<2x32xf32>
    %157 = vector.extract_strided_slice %148 {offsets = [0, 32], sizes = [2, 32], strides = [1, 1]} : vector<2x64xf32> to vector<2x32xf32>
    %158 = arith.mulf %157, %135 : vector<2x32xf32>
    %159 = vector.extract_strided_slice %148 {offsets = [0, 0], sizes = [2, 32], strides = [1, 1]} : vector<2x64xf32> to vector<2x32xf32>
    %160 = arith.mulf %159, %156 : vector<2x32xf32>
    %161 = arith.addf %158, %160 : vector<2x32xf32>
    %162 = math.tanh %161 : vector<2x32xf32>
    %163 = arith.mulf %154, %162 : vector<2x32xf32>
    %c7_125 = arith.constant 7 : index
    %c0_126 = arith.constant 0 : index
    %c0_127 = arith.constant 0 : index
    %164 = vector.load %arg22[%c7_125, %c0_126, %c0_127] : memref<8x2x128xf32, #tpu.memory_space<vmem>>, vector<1x2x128xf32>
    %165 = vector.shape_cast %164 : vector<1x2x128xf32> to vector<2x128xf32>
    %166 = arith.truncf %136 : vector<2x32xf32> to vector<2x32xbf16>
    %cst_128 = arith.constant dense<0.000000e+00> : vector<2x128xf32>
    %167 = tpu.matmul %166, %133, %cst_128 {dimension_numbers = #tpu.dot_dimension_numbers<[1], [0], [0], [1], [0, 0, 1, 1], [], []>} : vector<2x32xbf16>, vector<32x128xbf16>, vector<2x128xf32> -> vector<2x128xf32>
    %168 = arith.addf %165, %167 : vector<2x128xf32>
    %169 = vector.extract_strided_slice %168 {offsets = [0, 0], sizes = [2, 64], strides = [1, 1]} : vector<2x128xf32> to vector<2x64xf32>
    %170 = arith.negf %169 : vector<2x64xf32>
    %171 = math.exp %170 : vector<2x64xf32>
    %cst_129 = arith.constant 1.000000e+00 : f32
    %172 = vector.broadcast %cst_129 : f32 to vector<2x64xf32>
    %173 = arith.addf %172, %171 : vector<2x64xf32>
    %174 = arith.divf %172, %173 : vector<2x64xf32>
    %175 = vector.extract_strided_slice %168 {offsets = [0, 96], sizes = [2, 32], strides = [1, 1]} : vector<2x128xf32> to vector<2x32xf32>
    %176 = arith.negf %175 : vector<2x32xf32>
    %177 = math.exp %176 : vector<2x32xf32>
    %cst_130 = arith.constant 1.000000e+00 : f32
    %178 = vector.broadcast %cst_130 : f32 to vector<2x32xf32>
    %179 = arith.addf %178, %177 : vector<2x32xf32>
    %180 = arith.divf %178, %179 : vector<2x32xf32>
    %181 = vector.extract_strided_slice %168 {offsets = [0, 64], sizes = [2, 32], strides = [1, 1]} : vector<2x128xf32> to vector<2x32xf32>
    %182 = math.tanh %181 : vector<2x32xf32>
    %183 = vector.extract_strided_slice %174 {offsets = [0, 32], sizes = [2, 32], strides = [1, 1]} : vector<2x64xf32> to vector<2x32xf32>
    %184 = arith.mulf %183, %137 : vector<2x32xf32>
    %185 = vector.extract_strided_slice %174 {offsets = [0, 0], sizes = [2, 32], strides = [1, 1]} : vector<2x64xf32> to vector<2x32xf32>
    %186 = arith.mulf %185, %182 : vector<2x32xf32>
    %187 = arith.addf %184, %186 : vector<2x32xf32>
    %188 = math.tanh %187 : vector<2x32xf32>
    %189 = arith.mulf %180, %188 : vector<2x32xf32>
    %c0_131 = arith.constant 0 : index
    %c0_132 = arith.constant 0 : index
    %c0_133 = arith.constant 0 : index
    %190 = vector.load %arg23[%c0_131, %c0_132, %c0_133] : memref<8x2x64xf32, #tpu.memory_space<vmem>>, vector<1x2x32xf32>
    %191 = vector.shape_cast %190 : vector<1x2x32xf32> to vector<2x32xf32>
    %192 = vector.shape_cast %163 : vector<2x32xf32> to vector<1x2x32xf32>
    tpu.vector_store %arg23[%c0_131, %c0_132, %c0_133], %192 {strides = array<i32>} : memref<8x2x64xf32, #tpu.memory_space<vmem>>, vector<1x2x32xf32>,
    %c7_134 = arith.constant 7 : index
    %c0_135 = arith.constant 0 : index
    %c32 = arith.constant 32 : index
    %193 = vector.load %arg23[%c7_134, %c0_135, %c32] : memref<8x2x64xf32, #tpu.memory_space<vmem>>, vector<1x2x32xf32>
    %194 = vector.shape_cast %193 : vector<1x2x32xf32> to vector<2x32xf32>
    %195 = vector.shape_cast %189 : vector<2x32xf32> to vector<1x2x32xf32>
    tpu.vector_store %arg23[%c7_134, %c0_135, %c32], %195 {strides = array<i32>} : memref<8x2x64xf32, #tpu.memory_space<vmem>>, vector<1x2x32xf32>,
    %c1_136 = arith.constant 1 : index
    %c0_137 = arith.constant 0 : index
    %c0_138 = arith.constant 0 : index
    %196 = vector.load %arg21[%c1_136, %c0_137, %c0_138] : memref<8x2x128xf32, #tpu.memory_space<vmem>>, vector<1x2x128xf32>
    %197 = vector.shape_cast %196 : vector<1x2x128xf32> to vector<2x128xf32>
    %198 = arith.truncf %163 : vector<2x32xf32> to vector<2x32xbf16>
    %cst_139 = arith.constant dense<0.000000e+00> : vector<2x128xf32>
    %199 = tpu.matmul %198, %132, %cst_139 {dimension_numbers = #tpu.dot_dimension_numbers<[1], [0], [0], [1], [0, 0, 1, 1], [], []>} : vector<2x32xbf16>, vector<32x128xbf16>, vector<2x128xf32> -> vector<2x128xf32>
    %200 = arith.addf %197, %199 : vector<2x128xf32>
    %201 = vector.extract_strided_slice %200 {offsets = [0, 0], sizes = [2, 64], strides = [1, 1]} : vector<2x128xf32> to vector<2x64xf32>
    %202 = arith.negf %201 : vector<2x64xf32>
    %203 = math.exp %202 : vector<2x64xf32>
    %cst_140 = arith.constant 1.000000e+00 : f32
    %204 = vector.broadcast %cst_140 : f32 to vector<2x64xf32>
    %205 = arith.addf %204, %203 : vector<2x64xf32>
    %206 = arith.divf %204, %205 : vector<2x64xf32>
    %207 = vector.extract_strided_slice %200 {offsets = [0, 96], sizes = [2, 32], strides = [1, 1]} : vector<2x128xf32> to vector<2x32xf32>
    %208 = arith.negf %207 : vector<2x32xf32>
    %209 = math.exp %208 : vector<2x32xf32>
    %cst_141 = arith.constant 1.000000e+00 : f32
    %210 = vector.broadcast %cst_141 : f32 to vector<2x32xf32>
    %211 = arith.addf %210, %209 : vector<2x32xf32>
    %212 = arith.divf %210, %211 : vector<2x32xf32>
    %213 = vector.extract_strided_slice %200 {offsets = [0, 64], sizes = [2, 32], strides = [1, 1]} : vector<2x128xf32> to vector<2x32xf32>
    %214 = math.tanh %213 : vector<2x32xf32>
    %215 = vector.extract_strided_slice %206 {offsets = [0, 32], sizes = [2, 32], strides = [1, 1]} : vector<2x64xf32> to vector<2x32xf32>
    %216 = arith.mulf %215, %161 : vector<2x32xf32>
    %217 = vector.extract_strided_slice %206 {offsets = [0, 0], sizes = [2, 32], strides = [1, 1]} : vector<2x64xf32> to vector<2x32xf32>
    %218 = arith.mulf %217, %214 : vector<2x32xf32>
    %219 = arith.addf %216, %218 : vector<2x32xf32>
    %220 = math.tanh %219 : vector<2x32xf32>
    %221 = arith.mulf %212, %220 : vector<2x32xf32>
    %c6_142 = arith.constant 6 : index
    %c0_143 = arith.constant 0 : index
    %c0_144 = arith.constant 0 : index
    %222 = vector.load %arg22[%c6_142, %c0_143, %c0_144] : memref<8x2x128xf32, #tpu.memory_space<vmem>>, vector<1x2x128xf32>
    %223 = vector.shape_cast %222 : vector<1x2x128xf32> to vector<2x128xf32>
    %224 = arith.truncf %189 : vector<2x32xf32> to vector<2x32xbf16>
    %cst_145 = arith.constant dense<0.000000e+00> : vector<2x128xf32>
    %225 = tpu.matmul %224, %133, %cst_145 {dimension_numbers = #tpu.dot_dimension_numbers<[1], [0], [0], [1], [0, 0, 1, 1], [], []>} : vector<2x32xbf16>, vector<32x128xbf16>, vector<2x128xf32> -> vector<2x128xf32>
    %226 = arith.addf %223, %225 : vector<2x128xf32>
    %227 = vector.extract_strided_slice %226 {offsets = [0, 0], sizes = [2, 64], strides = [1, 1]} : vector<2x128xf32> to vector<2x64xf32>
    %228 = arith.negf %227 : vector<2x64xf32>
    %229 = math.exp %228 : vector<2x64xf32>
    %cst_146 = arith.constant 1.000000e+00 : f32
    %230 = vector.broadcast %cst_146 : f32 to vector<2x64xf32>
    %231 = arith.addf %230, %229 : vector<2x64xf32>
    %232 = arith.divf %230, %231 : vector<2x64xf32>
    %233 = vector.extract_strided_slice %226 {offsets = [0, 96], sizes = [2, 32], strides = [1, 1]} : vector<2x128xf32> to vector<2x32xf32>
    %234 = arith.negf %233 : vector<2x32xf32>
    %235 = math.exp %234 : vector<2x32xf32>
    %cst_147 = arith.constant 1.000000e+00 : f32
    %236 = vector.broadcast %cst_147 : f32 to vector<2x32xf32>
    %237 = arith.addf %236, %235 : vector<2x32xf32>
    %238 = arith.divf %236, %237 : vector<2x32xf32>
    %239 = vector.extract_strided_slice %226 {offsets = [0, 64], sizes = [2, 32], strides = [1, 1]} : vector<2x128xf32> to vector<2x32xf32>
    %240 = math.tanh %239 : vector<2x32xf32>
    %241 = vector.extract_strided_slice %232 {offsets = [0, 32], sizes = [2, 32], strides = [1, 1]} : vector<2x64xf32> to vector<2x32xf32>
    %242 = arith.mulf %241, %187 : vector<2x32xf32>
    %243 = vector.extract_strided_slice %232 {offsets = [0, 0], sizes = [2, 32], strides = [1, 1]} : vector<2x64xf32> to vector<2x32xf32>
    %244 = arith.mulf %243, %240 : vector<2x32xf32>
    %245 = arith.addf %242, %244 : vector<2x32xf32>
    %246 = math.tanh %245 : vector<2x32xf32>
    %247 = arith.mulf %238, %246 : vector<2x32xf32>
    %c1_148 = arith.constant 1 : index
    %c0_149 = arith.constant 0 : index
    %c0_150 = arith.constant 0 : index
    %248 = vector.load %arg23[%c1_148, %c0_149, %c0_150] : memref<8x2x64xf32, #tpu.memory_space<vmem>>, vector<1x2x32xf32>
    %249 = vector.shape_cast %248 : vector<1x2x32xf32> to vector<2x32xf32>
    %250 = vector.shape_cast %221 : vector<2x32xf32> to vector<1x2x32xf32>
    tpu.vector_store %arg23[%c1_148, %c0_149, %c0_150], %250 {strides = array<i32>} : memref<8x2x64xf32, #tpu.memory_space<vmem>>, vector<1x2x32xf32>,
    %c6_151 = arith.constant 6 : index
    %c0_152 = arith.constant 0 : index
    %c32_153 = arith.constant 32 : index
    %251 = vector.load %arg23[%c6_151, %c0_152, %c32_153] : memref<8x2x64xf32, #tpu.memory_space<vmem>>, vector<1x2x32xf32>
    %252 = vector.shape_cast %251 : vector<1x2x32xf32> to vector<2x32xf32>
    %253 = vector.shape_cast %247 : vector<2x32xf32> to vector<1x2x32xf32>
    tpu.vector_store %arg23[%c6_151, %c0_152, %c32_153], %253 {strides = array<i32>} : memref<8x2x64xf32, #tpu.memory_space<vmem>>, vector<1x2x32xf32>,
    %c2_154 = arith.constant 2 : index
    %c0_155 = arith.constant 0 : index
    %c0_156 = arith.constant 0 : index
    %254 = vector.load %arg21[%c2_154, %c0_155, %c0_156] : memref<8x2x128xf32, #tpu.memory_space<vmem>>, vector<1x2x128xf32>
    %255 = vector.shape_cast %254 : vector<1x2x128xf32> to vector<2x128xf32>
    %256 = arith.truncf %221 : vector<2x32xf32> to vector<2x32xbf16>
    %cst_157 = arith.constant dense<0.000000e+00> : vector<2x128xf32>
    %257 = tpu.matmul %256, %132, %cst_157 {dimension_numbers = #tpu.dot_dimension_numbers<[1], [0], [0], [1], [0, 0, 1, 1], [], []>} : vector<2x32xbf16>, vector<32x128xbf16>, vector<2x128xf32> -> vector<2x128xf32>
    %258 = arith.addf %255, %257 : vector<2x128xf32>
    %259 = vector.extract_strided_slice %258 {offsets = [0, 0], sizes = [2, 64], strides = [1, 1]} : vector<2x128xf32> to vector<2x64xf32>
    %260 = arith.negf %259 : vector<2x64xf32>
    %261 = math.exp %260 : vector<2x64xf32>
    %cst_158 = arith.constant 1.000000e+00 : f32
    %262 = vector.broadcast %cst_158 : f32 to vector<2x64xf32>
    %263 = arith.addf %262, %261 : vector<2x64xf32>
    %264 = arith.divf %262, %263 : vector<2x64xf32>
    %265 = vector.extract_strided_slice %258 {offsets = [0, 96], sizes = [2, 32], strides = [1, 1]} : vector<2x128xf32> to vector<2x32xf32>
    %266 = arith.negf %265 : vector<2x32xf32>
    %267 = math.exp %266 : vector<2x32xf32>
    %cst_159 = arith.constant 1.000000e+00 : f32
    %268 = vector.broadcast %cst_159 : f32 to vector<2x32xf32>
    %269 = arith.addf %268, %267 : vector<2x32xf32>
    %270 = arith.divf %268, %269 : vector<2x32xf32>
    %271 = vector.extract_strided_slice %258 {offsets = [0, 64], sizes = [2, 32], strides = [1, 1]} : vector<2x128xf32> to vector<2x32xf32>
    %272 = math.tanh %271 : vector<2x32xf32>
    %273 = vector.extract_strided_slice %264 {offsets = [0, 32], sizes = [2, 32], strides = [1, 1]} : vector<2x64xf32> to vector<2x32xf32>
    %274 = arith.mulf %273, %219 : vector<2x32xf32>
    %275 = vector.extract_strided_slice %264 {offsets = [0, 0], sizes = [2, 32], strides = [1, 1]} : vector<2x64xf32> to vector<2x32xf32>
    %276 = arith.mulf %275, %272 : vector<2x32xf32>
    %277 = arith.addf %274, %276 : vector<2x32xf32>
    %278 = math.tanh %277 : vector<2x32xf32>
    %279 = arith.mulf %270, %278 : vector<2x32xf32>
    %c5_160 = arith.constant 5 : index
    %c0_161 = arith.constant 0 : index
    %c0_162 = arith.constant 0 : index
    %280 = vector.load %arg22[%c5_160, %c0_161, %c0_162] : memref<8x2x128xf32, #tpu.memory_space<vmem>>, vector<1x2x128xf32>
    %281 = vector.shape_cast %280 : vector<1x2x128xf32> to vector<2x128xf32>
    %282 = arith.truncf %247 : vector<2x32xf32> to vector<2x32xbf16>
    %cst_163 = arith.constant dense<0.000000e+00> : vector<2x128xf32>
    %283 = tpu.matmul %282, %133, %cst_163 {dimension_numbers = #tpu.dot_dimension_numbers<[1], [0], [0], [1], [0, 0, 1, 1], [], []>} : vector<2x32xbf16>, vector<32x128xbf16>, vector<2x128xf32> -> vector<2x128xf32>
    %284 = arith.addf %281, %283 : vector<2x128xf32>
    %285 = vector.extract_strided_slice %284 {offsets = [0, 0], sizes = [2, 64], strides = [1, 1]} : vector<2x128xf32> to vector<2x64xf32>
    %286 = arith.negf %285 : vector<2x64xf32>
    %287 = math.exp %286 : vector<2x64xf32>
    %cst_164 = arith.constant 1.000000e+00 : f32
    %288 = vector.broadcast %cst_164 : f32 to vector<2x64xf32>
    %289 = arith.addf %288, %287 : vector<2x64xf32>
    %290 = arith.divf %288, %289 : vector<2x64xf32>
    %291 = vector.extract_strided_slice %284 {offsets = [0, 96], sizes = [2, 32], strides = [1, 1]} : vector<2x128xf32> to vector<2x32xf32>
    %292 = arith.negf %291 : vector<2x32xf32>
    %293 = math.exp %292 : vector<2x32xf32>
    %cst_165 = arith.constant 1.000000e+00 : f32
    %294 = vector.broadcast %cst_165 : f32 to vector<2x32xf32>
    %295 = arith.addf %294, %293 : vector<2x32xf32>
    %296 = arith.divf %294, %295 : vector<2x32xf32>
    %297 = vector.extract_strided_slice %284 {offsets = [0, 64], sizes = [2, 32], strides = [1, 1]} : vector<2x128xf32> to vector<2x32xf32>
    %298 = math.tanh %297 : vector<2x32xf32>
    %299 = vector.extract_strided_slice %290 {offsets = [0, 32], sizes = [2, 32], strides = [1, 1]} : vector<2x64xf32> to vector<2x32xf32>
    %300 = arith.mulf %299, %245 : vector<2x32xf32>
    %301 = vector.extract_strided_slice %290 {offsets = [0, 0], sizes = [2, 32], strides = [1, 1]} : vector<2x64xf32> to vector<2x32xf32>
    %302 = arith.mulf %301, %298 : vector<2x32xf32>
    %303 = arith.addf %300, %302 : vector<2x32xf32>
    %304 = math.tanh %303 : vector<2x32xf32>
    %305 = arith.mulf %296, %304 : vector<2x32xf32>
    %c2_166 = arith.constant 2 : index
    %c0_167 = arith.constant 0 : index
    %c0_168 = arith.constant 0 : index
    %306 = vector.load %arg23[%c2_166, %c0_167, %c0_168] : memref<8x2x64xf32, #tpu.memory_space<vmem>>, vector<1x2x32xf32>
    %307 = vector.shape_cast %306 : vector<1x2x32xf32> to vector<2x32xf32>
    %308 = vector.shape_cast %279 : vector<2x32xf32> to vector<1x2x32xf32>
    tpu.vector_store %arg23[%c2_166, %c0_167, %c0_168], %308 {strides = array<i32>} : memref<8x2x64xf32, #tpu.memory_space<vmem>>, vector<1x2x32xf32>,
    %c5_169 = arith.constant 5 : index
    %c0_170 = arith.constant 0 : index
    %c32_171 = arith.constant 32 : index
    %309 = vector.load %arg23[%c5_169, %c0_170, %c32_171] : memref<8x2x64xf32, #tpu.memory_space<vmem>>, vector<1x2x32xf32>
    %310 = vector.shape_cast %309 : vector<1x2x32xf32> to vector<2x32xf32>
    %311 = vector.shape_cast %305 : vector<2x32xf32> to vector<1x2x32xf32>
    tpu.vector_store %arg23[%c5_169, %c0_170, %c32_171], %311 {strides = array<i32>} : memref<8x2x64xf32, #tpu.memory_space<vmem>>, vector<1x2x32xf32>,
    %c3_172 = arith.constant 3 : index
    %c0_173 = arith.constant 0 : index
    %c0_174 = arith.constant 0 : index
    %312 = vector.load %arg21[%c3_172, %c0_173, %c0_174] : memref<8x2x128xf32, #tpu.memory_space<vmem>>, vector<1x2x128xf32>
    %313 = vector.shape_cast %312 : vector<1x2x128xf32> to vector<2x128xf32>
    %314 = arith.truncf %279 : vector<2x32xf32> to vector<2x32xbf16>
    %cst_175 = arith.constant dense<0.000000e+00> : vector<2x128xf32>
    %315 = tpu.matmul %314, %132, %cst_175 {dimension_numbers = #tpu.dot_dimension_numbers<[1], [0], [0], [1], [0, 0, 1, 1], [], []>} : vector<2x32xbf16>, vector<32x128xbf16>, vector<2x128xf32> -> vector<2x128xf32>
    %316 = arith.addf %313, %315 : vector<2x128xf32>
    %317 = vector.extract_strided_slice %316 {offsets = [0, 0], sizes = [2, 64], strides = [1, 1]} : vector<2x128xf32> to vector<2x64xf32>
    %318 = arith.negf %317 : vector<2x64xf32>
    %319 = math.exp %318 : vector<2x64xf32>
    %cst_176 = arith.constant 1.000000e+00 : f32
    %320 = vector.broadcast %cst_176 : f32 to vector<2x64xf32>
    %321 = arith.addf %320, %319 : vector<2x64xf32>
    %322 = arith.divf %320, %321 : vector<2x64xf32>
    %323 = vector.extract_strided_slice %316 {offsets = [0, 96], sizes = [2, 32], strides = [1, 1]} : vector<2x128xf32> to vector<2x32xf32>
    %324 = arith.negf %323 : vector<2x32xf32>
    %325 = math.exp %324 : vector<2x32xf32>
    %cst_177 = arith.constant 1.000000e+00 : f32
    %326 = vector.broadcast %cst_177 : f32 to vector<2x32xf32>
    %327 = arith.addf %326, %325 : vector<2x32xf32>
    %328 = arith.divf %326, %327 : vector<2x32xf32>
    %329 = vector.extract_strided_slice %316 {offsets = [0, 64], sizes = [2, 32], strides = [1, 1]} : vector<2x128xf32> to vector<2x32xf32>
    %330 = math.tanh %329 : vector<2x32xf32>
    %331 = vector.extract_strided_slice %322 {offsets = [0, 32], sizes = [2, 32], strides = [1, 1]} : vector<2x64xf32> to vector<2x32xf32>
    %332 = arith.mulf %331, %277 : vector<2x32xf32>
    %333 = vector.extract_strided_slice %322 {offsets = [0, 0], sizes = [2, 32], strides = [1, 1]} : vector<2x64xf32> to vector<2x32xf32>
    %334 = arith.mulf %333, %330 : vector<2x32xf32>
    %335 = arith.addf %332, %334 : vector<2x32xf32>
    %336 = math.tanh %335 : vector<2x32xf32>
    %337 = arith.mulf %328, %336 : vector<2x32xf32>
    %c4_178 = arith.constant 4 : index
    %c0_179 = arith.constant 0 : index
    %c0_180 = arith.constant 0 : index
    %338 = vector.load %arg22[%c4_178, %c0_179, %c0_180] : memref<8x2x128xf32, #tpu.memory_space<vmem>>, vector<1x2x128xf32>
    %339 = vector.shape_cast %338 : vector<1x2x128xf32> to vector<2x128xf32>
    %340 = arith.truncf %305 : vector<2x32xf32> to vector<2x32xbf16>
    %cst_181 = arith.constant dense<0.000000e+00> : vector<2x128xf32>
    %341 = tpu.matmul %340, %133, %cst_181 {dimension_numbers = #tpu.dot_dimension_numbers<[1], [0], [0], [1], [0, 0, 1, 1], [], []>} : vector<2x32xbf16>, vector<32x128xbf16>, vector<2x128xf32> -> vector<2x128xf32>
    %342 = arith.addf %339, %341 : vector<2x128xf32>
    %343 = vector.extract_strided_slice %342 {offsets = [0, 0], sizes = [2, 64], strides = [1, 1]} : vector<2x128xf32> to vector<2x64xf32>
    %344 = arith.negf %343 : vector<2x64xf32>
    %345 = math.exp %344 : vector<2x64xf32>
    %cst_182 = arith.constant 1.000000e+00 : f32
    %346 = vector.broadcast %cst_182 : f32 to vector<2x64xf32>
    %347 = arith.addf %346, %345 : vector<2x64xf32>
    %348 = arith.divf %346, %347 : vector<2x64xf32>
    %349 = vector.extract_strided_slice %342 {offsets = [0, 96], sizes = [2, 32], strides = [1, 1]} : vector<2x128xf32> to vector<2x32xf32>
    %350 = arith.negf %349 : vector<2x32xf32>
    %351 = math.exp %350 : vector<2x32xf32>
    %cst_183 = arith.constant 1.000000e+00 : f32
    %352 = vector.broadcast %cst_183 : f32 to vector<2x32xf32>
    %353 = arith.addf %352, %351 : vector<2x32xf32>
    %354 = arith.divf %352, %353 : vector<2x32xf32>
    %355 = vector.extract_strided_slice %342 {offsets = [0, 64], sizes = [2, 32], strides = [1, 1]} : vector<2x128xf32> to vector<2x32xf32>
    %356 = math.tanh %355 : vector<2x32xf32>
    %357 = vector.extract_strided_slice %348 {offsets = [0, 32], sizes = [2, 32], strides = [1, 1]} : vector<2x64xf32> to vector<2x32xf32>
    %358 = arith.mulf %357, %303 : vector<2x32xf32>
    %359 = vector.extract_strided_slice %348 {offsets = [0, 0], sizes = [2, 32], strides = [1, 1]} : vector<2x64xf32> to vector<2x32xf32>
    %360 = arith.mulf %359, %356 : vector<2x32xf32>
    %361 = arith.addf %358, %360 : vector<2x32xf32>
    %362 = math.tanh %361 : vector<2x32xf32>
    %363 = arith.mulf %354, %362 : vector<2x32xf32>
    %c3_184 = arith.constant 3 : index
    %c0_185 = arith.constant 0 : index
    %c0_186 = arith.constant 0 : index
    %364 = vector.load %arg23[%c3_184, %c0_185, %c0_186] : memref<8x2x64xf32, #tpu.memory_space<vmem>>, vector<1x2x32xf32>
    %365 = vector.shape_cast %364 : vector<1x2x32xf32> to vector<2x32xf32>
    %366 = vector.shape_cast %337 : vector<2x32xf32> to vector<1x2x32xf32>
    tpu.vector_store %arg23[%c3_184, %c0_185, %c0_186], %366 {strides = array<i32>} : memref<8x2x64xf32, #tpu.memory_space<vmem>>, vector<1x2x32xf32>,
    %c4_187 = arith.constant 4 : index
    %c0_188 = arith.constant 0 : index
    %c32_189 = arith.constant 32 : index
    %367 = vector.load %arg23[%c4_187, %c0_188, %c32_189] : memref<8x2x64xf32, #tpu.memory_space<vmem>>, vector<1x2x32xf32>
    %368 = vector.shape_cast %367 : vector<1x2x32xf32> to vector<2x32xf32>
    %369 = vector.shape_cast %363 : vector<2x32xf32> to vector<1x2x32xf32>
    tpu.vector_store %arg23[%c4_187, %c0_188, %c32_189], %369 {strides = array<i32>} : memref<8x2x64xf32, #tpu.memory_space<vmem>>, vector<1x2x32xf32>,
    %c4_190 = arith.constant 4 : index
    %c0_191 = arith.constant 0 : index
    %c0_192 = arith.constant 0 : index
    %370 = vector.load %arg21[%c4_190, %c0_191, %c0_192] : memref<8x2x128xf32, #tpu.memory_space<vmem>>, vector<1x2x128xf32>
    %371 = vector.shape_cast %370 : vector<1x2x128xf32> to vector<2x128xf32>
    %372 = arith.truncf %337 : vector<2x32xf32> to vector<2x32xbf16>
    %cst_193 = arith.constant dense<0.000000e+00> : vector<2x128xf32>
    %373 = tpu.matmul %372, %132, %cst_193 {dimension_numbers = #tpu.dot_dimension_numbers<[1], [0], [0], [1], [0, 0, 1, 1], [], []>} : vector<2x32xbf16>, vector<32x128xbf16>, vector<2x128xf32> -> vector<2x128xf32>
    %374 = arith.addf %371, %373 : vector<2x128xf32>
    %375 = vector.extract_strided_slice %374 {offsets = [0, 0], sizes = [2, 64], strides = [1, 1]} : vector<2x128xf32> to vector<2x64xf32>
    %376 = arith.negf %375 : vector<2x64xf32>
    %377 = math.exp %376 : vector<2x64xf32>
    %cst_194 = arith.constant 1.000000e+00 : f32
    %378 = vector.broadcast %cst_194 : f32 to vector<2x64xf32>
    %379 = arith.addf %378, %377 : vector<2x64xf32>
    %380 = arith.divf %378, %379 : vector<2x64xf32>
    %381 = vector.extract_strided_slice %374 {offsets = [0, 96], sizes = [2, 32], strides = [1, 1]} : vector<2x128xf32> to vector<2x32xf32>
    %382 = arith.negf %381 : vector<2x32xf32>
    %383 = math.exp %382 : vector<2x32xf32>
    %cst_195 = arith.constant 1.000000e+00 : f32
    %384 = vector.broadcast %cst_195 : f32 to vector<2x32xf32>
    %385 = arith.addf %384, %383 : vector<2x32xf32>
    %386 = arith.divf %384, %385 : vector<2x32xf32>
    %387 = vector.extract_strided_slice %374 {offsets = [0, 64], sizes = [2, 32], strides = [1, 1]} : vector<2x128xf32> to vector<2x32xf32>
    %388 = math.tanh %387 : vector<2x32xf32>
    %389 = vector.extract_strided_slice %380 {offsets = [0, 32], sizes = [2, 32], strides = [1, 1]} : vector<2x64xf32> to vector<2x32xf32>
    %390 = arith.mulf %389, %335 : vector<2x32xf32>
    %391 = vector.extract_strided_slice %380 {offsets = [0, 0], sizes = [2, 32], strides = [1, 1]} : vector<2x64xf32> to vector<2x32xf32>
    %392 = arith.mulf %391, %388 : vector<2x32xf32>
    %393 = arith.addf %390, %392 : vector<2x32xf32>
    %394 = math.tanh %393 : vector<2x32xf32>
    %395 = arith.mulf %386, %394 : vector<2x32xf32>
    %c3_196 = arith.constant 3 : index
    %c0_197 = arith.constant 0 : index
    %c0_198 = arith.constant 0 : index
    %396 = vector.load %arg22[%c3_196, %c0_197, %c0_198] : memref<8x2x128xf32, #tpu.memory_space<vmem>>, vector<1x2x128xf32>
    %397 = vector.shape_cast %396 : vector<1x2x128xf32> to vector<2x128xf32>
    %398 = arith.truncf %363 : vector<2x32xf32> to vector<2x32xbf16>
    %cst_199 = arith.constant dense<0.000000e+00> : vector<2x128xf32>
    %399 = tpu.matmul %398, %133, %cst_199 {dimension_numbers = #tpu.dot_dimension_numbers<[1], [0], [0], [1], [0, 0, 1, 1], [], []>} : vector<2x32xbf16>, vector<32x128xbf16>, vector<2x128xf32> -> vector<2x128xf32>
    %400 = arith.addf %397, %399 : vector<2x128xf32>
    %401 = vector.extract_strided_slice %400 {offsets = [0, 0], sizes = [2, 64], strides = [1, 1]} : vector<2x128xf32> to vector<2x64xf32>
    %402 = arith.negf %401 : vector<2x64xf32>
    %403 = math.exp %402 : vector<2x64xf32>
    %cst_200 = arith.constant 1.000000e+00 : f32
    %404 = vector.broadcast %cst_200 : f32 to vector<2x64xf32>
    %405 = arith.addf %404, %403 : vector<2x64xf32>
    %406 = arith.divf %404, %405 : vector<2x64xf32>
    %407 = vector.extract_strided_slice %400 {offsets = [0, 96], sizes = [2, 32], strides = [1, 1]} : vector<2x128xf32> to vector<2x32xf32>
    %408 = arith.negf %407 : vector<2x32xf32>
    %409 = math.exp %408 : vector<2x32xf32>
    %cst_201 = arith.constant 1.000000e+00 : f32
    %410 = vector.broadcast %cst_201 : f32 to vector<2x32xf32>
    %411 = arith.addf %410, %409 : vector<2x32xf32>
    %412 = arith.divf %410, %411 : vector<2x32xf32>
    %413 = vector.extract_strided_slice %400 {offsets = [0, 64], sizes = [2, 32], strides = [1, 1]} : vector<2x128xf32> to vector<2x32xf32>
    %414 = math.tanh %413 : vector<2x32xf32>
    %415 = vector.extract_strided_slice %406 {offsets = [0, 32], sizes = [2, 32], strides = [1, 1]} : vector<2x64xf32> to vector<2x32xf32>
    %416 = arith.mulf %415, %361 : vector<2x32xf32>
    %417 = vector.extract_strided_slice %406 {offsets = [0, 0], sizes = [2, 32], strides = [1, 1]} : vector<2x64xf32> to vector<2x32xf32>
    %418 = arith.mulf %417, %414 : vector<2x32xf32>
    %419 = arith.addf %416, %418 : vector<2x32xf32>
    %420 = math.tanh %419 : vector<2x32xf32>
    %421 = arith.mulf %412, %420 : vector<2x32xf32>
    %c4_202 = arith.constant 4 : index
    %c0_203 = arith.constant 0 : index
    %c0_204 = arith.constant 0 : index
    %422 = vector.load %arg23[%c4_202, %c0_203, %c0_204] : memref<8x2x64xf32, #tpu.memory_space<vmem>>, vector<1x2x32xf32>
    %423 = vector.shape_cast %422 : vector<1x2x32xf32> to vector<2x32xf32>
    %424 = vector.shape_cast %395 : vector<2x32xf32> to vector<1x2x32xf32>
    tpu.vector_store %arg23[%c4_202, %c0_203, %c0_204], %424 {strides = array<i32>} : memref<8x2x64xf32, #tpu.memory_space<vmem>>, vector<1x2x32xf32>,
    %c3_205 = arith.constant 3 : index
    %c0_206 = arith.constant 0 : index
    %c32_207 = arith.constant 32 : index
    %425 = vector.load %arg23[%c3_205, %c0_206, %c32_207] : memref<8x2x64xf32, #tpu.memory_space<vmem>>, vector<1x2x32xf32>
    %426 = vector.shape_cast %425 : vector<1x2x32xf32> to vector<2x32xf32>
    %427 = vector.shape_cast %421 : vector<2x32xf32> to vector<1x2x32xf32>
    tpu.vector_store %arg23[%c3_205, %c0_206, %c32_207], %427 {strides = array<i32>} : memref<8x2x64xf32, #tpu.memory_space<vmem>>, vector<1x2x32xf32>,
    %c5_208 = arith.constant 5 : index
    %c0_209 = arith.constant 0 : index
    %c0_210 = arith.constant 0 : index
    %428 = vector.load %arg21[%c5_208, %c0_209, %c0_210] : memref<8x2x128xf32, #tpu.memory_space<vmem>>, vector<1x2x128xf32>
    %429 = vector.shape_cast %428 : vector<1x2x128xf32> to vector<2x128xf32>
    %430 = arith.truncf %395 : vector<2x32xf32> to vector<2x32xbf16>
    %cst_211 = arith.constant dense<0.000000e+00> : vector<2x128xf32>
    %431 = tpu.matmul %430, %132, %cst_211 {dimension_numbers = #tpu.dot_dimension_numbers<[1], [0], [0], [1], [0, 0, 1, 1], [], []>} : vector<2x32xbf16>, vector<32x128xbf16>, vector<2x128xf32> -> vector<2x128xf32>
    %432 = arith.addf %429, %431 : vector<2x128xf32>
    %433 = vector.extract_strided_slice %432 {offsets = [0, 0], sizes = [2, 64], strides = [1, 1]} : vector<2x128xf32> to vector<2x64xf32>
    %434 = arith.negf %433 : vector<2x64xf32>
    %435 = math.exp %434 : vector<2x64xf32>
    %cst_212 = arith.constant 1.000000e+00 : f32
    %436 = vector.broadcast %cst_212 : f32 to vector<2x64xf32>
    %437 = arith.addf %436, %435 : vector<2x64xf32>
    %438 = arith.divf %436, %437 : vector<2x64xf32>
    %439 = vector.extract_strided_slice %432 {offsets = [0, 96], sizes = [2, 32], strides = [1, 1]} : vector<2x128xf32> to vector<2x32xf32>
    %440 = arith.negf %439 : vector<2x32xf32>
    %441 = math.exp %440 : vector<2x32xf32>
    %cst_213 = arith.constant 1.000000e+00 : f32
    %442 = vector.broadcast %cst_213 : f32 to vector<2x32xf32>
    %443 = arith.addf %442, %441 : vector<2x32xf32>
    %444 = arith.divf %442, %443 : vector<2x32xf32>
    %445 = vector.extract_strided_slice %432 {offsets = [0, 64], sizes = [2, 32], strides = [1, 1]} : vector<2x128xf32> to vector<2x32xf32>
    %446 = math.tanh %445 : vector<2x32xf32>
    %447 = vector.extract_strided_slice %438 {offsets = [0, 32], sizes = [2, 32], strides = [1, 1]} : vector<2x64xf32> to vector<2x32xf32>
    %448 = arith.mulf %447, %393 : vector<2x32xf32>
    %449 = vector.extract_strided_slice %438 {offsets = [0, 0], sizes = [2, 32], strides = [1, 1]} : vector<2x64xf32> to vector<2x32xf32>
    %450 = arith.mulf %449, %446 : vector<2x32xf32>
    %451 = arith.addf %448, %450 : vector<2x32xf32>
    %452 = math.tanh %451 : vector<2x32xf32>
    %453 = arith.mulf %444, %452 : vector<2x32xf32>
    %c2_214 = arith.constant 2 : index
    %c0_215 = arith.constant 0 : index
    %c0_216 = arith.constant 0 : index
    %454 = vector.load %arg22[%c2_214, %c0_215, %c0_216] : memref<8x2x128xf32, #tpu.memory_space<vmem>>, vector<1x2x128xf32>
    %455 = vector.shape_cast %454 : vector<1x2x128xf32> to vector<2x128xf32>
    %456 = arith.truncf %421 : vector<2x32xf32> to vector<2x32xbf16>
    %cst_217 = arith.constant dense<0.000000e+00> : vector<2x128xf32>
    %457 = tpu.matmul %456, %133, %cst_217 {dimension_numbers = #tpu.dot_dimension_numbers<[1], [0], [0], [1], [0, 0, 1, 1], [], []>} : vector<2x32xbf16>, vector<32x128xbf16>, vector<2x128xf32> -> vector<2x128xf32>
    %458 = arith.addf %455, %457 : vector<2x128xf32>
    %459 = vector.extract_strided_slice %458 {offsets = [0, 0], sizes = [2, 64], strides = [1, 1]} : vector<2x128xf32> to vector<2x64xf32>
    %460 = arith.negf %459 : vector<2x64xf32>
    %461 = math.exp %460 : vector<2x64xf32>
    %cst_218 = arith.constant 1.000000e+00 : f32
    %462 = vector.broadcast %cst_218 : f32 to vector<2x64xf32>
    %463 = arith.addf %462, %461 : vector<2x64xf32>
    %464 = arith.divf %462, %463 : vector<2x64xf32>
    %465 = vector.extract_strided_slice %458 {offsets = [0, 96], sizes = [2, 32], strides = [1, 1]} : vector<2x128xf32> to vector<2x32xf32>
    %466 = arith.negf %465 : vector<2x32xf32>
    %467 = math.exp %466 : vector<2x32xf32>
    %cst_219 = arith.constant 1.000000e+00 : f32
    %468 = vector.broadcast %cst_219 : f32 to vector<2x32xf32>
    %469 = arith.addf %468, %467 : vector<2x32xf32>
    %470 = arith.divf %468, %469 : vector<2x32xf32>
    %471 = vector.extract_strided_slice %458 {offsets = [0, 64], sizes = [2, 32], strides = [1, 1]} : vector<2x128xf32> to vector<2x32xf32>
    %472 = math.tanh %471 : vector<2x32xf32>
    %473 = vector.extract_strided_slice %464 {offsets = [0, 32], sizes = [2, 32], strides = [1, 1]} : vector<2x64xf32> to vector<2x32xf32>
    %474 = arith.mulf %473, %419 : vector<2x32xf32>
    %475 = vector.extract_strided_slice %464 {offsets = [0, 0], sizes = [2, 32], strides = [1, 1]} : vector<2x64xf32> to vector<2x32xf32>
    %476 = arith.mulf %475, %472 : vector<2x32xf32>
    %477 = arith.addf %474, %476 : vector<2x32xf32>
    %478 = math.tanh %477 : vector<2x32xf32>
    %479 = arith.mulf %470, %478 : vector<2x32xf32>
    %c5_220 = arith.constant 5 : index
    %c0_221 = arith.constant 0 : index
    %c0_222 = arith.constant 0 : index
    %480 = vector.load %arg23[%c5_220, %c0_221, %c0_222] : memref<8x2x64xf32, #tpu.memory_space<vmem>>, vector<1x2x32xf32>
    %481 = vector.shape_cast %480 : vector<1x2x32xf32> to vector<2x32xf32>
    %482 = vector.shape_cast %453 : vector<2x32xf32> to vector<1x2x32xf32>
    tpu.vector_store %arg23[%c5_220, %c0_221, %c0_222], %482 {strides = array<i32>} : memref<8x2x64xf32, #tpu.memory_space<vmem>>, vector<1x2x32xf32>,
    %c2_223 = arith.constant 2 : index
    %c0_224 = arith.constant 0 : index
    %c32_225 = arith.constant 32 : index
    %483 = vector.load %arg23[%c2_223, %c0_224, %c32_225] : memref<8x2x64xf32, #tpu.memory_space<vmem>>, vector<1x2x32xf32>
    %484 = vector.shape_cast %483 : vector<1x2x32xf32> to vector<2x32xf32>
    %485 = vector.shape_cast %479 : vector<2x32xf32> to vector<1x2x32xf32>
    tpu.vector_store %arg23[%c2_223, %c0_224, %c32_225], %485 {strides = array<i32>} : memref<8x2x64xf32, #tpu.memory_space<vmem>>, vector<1x2x32xf32>,
    %c6_226 = arith.constant 6 : index
    %c0_227 = arith.constant 0 : index
    %c0_228 = arith.constant 0 : index
    %486 = vector.load %arg21[%c6_226, %c0_227, %c0_228] : memref<8x2x128xf32, #tpu.memory_space<vmem>>, vector<1x2x128xf32>
    %487 = vector.shape_cast %486 : vector<1x2x128xf32> to vector<2x128xf32>
    %488 = arith.truncf %453 : vector<2x32xf32> to vector<2x32xbf16>
    %cst_229 = arith.constant dense<0.000000e+00> : vector<2x128xf32>
    %489 = tpu.matmul %488, %132, %cst_229 {dimension_numbers = #tpu.dot_dimension_numbers<[1], [0], [0], [1], [0, 0, 1, 1], [], []>} : vector<2x32xbf16>, vector<32x128xbf16>, vector<2x128xf32> -> vector<2x128xf32>
    %490 = arith.addf %487, %489 : vector<2x128xf32>
    %491 = vector.extract_strided_slice %490 {offsets = [0, 0], sizes = [2, 64], strides = [1, 1]} : vector<2x128xf32> to vector<2x64xf32>
    %492 = arith.negf %491 : vector<2x64xf32>
    %493 = math.exp %492 : vector<2x64xf32>
    %cst_230 = arith.constant 1.000000e+00 : f32
    %494 = vector.broadcast %cst_230 : f32 to vector<2x64xf32>
    %495 = arith.addf %494, %493 : vector<2x64xf32>
    %496 = arith.divf %494, %495 : vector<2x64xf32>
    %497 = vector.extract_strided_slice %490 {offsets = [0, 96], sizes = [2, 32], strides = [1, 1]} : vector<2x128xf32> to vector<2x32xf32>
    %498 = arith.negf %497 : vector<2x32xf32>
    %499 = math.exp %498 : vector<2x32xf32>
    %cst_231 = arith.constant 1.000000e+00 : f32
    %500 = vector.broadcast %cst_231 : f32 to vector<2x32xf32>
    %501 = arith.addf %500, %499 : vector<2x32xf32>
    %502 = arith.divf %500, %501 : vector<2x32xf32>
    %503 = vector.extract_strided_slice %490 {offsets = [0, 64], sizes = [2, 32], strides = [1, 1]} : vector<2x128xf32> to vector<2x32xf32>
    %504 = math.tanh %503 : vector<2x32xf32>
    %505 = vector.extract_strided_slice %496 {offsets = [0, 32], sizes = [2, 32], strides = [1, 1]} : vector<2x64xf32> to vector<2x32xf32>
    %506 = arith.mulf %505, %451 : vector<2x32xf32>
    %507 = vector.extract_strided_slice %496 {offsets = [0, 0], sizes = [2, 32], strides = [1, 1]} : vector<2x64xf32> to vector<2x32xf32>
    %508 = arith.mulf %507, %504 : vector<2x32xf32>
    %509 = arith.addf %506, %508 : vector<2x32xf32>
    %510 = math.tanh %509 : vector<2x32xf32>
    %511 = arith.mulf %502, %510 : vector<2x32xf32>
    %c1_232 = arith.constant 1 : index
    %c0_233 = arith.constant 0 : index
    %c0_234 = arith.constant 0 : index
    %512 = vector.load %arg22[%c1_232, %c0_233, %c0_234] : memref<8x2x128xf32, #tpu.memory_space<vmem>>, vector<1x2x128xf32>
    %513 = vector.shape_cast %512 : vector<1x2x128xf32> to vector<2x128xf32>
    %514 = arith.truncf %479 : vector<2x32xf32> to vector<2x32xbf16>
    %cst_235 = arith.constant dense<0.000000e+00> : vector<2x128xf32>
    %515 = tpu.matmul %514, %133, %cst_235 {dimension_numbers = #tpu.dot_dimension_numbers<[1], [0], [0], [1], [0, 0, 1, 1], [], []>} : vector<2x32xbf16>, vector<32x128xbf16>, vector<2x128xf32> -> vector<2x128xf32>
    %516 = arith.addf %513, %515 : vector<2x128xf32>
    %517 = vector.extract_strided_slice %516 {offsets = [0, 0], sizes = [2, 64], strides = [1, 1]} : vector<2x128xf32> to vector<2x64xf32>
    %518 = arith.negf %517 : vector<2x64xf32>
    %519 = math.exp %518 : vector<2x64xf32>
    %cst_236 = arith.constant 1.000000e+00 : f32
    %520 = vector.broadcast %cst_236 : f32 to vector<2x64xf32>
    %521 = arith.addf %520, %519 : vector<2x64xf32>
    %522 = arith.divf %520, %521 : vector<2x64xf32>
    %523 = vector.extract_strided_slice %516 {offsets = [0, 96], sizes = [2, 32], strides = [1, 1]} : vector<2x128xf32> to vector<2x32xf32>
    %524 = arith.negf %523 : vector<2x32xf32>
    %525 = math.exp %524 : vector<2x32xf32>
    %cst_237 = arith.constant 1.000000e+00 : f32
    %526 = vector.broadcast %cst_237 : f32 to vector<2x32xf32>
    %527 = arith.addf %526, %525 : vector<2x32xf32>
    %528 = arith.divf %526, %527 : vector<2x32xf32>
    %529 = vector.extract_strided_slice %516 {offsets = [0, 64], sizes = [2, 32], strides = [1, 1]} : vector<2x128xf32> to vector<2x32xf32>
    %530 = math.tanh %529 : vector<2x32xf32>
    %531 = vector.extract_strided_slice %522 {offsets = [0, 32], sizes = [2, 32], strides = [1, 1]} : vector<2x64xf32> to vector<2x32xf32>
    %532 = arith.mulf %531, %477 : vector<2x32xf32>
    %533 = vector.extract_strided_slice %522 {offsets = [0, 0], sizes = [2, 32], strides = [1, 1]} : vector<2x64xf32> to vector<2x32xf32>
    %534 = arith.mulf %533, %530 : vector<2x32xf32>
    %535 = arith.addf %532, %534 : vector<2x32xf32>
    %536 = math.tanh %535 : vector<2x32xf32>
    %537 = arith.mulf %528, %536 : vector<2x32xf32>
    %c6_238 = arith.constant 6 : index
    %c0_239 = arith.constant 0 : index
    %c0_240 = arith.constant 0 : index
    %538 = vector.load %arg23[%c6_238, %c0_239, %c0_240] : memref<8x2x64xf32, #tpu.memory_space<vmem>>, vector<1x2x32xf32>
    %539 = vector.shape_cast %538 : vector<1x2x32xf32> to vector<2x32xf32>
    %540 = vector.shape_cast %511 : vector<2x32xf32> to vector<1x2x32xf32>
    tpu.vector_store %arg23[%c6_238, %c0_239, %c0_240], %540 {strides = array<i32>} : memref<8x2x64xf32, #tpu.memory_space<vmem>>, vector<1x2x32xf32>,
    %c1_241 = arith.constant 1 : index
    %c0_242 = arith.constant 0 : index
    %c32_243 = arith.constant 32 : index
    %541 = vector.load %arg23[%c1_241, %c0_242, %c32_243] : memref<8x2x64xf32, #tpu.memory_space<vmem>>, vector<1x2x32xf32>
    %542 = vector.shape_cast %541 : vector<1x2x32xf32> to vector<2x32xf32>
    %543 = vector.shape_cast %537 : vector<2x32xf32> to vector<1x2x32xf32>
    tpu.vector_store %arg23[%c1_241, %c0_242, %c32_243], %543 {strides = array<i32>} : memref<8x2x64xf32, #tpu.memory_space<vmem>>, vector<1x2x32xf32>,
    %c7_244 = arith.constant 7 : index
    %c0_245 = arith.constant 0 : index
    %c0_246 = arith.constant 0 : index
    %544 = vector.load %arg21[%c7_244, %c0_245, %c0_246] : memref<8x2x128xf32, #tpu.memory_space<vmem>>, vector<1x2x128xf32>
    %545 = vector.shape_cast %544 : vector<1x2x128xf32> to vector<2x128xf32>
    %546 = arith.truncf %511 : vector<2x32xf32> to vector<2x32xbf16>
    %cst_247 = arith.constant dense<0.000000e+00> : vector<2x128xf32>
    %547 = tpu.matmul %546, %132, %cst_247 {dimension_numbers = #tpu.dot_dimension_numbers<[1], [0], [0], [1], [0, 0, 1, 1], [], []>} : vector<2x32xbf16>, vector<32x128xbf16>, vector<2x128xf32> -> vector<2x128xf32>
    %548 = arith.addf %545, %547 : vector<2x128xf32>
    %549 = vector.extract_strided_slice %548 {offsets = [0, 0], sizes = [2, 64], strides = [1, 1]} : vector<2x128xf32> to vector<2x64xf32>
    %550 = arith.negf %549 : vector<2x64xf32>
    %551 = math.exp %550 : vector<2x64xf32>
    %cst_248 = arith.constant 1.000000e+00 : f32
    %552 = vector.broadcast %cst_248 : f32 to vector<2x64xf32>
    %553 = arith.addf %552, %551 : vector<2x64xf32>
    %554 = arith.divf %552, %553 : vector<2x64xf32>
    %555 = vector.extract_strided_slice %548 {offsets = [0, 96], sizes = [2, 32], strides = [1, 1]} : vector<2x128xf32> to vector<2x32xf32>
    %556 = arith.negf %555 : vector<2x32xf32>
    %557 = math.exp %556 : vector<2x32xf32>
    %cst_249 = arith.constant 1.000000e+00 : f32
    %558 = vector.broadcast %cst_249 : f32 to vector<2x32xf32>
    %559 = arith.addf %558, %557 : vector<2x32xf32>
    %560 = arith.divf %558, %559 : vector<2x32xf32>
    %561 = vector.extract_strided_slice %548 {offsets = [0, 64], sizes = [2, 32], strides = [1, 1]} : vector<2x128xf32> to vector<2x32xf32>
    %562 = math.tanh %561 : vector<2x32xf32>
    %563 = vector.extract_strided_slice %554 {offsets = [0, 32], sizes = [2, 32], strides = [1, 1]} : vector<2x64xf32> to vector<2x32xf32>
    %564 = arith.mulf %563, %509 : vector<2x32xf32>
    %565 = vector.extract_strided_slice %554 {offsets = [0, 0], sizes = [2, 32], strides = [1, 1]} : vector<2x64xf32> to vector<2x32xf32>
    %566 = arith.mulf %565, %562 : vector<2x32xf32>
    %567 = arith.addf %564, %566 : vector<2x32xf32>
    %568 = math.tanh %567 : vector<2x32xf32>
    %569 = arith.mulf %560, %568 : vector<2x32xf32>
    %c0_250 = arith.constant 0 : index
    %c0_251 = arith.constant 0 : index
    %c0_252 = arith.constant 0 : index
    %570 = vector.load %arg22[%c0_250, %c0_251, %c0_252] : memref<8x2x128xf32, #tpu.memory_space<vmem>>, vector<1x2x128xf32>
    %571 = vector.shape_cast %570 : vector<1x2x128xf32> to vector<2x128xf32>
    %572 = arith.truncf %537 : vector<2x32xf32> to vector<2x32xbf16>
    %cst_253 = arith.constant dense<0.000000e+00> : vector<2x128xf32>
    %573 = tpu.matmul %572, %133, %cst_253 {dimension_numbers = #tpu.dot_dimension_numbers<[1], [0], [0], [1], [0, 0, 1, 1], [], []>} : vector<2x32xbf16>, vector<32x128xbf16>, vector<2x128xf32> -> vector<2x128xf32>
    %574 = arith.addf %571, %573 : vector<2x128xf32>
    %575 = vector.extract_strided_slice %574 {offsets = [0, 0], sizes = [2, 64], strides = [1, 1]} : vector<2x128xf32> to vector<2x64xf32>
    %576 = arith.negf %575 : vector<2x64xf32>
    %577 = math.exp %576 : vector<2x64xf32>
    %cst_254 = arith.constant 1.000000e+00 : f32
    %578 = vector.broadcast %cst_254 : f32 to vector<2x64xf32>
    %579 = arith.addf %578, %577 : vector<2x64xf32>
    %580 = arith.divf %578, %579 : vector<2x64xf32>
    %581 = vector.extract_strided_slice %574 {offsets = [0, 96], sizes = [2, 32], strides = [1, 1]} : vector<2x128xf32> to vector<2x32xf32>
    %582 = arith.negf %581 : vector<2x32xf32>
    %583 = math.exp %582 : vector<2x32xf32>
    %cst_255 = arith.constant 1.000000e+00 : f32
    %584 = vector.broadcast %cst_255 : f32 to vector<2x32xf32>
    %585 = arith.addf %584, %583 : vector<2x32xf32>
    %586 = arith.divf %584, %585 : vector<2x32xf32>
    %587 = vector.extract_strided_slice %574 {offsets = [0, 64], sizes = [2, 32], strides = [1, 1]} : vector<2x128xf32> to vector<2x32xf32>
    %588 = math.tanh %587 : vector<2x32xf32>
    %589 = vector.extract_strided_slice %580 {offsets = [0, 32], sizes = [2, 32], strides = [1, 1]} : vector<2x64xf32> to vector<2x32xf32>
    %590 = arith.mulf %589, %535 : vector<2x32xf32>
    %591 = vector.extract_strided_slice %580 {offsets = [0, 0], sizes = [2, 32], strides = [1, 1]} : vector<2x64xf32> to vector<2x32xf32>
    %592 = arith.mulf %591, %588 : vector<2x32xf32>
    %593 = arith.addf %590, %592 : vector<2x32xf32>
    %594 = math.tanh %593 : vector<2x32xf32>
    %595 = arith.mulf %586, %594 : vector<2x32xf32>
    %c7_256 = arith.constant 7 : index
    %c0_257 = arith.constant 0 : index
    %c0_258 = arith.constant 0 : index
    %596 = vector.load %arg23[%c7_256, %c0_257, %c0_258] : memref<8x2x64xf32, #tpu.memory_space<vmem>>, vector<1x2x32xf32>
    %597 = vector.shape_cast %596 : vector<1x2x32xf32> to vector<2x32xf32>
    %598 = vector.shape_cast %569 : vector<2x32xf32> to vector<1x2x32xf32>
    tpu.vector_store %arg23[%c7_256, %c0_257, %c0_258], %598 {strides = array<i32>} : memref<8x2x64xf32, #tpu.memory_space<vmem>>, vector<1x2x32xf32>,
    %c0_259 = arith.constant 0 : index
    %c0_260 = arith.constant 0 : index
    %c32_261 = arith.constant 32 : index
    %599 = vector.load %arg23[%c0_259, %c0_260, %c32_261] : memref<8x2x64xf32, #tpu.memory_space<vmem>>, vector<1x2x32xf32>
    %600 = vector.shape_cast %599 : vector<1x2x32xf32> to vector<2x32xf32>
    %601 = vector.shape_cast %595 : vector<2x32xf32> to vector<1x2x32xf32>
    tpu.vector_store %arg23[%c0_259, %c0_260, %c32_261], %601 {strides = array<i32>} : memref<8x2x64xf32, #tpu.memory_space<vmem>>, vector<1x2x32xf32>,
    %c0_262 = arith.constant 0 : index
    %c0_263 = arith.constant 0 : index
    %602 = vector.load %arg8[%c0_262, %c0_263] : memref<64x128xbf16, #tpu.memory_space<vmem>>, vector<64x128xbf16>
    %c0_264 = arith.constant 0 : index
    %c0_265 = arith.constant 0 : index
    %603 = vector.load %arg10[%c0_264, %c0_265] : memref<1x128xf32, #tpu.memory_space<vmem>>, vector<1x128xf32>
    %c0_266 = arith.constant 0 : index
    %c0_267 = arith.constant 0 : index
    %c0_268 = arith.constant 0 : index
    %604 = vector.load %arg23[%c0_266, %c0_267, %c0_268] : memref<8x2x64xf32, #tpu.memory_space<vmem>>, vector<1x2x64xf32>
    %605 = vector.shape_cast %604 : vector<1x2x64xf32> to vector<2x64xf32>
    %606 = arith.truncf %605 : vector<2x64xf32> to vector<2x64xbf16>
    %cst_269 = arith.constant dense<0.000000e+00> : vector<2x128xf32>
    %607 = tpu.matmul %606, %602, %cst_269 {dimension_numbers = #tpu.dot_dimension_numbers<[1], [0], [0], [1], [0, 0, 1, 1], [], []>} : vector<2x64xbf16>, vector<64x128xbf16>, vector<2x128xf32> -> vector<2x128xf32>
    %608 = vector.broadcast %603 : vector<1x128xf32> to vector<2x128xf32>
    %609 = arith.addf %607, %608 : vector<2x128xf32>
    %c0_270 = arith.constant 0 : index
    %c0_271 = arith.constant 0 : index
    %c0_272 = arith.constant 0 : index
    %610 = vector.load %arg21[%c0_270, %c0_271, %c0_272] : memref<8x2x128xf32, #tpu.memory_space<vmem>>, vector<1x2x128xf32>
    %611 = vector.shape_cast %610 : vector<1x2x128xf32> to vector<2x128xf32>
    %612 = vector.shape_cast %609 : vector<2x128xf32> to vector<1x2x128xf32>
    tpu.vector_store %arg21[%c0_270, %c0_271, %c0_272], %612 {strides = array<i32>} : memref<8x2x128xf32, #tpu.memory_space<vmem>>, vector<1x2x128xf32>,
    %c1_273 = arith.constant 1 : index
    %c0_274 = arith.constant 0 : index
    %c0_275 = arith.constant 0 : index
    %613 = vector.load %arg23[%c1_273, %c0_274, %c0_275] : memref<8x2x64xf32, #tpu.memory_space<vmem>>, vector<1x2x64xf32>
    %614 = vector.shape_cast %613 : vector<1x2x64xf32> to vector<2x64xf32>
    %615 = arith.truncf %614 : vector<2x64xf32> to vector<2x64xbf16>
    %cst_276 = arith.constant dense<0.000000e+00> : vector<2x128xf32>
    %616 = tpu.matmul %615, %602, %cst_276 {dimension_numbers = #tpu.dot_dimension_numbers<[1], [0], [0], [1], [0, 0, 1, 1], [], []>} : vector<2x64xbf16>, vector<64x128xbf16>, vector<2x128xf32> -> vector<2x128xf32>
    %617 = vector.broadcast %603 : vector<1x128xf32> to vector<2x128xf32>
    %618 = arith.addf %616, %617 : vector<2x128xf32>
    %c1_277 = arith.constant 1 : index
    %c0_278 = arith.constant 0 : index
    %c0_279 = arith.constant 0 : index
    %619 = vector.load %arg21[%c1_277, %c0_278, %c0_279] : memref<8x2x128xf32, #tpu.memory_space<vmem>>, vector<1x2x128xf32>
    %620 = vector.shape_cast %619 : vector<1x2x128xf32> to vector<2x128xf32>
    %621 = vector.shape_cast %618 : vector<2x128xf32> to vector<1x2x128xf32>
    tpu.vector_store %arg21[%c1_277, %c0_278, %c0_279], %621 {strides = array<i32>} : memref<8x2x128xf32, #tpu.memory_space<vmem>>, vector<1x2x128xf32>,
    %c2_280 = arith.constant 2 : index
    %c0_281 = arith.constant 0 : index
    %c0_282 = arith.constant 0 : index
    %622 = vector.load %arg23[%c2_280, %c0_281, %c0_282] : memref<8x2x64xf32, #tpu.memory_space<vmem>>, vector<1x2x64xf32>
    %623 = vector.shape_cast %622 : vector<1x2x64xf32> to vector<2x64xf32>
    %624 = arith.truncf %623 : vector<2x64xf32> to vector<2x64xbf16>
    %cst_283 = arith.constant dense<0.000000e+00> : vector<2x128xf32>
    %625 = tpu.matmul %624, %602, %cst_283 {dimension_numbers = #tpu.dot_dimension_numbers<[1], [0], [0], [1], [0, 0, 1, 1], [], []>} : vector<2x64xbf16>, vector<64x128xbf16>, vector<2x128xf32> -> vector<2x128xf32>
    %626 = vector.broadcast %603 : vector<1x128xf32> to vector<2x128xf32>
    %627 = arith.addf %625, %626 : vector<2x128xf32>
    %c2_284 = arith.constant 2 : index
    %c0_285 = arith.constant 0 : index
    %c0_286 = arith.constant 0 : index
    %628 = vector.load %arg21[%c2_284, %c0_285, %c0_286] : memref<8x2x128xf32, #tpu.memory_space<vmem>>, vector<1x2x128xf32>
    %629 = vector.shape_cast %628 : vector<1x2x128xf32> to vector<2x128xf32>
    %630 = vector.shape_cast %627 : vector<2x128xf32> to vector<1x2x128xf32>
    tpu.vector_store %arg21[%c2_284, %c0_285, %c0_286], %630 {strides = array<i32>} : memref<8x2x128xf32, #tpu.memory_space<vmem>>, vector<1x2x128xf32>,
    %c3_287 = arith.constant 3 : index
    %c0_288 = arith.constant 0 : index
    %c0_289 = arith.constant 0 : index
    %631 = vector.load %arg23[%c3_287, %c0_288, %c0_289] : memref<8x2x64xf32, #tpu.memory_space<vmem>>, vector<1x2x64xf32>
    %632 = vector.shape_cast %631 : vector<1x2x64xf32> to vector<2x64xf32>
    %633 = arith.truncf %632 : vector<2x64xf32> to vector<2x64xbf16>
    %cst_290 = arith.constant dense<0.000000e+00> : vector<2x128xf32>
    %634 = tpu.matmul %633, %602, %cst_290 {dimension_numbers = #tpu.dot_dimension_numbers<[1], [0], [0], [1], [0, 0, 1, 1], [], []>} : vector<2x64xbf16>, vector<64x128xbf16>, vector<2x128xf32> -> vector<2x128xf32>
    %635 = vector.broadcast %603 : vector<1x128xf32> to vector<2x128xf32>
    %636 = arith.addf %634, %635 : vector<2x128xf32>
    %c3_291 = arith.constant 3 : index
    %c0_292 = arith.constant 0 : index
    %c0_293 = arith.constant 0 : index
    %637 = vector.load %arg21[%c3_291, %c0_292, %c0_293] : memref<8x2x128xf32, #tpu.memory_space<vmem>>, vector<1x2x128xf32>
    %638 = vector.shape_cast %637 : vector<1x2x128xf32> to vector<2x128xf32>
    %639 = vector.shape_cast %636 : vector<2x128xf32> to vector<1x2x128xf32>
    tpu.vector_store %arg21[%c3_291, %c0_292, %c0_293], %639 {strides = array<i32>} : memref<8x2x128xf32, #tpu.memory_space<vmem>>, vector<1x2x128xf32>,
    %c4_294 = arith.constant 4 : index
    %c0_295 = arith.constant 0 : index
    %c0_296 = arith.constant 0 : index
    %640 = vector.load %arg23[%c4_294, %c0_295, %c0_296] : memref<8x2x64xf32, #tpu.memory_space<vmem>>, vector<1x2x64xf32>
    %641 = vector.shape_cast %640 : vector<1x2x64xf32> to vector<2x64xf32>
    %642 = arith.truncf %641 : vector<2x64xf32> to vector<2x64xbf16>
    %cst_297 = arith.constant dense<0.000000e+00> : vector<2x128xf32>
    %643 = tpu.matmul %642, %602, %cst_297 {dimension_numbers = #tpu.dot_dimension_numbers<[1], [0], [0], [1], [0, 0, 1, 1], [], []>} : vector<2x64xbf16>, vector<64x128xbf16>, vector<2x128xf32> -> vector<2x128xf32>
    %644 = vector.broadcast %603 : vector<1x128xf32> to vector<2x128xf32>
    %645 = arith.addf %643, %644 : vector<2x128xf32>
    %c4_298 = arith.constant 4 : index
    %c0_299 = arith.constant 0 : index
    %c0_300 = arith.constant 0 : index
    %646 = vector.load %arg21[%c4_298, %c0_299, %c0_300] : memref<8x2x128xf32, #tpu.memory_space<vmem>>, vector<1x2x128xf32>
    %647 = vector.shape_cast %646 : vector<1x2x128xf32> to vector<2x128xf32>
    %648 = vector.shape_cast %645 : vector<2x128xf32> to vector<1x2x128xf32>
    tpu.vector_store %arg21[%c4_298, %c0_299, %c0_300], %648 {strides = array<i32>} : memref<8x2x128xf32, #tpu.memory_space<vmem>>, vector<1x2x128xf32>,
    %c5_301 = arith.constant 5 : index
    %c0_302 = arith.constant 0 : index
    %c0_303 = arith.constant 0 : index
    %649 = vector.load %arg23[%c5_301, %c0_302, %c0_303] : memref<8x2x64xf32, #tpu.memory_space<vmem>>, vector<1x2x64xf32>
    %650 = vector.shape_cast %649 : vector<1x2x64xf32> to vector<2x64xf32>
    %651 = arith.truncf %650 : vector<2x64xf32> to vector<2x64xbf16>
    %cst_304 = arith.constant dense<0.000000e+00> : vector<2x128xf32>
    %652 = tpu.matmul %651, %602, %cst_304 {dimension_numbers = #tpu.dot_dimension_numbers<[1], [0], [0], [1], [0, 0, 1, 1], [], []>} : vector<2x64xbf16>, vector<64x128xbf16>, vector<2x128xf32> -> vector<2x128xf32>
    %653 = vector.broadcast %603 : vector<1x128xf32> to vector<2x128xf32>
    %654 = arith.addf %652, %653 : vector<2x128xf32>
    %c5_305 = arith.constant 5 : index
    %c0_306 = arith.constant 0 : index
    %c0_307 = arith.constant 0 : index
    %655 = vector.load %arg21[%c5_305, %c0_306, %c0_307] : memref<8x2x128xf32, #tpu.memory_space<vmem>>, vector<1x2x128xf32>
    %656 = vector.shape_cast %655 : vector<1x2x128xf32> to vector<2x128xf32>
    %657 = vector.shape_cast %654 : vector<2x128xf32> to vector<1x2x128xf32>
    tpu.vector_store %arg21[%c5_305, %c0_306, %c0_307], %657 {strides = array<i32>} : memref<8x2x128xf32, #tpu.memory_space<vmem>>, vector<1x2x128xf32>,
    %c6_308 = arith.constant 6 : index
    %c0_309 = arith.constant 0 : index
    %c0_310 = arith.constant 0 : index
    %658 = vector.load %arg23[%c6_308, %c0_309, %c0_310] : memref<8x2x64xf32, #tpu.memory_space<vmem>>, vector<1x2x64xf32>
    %659 = vector.shape_cast %658 : vector<1x2x64xf32> to vector<2x64xf32>
    %660 = arith.truncf %659 : vector<2x64xf32> to vector<2x64xbf16>
    %cst_311 = arith.constant dense<0.000000e+00> : vector<2x128xf32>
    %661 = tpu.matmul %660, %602, %cst_311 {dimension_numbers = #tpu.dot_dimension_numbers<[1], [0], [0], [1], [0, 0, 1, 1], [], []>} : vector<2x64xbf16>, vector<64x128xbf16>, vector<2x128xf32> -> vector<2x128xf32>
    %662 = vector.broadcast %603 : vector<1x128xf32> to vector<2x128xf32>
    %663 = arith.addf %661, %662 : vector<2x128xf32>
    %c6_312 = arith.constant 6 : index
    %c0_313 = arith.constant 0 : index
    %c0_314 = arith.constant 0 : index
    %664 = vector.load %arg21[%c6_312, %c0_313, %c0_314] : memref<8x2x128xf32, #tpu.memory_space<vmem>>, vector<1x2x128xf32>
    %665 = vector.shape_cast %664 : vector<1x2x128xf32> to vector<2x128xf32>
    %666 = vector.shape_cast %663 : vector<2x128xf32> to vector<1x2x128xf32>
    tpu.vector_store %arg21[%c6_312, %c0_313, %c0_314], %666 {strides = array<i32>} : memref<8x2x128xf32, #tpu.memory_space<vmem>>, vector<1x2x128xf32>,
    %c7_315 = arith.constant 7 : index
    %c0_316 = arith.constant 0 : index
    %c0_317 = arith.constant 0 : index
    %667 = vector.load %arg23[%c7_315, %c0_316, %c0_317] : memref<8x2x64xf32, #tpu.memory_space<vmem>>, vector<1x2x64xf32>
    %668 = vector.shape_cast %667 : vector<1x2x64xf32> to vector<2x64xf32>
    %669 = arith.truncf %668 : vector<2x64xf32> to vector<2x64xbf16>
    %cst_318 = arith.constant dense<0.000000e+00> : vector<2x128xf32>
    %670 = tpu.matmul %669, %602, %cst_318 {dimension_numbers = #tpu.dot_dimension_numbers<[1], [0], [0], [1], [0, 0, 1, 1], [], []>} : vector<2x64xbf16>, vector<64x128xbf16>, vector<2x128xf32> -> vector<2x128xf32>
    %671 = vector.broadcast %603 : vector<1x128xf32> to vector<2x128xf32>
    %672 = arith.addf %670, %671 : vector<2x128xf32>
    %c7_319 = arith.constant 7 : index
    %c0_320 = arith.constant 0 : index
    %c0_321 = arith.constant 0 : index
    %673 = vector.load %arg21[%c7_319, %c0_320, %c0_321] : memref<8x2x128xf32, #tpu.memory_space<vmem>>, vector<1x2x128xf32>
    %674 = vector.shape_cast %673 : vector<1x2x128xf32> to vector<2x128xf32>
    %675 = vector.shape_cast %672 : vector<2x128xf32> to vector<1x2x128xf32>
    tpu.vector_store %arg21[%c7_319, %c0_320, %c0_321], %675 {strides = array<i32>} : memref<8x2x128xf32, #tpu.memory_space<vmem>>, vector<1x2x128xf32>,
    %c0_322 = arith.constant 0 : index
    %c0_323 = arith.constant 0 : index
    %676 = vector.load %arg11[%c0_322, %c0_323] : memref<64x128xbf16, #tpu.memory_space<vmem>>, vector<64x128xbf16>
    %c0_324 = arith.constant 0 : index
    %c0_325 = arith.constant 0 : index
    %677 = vector.load %arg13[%c0_324, %c0_325] : memref<1x128xf32, #tpu.memory_space<vmem>>, vector<1x128xf32>
    %c0_326 = arith.constant 0 : index
    %c0_327 = arith.constant 0 : index
    %c0_328 = arith.constant 0 : index
    %678 = vector.load %arg23[%c0_326, %c0_327, %c0_328] : memref<8x2x64xf32, #tpu.memory_space<vmem>>, vector<1x2x64xf32>
    %679 = vector.shape_cast %678 : vector<1x2x64xf32> to vector<2x64xf32>
    %680 = arith.truncf %679 : vector<2x64xf32> to vector<2x64xbf16>
    %cst_329 = arith.constant dense<0.000000e+00> : vector<2x128xf32>
    %681 = tpu.matmul %680, %676, %cst_329 {dimension_numbers = #tpu.dot_dimension_numbers<[1], [0], [0], [1], [0, 0, 1, 1], [], []>} : vector<2x64xbf16>, vector<64x128xbf16>, vector<2x128xf32> -> vector<2x128xf32>
    %682 = vector.broadcast %677 : vector<1x128xf32> to vector<2x128xf32>
    %683 = arith.addf %681, %682 : vector<2x128xf32>
    %c0_330 = arith.constant 0 : index
    %c0_331 = arith.constant 0 : index
    %c0_332 = arith.constant 0 : index
    %684 = vector.load %arg22[%c0_330, %c0_331, %c0_332] : memref<8x2x128xf32, #tpu.memory_space<vmem>>, vector<1x2x128xf32>
    %685 = vector.shape_cast %684 : vector<1x2x128xf32> to vector<2x128xf32>
    %686 = vector.shape_cast %683 : vector<2x128xf32> to vector<1x2x128xf32>
    tpu.vector_store %arg22[%c0_330, %c0_331, %c0_332], %686 {strides = array<i32>} : memref<8x2x128xf32, #tpu.memory_space<vmem>>, vector<1x2x128xf32>,
    %c1_333 = arith.constant 1 : index
    %c0_334 = arith.constant 0 : index
    %c0_335 = arith.constant 0 : index
    %687 = vector.load %arg23[%c1_333, %c0_334, %c0_335] : memref<8x2x64xf32, #tpu.memory_space<vmem>>, vector<1x2x64xf32>
    %688 = vector.shape_cast %687 : vector<1x2x64xf32> to vector<2x64xf32>
    %689 = arith.truncf %688 : vector<2x64xf32> to vector<2x64xbf16>
    %cst_336 = arith.constant dense<0.000000e+00> : vector<2x128xf32>
    %690 = tpu.matmul %689, %676, %cst_336 {dimension_numbers = #tpu.dot_dimension_numbers<[1], [0], [0], [1], [0, 0, 1, 1], [], []>} : vector<2x64xbf16>, vector<64x128xbf16>, vector<2x128xf32> -> vector<2x128xf32>
    %691 = vector.broadcast %677 : vector<1x128xf32> to vector<2x128xf32>
    %692 = arith.addf %690, %691 : vector<2x128xf32>
    %c1_337 = arith.constant 1 : index
    %c0_338 = arith.constant 0 : index
    %c0_339 = arith.constant 0 : index
    %693 = vector.load %arg22[%c1_337, %c0_338, %c0_339] : memref<8x2x128xf32, #tpu.memory_space<vmem>>, vector<1x2x128xf32>
    %694 = vector.shape_cast %693 : vector<1x2x128xf32> to vector<2x128xf32>
    %695 = vector.shape_cast %692 : vector<2x128xf32> to vector<1x2x128xf32>
    tpu.vector_store %arg22[%c1_337, %c0_338, %c0_339], %695 {strides = array<i32>} : memref<8x2x128xf32, #tpu.memory_space<vmem>>, vector<1x2x128xf32>,
    %c2_340 = arith.constant 2 : index
    %c0_341 = arith.constant 0 : index
    %c0_342 = arith.constant 0 : index
    %696 = vector.load %arg23[%c2_340, %c0_341, %c0_342] : memref<8x2x64xf32, #tpu.memory_space<vmem>>, vector<1x2x64xf32>
    %697 = vector.shape_cast %696 : vector<1x2x64xf32> to vector<2x64xf32>
    %698 = arith.truncf %697 : vector<2x64xf32> to vector<2x64xbf16>
    %cst_343 = arith.constant dense<0.000000e+00> : vector<2x128xf32>
    %699 = tpu.matmul %698, %676, %cst_343 {dimension_numbers = #tpu.dot_dimension_numbers<[1], [0], [0], [1], [0, 0, 1, 1], [], []>} : vector<2x64xbf16>, vector<64x128xbf16>, vector<2x128xf32> -> vector<2x128xf32>
    %700 = vector.broadcast %677 : vector<1x128xf32> to vector<2x128xf32>
    %701 = arith.addf %699, %700 : vector<2x128xf32>
    %c2_344 = arith.constant 2 : index
    %c0_345 = arith.constant 0 : index
    %c0_346 = arith.constant 0 : index
    %702 = vector.load %arg22[%c2_344, %c0_345, %c0_346] : memref<8x2x128xf32, #tpu.memory_space<vmem>>, vector<1x2x128xf32>
    %703 = vector.shape_cast %702 : vector<1x2x128xf32> to vector<2x128xf32>
    %704 = vector.shape_cast %701 : vector<2x128xf32> to vector<1x2x128xf32>
    tpu.vector_store %arg22[%c2_344, %c0_345, %c0_346], %704 {strides = array<i32>} : memref<8x2x128xf32, #tpu.memory_space<vmem>>, vector<1x2x128xf32>,
    %c3_347 = arith.constant 3 : index
    %c0_348 = arith.constant 0 : index
    %c0_349 = arith.constant 0 : index
    %705 = vector.load %arg23[%c3_347, %c0_348, %c0_349] : memref<8x2x64xf32, #tpu.memory_space<vmem>>, vector<1x2x64xf32>
    %706 = vector.shape_cast %705 : vector<1x2x64xf32> to vector<2x64xf32>
    %707 = arith.truncf %706 : vector<2x64xf32> to vector<2x64xbf16>
    %cst_350 = arith.constant dense<0.000000e+00> : vector<2x128xf32>
    %708 = tpu.matmul %707, %676, %cst_350 {dimension_numbers = #tpu.dot_dimension_numbers<[1], [0], [0], [1], [0, 0, 1, 1], [], []>} : vector<2x64xbf16>, vector<64x128xbf16>, vector<2x128xf32> -> vector<2x128xf32>
    %709 = vector.broadcast %677 : vector<1x128xf32> to vector<2x128xf32>
    %710 = arith.addf %708, %709 : vector<2x128xf32>
    %c3_351 = arith.constant 3 : index
    %c0_352 = arith.constant 0 : index
    %c0_353 = arith.constant 0 : index
    %711 = vector.load %arg22[%c3_351, %c0_352, %c0_353] : memref<8x2x128xf32, #tpu.memory_space<vmem>>, vector<1x2x128xf32>
    %712 = vector.shape_cast %711 : vector<1x2x128xf32> to vector<2x128xf32>
    %713 = vector.shape_cast %710 : vector<2x128xf32> to vector<1x2x128xf32>
    tpu.vector_store %arg22[%c3_351, %c0_352, %c0_353], %713 {strides = array<i32>} : memref<8x2x128xf32, #tpu.memory_space<vmem>>, vector<1x2x128xf32>,
    %c4_354 = arith.constant 4 : index
    %c0_355 = arith.constant 0 : index
    %c0_356 = arith.constant 0 : index
    %714 = vector.load %arg23[%c4_354, %c0_355, %c0_356] : memref<8x2x64xf32, #tpu.memory_space<vmem>>, vector<1x2x64xf32>
    %715 = vector.shape_cast %714 : vector<1x2x64xf32> to vector<2x64xf32>
    %716 = arith.truncf %715 : vector<2x64xf32> to vector<2x64xbf16>
    %cst_357 = arith.constant dense<0.000000e+00> : vector<2x128xf32>
    %717 = tpu.matmul %716, %676, %cst_357 {dimension_numbers = #tpu.dot_dimension_numbers<[1], [0], [0], [1], [0, 0, 1, 1], [], []>} : vector<2x64xbf16>, vector<64x128xbf16>, vector<2x128xf32> -> vector<2x128xf32>
    %718 = vector.broadcast %677 : vector<1x128xf32> to vector<2x128xf32>
    %719 = arith.addf %717, %718 : vector<2x128xf32>
    %c4_358 = arith.constant 4 : index
    %c0_359 = arith.constant 0 : index
    %c0_360 = arith.constant 0 : index
    %720 = vector.load %arg22[%c4_358, %c0_359, %c0_360] : memref<8x2x128xf32, #tpu.memory_space<vmem>>, vector<1x2x128xf32>
    %721 = vector.shape_cast %720 : vector<1x2x128xf32> to vector<2x128xf32>
    %722 = vector.shape_cast %719 : vector<2x128xf32> to vector<1x2x128xf32>
    tpu.vector_store %arg22[%c4_358, %c0_359, %c0_360], %722 {strides = array<i32>} : memref<8x2x128xf32, #tpu.memory_space<vmem>>, vector<1x2x128xf32>,
    %c5_361 = arith.constant 5 : index
    %c0_362 = arith.constant 0 : index
    %c0_363 = arith.constant 0 : index
    %723 = vector.load %arg23[%c5_361, %c0_362, %c0_363] : memref<8x2x64xf32, #tpu.memory_space<vmem>>, vector<1x2x64xf32>
    %724 = vector.shape_cast %723 : vector<1x2x64xf32> to vector<2x64xf32>
    %725 = arith.truncf %724 : vector<2x64xf32> to vector<2x64xbf16>
    %cst_364 = arith.constant dense<0.000000e+00> : vector<2x128xf32>
    %726 = tpu.matmul %725, %676, %cst_364 {dimension_numbers = #tpu.dot_dimension_numbers<[1], [0], [0], [1], [0, 0, 1, 1], [], []>} : vector<2x64xbf16>, vector<64x128xbf16>, vector<2x128xf32> -> vector<2x128xf32>
    %727 = vector.broadcast %677 : vector<1x128xf32> to vector<2x128xf32>
    %728 = arith.addf %726, %727 : vector<2x128xf32>
    %c5_365 = arith.constant 5 : index
    %c0_366 = arith.constant 0 : index
    %c0_367 = arith.constant 0 : index
    %729 = vector.load %arg22[%c5_365, %c0_366, %c0_367] : memref<8x2x128xf32, #tpu.memory_space<vmem>>, vector<1x2x128xf32>
    %730 = vector.shape_cast %729 : vector<1x2x128xf32> to vector<2x128xf32>
    %731 = vector.shape_cast %728 : vector<2x128xf32> to vector<1x2x128xf32>
    tpu.vector_store %arg22[%c5_365, %c0_366, %c0_367], %731 {strides = array<i32>} : memref<8x2x128xf32, #tpu.memory_space<vmem>>, vector<1x2x128xf32>,
    %c6_368 = arith.constant 6 : index
    %c0_369 = arith.constant 0 : index
    %c0_370 = arith.constant 0 : index
    %732 = vector.load %arg23[%c6_368, %c0_369, %c0_370] : memref<8x2x64xf32, #tpu.memory_space<vmem>>, vector<1x2x64xf32>
    %733 = vector.shape_cast %732 : vector<1x2x64xf32> to vector<2x64xf32>
    %734 = arith.truncf %733 : vector<2x64xf32> to vector<2x64xbf16>
    %cst_371 = arith.constant dense<0.000000e+00> : vector<2x128xf32>
    %735 = tpu.matmul %734, %676, %cst_371 {dimension_numbers = #tpu.dot_dimension_numbers<[1], [0], [0], [1], [0, 0, 1, 1], [], []>} : vector<2x64xbf16>, vector<64x128xbf16>, vector<2x128xf32> -> vector<2x128xf32>
    %736 = vector.broadcast %677 : vector<1x128xf32> to vector<2x128xf32>
    %737 = arith.addf %735, %736 : vector<2x128xf32>
    %c6_372 = arith.constant 6 : index
    %c0_373 = arith.constant 0 : index
    %c0_374 = arith.constant 0 : index
    %738 = vector.load %arg22[%c6_372, %c0_373, %c0_374] : memref<8x2x128xf32, #tpu.memory_space<vmem>>, vector<1x2x128xf32>
    %739 = vector.shape_cast %738 : vector<1x2x128xf32> to vector<2x128xf32>
    %740 = vector.shape_cast %737 : vector<2x128xf32> to vector<1x2x128xf32>
    tpu.vector_store %arg22[%c6_372, %c0_373, %c0_374], %740 {strides = array<i32>} : memref<8x2x128xf32, #tpu.memory_space<vmem>>, vector<1x2x128xf32>,
    %c7_375 = arith.constant 7 : index
    %c0_376 = arith.constant 0 : index
    %c0_377 = arith.constant 0 : index
    %741 = vector.load %arg23[%c7_375, %c0_376, %c0_377] : memref<8x2x64xf32, #tpu.memory_space<vmem>>, vector<1x2x64xf32>
    %742 = vector.shape_cast %741 : vector<1x2x64xf32> to vector<2x64xf32>
    %743 = arith.truncf %742 : vector<2x64xf32> to vector<2x64xbf16>
    %cst_378 = arith.constant dense<0.000000e+00> : vector<2x128xf32>
    %744 = tpu.matmul %743, %676, %cst_378 {dimension_numbers = #tpu.dot_dimension_numbers<[1], [0], [0], [1], [0, 0, 1, 1], [], []>} : vector<2x64xbf16>, vector<64x128xbf16>, vector<2x128xf32> -> vector<2x128xf32>
    %745 = vector.broadcast %677 : vector<1x128xf32> to vector<2x128xf32>
    %746 = arith.addf %744, %745 : vector<2x128xf32>
    %c7_379 = arith.constant 7 : index
    %c0_380 = arith.constant 0 : index
    %c0_381 = arith.constant 0 : index
    %747 = vector.load %arg22[%c7_379, %c0_380, %c0_381] : memref<8x2x128xf32, #tpu.memory_space<vmem>>, vector<1x2x128xf32>
    %748 = vector.shape_cast %747 : vector<1x2x128xf32> to vector<2x128xf32>
    %749 = vector.shape_cast %746 : vector<2x128xf32> to vector<1x2x128xf32>
    tpu.vector_store %arg22[%c7_379, %c0_380, %c0_381], %749 {strides = array<i32>} : memref<8x2x128xf32, #tpu.memory_space<vmem>>, vector<1x2x128xf32>,
    %c0_382 = arith.constant 0 : index
    %c0_383 = arith.constant 0 : index
    %750 = vector.load %arg9[%c0_382, %c0_383] : memref<32x128xbf16, #tpu.memory_space<vmem>>, vector<32x128xbf16>
    %c0_384 = arith.constant 0 : index
    %c0_385 = arith.constant 0 : index
    %751 = vector.load %arg12[%c0_384, %c0_385] : memref<32x128xbf16, #tpu.memory_space<vmem>>, vector<32x128xbf16>
    %cst_386 = arith.constant 0.000000e+00 : f32
    %752 = vector.broadcast %cst_386 : f32 to vector<2x32xf32>
    %cst_387 = arith.constant 0.000000e+00 : f32
    %753 = vector.broadcast %cst_387 : f32 to vector<2x32xf32>
    %cst_388 = arith.constant 0.000000e+00 : f32
    %754 = vector.broadcast %cst_388 : f32 to vector<2x32xf32>
    %cst_389 = arith.constant 0.000000e+00 : f32
    %755 = vector.broadcast %cst_389 : f32 to vector<2x32xf32>
    %c0_390 = arith.constant 0 : index
    %c0_391 = arith.constant 0 : index
    %c0_392 = arith.constant 0 : index
    %756 = vector.load %arg21[%c0_390, %c0_391, %c0_392] : memref<8x2x128xf32, #tpu.memory_space<vmem>>, vector<1x2x128xf32>
    %757 = vector.shape_cast %756 : vector<1x2x128xf32> to vector<2x128xf32>
    %758 = arith.truncf %752 : vector<2x32xf32> to vector<2x32xbf16>
    %cst_393 = arith.constant dense<0.000000e+00> : vector<2x128xf32>
    %759 = tpu.matmul %758, %750, %cst_393 {dimension_numbers = #tpu.dot_dimension_numbers<[1], [0], [0], [1], [0, 0, 1, 1], [], []>} : vector<2x32xbf16>, vector<32x128xbf16>, vector<2x128xf32> -> vector<2x128xf32>
    %760 = arith.addf %757, %759 : vector<2x128xf32>
    %761 = vector.extract_strided_slice %760 {offsets = [0, 0], sizes = [2, 64], strides = [1, 1]} : vector<2x128xf32> to vector<2x64xf32>
    %762 = arith.negf %761 : vector<2x64xf32>
    %763 = math.exp %762 : vector<2x64xf32>
    %cst_394 = arith.constant 1.000000e+00 : f32
    %764 = vector.broadcast %cst_394 : f32 to vector<2x64xf32>
    %765 = arith.addf %764, %763 : vector<2x64xf32>
    %766 = arith.divf %764, %765 : vector<2x64xf32>
    %767 = vector.extract_strided_slice %760 {offsets = [0, 96], sizes = [2, 32], strides = [1, 1]} : vector<2x128xf32> to vector<2x32xf32>
    %768 = arith.negf %767 : vector<2x32xf32>
    %769 = math.exp %768 : vector<2x32xf32>
    %cst_395 = arith.constant 1.000000e+00 : f32
    %770 = vector.broadcast %cst_395 : f32 to vector<2x32xf32>
    %771 = arith.addf %770, %769 : vector<2x32xf32>
    %772 = arith.divf %770, %771 : vector<2x32xf32>
    %773 = vector.extract_strided_slice %760 {offsets = [0, 64], sizes = [2, 32], strides = [1, 1]} : vector<2x128xf32> to vector<2x32xf32>
    %774 = math.tanh %773 : vector<2x32xf32>
    %775 = vector.extract_strided_slice %766 {offsets = [0, 32], sizes = [2, 32], strides = [1, 1]} : vector<2x64xf32> to vector<2x32xf32>
    %776 = arith.mulf %775, %753 : vector<2x32xf32>
    %777 = vector.extract_strided_slice %766 {offsets = [0, 0], sizes = [2, 32], strides = [1, 1]} : vector<2x64xf32> to vector<2x32xf32>
    %778 = arith.mulf %777, %774 : vector<2x32xf32>
    %779 = arith.addf %776, %778 : vector<2x32xf32>
    %780 = math.tanh %779 : vector<2x32xf32>
    %781 = arith.mulf %772, %780 : vector<2x32xf32>
    %c7_396 = arith.constant 7 : index
    %c0_397 = arith.constant 0 : index
    %c0_398 = arith.constant 0 : index
    %782 = vector.load %arg22[%c7_396, %c0_397, %c0_398] : memref<8x2x128xf32, #tpu.memory_space<vmem>>, vector<1x2x128xf32>
    %783 = vector.shape_cast %782 : vector<1x2x128xf32> to vector<2x128xf32>
    %784 = arith.truncf %754 : vector<2x32xf32> to vector<2x32xbf16>
    %cst_399 = arith.constant dense<0.000000e+00> : vector<2x128xf32>
    %785 = tpu.matmul %784, %751, %cst_399 {dimension_numbers = #tpu.dot_dimension_numbers<[1], [0], [0], [1], [0, 0, 1, 1], [], []>} : vector<2x32xbf16>, vector<32x128xbf16>, vector<2x128xf32> -> vector<2x128xf32>
    %786 = arith.addf %783, %785 : vector<2x128xf32>
    %787 = vector.extract_strided_slice %786 {offsets = [0, 0], sizes = [2, 64], strides = [1, 1]} : vector<2x128xf32> to vector<2x64xf32>
    %788 = arith.negf %787 : vector<2x64xf32>
    %789 = math.exp %788 : vector<2x64xf32>
    %cst_400 = arith.constant 1.000000e+00 : f32
    %790 = vector.broadcast %cst_400 : f32 to vector<2x64xf32>
    %791 = arith.addf %790, %789 : vector<2x64xf32>
    %792 = arith.divf %790, %791 : vector<2x64xf32>
    %793 = vector.extract_strided_slice %786 {offsets = [0, 96], sizes = [2, 32], strides = [1, 1]} : vector<2x128xf32> to vector<2x32xf32>
    %794 = arith.negf %793 : vector<2x32xf32>
    %795 = math.exp %794 : vector<2x32xf32>
    %cst_401 = arith.constant 1.000000e+00 : f32
    %796 = vector.broadcast %cst_401 : f32 to vector<2x32xf32>
    %797 = arith.addf %796, %795 : vector<2x32xf32>
    %798 = arith.divf %796, %797 : vector<2x32xf32>
    %799 = vector.extract_strided_slice %786 {offsets = [0, 64], sizes = [2, 32], strides = [1, 1]} : vector<2x128xf32> to vector<2x32xf32>
    %800 = math.tanh %799 : vector<2x32xf32>
    %801 = vector.extract_strided_slice %792 {offsets = [0, 32], sizes = [2, 32], strides = [1, 1]} : vector<2x64xf32> to vector<2x32xf32>
    %802 = arith.mulf %801, %755 : vector<2x32xf32>
    %803 = vector.extract_strided_slice %792 {offsets = [0, 0], sizes = [2, 32], strides = [1, 1]} : vector<2x64xf32> to vector<2x32xf32>
    %804 = arith.mulf %803, %800 : vector<2x32xf32>
    %805 = arith.addf %802, %804 : vector<2x32xf32>
    %806 = math.tanh %805 : vector<2x32xf32>
    %807 = arith.mulf %798, %806 : vector<2x32xf32>
    %c0_402 = arith.constant 0 : index
    %c0_403 = arith.constant 0 : index
    %c0_404 = arith.constant 0 : index
    %808 = vector.load %arg24[%c0_402, %c0_403, %c0_404] : memref<8x2x64xf32, #tpu.memory_space<vmem>>, vector<1x2x32xf32>
    %809 = vector.shape_cast %808 : vector<1x2x32xf32> to vector<2x32xf32>
    %810 = vector.shape_cast %781 : vector<2x32xf32> to vector<1x2x32xf32>
    tpu.vector_store %arg24[%c0_402, %c0_403, %c0_404], %810 {strides = array<i32>} : memref<8x2x64xf32, #tpu.memory_space<vmem>>, vector<1x2x32xf32>,
    %c7_405 = arith.constant 7 : index
    %c0_406 = arith.constant 0 : index
    %c32_407 = arith.constant 32 : index
    %811 = vector.load %arg24[%c7_405, %c0_406, %c32_407] : memref<8x2x64xf32, #tpu.memory_space<vmem>>, vector<1x2x32xf32>
    %812 = vector.shape_cast %811 : vector<1x2x32xf32> to vector<2x32xf32>
    %813 = vector.shape_cast %807 : vector<2x32xf32> to vector<1x2x32xf32>
    tpu.vector_store %arg24[%c7_405, %c0_406, %c32_407], %813 {strides = array<i32>} : memref<8x2x64xf32, #tpu.memory_space<vmem>>, vector<1x2x32xf32>,
    %c1_408 = arith.constant 1 : index
    %c0_409 = arith.constant 0 : index
    %c0_410 = arith.constant 0 : index
    %814 = vector.load %arg21[%c1_408, %c0_409, %c0_410] : memref<8x2x128xf32, #tpu.memory_space<vmem>>, vector<1x2x128xf32>
    %815 = vector.shape_cast %814 : vector<1x2x128xf32> to vector<2x128xf32>
    %816 = arith.truncf %781 : vector<2x32xf32> to vector<2x32xbf16>
    %cst_411 = arith.constant dense<0.000000e+00> : vector<2x128xf32>
    %817 = tpu.matmul %816, %750, %cst_411 {dimension_numbers = #tpu.dot_dimension_numbers<[1], [0], [0], [1], [0, 0, 1, 1], [], []>} : vector<2x32xbf16>, vector<32x128xbf16>, vector<2x128xf32> -> vector<2x128xf32>
    %818 = arith.addf %815, %817 : vector<2x128xf32>
    %819 = vector.extract_strided_slice %818 {offsets = [0, 0], sizes = [2, 64], strides = [1, 1]} : vector<2x128xf32> to vector<2x64xf32>
    %820 = arith.negf %819 : vector<2x64xf32>
    %821 = math.exp %820 : vector<2x64xf32>
    %cst_412 = arith.constant 1.000000e+00 : f32
    %822 = vector.broadcast %cst_412 : f32 to vector<2x64xf32>
    %823 = arith.addf %822, %821 : vector<2x64xf32>
    %824 = arith.divf %822, %823 : vector<2x64xf32>
    %825 = vector.extract_strided_slice %818 {offsets = [0, 96], sizes = [2, 32], strides = [1, 1]} : vector<2x128xf32> to vector<2x32xf32>
    %826 = arith.negf %825 : vector<2x32xf32>
    %827 = math.exp %826 : vector<2x32xf32>
    %cst_413 = arith.constant 1.000000e+00 : f32
    %828 = vector.broadcast %cst_413 : f32 to vector<2x32xf32>
    %829 = arith.addf %828, %827 : vector<2x32xf32>
    %830 = arith.divf %828, %829 : vector<2x32xf32>
    %831 = vector.extract_strided_slice %818 {offsets = [0, 64], sizes = [2, 32], strides = [1, 1]} : vector<2x128xf32> to vector<2x32xf32>
    %832 = math.tanh %831 : vector<2x32xf32>
    %833 = vector.extract_strided_slice %824 {offsets = [0, 32], sizes = [2, 32], strides = [1, 1]} : vector<2x64xf32> to vector<2x32xf32>
    %834 = arith.mulf %833, %779 : vector<2x32xf32>
    %835 = vector.extract_strided_slice %824 {offsets = [0, 0], sizes = [2, 32], strides = [1, 1]} : vector<2x64xf32> to vector<2x32xf32>
    %836 = arith.mulf %835, %832 : vector<2x32xf32>
    %837 = arith.addf %834, %836 : vector<2x32xf32>
    %838 = math.tanh %837 : vector<2x32xf32>
    %839 = arith.mulf %830, %838 : vector<2x32xf32>
    %c6_414 = arith.constant 6 : index
    %c0_415 = arith.constant 0 : index
    %c0_416 = arith.constant 0 : index
    %840 = vector.load %arg22[%c6_414, %c0_415, %c0_416] : memref<8x2x128xf32, #tpu.memory_space<vmem>>, vector<1x2x128xf32>
    %841 = vector.shape_cast %840 : vector<1x2x128xf32> to vector<2x128xf32>
    %842 = arith.truncf %807 : vector<2x32xf32> to vector<2x32xbf16>
    %cst_417 = arith.constant dense<0.000000e+00> : vector<2x128xf32>
    %843 = tpu.matmul %842, %751, %cst_417 {dimension_numbers = #tpu.dot_dimension_numbers<[1], [0], [0], [1], [0, 0, 1, 1], [], []>} : vector<2x32xbf16>, vector<32x128xbf16>, vector<2x128xf32> -> vector<2x128xf32>
    %844 = arith.addf %841, %843 : vector<2x128xf32>
    %845 = vector.extract_strided_slice %844 {offsets = [0, 0], sizes = [2, 64], strides = [1, 1]} : vector<2x128xf32> to vector<2x64xf32>
    %846 = arith.negf %845 : vector<2x64xf32>
    %847 = math.exp %846 : vector<2x64xf32>
    %cst_418 = arith.constant 1.000000e+00 : f32
    %848 = vector.broadcast %cst_418 : f32 to vector<2x64xf32>
    %849 = arith.addf %848, %847 : vector<2x64xf32>
    %850 = arith.divf %848, %849 : vector<2x64xf32>
    %851 = vector.extract_strided_slice %844 {offsets = [0, 96], sizes = [2, 32], strides = [1, 1]} : vector<2x128xf32> to vector<2x32xf32>
    %852 = arith.negf %851 : vector<2x32xf32>
    %853 = math.exp %852 : vector<2x32xf32>
    %cst_419 = arith.constant 1.000000e+00 : f32
    %854 = vector.broadcast %cst_419 : f32 to vector<2x32xf32>
    %855 = arith.addf %854, %853 : vector<2x32xf32>
    %856 = arith.divf %854, %855 : vector<2x32xf32>
    %857 = vector.extract_strided_slice %844 {offsets = [0, 64], sizes = [2, 32], strides = [1, 1]} : vector<2x128xf32> to vector<2x32xf32>
    %858 = math.tanh %857 : vector<2x32xf32>
    %859 = vector.extract_strided_slice %850 {offsets = [0, 32], sizes = [2, 32], strides = [1, 1]} : vector<2x64xf32> to vector<2x32xf32>
    %860 = arith.mulf %859, %805 : vector<2x32xf32>
    %861 = vector.extract_strided_slice %850 {offsets = [0, 0], sizes = [2, 32], strides = [1, 1]} : vector<2x64xf32> to vector<2x32xf32>
    %862 = arith.mulf %861, %858 : vector<2x32xf32>
    %863 = arith.addf %860, %862 : vector<2x32xf32>
    %864 = math.tanh %863 : vector<2x32xf32>
    %865 = arith.mulf %856, %864 : vector<2x32xf32>
    %c1_420 = arith.constant 1 : index
    %c0_421 = arith.constant 0 : index
    %c0_422 = arith.constant 0 : index
    %866 = vector.load %arg24[%c1_420, %c0_421, %c0_422] : memref<8x2x64xf32, #tpu.memory_space<vmem>>, vector<1x2x32xf32>
    %867 = vector.shape_cast %866 : vector<1x2x32xf32> to vector<2x32xf32>
    %868 = vector.shape_cast %839 : vector<2x32xf32> to vector<1x2x32xf32>
    tpu.vector_store %arg24[%c1_420, %c0_421, %c0_422], %868 {strides = array<i32>} : memref<8x2x64xf32, #tpu.memory_space<vmem>>, vector<1x2x32xf32>,
    %c6_423 = arith.constant 6 : index
    %c0_424 = arith.constant 0 : index
    %c32_425 = arith.constant 32 : index
    %869 = vector.load %arg24[%c6_423, %c0_424, %c32_425] : memref<8x2x64xf32, #tpu.memory_space<vmem>>, vector<1x2x32xf32>
    %870 = vector.shape_cast %869 : vector<1x2x32xf32> to vector<2x32xf32>
    %871 = vector.shape_cast %865 : vector<2x32xf32> to vector<1x2x32xf32>
    tpu.vector_store %arg24[%c6_423, %c0_424, %c32_425], %871 {strides = array<i32>} : memref<8x2x64xf32, #tpu.memory_space<vmem>>, vector<1x2x32xf32>,
    %c2_426 = arith.constant 2 : index
    %c0_427 = arith.constant 0 : index
    %c0_428 = arith.constant 0 : index
    %872 = vector.load %arg21[%c2_426, %c0_427, %c0_428] : memref<8x2x128xf32, #tpu.memory_space<vmem>>, vector<1x2x128xf32>
    %873 = vector.shape_cast %872 : vector<1x2x128xf32> to vector<2x128xf32>
    %874 = arith.truncf %839 : vector<2x32xf32> to vector<2x32xbf16>
    %cst_429 = arith.constant dense<0.000000e+00> : vector<2x128xf32>
    %875 = tpu.matmul %874, %750, %cst_429 {dimension_numbers = #tpu.dot_dimension_numbers<[1], [0], [0], [1], [0, 0, 1, 1], [], []>} : vector<2x32xbf16>, vector<32x128xbf16>, vector<2x128xf32> -> vector<2x128xf32>
    %876 = arith.addf %873, %875 : vector<2x128xf32>
    %877 = vector.extract_strided_slice %876 {offsets = [0, 0], sizes = [2, 64], strides = [1, 1]} : vector<2x128xf32> to vector<2x64xf32>
    %878 = arith.negf %877 : vector<2x64xf32>
    %879 = math.exp %878 : vector<2x64xf32>
    %cst_430 = arith.constant 1.000000e+00 : f32
    %880 = vector.broadcast %cst_430 : f32 to vector<2x64xf32>
    %881 = arith.addf %880, %879 : vector<2x64xf32>
    %882 = arith.divf %880, %881 : vector<2x64xf32>
    %883 = vector.extract_strided_slice %876 {offsets = [0, 96], sizes = [2, 32], strides = [1, 1]} : vector<2x128xf32> to vector<2x32xf32>
    %884 = arith.negf %883 : vector<2x32xf32>
    %885 = math.exp %884 : vector<2x32xf32>
    %cst_431 = arith.constant 1.000000e+00 : f32
    %886 = vector.broadcast %cst_431 : f32 to vector<2x32xf32>
    %887 = arith.addf %886, %885 : vector<2x32xf32>
    %888 = arith.divf %886, %887 : vector<2x32xf32>
    %889 = vector.extract_strided_slice %876 {offsets = [0, 64], sizes = [2, 32], strides = [1, 1]} : vector<2x128xf32> to vector<2x32xf32>
    %890 = math.tanh %889 : vector<2x32xf32>
    %891 = vector.extract_strided_slice %882 {offsets = [0, 32], sizes = [2, 32], strides = [1, 1]} : vector<2x64xf32> to vector<2x32xf32>
    %892 = arith.mulf %891, %837 : vector<2x32xf32>
    %893 = vector.extract_strided_slice %882 {offsets = [0, 0], sizes = [2, 32], strides = [1, 1]} : vector<2x64xf32> to vector<2x32xf32>
    %894 = arith.mulf %893, %890 : vector<2x32xf32>
    %895 = arith.addf %892, %894 : vector<2x32xf32>
    %896 = math.tanh %895 : vector<2x32xf32>
    %897 = arith.mulf %888, %896 : vector<2x32xf32>
    %c5_432 = arith.constant 5 : index
    %c0_433 = arith.constant 0 : index
    %c0_434 = arith.constant 0 : index
    %898 = vector.load %arg22[%c5_432, %c0_433, %c0_434] : memref<8x2x128xf32, #tpu.memory_space<vmem>>, vector<1x2x128xf32>
    %899 = vector.shape_cast %898 : vector<1x2x128xf32> to vector<2x128xf32>
    %900 = arith.truncf %865 : vector<2x32xf32> to vector<2x32xbf16>
    %cst_435 = arith.constant dense<0.000000e+00> : vector<2x128xf32>
    %901 = tpu.matmul %900, %751, %cst_435 {dimension_numbers = #tpu.dot_dimension_numbers<[1], [0], [0], [1], [0, 0, 1, 1], [], []>} : vector<2x32xbf16>, vector<32x128xbf16>, vector<2x128xf32> -> vector<2x128xf32>
    %902 = arith.addf %899, %901 : vector<2x128xf32>
    %903 = vector.extract_strided_slice %902 {offsets = [0, 0], sizes = [2, 64], strides = [1, 1]} : vector<2x128xf32> to vector<2x64xf32>
    %904 = arith.negf %903 : vector<2x64xf32>
    %905 = math.exp %904 : vector<2x64xf32>
    %cst_436 = arith.constant 1.000000e+00 : f32
    %906 = vector.broadcast %cst_436 : f32 to vector<2x64xf32>
    %907 = arith.addf %906, %905 : vector<2x64xf32>
    %908 = arith.divf %906, %907 : vector<2x64xf32>
    %909 = vector.extract_strided_slice %902 {offsets = [0, 96], sizes = [2, 32], strides = [1, 1]} : vector<2x128xf32> to vector<2x32xf32>
    %910 = arith.negf %909 : vector<2x32xf32>
    %911 = math.exp %910 : vector<2x32xf32>
    %cst_437 = arith.constant 1.000000e+00 : f32
    %912 = vector.broadcast %cst_437 : f32 to vector<2x32xf32>
    %913 = arith.addf %912, %911 : vector<2x32xf32>
    %914 = arith.divf %912, %913 : vector<2x32xf32>
    %915 = vector.extract_strided_slice %902 {offsets = [0, 64], sizes = [2, 32], strides = [1, 1]} : vector<2x128xf32> to vector<2x32xf32>
    %916 = math.tanh %915 : vector<2x32xf32>
    %917 = vector.extract_strided_slice %908 {offsets = [0, 32], sizes = [2, 32], strides = [1, 1]} : vector<2x64xf32> to vector<2x32xf32>
    %918 = arith.mulf %917, %863 : vector<2x32xf32>
    %919 = vector.extract_strided_slice %908 {offsets = [0, 0], sizes = [2, 32], strides = [1, 1]} : vector<2x64xf32> to vector<2x32xf32>
    %920 = arith.mulf %919, %916 : vector<2x32xf32>
    %921 = arith.addf %918, %920 : vector<2x32xf32>
    %922 = math.tanh %921 : vector<2x32xf32>
    %923 = arith.mulf %914, %922 : vector<2x32xf32>
    %c2_438 = arith.constant 2 : index
    %c0_439 = arith.constant 0 : index
    %c0_440 = arith.constant 0 : index
    %924 = vector.load %arg24[%c2_438, %c0_439, %c0_440] : memref<8x2x64xf32, #tpu.memory_space<vmem>>, vector<1x2x32xf32>
    %925 = vector.shape_cast %924 : vector<1x2x32xf32> to vector<2x32xf32>
    %926 = vector.shape_cast %897 : vector<2x32xf32> to vector<1x2x32xf32>
    tpu.vector_store %arg24[%c2_438, %c0_439, %c0_440], %926 {strides = array<i32>} : memref<8x2x64xf32, #tpu.memory_space<vmem>>, vector<1x2x32xf32>,
    %c5_441 = arith.constant 5 : index
    %c0_442 = arith.constant 0 : index
    %c32_443 = arith.constant 32 : index
    %927 = vector.load %arg24[%c5_441, %c0_442, %c32_443] : memref<8x2x64xf32, #tpu.memory_space<vmem>>, vector<1x2x32xf32>
    %928 = vector.shape_cast %927 : vector<1x2x32xf32> to vector<2x32xf32>
    %929 = vector.shape_cast %923 : vector<2x32xf32> to vector<1x2x32xf32>
    tpu.vector_store %arg24[%c5_441, %c0_442, %c32_443], %929 {strides = array<i32>} : memref<8x2x64xf32, #tpu.memory_space<vmem>>, vector<1x2x32xf32>,
    %c3_444 = arith.constant 3 : index
    %c0_445 = arith.constant 0 : index
    %c0_446 = arith.constant 0 : index
    %930 = vector.load %arg21[%c3_444, %c0_445, %c0_446] : memref<8x2x128xf32, #tpu.memory_space<vmem>>, vector<1x2x128xf32>
    %931 = vector.shape_cast %930 : vector<1x2x128xf32> to vector<2x128xf32>
    %932 = arith.truncf %897 : vector<2x32xf32> to vector<2x32xbf16>
    %cst_447 = arith.constant dense<0.000000e+00> : vector<2x128xf32>
    %933 = tpu.matmul %932, %750, %cst_447 {dimension_numbers = #tpu.dot_dimension_numbers<[1], [0], [0], [1], [0, 0, 1, 1], [], []>} : vector<2x32xbf16>, vector<32x128xbf16>, vector<2x128xf32> -> vector<2x128xf32>
    %934 = arith.addf %931, %933 : vector<2x128xf32>
    %935 = vector.extract_strided_slice %934 {offsets = [0, 0], sizes = [2, 64], strides = [1, 1]} : vector<2x128xf32> to vector<2x64xf32>
    %936 = arith.negf %935 : vector<2x64xf32>
    %937 = math.exp %936 : vector<2x64xf32>
    %cst_448 = arith.constant 1.000000e+00 : f32
    %938 = vector.broadcast %cst_448 : f32 to vector<2x64xf32>
    %939 = arith.addf %938, %937 : vector<2x64xf32>
    %940 = arith.divf %938, %939 : vector<2x64xf32>
    %941 = vector.extract_strided_slice %934 {offsets = [0, 96], sizes = [2, 32], strides = [1, 1]} : vector<2x128xf32> to vector<2x32xf32>
    %942 = arith.negf %941 : vector<2x32xf32>
    %943 = math.exp %942 : vector<2x32xf32>
    %cst_449 = arith.constant 1.000000e+00 : f32
    %944 = vector.broadcast %cst_449 : f32 to vector<2x32xf32>
    %945 = arith.addf %944, %943 : vector<2x32xf32>
    %946 = arith.divf %944, %945 : vector<2x32xf32>
    %947 = vector.extract_strided_slice %934 {offsets = [0, 64], sizes = [2, 32], strides = [1, 1]} : vector<2x128xf32> to vector<2x32xf32>
    %948 = math.tanh %947 : vector<2x32xf32>
    %949 = vector.extract_strided_slice %940 {offsets = [0, 32], sizes = [2, 32], strides = [1, 1]} : vector<2x64xf32> to vector<2x32xf32>
    %950 = arith.mulf %949, %895 : vector<2x32xf32>
    %951 = vector.extract_strided_slice %940 {offsets = [0, 0], sizes = [2, 32], strides = [1, 1]} : vector<2x64xf32> to vector<2x32xf32>
    %952 = arith.mulf %951, %948 : vector<2x32xf32>
    %953 = arith.addf %950, %952 : vector<2x32xf32>
    %954 = math.tanh %953 : vector<2x32xf32>
    %955 = arith.mulf %946, %954 : vector<2x32xf32>
    %c4_450 = arith.constant 4 : index
    %c0_451 = arith.constant 0 : index
    %c0_452 = arith.constant 0 : index
    %956 = vector.load %arg22[%c4_450, %c0_451, %c0_452] : memref<8x2x128xf32, #tpu.memory_space<vmem>>, vector<1x2x128xf32>
    %957 = vector.shape_cast %956 : vector<1x2x128xf32> to vector<2x128xf32>
    %958 = arith.truncf %923 : vector<2x32xf32> to vector<2x32xbf16>
    %cst_453 = arith.constant dense<0.000000e+00> : vector<2x128xf32>
    %959 = tpu.matmul %958, %751, %cst_453 {dimension_numbers = #tpu.dot_dimension_numbers<[1], [0], [0], [1], [0, 0, 1, 1], [], []>} : vector<2x32xbf16>, vector<32x128xbf16>, vector<2x128xf32> -> vector<2x128xf32>
    %960 = arith.addf %957, %959 : vector<2x128xf32>
    %961 = vector.extract_strided_slice %960 {offsets = [0, 0], sizes = [2, 64], strides = [1, 1]} : vector<2x128xf32> to vector<2x64xf32>
    %962 = arith.negf %961 : vector<2x64xf32>
    %963 = math.exp %962 : vector<2x64xf32>
    %cst_454 = arith.constant 1.000000e+00 : f32
    %964 = vector.broadcast %cst_454 : f32 to vector<2x64xf32>
    %965 = arith.addf %964, %963 : vector<2x64xf32>
    %966 = arith.divf %964, %965 : vector<2x64xf32>
    %967 = vector.extract_strided_slice %960 {offsets = [0, 96], sizes = [2, 32], strides = [1, 1]} : vector<2x128xf32> to vector<2x32xf32>
    %968 = arith.negf %967 : vector<2x32xf32>
    %969 = math.exp %968 : vector<2x32xf32>
    %cst_455 = arith.constant 1.000000e+00 : f32
    %970 = vector.broadcast %cst_455 : f32 to vector<2x32xf32>
    %971 = arith.addf %970, %969 : vector<2x32xf32>
    %972 = arith.divf %970, %971 : vector<2x32xf32>
    %973 = vector.extract_strided_slice %960 {offsets = [0, 64], sizes = [2, 32], strides = [1, 1]} : vector<2x128xf32> to vector<2x32xf32>
    %974 = math.tanh %973 : vector<2x32xf32>
    %975 = vector.extract_strided_slice %966 {offsets = [0, 32], sizes = [2, 32], strides = [1, 1]} : vector<2x64xf32> to vector<2x32xf32>
    %976 = arith.mulf %975, %921 : vector<2x32xf32>
    %977 = vector.extract_strided_slice %966 {offsets = [0, 0], sizes = [2, 32], strides = [1, 1]} : vector<2x64xf32> to vector<2x32xf32>
    %978 = arith.mulf %977, %974 : vector<2x32xf32>
    %979 = arith.addf %976, %978 : vector<2x32xf32>
    %980 = math.tanh %979 : vector<2x32xf32>
    %981 = arith.mulf %972, %980 : vector<2x32xf32>
    %c3_456 = arith.constant 3 : index
    %c0_457 = arith.constant 0 : index
    %c0_458 = arith.constant 0 : index
    %982 = vector.load %arg24[%c3_456, %c0_457, %c0_458] : memref<8x2x64xf32, #tpu.memory_space<vmem>>, vector<1x2x32xf32>
    %983 = vector.shape_cast %982 : vector<1x2x32xf32> to vector<2x32xf32>
    %984 = vector.shape_cast %955 : vector<2x32xf32> to vector<1x2x32xf32>
    tpu.vector_store %arg24[%c3_456, %c0_457, %c0_458], %984 {strides = array<i32>} : memref<8x2x64xf32, #tpu.memory_space<vmem>>, vector<1x2x32xf32>,
    %c4_459 = arith.constant 4 : index
    %c0_460 = arith.constant 0 : index
    %c32_461 = arith.constant 32 : index
    %985 = vector.load %arg24[%c4_459, %c0_460, %c32_461] : memref<8x2x64xf32, #tpu.memory_space<vmem>>, vector<1x2x32xf32>
    %986 = vector.shape_cast %985 : vector<1x2x32xf32> to vector<2x32xf32>
    %987 = vector.shape_cast %981 : vector<2x32xf32> to vector<1x2x32xf32>
    tpu.vector_store %arg24[%c4_459, %c0_460, %c32_461], %987 {strides = array<i32>} : memref<8x2x64xf32, #tpu.memory_space<vmem>>, vector<1x2x32xf32>,
    %c4_462 = arith.constant 4 : index
    %c0_463 = arith.constant 0 : index
    %c0_464 = arith.constant 0 : index
    %988 = vector.load %arg21[%c4_462, %c0_463, %c0_464] : memref<8x2x128xf32, #tpu.memory_space<vmem>>, vector<1x2x128xf32>
    %989 = vector.shape_cast %988 : vector<1x2x128xf32> to vector<2x128xf32>
    %990 = arith.truncf %955 : vector<2x32xf32> to vector<2x32xbf16>
    %cst_465 = arith.constant dense<0.000000e+00> : vector<2x128xf32>
    %991 = tpu.matmul %990, %750, %cst_465 {dimension_numbers = #tpu.dot_dimension_numbers<[1], [0], [0], [1], [0, 0, 1, 1], [], []>} : vector<2x32xbf16>, vector<32x128xbf16>, vector<2x128xf32> -> vector<2x128xf32>
    %992 = arith.addf %989, %991 : vector<2x128xf32>
    %993 = vector.extract_strided_slice %992 {offsets = [0, 0], sizes = [2, 64], strides = [1, 1]} : vector<2x128xf32> to vector<2x64xf32>
    %994 = arith.negf %993 : vector<2x64xf32>
    %995 = math.exp %994 : vector<2x64xf32>
    %cst_466 = arith.constant 1.000000e+00 : f32
    %996 = vector.broadcast %cst_466 : f32 to vector<2x64xf32>
    %997 = arith.addf %996, %995 : vector<2x64xf32>
    %998 = arith.divf %996, %997 : vector<2x64xf32>
    %999 = vector.extract_strided_slice %992 {offsets = [0, 96], sizes = [2, 32], strides = [1, 1]} : vector<2x128xf32> to vector<2x32xf32>
    %1000 = arith.negf %999 : vector<2x32xf32>
    %1001 = math.exp %1000 : vector<2x32xf32>
    %cst_467 = arith.constant 1.000000e+00 : f32
    %1002 = vector.broadcast %cst_467 : f32 to vector<2x32xf32>
    %1003 = arith.addf %1002, %1001 : vector<2x32xf32>
    %1004 = arith.divf %1002, %1003 : vector<2x32xf32>
    %1005 = vector.extract_strided_slice %992 {offsets = [0, 64], sizes = [2, 32], strides = [1, 1]} : vector<2x128xf32> to vector<2x32xf32>
    %1006 = math.tanh %1005 : vector<2x32xf32>
    %1007 = vector.extract_strided_slice %998 {offsets = [0, 32], sizes = [2, 32], strides = [1, 1]} : vector<2x64xf32> to vector<2x32xf32>
    %1008 = arith.mulf %1007, %953 : vector<2x32xf32>
    %1009 = vector.extract_strided_slice %998 {offsets = [0, 0], sizes = [2, 32], strides = [1, 1]} : vector<2x64xf32> to vector<2x32xf32>
    %1010 = arith.mulf %1009, %1006 : vector<2x32xf32>
    %1011 = arith.addf %1008, %1010 : vector<2x32xf32>
    %1012 = math.tanh %1011 : vector<2x32xf32>
    %1013 = arith.mulf %1004, %1012 : vector<2x32xf32>
    %c3_468 = arith.constant 3 : index
    %c0_469 = arith.constant 0 : index
    %c0_470 = arith.constant 0 : index
    %1014 = vector.load %arg22[%c3_468, %c0_469, %c0_470] : memref<8x2x128xf32, #tpu.memory_space<vmem>>, vector<1x2x128xf32>
    %1015 = vector.shape_cast %1014 : vector<1x2x128xf32> to vector<2x128xf32>
    %1016 = arith.truncf %981 : vector<2x32xf32> to vector<2x32xbf16>
    %cst_471 = arith.constant dense<0.000000e+00> : vector<2x128xf32>
    %1017 = tpu.matmul %1016, %751, %cst_471 {dimension_numbers = #tpu.dot_dimension_numbers<[1], [0], [0], [1], [0, 0, 1, 1], [], []>} : vector<2x32xbf16>, vector<32x128xbf16>, vector<2x128xf32> -> vector<2x128xf32>
    %1018 = arith.addf %1015, %1017 : vector<2x128xf32>
    %1019 = vector.extract_strided_slice %1018 {offsets = [0, 0], sizes = [2, 64], strides = [1, 1]} : vector<2x128xf32> to vector<2x64xf32>
    %1020 = arith.negf %1019 : vector<2x64xf32>
    %1021 = math.exp %1020 : vector<2x64xf32>
    %cst_472 = arith.constant 1.000000e+00 : f32
    %1022 = vector.broadcast %cst_472 : f32 to vector<2x64xf32>
    %1023 = arith.addf %1022, %1021 : vector<2x64xf32>
    %1024 = arith.divf %1022, %1023 : vector<2x64xf32>
    %1025 = vector.extract_strided_slice %1018 {offsets = [0, 96], sizes = [2, 32], strides = [1, 1]} : vector<2x128xf32> to vector<2x32xf32>
    %1026 = arith.negf %1025 : vector<2x32xf32>
    %1027 = math.exp %1026 : vector<2x32xf32>
    %cst_473 = arith.constant 1.000000e+00 : f32
    %1028 = vector.broadcast %cst_473 : f32 to vector<2x32xf32>
    %1029 = arith.addf %1028, %1027 : vector<2x32xf32>
    %1030 = arith.divf %1028, %1029 : vector<2x32xf32>
    %1031 = vector.extract_strided_slice %1018 {offsets = [0, 64], sizes = [2, 32], strides = [1, 1]} : vector<2x128xf32> to vector<2x32xf32>
    %1032 = math.tanh %1031 : vector<2x32xf32>
    %1033 = vector.extract_strided_slice %1024 {offsets = [0, 32], sizes = [2, 32], strides = [1, 1]} : vector<2x64xf32> to vector<2x32xf32>
    %1034 = arith.mulf %1033, %979 : vector<2x32xf32>
    %1035 = vector.extract_strided_slice %1024 {offsets = [0, 0], sizes = [2, 32], strides = [1, 1]} : vector<2x64xf32> to vector<2x32xf32>
    %1036 = arith.mulf %1035, %1032 : vector<2x32xf32>
    %1037 = arith.addf %1034, %1036 : vector<2x32xf32>
    %1038 = math.tanh %1037 : vector<2x32xf32>
    %1039 = arith.mulf %1030, %1038 : vector<2x32xf32>
    %c4_474 = arith.constant 4 : index
    %c0_475 = arith.constant 0 : index
    %c0_476 = arith.constant 0 : index
    %1040 = vector.load %arg24[%c4_474, %c0_475, %c0_476] : memref<8x2x64xf32, #tpu.memory_space<vmem>>, vector<1x2x32xf32>
    %1041 = vector.shape_cast %1040 : vector<1x2x32xf32> to vector<2x32xf32>
    %1042 = vector.shape_cast %1013 : vector<2x32xf32> to vector<1x2x32xf32>
    tpu.vector_store %arg24[%c4_474, %c0_475, %c0_476], %1042 {strides = array<i32>} : memref<8x2x64xf32, #tpu.memory_space<vmem>>, vector<1x2x32xf32>,
    %c3_477 = arith.constant 3 : index
    %c0_478 = arith.constant 0 : index
    %c32_479 = arith.constant 32 : index
    %1043 = vector.load %arg24[%c3_477, %c0_478, %c32_479] : memref<8x2x64xf32, #tpu.memory_space<vmem>>, vector<1x2x32xf32>
    %1044 = vector.shape_cast %1043 : vector<1x2x32xf32> to vector<2x32xf32>
    %1045 = vector.shape_cast %1039 : vector<2x32xf32> to vector<1x2x32xf32>
    tpu.vector_store %arg24[%c3_477, %c0_478, %c32_479], %1045 {strides = array<i32>} : memref<8x2x64xf32, #tpu.memory_space<vmem>>, vector<1x2x32xf32>,
    %c5_480 = arith.constant 5 : index
    %c0_481 = arith.constant 0 : index
    %c0_482 = arith.constant 0 : index
    %1046 = vector.load %arg21[%c5_480, %c0_481, %c0_482] : memref<8x2x128xf32, #tpu.memory_space<vmem>>, vector<1x2x128xf32>
    %1047 = vector.shape_cast %1046 : vector<1x2x128xf32> to vector<2x128xf32>
    %1048 = arith.truncf %1013 : vector<2x32xf32> to vector<2x32xbf16>
    %cst_483 = arith.constant dense<0.000000e+00> : vector<2x128xf32>
    %1049 = tpu.matmul %1048, %750, %cst_483 {dimension_numbers = #tpu.dot_dimension_numbers<[1], [0], [0], [1], [0, 0, 1, 1], [], []>} : vector<2x32xbf16>, vector<32x128xbf16>, vector<2x128xf32> -> vector<2x128xf32>
    %1050 = arith.addf %1047, %1049 : vector<2x128xf32>
    %1051 = vector.extract_strided_slice %1050 {offsets = [0, 0], sizes = [2, 64], strides = [1, 1]} : vector<2x128xf32> to vector<2x64xf32>
    %1052 = arith.negf %1051 : vector<2x64xf32>
    %1053 = math.exp %1052 : vector<2x64xf32>
    %cst_484 = arith.constant 1.000000e+00 : f32
    %1054 = vector.broadcast %cst_484 : f32 to vector<2x64xf32>
    %1055 = arith.addf %1054, %1053 : vector<2x64xf32>
    %1056 = arith.divf %1054, %1055 : vector<2x64xf32>
    %1057 = vector.extract_strided_slice %1050 {offsets = [0, 96], sizes = [2, 32], strides = [1, 1]} : vector<2x128xf32> to vector<2x32xf32>
    %1058 = arith.negf %1057 : vector<2x32xf32>
    %1059 = math.exp %1058 : vector<2x32xf32>
    %cst_485 = arith.constant 1.000000e+00 : f32
    %1060 = vector.broadcast %cst_485 : f32 to vector<2x32xf32>
    %1061 = arith.addf %1060, %1059 : vector<2x32xf32>
    %1062 = arith.divf %1060, %1061 : vector<2x32xf32>
    %1063 = vector.extract_strided_slice %1050 {offsets = [0, 64], sizes = [2, 32], strides = [1, 1]} : vector<2x128xf32> to vector<2x32xf32>
    %1064 = math.tanh %1063 : vector<2x32xf32>
    %1065 = vector.extract_strided_slice %1056 {offsets = [0, 32], sizes = [2, 32], strides = [1, 1]} : vector<2x64xf32> to vector<2x32xf32>
    %1066 = arith.mulf %1065, %1011 : vector<2x32xf32>
    %1067 = vector.extract_strided_slice %1056 {offsets = [0, 0], sizes = [2, 32], strides = [1, 1]} : vector<2x64xf32> to vector<2x32xf32>
    %1068 = arith.mulf %1067, %1064 : vector<2x32xf32>
    %1069 = arith.addf %1066, %1068 : vector<2x32xf32>
    %1070 = math.tanh %1069 : vector<2x32xf32>
    %1071 = arith.mulf %1062, %1070 : vector<2x32xf32>
    %c2_486 = arith.constant 2 : index
    %c0_487 = arith.constant 0 : index
    %c0_488 = arith.constant 0 : index
    %1072 = vector.load %arg22[%c2_486, %c0_487, %c0_488] : memref<8x2x128xf32, #tpu.memory_space<vmem>>, vector<1x2x128xf32>
    %1073 = vector.shape_cast %1072 : vector<1x2x128xf32> to vector<2x128xf32>
    %1074 = arith.truncf %1039 : vector<2x32xf32> to vector<2x32xbf16>
    %cst_489 = arith.constant dense<0.000000e+00> : vector<2x128xf32>
    %1075 = tpu.matmul %1074, %751, %cst_489 {dimension_numbers = #tpu.dot_dimension_numbers<[1], [0], [0], [1], [0, 0, 1, 1], [], []>} : vector<2x32xbf16>, vector<32x128xbf16>, vector<2x128xf32> -> vector<2x128xf32>
    %1076 = arith.addf %1073, %1075 : vector<2x128xf32>
    %1077 = vector.extract_strided_slice %1076 {offsets = [0, 0], sizes = [2, 64], strides = [1, 1]} : vector<2x128xf32> to vector<2x64xf32>
    %1078 = arith.negf %1077 : vector<2x64xf32>
    %1079 = math.exp %1078 : vector<2x64xf32>
    %cst_490 = arith.constant 1.000000e+00 : f32
    %1080 = vector.broadcast %cst_490 : f32 to vector<2x64xf32>
    %1081 = arith.addf %1080, %1079 : vector<2x64xf32>
    %1082 = arith.divf %1080, %1081 : vector<2x64xf32>
    %1083 = vector.extract_strided_slice %1076 {offsets = [0, 96], sizes = [2, 32], strides = [1, 1]} : vector<2x128xf32> to vector<2x32xf32>
    %1084 = arith.negf %1083 : vector<2x32xf32>
    %1085 = math.exp %1084 : vector<2x32xf32>
    %cst_491 = arith.constant 1.000000e+00 : f32
    %1086 = vector.broadcast %cst_491 : f32 to vector<2x32xf32>
    %1087 = arith.addf %1086, %1085 : vector<2x32xf32>
    %1088 = arith.divf %1086, %1087 : vector<2x32xf32>
    %1089 = vector.extract_strided_slice %1076 {offsets = [0, 64], sizes = [2, 32], strides = [1, 1]} : vector<2x128xf32> to vector<2x32xf32>
    %1090 = math.tanh %1089 : vector<2x32xf32>
    %1091 = vector.extract_strided_slice %1082 {offsets = [0, 32], sizes = [2, 32], strides = [1, 1]} : vector<2x64xf32> to vector<2x32xf32>
    %1092 = arith.mulf %1091, %1037 : vector<2x32xf32>
    %1093 = vector.extract_strided_slice %1082 {offsets = [0, 0], sizes = [2, 32], strides = [1, 1]} : vector<2x64xf32> to vector<2x32xf32>
    %1094 = arith.mulf %1093, %1090 : vector<2x32xf32>
    %1095 = arith.addf %1092, %1094 : vector<2x32xf32>
    %1096 = math.tanh %1095 : vector<2x32xf32>
    %1097 = arith.mulf %1088, %1096 : vector<2x32xf32>
    %c5_492 = arith.constant 5 : index
    %c0_493 = arith.constant 0 : index
    %c0_494 = arith.constant 0 : index
    %1098 = vector.load %arg24[%c5_492, %c0_493, %c0_494] : memref<8x2x64xf32, #tpu.memory_space<vmem>>, vector<1x2x32xf32>
    %1099 = vector.shape_cast %1098 : vector<1x2x32xf32> to vector<2x32xf32>
    %1100 = vector.shape_cast %1071 : vector<2x32xf32> to vector<1x2x32xf32>
    tpu.vector_store %arg24[%c5_492, %c0_493, %c0_494], %1100 {strides = array<i32>} : memref<8x2x64xf32, #tpu.memory_space<vmem>>, vector<1x2x32xf32>,
    %c2_495 = arith.constant 2 : index
    %c0_496 = arith.constant 0 : index
    %c32_497 = arith.constant 32 : index
    %1101 = vector.load %arg24[%c2_495, %c0_496, %c32_497] : memref<8x2x64xf32, #tpu.memory_space<vmem>>, vector<1x2x32xf32>
    %1102 = vector.shape_cast %1101 : vector<1x2x32xf32> to vector<2x32xf32>
    %1103 = vector.shape_cast %1097 : vector<2x32xf32> to vector<1x2x32xf32>
    tpu.vector_store %arg24[%c2_495, %c0_496, %c32_497], %1103 {strides = array<i32>} : memref<8x2x64xf32, #tpu.memory_space<vmem>>, vector<1x2x32xf32>,
    %c6_498 = arith.constant 6 : index
    %c0_499 = arith.constant 0 : index
    %c0_500 = arith.constant 0 : index
    %1104 = vector.load %arg21[%c6_498, %c0_499, %c0_500] : memref<8x2x128xf32, #tpu.memory_space<vmem>>, vector<1x2x128xf32>
    %1105 = vector.shape_cast %1104 : vector<1x2x128xf32> to vector<2x128xf32>
    %1106 = arith.truncf %1071 : vector<2x32xf32> to vector<2x32xbf16>
    %cst_501 = arith.constant dense<0.000000e+00> : vector<2x128xf32>
    %1107 = tpu.matmul %1106, %750, %cst_501 {dimension_numbers = #tpu.dot_dimension_numbers<[1], [0], [0], [1], [0, 0, 1, 1], [], []>} : vector<2x32xbf16>, vector<32x128xbf16>, vector<2x128xf32> -> vector<2x128xf32>
    %1108 = arith.addf %1105, %1107 : vector<2x128xf32>
    %1109 = vector.extract_strided_slice %1108 {offsets = [0, 0], sizes = [2, 64], strides = [1, 1]} : vector<2x128xf32> to vector<2x64xf32>
    %1110 = arith.negf %1109 : vector<2x64xf32>
    %1111 = math.exp %1110 : vector<2x64xf32>
    %cst_502 = arith.constant 1.000000e+00 : f32
    %1112 = vector.broadcast %cst_502 : f32 to vector<2x64xf32>
    %1113 = arith.addf %1112, %1111 : vector<2x64xf32>
    %1114 = arith.divf %1112, %1113 : vector<2x64xf32>
    %1115 = vector.extract_strided_slice %1108 {offsets = [0, 96], sizes = [2, 32], strides = [1, 1]} : vector<2x128xf32> to vector<2x32xf32>
    %1116 = arith.negf %1115 : vector<2x32xf32>
    %1117 = math.exp %1116 : vector<2x32xf32>
    %cst_503 = arith.constant 1.000000e+00 : f32
    %1118 = vector.broadcast %cst_503 : f32 to vector<2x32xf32>
    %1119 = arith.addf %1118, %1117 : vector<2x32xf32>
    %1120 = arith.divf %1118, %1119 : vector<2x32xf32>
    %1121 = vector.extract_strided_slice %1108 {offsets = [0, 64], sizes = [2, 32], strides = [1, 1]} : vector<2x128xf32> to vector<2x32xf32>
    %1122 = math.tanh %1121 : vector<2x32xf32>
    %1123 = vector.extract_strided_slice %1114 {offsets = [0, 32], sizes = [2, 32], strides = [1, 1]} : vector<2x64xf32> to vector<2x32xf32>
    %1124 = arith.mulf %1123, %1069 : vector<2x32xf32>
    %1125 = vector.extract_strided_slice %1114 {offsets = [0, 0], sizes = [2, 32], strides = [1, 1]} : vector<2x64xf32> to vector<2x32xf32>
    %1126 = arith.mulf %1125, %1122 : vector<2x32xf32>
    %1127 = arith.addf %1124, %1126 : vector<2x32xf32>
    %1128 = math.tanh %1127 : vector<2x32xf32>
    %1129 = arith.mulf %1120, %1128 : vector<2x32xf32>
    %c1_504 = arith.constant 1 : index
    %c0_505 = arith.constant 0 : index
    %c0_506 = arith.constant 0 : index
    %1130 = vector.load %arg22[%c1_504, %c0_505, %c0_506] : memref<8x2x128xf32, #tpu.memory_space<vmem>>, vector<1x2x128xf32>
    %1131 = vector.shape_cast %1130 : vector<1x2x128xf32> to vector<2x128xf32>
    %1132 = arith.truncf %1097 : vector<2x32xf32> to vector<2x32xbf16>
    %cst_507 = arith.constant dense<0.000000e+00> : vector<2x128xf32>
    %1133 = tpu.matmul %1132, %751, %cst_507 {dimension_numbers = #tpu.dot_dimension_numbers<[1], [0], [0], [1], [0, 0, 1, 1], [], []>} : vector<2x32xbf16>, vector<32x128xbf16>, vector<2x128xf32> -> vector<2x128xf32>
    %1134 = arith.addf %1131, %1133 : vector<2x128xf32>
    %1135 = vector.extract_strided_slice %1134 {offsets = [0, 0], sizes = [2, 64], strides = [1, 1]} : vector<2x128xf32> to vector<2x64xf32>
    %1136 = arith.negf %1135 : vector<2x64xf32>
    %1137 = math.exp %1136 : vector<2x64xf32>
    %cst_508 = arith.constant 1.000000e+00 : f32
    %1138 = vector.broadcast %cst_508 : f32 to vector<2x64xf32>
    %1139 = arith.addf %1138, %1137 : vector<2x64xf32>
    %1140 = arith.divf %1138, %1139 : vector<2x64xf32>
    %1141 = vector.extract_strided_slice %1134 {offsets = [0, 96], sizes = [2, 32], strides = [1, 1]} : vector<2x128xf32> to vector<2x32xf32>
    %1142 = arith.negf %1141 : vector<2x32xf32>
    %1143 = math.exp %1142 : vector<2x32xf32>
    %cst_509 = arith.constant 1.000000e+00 : f32
    %1144 = vector.broadcast %cst_509 : f32 to vector<2x32xf32>
    %1145 = arith.addf %1144, %1143 : vector<2x32xf32>
    %1146 = arith.divf %1144, %1145 : vector<2x32xf32>
    %1147 = vector.extract_strided_slice %1134 {offsets = [0, 64], sizes = [2, 32], strides = [1, 1]} : vector<2x128xf32> to vector<2x32xf32>
    %1148 = math.tanh %1147 : vector<2x32xf32>
    %1149 = vector.extract_strided_slice %1140 {offsets = [0, 32], sizes = [2, 32], strides = [1, 1]} : vector<2x64xf32> to vector<2x32xf32>
    %1150 = arith.mulf %1149, %1095 : vector<2x32xf32>
    %1151 = vector.extract_strided_slice %1140 {offsets = [0, 0], sizes = [2, 32], strides = [1, 1]} : vector<2x64xf32> to vector<2x32xf32>
    %1152 = arith.mulf %1151, %1148 : vector<2x32xf32>
    %1153 = arith.addf %1150, %1152 : vector<2x32xf32>
    %1154 = math.tanh %1153 : vector<2x32xf32>
    %1155 = arith.mulf %1146, %1154 : vector<2x32xf32>
    %c6_510 = arith.constant 6 : index
    %c0_511 = arith.constant 0 : index
    %c0_512 = arith.constant 0 : index
    %1156 = vector.load %arg24[%c6_510, %c0_511, %c0_512] : memref<8x2x64xf32, #tpu.memory_space<vmem>>, vector<1x2x32xf32>
    %1157 = vector.shape_cast %1156 : vector<1x2x32xf32> to vector<2x32xf32>
    %1158 = vector.shape_cast %1129 : vector<2x32xf32> to vector<1x2x32xf32>
    tpu.vector_store %arg24[%c6_510, %c0_511, %c0_512], %1158 {strides = array<i32>} : memref<8x2x64xf32, #tpu.memory_space<vmem>>, vector<1x2x32xf32>,
    %c1_513 = arith.constant 1 : index
    %c0_514 = arith.constant 0 : index
    %c32_515 = arith.constant 32 : index
    %1159 = vector.load %arg24[%c1_513, %c0_514, %c32_515] : memref<8x2x64xf32, #tpu.memory_space<vmem>>, vector<1x2x32xf32>
    %1160 = vector.shape_cast %1159 : vector<1x2x32xf32> to vector<2x32xf32>
    %1161 = vector.shape_cast %1155 : vector<2x32xf32> to vector<1x2x32xf32>
    tpu.vector_store %arg24[%c1_513, %c0_514, %c32_515], %1161 {strides = array<i32>} : memref<8x2x64xf32, #tpu.memory_space<vmem>>, vector<1x2x32xf32>,
    %c7_516 = arith.constant 7 : index
    %c0_517 = arith.constant 0 : index
    %c0_518 = arith.constant 0 : index
    %1162 = vector.load %arg21[%c7_516, %c0_517, %c0_518] : memref<8x2x128xf32, #tpu.memory_space<vmem>>, vector<1x2x128xf32>
    %1163 = vector.shape_cast %1162 : vector<1x2x128xf32> to vector<2x128xf32>
    %1164 = arith.truncf %1129 : vector<2x32xf32> to vector<2x32xbf16>
    %cst_519 = arith.constant dense<0.000000e+00> : vector<2x128xf32>
    %1165 = tpu.matmul %1164, %750, %cst_519 {dimension_numbers = #tpu.dot_dimension_numbers<[1], [0], [0], [1], [0, 0, 1, 1], [], []>} : vector<2x32xbf16>, vector<32x128xbf16>, vector<2x128xf32> -> vector<2x128xf32>
    %1166 = arith.addf %1163, %1165 : vector<2x128xf32>
    %1167 = vector.extract_strided_slice %1166 {offsets = [0, 0], sizes = [2, 64], strides = [1, 1]} : vector<2x128xf32> to vector<2x64xf32>
    %1168 = arith.negf %1167 : vector<2x64xf32>
    %1169 = math.exp %1168 : vector<2x64xf32>
    %cst_520 = arith.constant 1.000000e+00 : f32
    %1170 = vector.broadcast %cst_520 : f32 to vector<2x64xf32>
    %1171 = arith.addf %1170, %1169 : vector<2x64xf32>
    %1172 = arith.divf %1170, %1171 : vector<2x64xf32>
    %1173 = vector.extract_strided_slice %1166 {offsets = [0, 96], sizes = [2, 32], strides = [1, 1]} : vector<2x128xf32> to vector<2x32xf32>
    %1174 = arith.negf %1173 : vector<2x32xf32>
    %1175 = math.exp %1174 : vector<2x32xf32>
    %cst_521 = arith.constant 1.000000e+00 : f32
    %1176 = vector.broadcast %cst_521 : f32 to vector<2x32xf32>
    %1177 = arith.addf %1176, %1175 : vector<2x32xf32>
    %1178 = arith.divf %1176, %1177 : vector<2x32xf32>
    %1179 = vector.extract_strided_slice %1166 {offsets = [0, 64], sizes = [2, 32], strides = [1, 1]} : vector<2x128xf32> to vector<2x32xf32>
    %1180 = math.tanh %1179 : vector<2x32xf32>
    %1181 = vector.extract_strided_slice %1172 {offsets = [0, 32], sizes = [2, 32], strides = [1, 1]} : vector<2x64xf32> to vector<2x32xf32>
    %1182 = arith.mulf %1181, %1127 : vector<2x32xf32>
    %1183 = vector.extract_strided_slice %1172 {offsets = [0, 0], sizes = [2, 32], strides = [1, 1]} : vector<2x64xf32> to vector<2x32xf32>
    %1184 = arith.mulf %1183, %1180 : vector<2x32xf32>
    %1185 = arith.addf %1182, %1184 : vector<2x32xf32>
    %1186 = math.tanh %1185 : vector<2x32xf32>
    %1187 = arith.mulf %1178, %1186 : vector<2x32xf32>
    %c0_522 = arith.constant 0 : index
    %c0_523 = arith.constant 0 : index
    %c0_524 = arith.constant 0 : index
    %1188 = vector.load %arg22[%c0_522, %c0_523, %c0_524] : memref<8x2x128xf32, #tpu.memory_space<vmem>>, vector<1x2x128xf32>
    %1189 = vector.shape_cast %1188 : vector<1x2x128xf32> to vector<2x128xf32>
    %1190 = arith.truncf %1155 : vector<2x32xf32> to vector<2x32xbf16>
    %cst_525 = arith.constant dense<0.000000e+00> : vector<2x128xf32>
    %1191 = tpu.matmul %1190, %751, %cst_525 {dimension_numbers = #tpu.dot_dimension_numbers<[1], [0], [0], [1], [0, 0, 1, 1], [], []>} : vector<2x32xbf16>, vector<32x128xbf16>, vector<2x128xf32> -> vector<2x128xf32>
    %1192 = arith.addf %1189, %1191 : vector<2x128xf32>
    %1193 = vector.extract_strided_slice %1192 {offsets = [0, 0], sizes = [2, 64], strides = [1, 1]} : vector<2x128xf32> to vector<2x64xf32>
    %1194 = arith.negf %1193 : vector<2x64xf32>
    %1195 = math.exp %1194 : vector<2x64xf32>
    %cst_526 = arith.constant 1.000000e+00 : f32
    %1196 = vector.broadcast %cst_526 : f32 to vector<2x64xf32>
    %1197 = arith.addf %1196, %1195 : vector<2x64xf32>
    %1198 = arith.divf %1196, %1197 : vector<2x64xf32>
    %1199 = vector.extract_strided_slice %1192 {offsets = [0, 96], sizes = [2, 32], strides = [1, 1]} : vector<2x128xf32> to vector<2x32xf32>
    %1200 = arith.negf %1199 : vector<2x32xf32>
    %1201 = math.exp %1200 : vector<2x32xf32>
    %cst_527 = arith.constant 1.000000e+00 : f32
    %1202 = vector.broadcast %cst_527 : f32 to vector<2x32xf32>
    %1203 = arith.addf %1202, %1201 : vector<2x32xf32>
    %1204 = arith.divf %1202, %1203 : vector<2x32xf32>
    %1205 = vector.extract_strided_slice %1192 {offsets = [0, 64], sizes = [2, 32], strides = [1, 1]} : vector<2x128xf32> to vector<2x32xf32>
    %1206 = math.tanh %1205 : vector<2x32xf32>
    %1207 = vector.extract_strided_slice %1198 {offsets = [0, 32], sizes = [2, 32], strides = [1, 1]} : vector<2x64xf32> to vector<2x32xf32>
    %1208 = arith.mulf %1207, %1153 : vector<2x32xf32>
    %1209 = vector.extract_strided_slice %1198 {offsets = [0, 0], sizes = [2, 32], strides = [1, 1]} : vector<2x64xf32> to vector<2x32xf32>
    %1210 = arith.mulf %1209, %1206 : vector<2x32xf32>
    %1211 = arith.addf %1208, %1210 : vector<2x32xf32>
    %1212 = math.tanh %1211 : vector<2x32xf32>
    %1213 = arith.mulf %1204, %1212 : vector<2x32xf32>
    %c7_528 = arith.constant 7 : index
    %c0_529 = arith.constant 0 : index
    %c0_530 = arith.constant 0 : index
    %1214 = vector.load %arg24[%c7_528, %c0_529, %c0_530] : memref<8x2x64xf32, #tpu.memory_space<vmem>>, vector<1x2x32xf32>
    %1215 = vector.shape_cast %1214 : vector<1x2x32xf32> to vector<2x32xf32>
    %1216 = vector.shape_cast %1187 : vector<2x32xf32> to vector<1x2x32xf32>
    tpu.vector_store %arg24[%c7_528, %c0_529, %c0_530], %1216 {strides = array<i32>} : memref<8x2x64xf32, #tpu.memory_space<vmem>>, vector<1x2x32xf32>,
    %c0_531 = arith.constant 0 : index
    %c0_532 = arith.constant 0 : index
    %c32_533 = arith.constant 32 : index
    %1217 = vector.load %arg24[%c0_531, %c0_532, %c32_533] : memref<8x2x64xf32, #tpu.memory_space<vmem>>, vector<1x2x32xf32>
    %1218 = vector.shape_cast %1217 : vector<1x2x32xf32> to vector<2x32xf32>
    %1219 = vector.shape_cast %1213 : vector<2x32xf32> to vector<1x2x32xf32>
    tpu.vector_store %arg24[%c0_531, %c0_532, %c32_533], %1219 {strides = array<i32>} : memref<8x2x64xf32, #tpu.memory_space<vmem>>, vector<1x2x32xf32>,
    %cst_534 = arith.constant 0.000000e+00 : f32
    %1220 = vector.broadcast %cst_534 : f32 to vector<2x32xf32>
    %c0_535 = arith.constant 0 : index
    %c0_536 = arith.constant 0 : index
    %c0_537 = arith.constant 0 : index
    %1221 = vector.load %arg24[%c0_535, %c0_536, %c0_537] : memref<8x2x64xf32, #tpu.memory_space<vmem>>, vector<1x2x64xf32>
    %1222 = vector.shape_cast %1221 : vector<1x2x64xf32> to vector<2x64xf32>
    %1223 = arith.truncf %1222 : vector<2x64xf32> to vector<2x64xbf16>
    %c0_538 = arith.constant 0 : index
    %c0_539 = arith.constant 0 : index
    %c0_540 = arith.constant 0 : index
    %1224 = vector.load %arg14[%c0_538, %c0_539, %c0_540] : memref<8x64x32xbf16, #tpu.memory_space<vmem>>, vector<1x64x32xbf16>
    %1225 = vector.shape_cast %1224 : vector<1x64x32xbf16> to vector<64x32xbf16>
    %cst_541 = arith.constant dense<0.000000e+00> : vector<2x32xf32>
    %1226 = tpu.matmul %1223, %1225, %cst_541 {dimension_numbers = #tpu.dot_dimension_numbers<[1], [0], [0], [1], [0, 0, 1, 1], [], []>} : vector<2x64xbf16>, vector<64x32xbf16>, vector<2x32xf32> -> vector<2x32xf32>
    %1227 = arith.addf %1220, %1226 : vector<2x32xf32>
    %c1_542 = arith.constant 1 : index
    %c0_543 = arith.constant 0 : index
    %c0_544 = arith.constant 0 : index
    %1228 = vector.load %arg24[%c1_542, %c0_543, %c0_544] : memref<8x2x64xf32, #tpu.memory_space<vmem>>, vector<1x2x64xf32>
    %1229 = vector.shape_cast %1228 : vector<1x2x64xf32> to vector<2x64xf32>
    %1230 = arith.truncf %1229 : vector<2x64xf32> to vector<2x64xbf16>
    %c1_545 = arith.constant 1 : index
    %c0_546 = arith.constant 0 : index
    %c0_547 = arith.constant 0 : index
    %1231 = vector.load %arg14[%c1_545, %c0_546, %c0_547] : memref<8x64x32xbf16, #tpu.memory_space<vmem>>, vector<1x64x32xbf16>
    %1232 = vector.shape_cast %1231 : vector<1x64x32xbf16> to vector<64x32xbf16>
    %cst_548 = arith.constant dense<0.000000e+00> : vector<2x32xf32>
    %1233 = tpu.matmul %1230, %1232, %cst_548 {dimension_numbers = #tpu.dot_dimension_numbers<[1], [0], [0], [1], [0, 0, 1, 1], [], []>} : vector<2x64xbf16>, vector<64x32xbf16>, vector<2x32xf32> -> vector<2x32xf32>
    %1234 = arith.addf %1227, %1233 : vector<2x32xf32>
    %c2_549 = arith.constant 2 : index
    %c0_550 = arith.constant 0 : index
    %c0_551 = arith.constant 0 : index
    %1235 = vector.load %arg24[%c2_549, %c0_550, %c0_551] : memref<8x2x64xf32, #tpu.memory_space<vmem>>, vector<1x2x64xf32>
    %1236 = vector.shape_cast %1235 : vector<1x2x64xf32> to vector<2x64xf32>
    %1237 = arith.truncf %1236 : vector<2x64xf32> to vector<2x64xbf16>
    %c2_552 = arith.constant 2 : index
    %c0_553 = arith.constant 0 : index
    %c0_554 = arith.constant 0 : index
    %1238 = vector.load %arg14[%c2_552, %c0_553, %c0_554] : memref<8x64x32xbf16, #tpu.memory_space<vmem>>, vector<1x64x32xbf16>
    %1239 = vector.shape_cast %1238 : vector<1x64x32xbf16> to vector<64x32xbf16>
    %cst_555 = arith.constant dense<0.000000e+00> : vector<2x32xf32>
    %1240 = tpu.matmul %1237, %1239, %cst_555 {dimension_numbers = #tpu.dot_dimension_numbers<[1], [0], [0], [1], [0, 0, 1, 1], [], []>} : vector<2x64xbf16>, vector<64x32xbf16>, vector<2x32xf32> -> vector<2x32xf32>
    %1241 = arith.addf %1234, %1240 : vector<2x32xf32>
    %c3_556 = arith.constant 3 : index
    %c0_557 = arith.constant 0 : index
    %c0_558 = arith.constant 0 : index
    %1242 = vector.load %arg24[%c3_556, %c0_557, %c0_558] : memref<8x2x64xf32, #tpu.memory_space<vmem>>, vector<1x2x64xf32>
    %1243 = vector.shape_cast %1242 : vector<1x2x64xf32> to vector<2x64xf32>
    %1244 = arith.truncf %1243 : vector<2x64xf32> to vector<2x64xbf16>
    %c3_559 = arith.constant 3 : index
    %c0_560 = arith.constant 0 : index
    %c0_561 = arith.constant 0 : index
    %1245 = vector.load %arg14[%c3_559, %c0_560, %c0_561] : memref<8x64x32xbf16, #tpu.memory_space<vmem>>, vector<1x64x32xbf16>
    %1246 = vector.shape_cast %1245 : vector<1x64x32xbf16> to vector<64x32xbf16>
    %cst_562 = arith.constant dense<0.000000e+00> : vector<2x32xf32>
    %1247 = tpu.matmul %1244, %1246, %cst_562 {dimension_numbers = #tpu.dot_dimension_numbers<[1], [0], [0], [1], [0, 0, 1, 1], [], []>} : vector<2x64xbf16>, vector<64x32xbf16>, vector<2x32xf32> -> vector<2x32xf32>
    %1248 = arith.addf %1241, %1247 : vector<2x32xf32>
    %c4_563 = arith.constant 4 : index
    %c0_564 = arith.constant 0 : index
    %c0_565 = arith.constant 0 : index
    %1249 = vector.load %arg24[%c4_563, %c0_564, %c0_565] : memref<8x2x64xf32, #tpu.memory_space<vmem>>, vector<1x2x64xf32>
    %1250 = vector.shape_cast %1249 : vector<1x2x64xf32> to vector<2x64xf32>
    %1251 = arith.truncf %1250 : vector<2x64xf32> to vector<2x64xbf16>
    %c4_566 = arith.constant 4 : index
    %c0_567 = arith.constant 0 : index
    %c0_568 = arith.constant 0 : index
    %1252 = vector.load %arg14[%c4_566, %c0_567, %c0_568] : memref<8x64x32xbf16, #tpu.memory_space<vmem>>, vector<1x64x32xbf16>
    %1253 = vector.shape_cast %1252 : vector<1x64x32xbf16> to vector<64x32xbf16>
    %cst_569 = arith.constant dense<0.000000e+00> : vector<2x32xf32>
    %1254 = tpu.matmul %1251, %1253, %cst_569 {dimension_numbers = #tpu.dot_dimension_numbers<[1], [0], [0], [1], [0, 0, 1, 1], [], []>} : vector<2x64xbf16>, vector<64x32xbf16>, vector<2x32xf32> -> vector<2x32xf32>
    %1255 = arith.addf %1248, %1254 : vector<2x32xf32>
    %c5_570 = arith.constant 5 : index
    %c0_571 = arith.constant 0 : index
    %c0_572 = arith.constant 0 : index
    %1256 = vector.load %arg24[%c5_570, %c0_571, %c0_572] : memref<8x2x64xf32, #tpu.memory_space<vmem>>, vector<1x2x64xf32>
    %1257 = vector.shape_cast %1256 : vector<1x2x64xf32> to vector<2x64xf32>
    %1258 = arith.truncf %1257 : vector<2x64xf32> to vector<2x64xbf16>
    %c5_573 = arith.constant 5 : index
    %c0_574 = arith.constant 0 : index
    %c0_575 = arith.constant 0 : index
    %1259 = vector.load %arg14[%c5_573, %c0_574, %c0_575] : memref<8x64x32xbf16, #tpu.memory_space<vmem>>, vector<1x64x32xbf16>
    %1260 = vector.shape_cast %1259 : vector<1x64x32xbf16> to vector<64x32xbf16>
    %cst_576 = arith.constant dense<0.000000e+00> : vector<2x32xf32>
    %1261 = tpu.matmul %1258, %1260, %cst_576 {dimension_numbers = #tpu.dot_dimension_numbers<[1], [0], [0], [1], [0, 0, 1, 1], [], []>} : vector<2x64xbf16>, vector<64x32xbf16>, vector<2x32xf32> -> vector<2x32xf32>
    %1262 = arith.addf %1255, %1261 : vector<2x32xf32>
    %c6_577 = arith.constant 6 : index
    %c0_578 = arith.constant 0 : index
    %c0_579 = arith.constant 0 : index
    %1263 = vector.load %arg24[%c6_577, %c0_578, %c0_579] : memref<8x2x64xf32, #tpu.memory_space<vmem>>, vector<1x2x64xf32>
    %1264 = vector.shape_cast %1263 : vector<1x2x64xf32> to vector<2x64xf32>
    %1265 = arith.truncf %1264 : vector<2x64xf32> to vector<2x64xbf16>
    %c6_580 = arith.constant 6 : index
    %c0_581 = arith.constant 0 : index
    %c0_582 = arith.constant 0 : index
    %1266 = vector.load %arg14[%c6_580, %c0_581, %c0_582] : memref<8x64x32xbf16, #tpu.memory_space<vmem>>, vector<1x64x32xbf16>
    %1267 = vector.shape_cast %1266 : vector<1x64x32xbf16> to vector<64x32xbf16>
    %cst_583 = arith.constant dense<0.000000e+00> : vector<2x32xf32>
    %1268 = tpu.matmul %1265, %1267, %cst_583 {dimension_numbers = #tpu.dot_dimension_numbers<[1], [0], [0], [1], [0, 0, 1, 1], [], []>} : vector<2x64xbf16>, vector<64x32xbf16>, vector<2x32xf32> -> vector<2x32xf32>
    %1269 = arith.addf %1262, %1268 : vector<2x32xf32>
    %c7_584 = arith.constant 7 : index
    %c0_585 = arith.constant 0 : index
    %c0_586 = arith.constant 0 : index
    %1270 = vector.load %arg24[%c7_584, %c0_585, %c0_586] : memref<8x2x64xf32, #tpu.memory_space<vmem>>, vector<1x2x64xf32>
    %1271 = vector.shape_cast %1270 : vector<1x2x64xf32> to vector<2x64xf32>
    %1272 = arith.truncf %1271 : vector<2x64xf32> to vector<2x64xbf16>
    %c7_587 = arith.constant 7 : index
    %c0_588 = arith.constant 0 : index
    %c0_589 = arith.constant 0 : index
    %1273 = vector.load %arg14[%c7_587, %c0_588, %c0_589] : memref<8x64x32xbf16, #tpu.memory_space<vmem>>, vector<1x64x32xbf16>
    %1274 = vector.shape_cast %1273 : vector<1x64x32xbf16> to vector<64x32xbf16>
    %cst_590 = arith.constant dense<0.000000e+00> : vector<2x32xf32>
    %1275 = tpu.matmul %1272, %1274, %cst_590 {dimension_numbers = #tpu.dot_dimension_numbers<[1], [0], [0], [1], [0, 0, 1, 1], [], []>} : vector<2x64xbf16>, vector<64x32xbf16>, vector<2x32xf32> -> vector<2x32xf32>
    %1276 = arith.addf %1269, %1275 : vector<2x32xf32>
    %c0_591 = arith.constant 0 : index
    %c0_592 = arith.constant 0 : index
    %1277 = vector.load %arg15[%c0_591, %c0_592] : memref<1x32xf32, #tpu.memory_space<vmem>>, vector<1x32xf32>
    %1278 = vector.broadcast %1277 : vector<1x32xf32> to vector<2x32xf32>
    %1279 = arith.addf %1276, %1278 : vector<2x32xf32>
    %1280 = arith.truncf %1279 : vector<2x32xf32> to vector<2x32xbf16>
    %c0_593 = arith.constant 0 : index
    %c0_594 = arith.constant 0 : index
    %1281 = vector.load %arg16[%c0_593, %c0_594] : memref<32x8xbf16, #tpu.memory_space<vmem>>, vector<32x8xbf16>
    %cst_595 = arith.constant dense<0.000000e+00> : vector<2x8xf32>
    %1282 = tpu.matmul %1280, %1281, %cst_595 {dimension_numbers = #tpu.dot_dimension_numbers<[1], [0], [0], [1], [0, 0, 1, 1], [], []>} : vector<2x32xbf16>, vector<32x8xbf16>, vector<2x8xf32> -> vector<2x8xf32>
    %c0_596 = arith.constant 0 : index
    %c0_597 = arith.constant 0 : index
    %1283 = vector.load %arg17[%c0_596, %c0_597] : memref<1x8xf32, #tpu.memory_space<vmem>>, vector<1x8xf32>
    %1284 = vector.broadcast %1283 : vector<1x8xf32> to vector<2x8xf32>
    %1285 = arith.addf %1282, %1284 : vector<2x8xf32>
    %1286 = arith.truncf %1285 : vector<2x8xf32> to vector<2x8xbf16>
    %c0_598 = arith.constant 0 : index
    %c0_599 = arith.constant 0 : index
    %1287 = vector.load %arg18[%c0_598, %c0_599] : memref<8x4xbf16, #tpu.memory_space<vmem>>, vector<8x4xbf16>
    %cst_600 = arith.constant dense<0.000000e+00> : vector<2x4xf32>
    %1288 = tpu.matmul %1286, %1287, %cst_600 {dimension_numbers = #tpu.dot_dimension_numbers<[1], [0], [0], [1], [0, 0, 1, 1], [], []>} : vector<2x8xbf16>, vector<8x4xbf16>, vector<2x4xf32> -> vector<2x4xf32>
    %c0_601 = arith.constant 0 : index
    %c0_602 = arith.constant 0 : index
    %1289 = vector.load %arg19[%c0_601, %c0_602] : memref<1x4xf32, #tpu.memory_space<vmem>>, vector<1x4xf32>
    %1290 = vector.broadcast %1289 : vector<1x4xf32> to vector<2x4xf32>
    %1291 = arith.addf %1288, %1290 : vector<2x4xf32>
    %c0_603 = arith.constant 0 : index
    %c0_604 = arith.constant 0 : index
    %1292 = vector.load %arg20[%c0_603, %c0_604] : memref<2x4xf32, #tpu.memory_space<vmem>>, vector<2x4xf32>
    tpu.vector_store %arg20[%c0_603, %c0_604], %1291 {strides = array<i32>} : memref<2x4xf32, #tpu.memory_space<vmem>>, vector<2x4xf32>,
    return
  }
  func.func @transform_0(%arg0: i32) -> (i32, i32, i32) {
    %c0_i32 = arith.constant 0 : i32
    %c0_i32_0 = arith.constant 0 : i32
    %c0_i32_1 = arith.constant 0 : i32
    return %c0_i32, %arg0, %c0_i32_0 : i32, i32, i32
  }
  func.func @transform_1(%arg0: i32) -> (i32, i32) {
    %c0_i32 = arith.constant 0 : i32
    %c0_i32_0 = arith.constant 0 : i32
    %c0_i32_1 = arith.constant 0 : i32
    return %c0_i32, %c0_i32_0 : i32, i32
  }
  func.func @transform_2(%arg0: i32) -> (i32, i32) {
    %c0_i32 = arith.constant 0 : i32
    %c0_i32_0 = arith.constant 0 : i32
    %c0_i32_1 = arith.constant 0 : i32
    return %c0_i32, %c0_i32_0 : i32, i32
  }
  func.func @transform_3(%arg0: i32) -> (i32, i32) {
    %c0_i32 = arith.constant 0 : i32
    %c0_i32_0 = arith.constant 0 : i32
    %c0_i32_1 = arith.constant 0 : i32
    return %c0_i32, %c0_i32_0 : i32, i32
  }
  func.func @transform_4(%arg0: i32) -> (i32, i32) {
    %c0_i32 = arith.constant 0 : i32
    %c0_i32_0 = arith.constant 0 : i32
    %c0_i32_1 = arith.constant 0 : i32
    return %c0_i32, %c0_i32_0 : i32, i32
  }
  func.func @transform_5(%arg0: i32) -> (i32, i32) {
    %c0_i32 = arith.constant 0 : i32
    %c0_i32_0 = arith.constant 0 : i32
    %c0_i32_1 = arith.constant 0 : i32
    return %c0_i32, %c0_i32_0 : i32, i32
  }
  func.func @transform_6(%arg0: i32) -> (i32, i32) {
    %c0_i32 = arith.constant 0 : i32
    %c0_i32_0 = arith.constant 0 : i32
    %c0_i32_1 = arith.constant 0 : i32
    return %c0_i32, %c0_i32_0 : i32, i32
  }
  func.func @transform_7(%arg0: i32) -> (i32, i32) {
    %c0_i32 = arith.constant 0 : i32
    %c0_i32_0 = arith.constant 0 : i32
    %c0_i32_1 = arith.constant 0 : i32
    return %c0_i32, %c0_i32_0 : i32, i32
  }
  func.func @transform_8(%arg0: i32) -> (i32, i32) {
    %c0_i32 = arith.constant 0 : i32
    %c0_i32_0 = arith.constant 0 : i32
    %c0_i32_1 = arith.constant 0 : i32
    return %c0_i32, %c0_i32_0 : i32, i32
  }
  func.func @transform_9(%arg0: i32) -> (i32, i32) {
    %c0_i32 = arith.constant 0 : i32
    %c0_i32_0 = arith.constant 0 : i32
    %c0_i32_1 = arith.constant 0 : i32
    return %c0_i32, %c0_i32_0 : i32, i32
  }
  func.func @transform_10(%arg0: i32) -> (i32, i32) {
    %c0_i32 = arith.constant 0 : i32
    %c0_i32_0 = arith.constant 0 : i32
    %c0_i32_1 = arith.constant 0 : i32
    return %c0_i32, %c0_i32_0 : i32, i32
  }
  func.func @transform_11(%arg0: i32) -> (i32, i32) {
    %c0_i32 = arith.constant 0 : i32
    %c0_i32_0 = arith.constant 0 : i32
    %c0_i32_1 = arith.constant 0 : i32
    return %c0_i32, %c0_i32_0 : i32, i32
  }
  func.func @transform_12(%arg0: i32) -> (i32, i32) {
    %c0_i32 = arith.constant 0 : i32
    %c0_i32_0 = arith.constant 0 : i32
    %c0_i32_1 = arith.constant 0 : i32
    return %c0_i32, %c0_i32_0 : i32, i32
  }
  func.func @transform_13(%arg0: i32) -> (i32, i32, i32) {
    %c0_i32 = arith.constant 0 : i32
    %c0_i32_0 = arith.constant 0 : i32
    %c0_i32_1 = arith.constant 0 : i32
    %c0_i32_2 = arith.constant 0 : i32
    return %c0_i32, %c0_i32_0, %c0_i32_1 : i32, i32, i32
  }
  func.func @transform_14(%arg0: i32) -> (i32, i32) {
    %c0_i32 = arith.constant 0 : i32
    %c0_i32_0 = arith.constant 0 : i32
    %c0_i32_1 = arith.constant 0 : i32
    return %c0_i32, %c0_i32_0 : i32, i32
  }
  func.func @transform_15(%arg0: i32) -> (i32, i32) {
    %c0_i32 = arith.constant 0 : i32
    %c0_i32_0 = arith.constant 0 : i32
    %c0_i32_1 = arith.constant 0 : i32
    return %c0_i32, %c0_i32_0 : i32, i32
  }
  func.func @transform_16(%arg0: i32) -> (i32, i32) {
    %c0_i32 = arith.constant 0 : i32
    %c0_i32_0 = arith.constant 0 : i32
    %c0_i32_1 = arith.constant 0 : i32
    return %c0_i32, %c0_i32_0 : i32, i32
  }
  func.func @transform_17(%arg0: i32) -> (i32, i32) {
    %c0_i32 = arith.constant 0 : i32
    %c0_i32_0 = arith.constant 0 : i32
    %c0_i32_1 = arith.constant 0 : i32
    return %c0_i32, %c0_i32_0 : i32, i32
  }
  func.func @transform_18(%arg0: i32) -> (i32, i32) {
    %c0_i32 = arith.constant 0 : i32
    %c0_i32_0 = arith.constant 0 : i32
    %c0_i32_1 = arith.constant 0 : i32
    return %c0_i32, %c0_i32_0 : i32, i32
  }
  func.func @transform_19(%arg0: i32) -> (i32, i32) {
    %c0_i32 = arith.constant 0 : i32
    %c0_i32_0 = arith.constant 0 : i32
    return %arg0, %c0_i32 : i32, i32
  }
}

</mosaic_0001>

<bundles_post_ra>
// kernel: seq_classifier_forward.1
= control target key start
LH: loop header
LB: loop body
LE: loop exit
PB: predicated region body
PF: predicated region fallthrough
CT: control target
= control target key end

     0   :  { %s8522_s0 = inlined_call_operand.hbm [shape: bf16[8,2,16], index: 0, kind: input, shape index: {}]   ;;  %s8523_s1 = inlined_call_operand.hbm [shape: bf16[16,128], index: 1, kind: input, shape index: {}]   ;;  %s8524_s2 = inlined_call_operand.hbm [shape: bf16[32,128], index: 2, kind: input, shape index: {}]   ;;  %s8525_s3 = inlined_call_operand.hbm [shape: f32[1,128], index: 3, kind: input, shape index: {}]   ;;  %s8526_s4 = inlined_call_operand.hbm [shape: bf16[16,128], index: 4, kind: input, shape index: {}]   ;;  %s8527_s5 = inlined_call_operand.hbm [shape: bf16[32,128], index: 5, kind: input, shape index: {}]   ;;  %s8528_s6 = inlined_call_operand.hbm [shape: f32[1,128], index: 6, kind: input, shape index: {}]   ;;  %s8529_s7 = inlined_call_operand.hbm [shape: bf16[64,128], index: 7, kind: input, shape index: {}]   ;;  %s8530_s8 = inlined_call_operand.hbm [shape: bf16[32,128], index: 8, kind: input, shape index: {}]   ;;  %s8531_s9 = inlined_call_operand.hbm [shape: f32[1,128], index: 9, kind: input, shape index: {}]   ;;  %s8532_s10 = inlined_call_operand.hbm [shape: bf16[64,128], index: 10, kind: input, shape index: {}]   ;;  %s8533_s11 = inlined_call_operand.hbm [shape: bf16[32,128], index: 11, kind: input, shape index: {}]   ;;  %s8534_s12 = inlined_call_operand.hbm [shape: f32[1,128], index: 12, kind: input, shape index: {}]   ;;  %s8535_s13 = inlined_call_operand.hbm [shape: bf16[8,64,32], index: 13, kind: input, shape index: {}]   ;;  %s8536_s14 = inlined_call_operand.hbm [shape: f32[1,32], index: 14, kind: input, shape index: {}]   ;;  %s8537_s15 = inlined_call_operand.hbm [shape: bf16[32,8], index: 15, kind: input, shape index: {}]   ;;  %s8538_s16 = inlined_call_operand.hbm [shape: f32[1,8], index: 16, kind: input, shape index: {}]   ;;  %s8539_s17 = inlined_call_operand.hbm [shape: bf16[8,4], index: 17, kind: input, shape index: {}]   ;;  %s8540_s18 = inlined_call_operand.hbm [shape: f32[1,4], index: 18, kind: input, shape index: {}]   ;;  %s8541_s19 = inlined_call_operand.hbm [shape: f32[2,4], index: 19, kind: output, shape index: {}]  }
   0x1   :  { %8549 = sst [smem:[#allocation48_spill]] %s8522_s0 }
   0x2   :  { %8550 = sst [smem:[#allocation49_spill]] %s8523_s1 }
   0x3   :  { %8551 = sst [smem:[#allocation50_spill]] %s8524_s2 }
   0x4   :  { %8552 = sst [smem:[#allocation51_spill]] %s8525_s3 }
   0x5   :  { %8553 = sst [smem:[#allocation52_spill]] %s8538_s16 }
   0x6   :  { %8554 = sst [smem:[#allocation53_spill]] %s8540_s18 }
   0x7   :  { %8555 = sst [smem:[#allocation54_spill]] %s8541_s19 }
   0x8   :  { %24 = vsyncpa [#allocation7], 0 }
   0x9   :  { %25 = vsyncpa [#allocation10], 0 }
   0xa   :  { %26 = vsyncpa [#allocation13], 0 }
   0xb   :  { %27 = vsyncpa [#allocation16], 0 }
   0xc   :  { %28 = vsyncpa [#allocation19], 0 }
   0xd   :  { %29 = vsyncpa [#allocation22], 0 }
   0xe   :  { %30 = vsyncpa [#allocation25], 0 }
   0xf   :  { %31 = vsyncpa [#allocation28], 0 }
  0x10   :  { %32 = vsyncpa [#allocation31], 0 }
  0x11   :  { %33 = vsyncpa [#allocation34], 0 }
  0x12   :  { %34 = vsyncpa [#allocation8], 0  ;;  %s7105_s0 = smov [#allocation9]   ;;  %s8556_s1 = sld [smem:[#allocation49_spill]] }
  0x13   :  { %s52_s30 = sshll.u32 %s7105_s0, 4  ;;  %s53_s30 = int_to_ptr.vmem [resolvable:$true] %s52_s30 }
  0x18   :  { %s6643_s22 = scalar_lea.hbm %s8556_s1, 128 }
  0x19   :  { %p6644_p0 = scmp.ne.s32.totalorder %s8556_s1, %s6643_s22  ;;  %p6647_p1 = scmp.lt.u32.totalorder %s6643_s22, %s8556_s1 }
  0x1b   :  { %p6649_p2 = pnand %p6647_p1, %p6644_p0 }
  0x1d   :  { %6652 = shalt.err (!%p6649_p2)
}
  0x1e   :  { %s6653_s3 = scalar_lea.vmem %s53_s30, 128  ;;  %p6658_p4 = scmp.lt.s32.totalorder %s53_s30, %s53_s30 }
  0x1f   :  { %p6654_p3 = scmp.ne.s32.totalorder %s53_s30, %s6653_s3  ;;  %p6659_p5 = scmp.lt.s32.totalorder %s6653_s3, %s6653_s3 }
  0x21   :  { %p6660_p6 = por %p6659_p5, %p6658_p4 }
  0x23   :  { %p6661_p7 = pnand %p6660_p6, %p6654_p3 }
  0x25   :  { %6664 = shalt.err (!%p6661_p7)
}
  0x26   :  { %s7106_s26 = smov 64   ;;  %s7107_s27 = smov 4  }
  0x27   :  { %58 = dma.hbm_to_vmem [thread:$0]  %s8556_s1, 128, %s53_s30, [#allocation10], %s7106_s26, %s7106_s26, %s7107_s27  }
  0x28   :  { %s7108_s0 = smov [#allocation12]   ;;  %s7109_s21 = smov [#allocation15]  }
  0x29   :  { %s77_s20 = sshll.u32 %s7108_s0, 4  ;;  %s98_s22 = sshll.u32 %s7109_s21, 4  ;;  %s78_s20 = int_to_ptr.vmem [resolvable:$true] %s77_s20  ;;  %s99_s22 = int_to_ptr.vmem [resolvable:$true] %s98_s22 }
  0x2a   :  { %s8557_s24 = sld [smem:[#allocation51_spill]] }
  0x30   :  { %s6665_s25 = scalar_lea.hbm %s8557_s24, 16 }
  0x31   :  { %p6666_p8 = scmp.ne.s32.totalorder %s8557_s24, %s6665_s25  ;;  %p6669_p9 = scmp.lt.u32.totalorder %s6665_s25, %s8557_s24 }
  0x33   :  { %p6671_p10 = pnand %p6669_p9, %p6666_p8 }
  0x35   :  { %6674 = shalt.err (!%p6671_p10)
}
  0x36   :  { %s6675_s30 = scalar_lea.vmem %s78_s20, 16  ;;  %s6679_s1 = scalar_lea.vmem %s78_s20, 32 }
  0x37   :  { %p6676_p11 = scmp.ne.s32.totalorder %s78_s20, %s6675_s30  ;;  %p6680_p12 = scmp.lt.s32.totalorder %s78_s20, %s78_s20 }
  0x38   :  { %p6681_p13 = scmp.lt.s32.totalorder %s6679_s1, %s6675_s30 }
  0x3a   :  { %p6682_p0 = por %p6681_p13, %p6680_p12 }
  0x3c   :  { %p6683_p1 = pnand %p6682_p0, %p6676_p11 }
  0x3e   :  { %6686 = shalt.err (!%p6683_p1)
}
  0x3f   :  { %80 = dma.hbm_to_vmem [thread:$0]  %s8557_s24, 16, %s78_s20, [#allocation13]  }
  0x40   :  { %s6687_s16 = scalar_lea.hbm %s8527_s5, 256 }
  0x41   :  { %p6688_p2 = scmp.ne.s32.totalorder %s8527_s5, %s6687_s16  ;;  %p6691_p3 = scmp.lt.u32.totalorder %s6687_s16, %s8527_s5 }
  0x43   :  { %p6693_p4 = pnand %p6691_p3, %p6688_p2 }
  0x45   :  { %6696 = shalt.err (!%p6693_p4)
}
  0x46   :  { %s6697_s25 = scalar_lea.vmem %s99_s22, 256  ;;  %p6702_p6 = scmp.lt.s32.totalorder %s99_s22, %s99_s22 }
  0x47   :  { %p6698_p5 = scmp.ne.s32.totalorder %s99_s22, %s6697_s25  ;;  %p6703_p7 = scmp.lt.s32.totalorder %s6697_s25, %s6697_s25 }
  0x49   :  { %p6704_p8 = por %p6703_p7, %p6702_p6 }
  0x4b   :  { %p6705_p9 = pnand %p6704_p8, %p6698_p5 }
  0x4d   :  { %6708 = shalt.err (!%p6705_p9)
}
  0x4e   :  { %104 = dma.hbm_to_vmem [thread:$0]  %s8527_s5, 256, %s99_s22, [#allocation16], %s7106_s26, %s7106_s26, %s7107_s27  }
  0x4f   :  { %s7110_s3 = smov [#allocation18]   ;;  %s7111_s1 = smov [#allocation21]  }
  0x50   :  { %s120_s30 = sshll.u32 %s7110_s3, 4  ;;  %s145_s28 = sshll.u32 %s7111_s1, 4  ;;  %s121_s30 = int_to_ptr.vmem [resolvable:$true] %s120_s30  ;;  %s146_s28 = int_to_ptr.vmem [resolvable:$true] %s145_s28 }
  0x51   :  { %s6709_s0 = scalar_lea.hbm %s8529_s7, 512 }
  0x52   :  { %p6710_p10 = scmp.ne.s32.totalorder %s8529_s7, %s6709_s0  ;;  %p6713_p11 = scmp.lt.u32.totalorder %s6709_s0, %s8529_s7 }
  0x54   :  { %p6715_p12 = pnand %p6713_p11, %p6710_p10 }
  0x56   :  { %6718 = shalt.err (!%p6715_p12)
}
  0x57   :  { %s6719_s5 = scalar_lea.vmem %s121_s30, 512  ;;  %p6724_p0 = scmp.lt.s32.totalorder %s121_s30, %s121_s30 }
  0x58   :  { %p6720_p13 = scmp.ne.s32.totalorder %s121_s30, %s6719_s5  ;;  %p6725_p1 = scmp.lt.s32.totalorder %s6719_s5, %s6719_s5 }
  0x5a   :  { %p6726_p2 = por %p6725_p1, %p6724_p0 }
  0x5c   :  { %p6727_p3 = pnand %p6726_p2, %p6720_p13 }
  0x5e   :  { %6730 = shalt.err (!%p6727_p3)
}
  0x5f   :  { %126 = dma.hbm_to_vmem [thread:$0]  %s8529_s7, 512, %s121_s30, [#allocation19], %s7106_s26, %s7106_s26, %s7107_s27  }
  0x60   :  { %s6731_s24 = scalar_lea.hbm %s8531_s9, 16 }
  0x61   :  { %p6732_p4 = scmp.ne.s32.totalorder %s8531_s9, %s6731_s24  ;;  %p6735_p5 = scmp.lt.u32.totalorder %s6731_s24, %s8531_s9 }
  0x63   :  { %p6737_p6 = pnand %p6735_p5, %p6732_p4 }
  0x65   :  { %6740 = shalt.err (!%p6737_p6)
}
  0x66   :  { %s6741_s0 = scalar_lea.vmem %s146_s28, 16  ;;  %s6745_s16 = scalar_lea.vmem %s146_s28, 32 }
  0x67   :  { %p6742_p7 = scmp.ne.s32.totalorder %s146_s28, %s6741_s0  ;;  %p6746_p8 = scmp.lt.s32.totalorder %s146_s28, %s146_s28 }
  0x68   :  { %p6747_p9 = scmp.lt.s32.totalorder %s6745_s16, %s6741_s0 }
  0x6a   :  { %p6748_p10 = por %p6747_p9, %p6746_p8 }
  0x6c   :  { %p6749_p11 = pnand %p6748_p10, %p6742_p7 }
  0x6e   :  { %6752 = shalt.err (!%p6749_p11)
}
  0x6f   :  { %148 = dma.hbm_to_vmem [thread:$0]  %s8531_s9, 16, %s146_s28, [#allocation22]  }
  0x70   :  { %s7112_s18 = smov [#allocation24]   ;;  %s7113_s2 = smov [#allocation27]  }
  0x71   :  { %s166_s21 = sshll.u32 %s7112_s18, 4  ;;  %s188_s5 = sshll.u32 %s7113_s2, 4  ;;  %s167_s21 = int_to_ptr.vmem [resolvable:$true] %s166_s21  ;;  %s189_s5 = int_to_ptr.vmem [resolvable:$true] %s188_s5 }
  0x72   :  { %s6753_s25 = scalar_lea.hbm %s8533_s11, 256 }
  0x73   :  { %p6754_p12 = scmp.ne.s32.totalorder %s8533_s11, %s6753_s25  ;;  %p6757_p13 = scmp.lt.u32.totalorder %s6753_s25, %s8533_s11 }
  0x75   :  { %p6759_p0 = pnand %p6757_p13, %p6754_p12 }
  0x77   :  { %6762 = shalt.err (!%p6759_p0)
}
  0x78   :  { %s6763_s9 = scalar_lea.vmem %s167_s21, 256  ;;  %p6768_p2 = scmp.lt.s32.totalorder %s167_s21, %s167_s21 }
  0x79   :  { %p6764_p1 = scmp.ne.s32.totalorder %s167_s21, %s6763_s9  ;;  %p6769_p3 = scmp.lt.s32.totalorder %s6763_s9, %s6763_s9 }
  0x7b   :  { %p6770_p4 = por %p6769_p3, %p6768_p2 }
  0x7d   :  { %p6771_p5 = pnand %p6770_p4, %p6764_p1 }
  0x7f   :  { %6774 = shalt.err (!%p6771_p5)
}
  0x80   :  { %172 = dma.hbm_to_vmem [thread:$0]  %s8533_s11, 256, %s167_s21, [#allocation25], %s7106_s26, %s7106_s26, %s7107_s27  }
  0x81   :  { %s6775_s16 = scalar_lea.hbm %s8535_s13, 4096 }
  0x82   :  { %p6776_p6 = scmp.ne.s32.totalorder %s8535_s13, %s6775_s16  ;;  %p6779_p7 = scmp.lt.u32.totalorder %s6775_s16, %s8535_s13 }
  0x84   :  { %p6781_p8 = pnand %p6779_p7, %p6776_p6 }
  0x86   :  { %6784 = shalt.err (!%p6781_p8)
}
  0x87   :  { %s6785_s22 = scalar_lea.vmem %s189_s5, 4096  ;;  %p6790_p10 = scmp.lt.s32.totalorder %s189_s5, %s189_s5 }
  0x88   :  { %p6786_p9 = scmp.ne.s32.totalorder %s189_s5, %s6785_s22  ;;  %p6791_p11 = scmp.lt.s32.totalorder %s6785_s22, %s6785_s22 }
  0x8a   :  { %p6792_p12 = por %p6791_p11, %p6790_p10 }
  0x8c   :  { %p6793_p13 = pnand %p6792_p12, %p6786_p9 }
  0x8e   :  { %6796 = shalt.err (!%p6793_p13)
}
  0x8f   :  { %194 = dma.hbm_to_vmem [thread:$0]  %s8535_s13, 4096, %s189_s5, [#allocation28], %s7106_s26, %s7106_s26, %s7107_s27  }
  0x90   :  { %s7114_s23 = smov [#allocation30]   ;;  %s7115_s20 = smov [#allocation33]  }
  0x91   :  { %s210_s25 = sshll.u32 %s7114_s23, 4  ;;  %s233_s24 = sshll.u32 %s7115_s20, 4  ;;  %s211_s25 = int_to_ptr.vmem [resolvable:$true] %s210_s25  ;;  %s234_s24 = int_to_ptr.vmem [resolvable:$true] %s233_s24 }
  0x92   :  { %s6797_s9 = scalar_lea.hbm %s8537_s15, 256 }
  0x93   :  { %p6798_p0 = scmp.ne.s32.totalorder %s8537_s15, %s6797_s9  ;;  %p6801_p1 = scmp.lt.u32.totalorder %s6797_s9, %s8537_s15 }
  0x95   :  { %p6803_p2 = pnand %p6801_p1, %p6798_p0 }
  0x97   :  { %6806 = shalt.err (!%p6803_p2)
}
  0x98   :  { %s6807_s13 = scalar_lea.vmem %s211_s25, 256  ;;  %p6812_p4 = scmp.lt.s32.totalorder %s211_s25, %s211_s25 }
  0x99   :  { %p6808_p3 = scmp.ne.s32.totalorder %s211_s25, %s6807_s13  ;;  %p6813_p5 = scmp.lt.s32.totalorder %s6807_s13, %s6807_s13 }
  0x9b   :  { %p6814_p6 = por %p6813_p5, %p6812_p4 }
  0x9d   :  { %p6815_p7 = pnand %p6814_p6, %p6808_p3 }
  0x9f   :  { %6818 = shalt.err (!%p6815_p7)
}
  0xa0   :  { %216 = dma.hbm_to_vmem [thread:$0]  %s8537_s15, 256, %s211_s25, [#allocation31], %s7106_s26, %s7106_s26, %s7107_s27  }
  0xa1   :  { %s6819_s18 = scalar_lea.hbm %s8539_s17, 64 }
  0xa2   :  { %p6820_p8 = scmp.ne.s32.totalorder %s8539_s17, %s6819_s18  ;;  %p6823_p9 = scmp.lt.u32.totalorder %s6819_s18, %s8539_s17 }
  0xa4   :  { %p6825_p10 = pnand %p6823_p9, %p6820_p8 }
  0xa6   :  { %6828 = shalt.err (!%p6825_p10)
}
  0xa7   :  { %s6829_s23 = scalar_lea.vmem %s234_s24, 64  ;;  %p6834_p12 = scmp.lt.s32.totalorder %s234_s24, %s234_s24 }
  0xa8   :  { %p6830_p11 = scmp.ne.s32.totalorder %s234_s24, %s6829_s23  ;;  %p6835_p13 = scmp.lt.s32.totalorder %s6829_s23, %s6829_s23 }
  0xaa   :  { %p6836_p0 = por %p6835_p13, %p6834_p12 }
  0xac   :  { %p6837_p1 = pnand %p6836_p0, %p6830_p11 }
  0xae   :  { %6840 = shalt.err (!%p6837_p1)
}
  0xaf   :  { %236 = dma.hbm_to_vmem [thread:$0]  %s8539_s17, 64, %s234_s24, [#allocation34]  }
  0xb0   :  { %s7116_s20 = smov [#allocation6]   ;;  %s8558_s28 = sld [smem:[#allocation48_spill]] }
  0xb1   :  { %s40_s3 = sshll.u32 %s7116_s20, 4  ;;  %s41_s3 = int_to_ptr.vmem [resolvable:$true] %s40_s3 }
  0xb6   :  { %s6841_s29 = scalar_lea.hbm %s8558_s28, 128 }
  0xb7   :  { %p6842_p2 = scmp.ne.s32.totalorder %s8558_s28, %s6841_s29  ;;  %p6845_p3 = scmp.lt.u32.totalorder %s6841_s29, %s8558_s28 }
  0xb9   :  { %p6847_p4 = pnand %p6845_p3, %p6842_p2 }
  0xbb   :  { %6850 = shalt.err (!%p6847_p4)
}
  0xbc   :  { %s6851_s16 = scalar_lea.vmem %s41_s3, 128  ;;  %p6856_p6 = scmp.lt.s32.totalorder %s41_s3, %s41_s3 }
  0xbd   :  { %p6852_p5 = scmp.ne.s32.totalorder %s41_s3, %s6851_s16  ;;  %p6857_p7 = scmp.lt.s32.totalorder %s6851_s16, %s6851_s16 }
  0xbf   :  { %p6858_p8 = por %p6857_p7, %p6856_p6 }
  0xc1   :  { %p6859_p9 = pnand %p6858_p8, %p6852_p5 }
  0xc3   :  { %6862 = shalt.err (!%p6859_p9)
}
  0xc4   :  { %s7117_s17 = smov 16   ;;  %s7118_s24 = smov 1  }
  0xc5   :  { %46 = dma.hbm_to_vmem [thread:$0]  %s8558_s28, 128, %s41_s3, [#allocation7], %s7117_s17, %s7117_s17, %s7118_s24  }
  0xc6   :  { %s7119_s18 = smov [#allocation11]   ;;  %s7120_s22 = smov [#allocation14]  }
  0xc7   :  { %s64_s2 = sshll.u32 %s7119_s18, 4  ;;  %s86_s11 = sshll.u32 %s7120_s22, 4  ;;  %s65_s2 = int_to_ptr.vmem [resolvable:$true] %s64_s2  ;;  %s7371_s11 = int_to_ptr.vmem [resolvable:$true] %s86_s11 }
  0xc8   :  { %s8559_s15 = sld [smem:[#allocation50_spill]] }
  0xce   :  { %s6863_s25 = scalar_lea.hbm %s8559_s15, 256 }
  0xcf   :  { %p6864_p10 = scmp.ne.s32.totalorder %s8559_s15, %s6863_s25  ;;  %p6867_p11 = scmp.lt.u32.totalorder %s6863_s25, %s8559_s15 }
  0xd1   :  { %p6869_p12 = pnand %p6867_p11, %p6864_p10 }
  0xd3   :  { %6872 = shalt.err (!%p6869_p12)
}
  0xd4   :  { %s6873_s3 = scalar_lea.vmem %s65_s2, 256  ;;  %p6878_p0 = scmp.lt.s32.totalorder %s65_s2, %s65_s2 }
  0xd5   :  { %p6874_p13 = scmp.ne.s32.totalorder %s65_s2, %s6873_s3  ;;  %p6879_p1 = scmp.lt.s32.totalorder %s6873_s3, %s6873_s3 }
  0xd7   :  { %p6880_p2 = por %p6879_p1, %p6878_p0 }
  0xd9   :  { %p6881_p3 = pnand %p6880_p2, %p6874_p13 }
  0xdb   :  { %6884 = shalt.err (!%p6881_p3)
}
  0xdc   :  { %70 = dma.hbm_to_vmem [thread:$0]  %s8559_s15, 256, %s65_s2, [#allocation10], %s7106_s26, %s7106_s26, %s7107_s27  }
  0xdd   :  { %s6885_s5 = scalar_lea.hbm %s8526_s4, 128 }
  0xde   :  { %p6886_p4 = scmp.ne.s32.totalorder %s8526_s4, %s6885_s5  ;;  %p6889_p5 = scmp.lt.u32.totalorder %s6885_s5, %s8526_s4 }
  0xe0   :  { %p6891_p6 = pnand %p6889_p5, %p6886_p4 }
  0xe2   :  { %6894 = shalt.err (!%p6891_p6)
}
  0xe3   :  { %s6895_s30 = scalar_lea.vmem %s7371_s11, 128  ;;  %p6900_p8 = scmp.lt.s32.totalorder %s7371_s11, %s7371_s11 }
  0xe4   :  { %p6896_p7 = scmp.ne.s32.totalorder %s7371_s11, %s6895_s30  ;;  %p6901_p9 = scmp.lt.s32.totalorder %s6895_s30, %s6895_s30 }
  0xe6   :  { %p6902_p10 = por %p6901_p9, %p6900_p8 }
  0xe8   :  { %p6903_p11 = pnand %p6902_p10, %p6896_p7 }
  0xea   :  { %6906 = shalt.err (!%p6903_p11)
}
  0xeb   :  { %92 = dma.hbm_to_vmem [thread:$0]  %s8526_s4, 128, %s7371_s11, [#allocation13], %s7106_s26, %s7106_s26, %s7107_s27  }
  0xec   :  { %s7121_s22 = smov [#allocation17]   ;;  %s7122_s23 = smov [#allocation20]  }
  0xed   :  { %s111_s21 = sshll.u32 %s7121_s22, 4  ;;  %s132_s15 = sshll.u32 %s7122_s23, 4  ;;  %s112_s21 = int_to_ptr.vmem [resolvable:$true] %s111_s21  ;;  %s7408_s15 = int_to_ptr.vmem [resolvable:$true] %s132_s15 }
  0xee   :  { %s6907_s1 = scalar_lea.hbm %s8528_s6, 16 }
  0xef   :  { %p6908_p12 = scmp.ne.s32.totalorder %s8528_s6, %s6907_s1  ;;  %p6911_p13 = scmp.lt.u32.totalorder %s6907_s1, %s8528_s6 }
  0xf1   :  { %p6913_p0 = pnand %p6911_p13, %p6908_p12 }
  0xf3   :  { %6916 = shalt.err (!%p6913_p0)
}
  0xf4   :  { %s6917_s4 = scalar_lea.vmem %s112_s21, 16  ;;  %s6921_s11 = scalar_lea.vmem %s112_s21, 32 }
  0xf5   :  { %p6918_p1 = scmp.ne.s32.totalorder %s112_s21, %s6917_s4  ;;  %p6922_p2 = scmp.lt.s32.totalorder %s112_s21, %s112_s21 }
  0xf6   :  { %p6923_p3 = scmp.lt.s32.totalorder %s6921_s11, %s6917_s4 }
  0xf8   :  { %p6924_p4 = por %p6923_p3, %p6922_p2 }
  0xfa   :  { %p6925_p5 = pnand %p6924_p4, %p6918_p1 }
  0xfc   :  { %6928 = shalt.err (!%p6925_p5)
}
  0xfd   :  { %114 = dma.hbm_to_vmem [thread:$0]  %s8528_s6, 16, %s112_s21, [#allocation16]  }
  0xfe   :  { %s6929_s16 = scalar_lea.hbm %s8530_s8, 256 }
  0xff   :  { %p6930_p6 = scmp.ne.s32.totalorder %s8530_s8, %s6929_s16  ;;  %p6933_p7 = scmp.lt.u32.totalorder %s6929_s16, %s8530_s8 }
 0x101   :  { %p6935_p8 = pnand %p6933_p7, %p6930_p6 }
 0x103   :  { %6938 = shalt.err (!%p6935_p8)
}
 0x104   :  { %s6939_s18 = scalar_lea.vmem %s7408_s15, 256  ;;  %p6944_p10 = scmp.lt.s32.totalorder %s7408_s15, %s7408_s15 }
 0x105   :  { %p6940_p9 = scmp.ne.s32.totalorder %s7408_s15, %s6939_s18  ;;  %p6945_p11 = scmp.lt.s32.totalorder %s6939_s18, %s6939_s18 }
 0x107   :  { %p6946_p12 = por %p6945_p11, %p6944_p10 }
 0x109   :  { %p6947_p13 = pnand %p6946_p12, %p6940_p9 }
 0x10b   :  { %6950 = shalt.err (!%p6947_p13)
}
 0x10c   :  { %138 = dma.hbm_to_vmem [thread:$0]  %s8530_s8, 256, %s7408_s15, [#allocation19], %s7106_s26, %s7106_s26, %s7107_s27  }
 0x10d   :  { %s7123_s22 = smov [#allocation23]   ;;  %s7124_s23 = smov [#allocation26]  }
 0x10e   :  { %s154_s21 = sshll.u32 %s7123_s22, 4  ;;  %s179_s25 = sshll.u32 %s7124_s23, 4  ;;  %s155_s21 = int_to_ptr.vmem [resolvable:$true] %s154_s21  ;;  %s180_s25 = int_to_ptr.vmem [resolvable:$true] %s179_s25 }
 0x10f   :  { %s6951_s9 = scalar_lea.hbm %s8532_s10, 512 }
 0x110   :  { %p6952_p0 = scmp.ne.s32.totalorder %s8532_s10, %s6951_s9  ;;  %p6955_p1 = scmp.lt.u32.totalorder %s6951_s9, %s8532_s10 }
 0x112   :  { %p6957_p2 = pnand %p6955_p1, %p6952_p0 }
 0x114   :  { %6960 = shalt.err (!%p6957_p2)
}
 0x115   :  { %s6961_s8 = scalar_lea.vmem %s155_s21, 512  ;;  %p6966_p4 = scmp.lt.s32.totalorder %s155_s21, %s155_s21 }
 0x116   :  { %p6962_p3 = scmp.ne.s32.totalorder %s155_s21, %s6961_s8  ;;  %p6967_p5 = scmp.lt.s32.totalorder %s6961_s8, %s6961_s8 }
 0x118   :  { %p6968_p6 = por %p6967_p5, %p6966_p4 }
 0x11a   :  { %p6969_p7 = pnand %p6968_p6, %p6962_p3 }
 0x11c   :  { %6972 = shalt.err (!%p6969_p7)
}
 0x11d   :  { %160 = dma.hbm_to_vmem [thread:$0]  %s8532_s10, 512, %s155_s21, [#allocation22], %s7106_s26, %s7106_s26, %s7107_s27  }
 0x11e   :  { %s6973_s13 = scalar_lea.hbm %s8534_s12, 16 }
 0x11f   :  { %p6974_p8 = scmp.ne.s32.totalorder %s8534_s12, %s6973_s13  ;;  %p6977_p9 = scmp.lt.u32.totalorder %s6973_s13, %s8534_s12 }
 0x121   :  { %p6979_p10 = pnand %p6977_p9, %p6974_p8 }
 0x123   :  { %6982 = shalt.err (!%p6979_p10)
}
 0x124   :  { %s6983_s7 = scalar_lea.vmem %s180_s25, 16  ;;  %s6987_s30 = scalar_lea.vmem %s180_s25, 32 }
 0x125   :  { %p6984_p11 = scmp.ne.s32.totalorder %s180_s25, %s6983_s7  ;;  %p6988_p12 = scmp.lt.s32.totalorder %s180_s25, %s180_s25 }
 0x126   :  { %p6989_p13 = scmp.lt.s32.totalorder %s6987_s30, %s6983_s7 }
 0x128   :  { %p6990_p0 = por %p6989_p13, %p6988_p12 }
 0x12a   :  { %p6991_p1 = pnand %p6990_p0, %p6984_p11 }
 0x12c   :  { %6994 = shalt.err (!%p6991_p1)
}
 0x12d   :  { %182 = dma.hbm_to_vmem [thread:$0]  %s8534_s12, 16, %s180_s25, [#allocation25]  }
 0x12e   :  { %s7125_s18 = smov [#allocation29]   ;;  %s7126_s2 = smov [#allocation32]  }
 0x12f   :  { %s201_s6 = sshll.u32 %s7125_s18, 4  ;;  %s223_s22 = sshll.u32 %s7126_s2, 4  ;;  %s202_s6 = int_to_ptr.vmem [resolvable:$true] %s201_s6  ;;  %s224_s22 = int_to_ptr.vmem [resolvable:$true] %s223_s22 }
 0x130   :  { %s6995_s20 = scalar_lea.hbm %s8536_s14, 16 }
 0x131   :  { %p6996_p2 = scmp.ne.s32.totalorder %s8536_s14, %s6995_s20  ;;  %p6999_p3 = scmp.lt.u32.totalorder %s6995_s20, %s8536_s14 }
 0x133   :  { %p7001_p4 = pnand %p6999_p3, %p6996_p2 }
 0x135   :  { %7004 = shalt.err (!%p7001_p4)
}
 0x136   :  { %s7005_s12 = scalar_lea.vmem %s202_s6, 16  ;;  %s7009_s25 = scalar_lea.vmem %s202_s6, 32 }
 0x137   :  { %p7006_p5 = scmp.ne.s32.totalorder %s202_s6, %s7005_s12  ;;  %p7010_p6 = scmp.lt.s32.totalorder %s202_s6, %s202_s6 }
 0x138   :  { %p7011_p7 = scmp.lt.s32.totalorder %s7009_s25, %s7005_s12 }
 0x13a   :  { %p7012_p8 = por %p7011_p7, %p7010_p6 }
 0x13c   :  { %p7013_p9 = pnand %p7012_p8, %p7006_p5 }
 0x13e   :  { %7016 = shalt.err (!%p7013_p9)
}
 0x13f   :  { %204 = dma.hbm_to_vmem [thread:$0]  %s8536_s14, 16, %s202_s6, [#allocation28]  }
 0x140   :  { %s8560_s11 = sld [smem:[#allocation52_spill]] }
 0x146   :  { %s7017_s19 = scalar_lea.hbm %s8560_s11, 16 }
 0x147   :  { %p7018_p10 = scmp.ne.s32.totalorder %s8560_s11, %s7017_s19  ;;  %p7021_p11 = scmp.lt.u32.totalorder %s7017_s19, %s8560_s11 }
 0x149   :  { %p7023_p12 = pnand %p7021_p11, %p7018_p10 }
 0x14b   :  { %7026 = shalt.err (!%p7023_p12)
}
 0x14c   :  { %s7027_s17 = scalar_lea.vmem %s224_s22, 16  ;;  %s7031_s24 = scalar_lea.vmem %s224_s22, 32 }
 0x14d   :  { %p7028_p13 = scmp.ne.s32.totalorder %s224_s22, %s7027_s17  ;;  %p7032_p0 = scmp.lt.s32.totalorder %s224_s22, %s224_s22 }
 0x14e   :  { %p7033_p1 = scmp.lt.s32.totalorder %s7031_s24, %s7027_s17 }
 0x150   :  { %p7034_p2 = por %p7033_p1, %p7032_p0 }
 0x152   :  { %p7035_p3 = pnand %p7034_p2, %p7028_p13 }
 0x154   :  { %7038 = shalt.err (!%p7035_p3)
}
 0x155   :  { %226 = dma.hbm_to_vmem [thread:$0]  %s8560_s11, 16, %s224_s22, [#allocation31]  }
 0x156   :  { %s7127_s30 = smov [#allocation35]   ;;  %s8561_s6 = sld [smem:[#allocation53_spill]] }
 0x157   :  { %s243_s10 = sshll.u32 %s7127_s30, 4  ;;  %s244_s10 = int_to_ptr.vmem [resolvable:$true] %s243_s10 }
 0x15c   :  { %s7039_s2 = scalar_lea.hbm %s8561_s6, 16 }
 0x15d   :  { %p7040_p4 = scmp.ne.s32.totalorder %s8561_s6, %s7039_s2  ;;  %p7043_p5 = scmp.lt.u32.totalorder %s7039_s2, %s8561_s6 }
 0x15f   :  { %p7045_p6 = pnand %p7043_p5, %p7040_p4 }
 0x161   :  { %7048 = shalt.err (!%p7045_p6)
}
 0x162   :  { %s7049_s9 = scalar_lea.vmem %s244_s10, 16  ;;  %s7053_s22 = scalar_lea.vmem %s244_s10, 32 }
 0x163   :  { %p7050_p7 = scmp.ne.s32.totalorder %s244_s10, %s7049_s9  ;;  %p7054_p8 = scmp.lt.s32.totalorder %s244_s10, %s244_s10 }
 0x164   :  { %p7055_p9 = scmp.lt.s32.totalorder %s7053_s22, %s7049_s9 }
 0x166   :  { %p7056_p10 = por %p7055_p9, %p7054_p8 }
 0x168   :  { %p7057_p11 = pnand %p7056_p10, %p7050_p7 }
 0x16a   :  { %7060 = shalt.err (!%p7057_p11)
}
 0x16b   :  { %246 = dma.hbm_to_vmem [thread:$0]  %s8561_s6, 16, %s244_s10, [#allocation34]  }
 0x16c   :  { %7083 = dma.done.wait [#allocation7], 128  }
 0x16d   :  { %7084 = vsyncadd [#allocation7], 4294967168 }
 0x16e   :  { %7085 = dma.done.wait [#allocation10], 384  }
 0x16f   :  { %7086 = vsyncadd [#allocation10], 4294966912 }
 0x170   :  { %7087 = dma.done.wait [#allocation13], 144  }
 0x171   :  { %7088 = vsyncadd [#allocation13], 4294967152 }
 0x172   :  { %7089 = dma.done.wait [#allocation16], 272  }
 0x173   :  { %7090 = vsyncadd [#allocation16], 4294967024 }
 0x174   :  { %7091 = dma.done.wait [#allocation19], 768  }
 0x175   :  { %7092 = vsyncadd [#allocation19], 4294966528 }
 0x176   :  { %7093 = dma.done.wait [#allocation22], 528  }
 0x177   :  { %7094 = vsyncadd [#allocation22], 4294966768 }
 0x178   :  { %7095 = dma.done.wait [#allocation25], 272  }
 0x179   :  { %7096 = vsyncadd [#allocation25], 4294967024 }
 0x17a   :  { %7097 = dma.done.wait [#allocation28], 4112  }
 0x17b   :  { %7098 = vsyncadd [#allocation28], 4294963184 }
 0x17c   :  { %7099 = dma.done.wait [#allocation31], 272  }
 0x17d   :  { %7100 = vsyncadd [#allocation31], 4294967024 }
 0x17e   :  { %7101 = dma.done.wait [#allocation34], 80  }
 0x17f   :  { %7102 = vsyncadd [#allocation34], 4294967216  ;;  %v7128_v0 = vmov 0.0   ;;  %vm7129_vm0 = vmmov 0   ;;  %v6327_v1 = vld [vmem:[#allocation9] sm:$0xff]   ;;  %vm321_vm1 = vcmask 130048  }
 0x180   :  { %5645 = vmatprep.subr.bf16.mxu0 %v7128_v0  ;;  %5651 = vmatprep.subr.bf16.mxu1 %v7128_v0  ;;  %v308_v2 = vld [vmem:[#allocation6] sm:$0x1]  ;;  %v367_v3 = vld [vmem:[#allocation6 + $0x1] sm:$0x1]  ;;  %v414_v4 = vld [vmem:[#allocation6 + $0x2] sm:$0x1] }
 0x181   :  { %5647 = vmatprep.mubr.msk.bf16.mxu0 %vm7129_vm0, %v7128_v0  ;;  %5653 = vmatprep.mubr.msk.bf16.mxu1 %vm7129_vm0, %v7128_v0  ;;  %v461_v5 = vld [vmem:[#allocation6 + $0x3] sm:$0x1]  ;;  %v508_v6 = vld [vmem:[#allocation6 + $0x4] sm:$0x1]  ;;  %v555_v7 = vld [vmem:[#allocation6 + $0x5] sm:$0x1] }
 0x182   :  { %5646 = vmatpush3.bf16.msra.mxu0 %v6327_v1  ;;  %5652 = vmatpush3.bf16.msra.mxu1 %v6327_v1  ;;  %v602_v8 = vld [vmem:[#allocation6 + $0x6] sm:$0x1]  ;;  %v649_v9 = vld [vmem:[#allocation6 + $0x7] sm:$0x1]  ;;  %v698_v11 = vld [vmem:[#allocation6] sm:$0x1] }
 0x183   :  { %5657 = vmatprep.subr.bf16.mxu0 %v7128_v0  ;;  %5663 = vmatprep.subr.bf16.mxu1 %v7128_v0  ;;  %v6328_v10 = vld [vmem:[#allocation14] sm:$0xff]   ;;  %v755_v12 = vld [vmem:[#allocation6 + $0x1] sm:$0x1]  ;;  %v7569_v19 = vld [vmem:[#allocation11] sm:$0xff]   ;;  %v7130_v23 = vmov 0   ;;  %s7131_s12 = smov 32  }
 0x184   :  { %v801_v13 = vld [vmem:[#allocation6 + $0x2] sm:$0x1]  ;;  %v847_v14 = vld [vmem:[#allocation6 + $0x3] sm:$0x1]  ;;  %v893_v15 = vld [vmem:[#allocation6 + $0x4] sm:$0x1] }
 0x185   :  { %5648 = vmatmul.mubr.msk.bf16.vlgmr.msra.gmra.mrb[0].mxu0 %vm321_vm1, %v308_v2  ;;  %5654 = vmatmul.mubr.msk.bf16.vlgmr.msra.gmra.mrb[0].mxu1 %vm321_vm1, %v367_v3  ;;  %v939_v16 = vld [vmem:[#allocation6 + $0x5] sm:$0x1]  ;;  %v985_v17 = vld [vmem:[#allocation6 + $0x6] sm:$0x1]  ;;  %v1031_v18 = vld [vmem:[#allocation6 + $0x7] sm:$0x1] }
 0x186   :  { %5658 = vmatpush3.bf16.msra.mxu0 %v6327_v1  ;;  %5664 = vmatpush3.bf16.msra.mxu1 %v6327_v1  ;;  %v7571_v20 = vld [vmem:[#allocation15] sm:$0xff]   ;;  %v7577_v21 = vld [vmem:[#allocation11 + $0x8] sm:$0xff]   ;;  %v5231_v24 = vld [vmem:[#allocation12] ss:$0 sm:$0xff]  ;;  %vm1098_vm2 = vcmask 261120   ;;  %vm1249_vm3 = vcmask 254976  }
 0x187   :  { %5659 = vmatprep.mubr.msk.bf16.mxu0 %vm7129_vm0, %v7128_v0  ;;  %5665 = vmatprep.mubr.msk.bf16.mxu1 %vm7129_vm0, %v7128_v0  ;;  %v7579_v22 = vld [vmem:[#allocation15 + $0x8] sm:$0xff]   ;;  %v5241_v2 = vld [vmem:[#allocation17] ss:$0 sm:$0xff]  ;;  %vm1256_vm4 = vcmask 517376   ;;  %vm2397_vm5 = vcmask 523264   ;;  %vm5161_vm6 = vcmask 1043456  }
 0x188   :  { %5669 = vmatprep.subr.bf16.mxu0 %v7128_v0  ;;  %5675 = vmatprep.subr.bf16.mxu1 %v7128_v0  ;;  %vm5157_vm7 = vcmask 64512   ;;  %vm5205_vm8 = vcmask 25600  }
 0x18d   :  { %5660 = vmatmul.mubr.msk.bf16.vlgmr.msra.gmra.mrb[4].mxu0 %vm321_vm1, %v414_v4  ;;  %5666 = vmatmul.mubr.msk.bf16.vlgmr.msra.gmra.mrb[4].mxu1 %vm321_vm1, %v461_v5 }
 0x18e   :  { %5670 = vmatpush3.bf16.msra.mxu0 %v6327_v1  ;;  %5676 = vmatpush3.bf16.msra.mxu1 %v6327_v1 }
 0x18f   :  { %5671 = vmatprep.mubr.msk.bf16.mxu0 %vm7129_vm0, %v7128_v0  ;;  %5677 = vmatprep.mubr.msk.bf16.mxu1 %vm7129_vm0, %v7128_v0 }
 0x190   :  { %5681 = vmatprep.subr.bf16.mxu0 %v7128_v0  ;;  %5687 = vmatprep.subr.bf16.mxu1 %v7128_v0 }
 0x195   :  { %5672 = vmatmul.mubr.msk.bf16.vlgmr.msra.gmra.mrb[8].mxu0 %vm321_vm1, %v508_v6  ;;  %5678 = vmatmul.mubr.msk.bf16.vlgmr.msra.gmra.mrb[8].mxu1 %vm321_vm1, %v555_v7 }
 0x196   :  { %5682 = vmatpush3.bf16.msra.mxu0 %v6327_v1  ;;  %5688 = vmatpush3.bf16.msra.mxu1 %v6327_v1 }
 0x197   :  { %5683 = vmatprep.mubr.msk.bf16.mxu0 %vm7129_vm0, %v7128_v0  ;;  %5689 = vmatprep.mubr.msk.bf16.mxu1 %vm7129_vm0, %v7128_v0 }
 0x198   :  { %5693 = vmatprep.subr.bf16.mxu0 %v7128_v0  ;;  %5699 = vmatprep.subr.bf16.mxu1 %v7128_v0 }
 0x19d   :  { %5684 = vmatmul.mubr.msk.bf16.vlgmr.msra.gmra.mrb[12].mxu0 %vm321_vm1, %v602_v8  ;;  %5690 = vmatmul.mubr.msk.bf16.vlgmr.msra.gmra.mrb[12].mxu1 %vm321_vm1, %v649_v9 }
 0x19e   :  { %5694 = vmatpush3.bf16.msra.mxu0 %v6328_v10  ;;  %5700 = vmatpush3.bf16.msra.mxu1 %v6328_v10 }
 0x19f   :  { %5695 = vmatprep.mubr.msk.bf16.mxu0 %vm7129_vm0, %v7128_v0  ;;  %5701 = vmatprep.mubr.msk.bf16.mxu1 %vm7129_vm0, %v7128_v0 }
 0x1a0   :  { %5705 = vmatprep.subr.bf16.mxu0 %v7128_v0  ;;  %5711 = vmatprep.subr.bf16.mxu1 %v7128_v0 }
 0x1a5   :  { %5696 = vmatmul.mubr.msk.bf16.vlgmr.msra.gmra.mrb[16].mxu0 %vm321_vm1, %v698_v11  ;;  %5702 = vmatmul.mubr.msk.bf16.vlgmr.msra.gmra.mrb[16].mxu1 %vm321_vm1, %v755_v12 }
 0x1a6   :  { %5706 = vmatpush3.bf16.msra.mxu0 %v6328_v10  ;;  %5712 = vmatpush3.bf16.msra.mxu1 %v6328_v10 }
 0x1a7   :  { %5707 = vmatprep.mubr.msk.bf16.mxu0 %vm7129_vm0, %v7128_v0  ;;  %5713 = vmatprep.mubr.msk.bf16.mxu1 %vm7129_vm0, %v7128_v0 }
 0x1a8   :  { %5717 = vmatprep.subr.bf16.mxu0 %v7128_v0  ;;  %5723 = vmatprep.subr.bf16.mxu1 %v7128_v0 }
 0x1ad   :  { %5708 = vmatmul.mubr.msk.bf16.vlgmr.msra.gmra.mrb[20].mxu0 %vm321_vm1, %v801_v13  ;;  %5714 = vmatmul.mubr.msk.bf16.vlgmr.msra.gmra.mrb[20].mxu1 %vm321_vm1, %v847_v14 }
 0x1ae   :  { %5718 = vmatpush3.bf16.msra.mxu0 %v6328_v10  ;;  %5724 = vmatpush3.bf16.msra.mxu1 %v6328_v10 }
 0x1af   :  { %5719 = vmatprep.mubr.msk.bf16.mxu0 %vm7129_vm0, %v7128_v0  ;;  %5725 = vmatprep.mubr.msk.bf16.mxu1 %vm7129_vm0, %v7128_v0 }
 0x1b0   :  { %5729 = vmatprep.subr.bf16.mxu0 %v7128_v0  ;;  %5735 = vmatprep.subr.bf16.mxu1 %v7128_v0 }
 0x1b5   :  { %5720 = vmatmul.mubr.msk.bf16.vlgmr.msra.gmra.mrb[24].mxu0 %vm321_vm1, %v893_v15  ;;  %5726 = vmatmul.mubr.msk.bf16.vlgmr.msra.gmra.mrb[24].mxu1 %vm321_vm1, %v939_v16 }
 0x1b6   :  { %5730 = vmatpush3.bf16.msra.mxu0 %v6328_v10  ;;  %5736 = vmatpush3.bf16.msra.mxu1 %v6328_v10 }
 0x1b7   :  { %5731 = vmatprep.mubr.msk.bf16.mxu0 %vm7129_vm0, %v7128_v0  ;;  %5737 = vmatprep.mubr.msk.bf16.mxu1 %vm7129_vm0, %v7128_v0 }
 0x1b8   :  { %5741 = vmatprep.subr.bf16.mxu0 %v7128_v0  ;;  %5749 = vmatprep.subr.bf16.mxu1 %v7128_v0 }
 0x1bd   :  { %5732 = vmatmul.mubr.msk.bf16.vlgmr.msra.gmra.mrb[28].mxu0 %vm321_vm1, %v985_v17  ;;  %5738 = vmatmul.mubr.msk.bf16.vlgmr.msra.gmra.mrb[28].mxu1 %vm321_vm1, %v1031_v18 }
 0x1be   :  { %5742 = vmatpush3.bf16.msra.mxu0 %v7569_v19  ;;  %5750 = vmatpush3.bf16.msra.mxu1 %v7571_v20 }
 0x1bf   :  { %5743 = vmatprep.subr.bf16.mxu0 %v7128_v0  ;;  %5751 = vmatprep.subr.bf16.mxu1 %v7128_v0 }
 0x1c0   :  { %5745 = vmatprep.mubr.msk.bf16.mxu0 %vm7129_vm0, %v7128_v0  ;;  %5753 = vmatprep.mubr.msk.bf16.mxu1 %vm7129_vm0, %v7128_v0 }
 0x1c2   :  { %5744 = vmatpush3.bf16.msra.mxu0 %v7577_v21  ;;  %5752 = vmatpush3.bf16.msra.mxu1 %v7579_v22 }
 0x1c3   :  { %5757 = vmatprep.subr.bf16.mxu0 %v7128_v0  ;;  %5765 = vmatprep.subr.bf16.mxu1 %v7128_v0 }
 0x1c5   :  { %5746 = vmatmul.mubr.bf16.vlgmr.msra.gmra.mrb[32].mxu0 %v7130_v23  ;;  %5754 = vmatmul.mubr.bf16.vlgmr.msra.gmra.mrb[32].mxu1 %v7130_v23 }
 0x1c6   :  { %5758 = vmatpush3.bf16.msra.mxu0 %v7569_v19  ;;  %5766 = vmatpush3.bf16.msra.mxu1 %v7571_v20 }
 0x1c7   :  { %5759 = vmatprep.subr.bf16.mxu0 %v7128_v0  ;;  %5761 = vmatprep.mubr.msk.bf16.mxu0 %vm7129_vm0, %v7128_v0 }
 0x1c8   :  { %5767 = vmatprep.subr.bf16.mxu1 %v7128_v0  ;;  %5769 = vmatprep.mubr.msk.bf16.mxu1 %vm7129_vm0, %v7128_v0 }
 0x1ca   :  { %5760 = vmatpush3.bf16.msra.mxu0 %v7577_v21  ;;  %5768 = vmatpush3.bf16.msra.mxu1 %v7579_v22 }
 0x1cb   :  { %5773 = vmatprep.subr.bf16.mxu0 %v7128_v0  ;;  %5781 = vmatprep.subr.bf16.mxu1 %v7128_v0 }
 0x258   :  { %v359_v25 = vpop.f32.mrb[0].mxu0  ;;  %v405_v26 = vpop.f32.mrb[0].mxu1 }
 0x259   :  { %v360_v27 = vadd.f32 %v5231_v24, %v359_v25  ;;  %v406_v28 = vadd.f32 %v5231_v24, %v405_v26  ;;  %v5649_v29 = vpop.f32.mrb[1].mxu0  ;;  %v5655_v30 = vpop.f32.mrb[1].mxu1 }
 0x25a   :  { %v362_v31 = vpop.f32.mrb[2].mxu0  ;;  %v408_v32 = vpop.f32.mrb[2].mxu1 }
 0x25b   :  { %365 = vst [vmem:[#allocation2] sm:$0x3] %v360_v27  ;;  %412 = vst [vmem:[#allocation2 + $0x2] sm:$0x3] %v406_v28  ;;  %v5650_v33 = vpop.f32.mrb[3].mxu0  ;;  %v5656_v34 = vpop.f32.mrb[3].mxu1 }
 0x260   :  { %v452_v35 = vpop.f32.mrb[4].mxu0  ;;  %v499_v36 = vpop.f32.mrb[4].mxu1 }
 0x261   :  { %v453_v37 = vadd.f32 %v5231_v24, %v452_v35  ;;  %v500_v38 = vadd.f32 %v5231_v24, %v499_v36  ;;  %v5661_v39 = vpop.f32.mrb[5].mxu0  ;;  %v5667_v40 = vpop.f32.mrb[5].mxu1 }
 0x262   :  { %v455_v41 = vpop.f32.mrb[6].mxu0  ;;  %v502_v42 = vpop.f32.mrb[6].mxu1 }
 0x263   :  { %459 = vst [vmem:[#allocation2 + $0x4] sm:$0x3] %v453_v37  ;;  %506 = vst [vmem:[#allocation2 + $0x6] sm:$0x3] %v500_v38  ;;  %v5662_v43 = vpop.f32.mrb[7].mxu0  ;;  %v5668_v44 = vpop.f32.mrb[7].mxu1 }
 0x268   :  { %v546_v45 = vpop.f32.mrb[8].mxu0  ;;  %v593_v46 = vpop.f32.mrb[8].mxu1 }
 0x269   :  { %v547_v47 = vadd.f32 %v5231_v24, %v546_v45  ;;  %v594_v48 = vadd.f32 %v5231_v24, %v593_v46  ;;  %v5673_v49 = vpop.f32.mrb[9].mxu0  ;;  %v5679_v50 = vpop.f32.mrb[9].mxu1 }
 0x26a   :  { %v549_v51 = vpop.f32.mrb[10].mxu0  ;;  %v596_v52 = vpop.f32.mrb[10].mxu1 }
 0x26b   :  { %553 = vst [vmem:[#allocation2 + $0x8] sm:$0x3] %v547_v47  ;;  %600 = vst [vmem:[#allocation2 + $0xa] sm:$0x3] %v594_v48  ;;  %v5674_v53 = vpop.f32.mrb[11].mxu0  ;;  %v5680_v54 = vpop.f32.mrb[11].mxu1 }
 0x26c   :  { %v1085_v48 = vld [vmem:[#allocation2] sm:$0x3] }
 0x270   :  { %v640_v55 = vpop.f32.mrb[12].mxu0  ;;  %v687_v56 = vpop.f32.mrb[12].mxu1 }
 0x271   :  { %v641_v57 = vadd.f32 %v5231_v24, %v640_v55  ;;  %v688_v58 = vadd.f32 %v5231_v24, %v687_v56  ;;  %v5685_v59 = vpop.f32.mrb[13].mxu0  ;;  %v5691_v60 = vpop.f32.mrb[13].mxu1 }
 0x272   :  { %v643_v61 = vpop.f32.mrb[14].mxu0  ;;  %v690_v62 = vpop.f32.mrb[14].mxu1 }
 0x273   :  { %647 = vst [vmem:[#allocation2 + $0xc] sm:$0x3] %v641_v57  ;;  %694 = vst [vmem:[#allocation2 + $0xe] sm:$0x3] %v688_v58  ;;  %v5686_v63 = vpop.f32.mrb[15].mxu0  ;;  %v5692_v1 = vpop.f32.mrb[15].mxu1 }
 0x278   :  { %v748_v3 = vpop.f32.mrb[16].mxu0  ;;  %v793_v4 = vpop.f32.mrb[16].mxu1 }
 0x279   :  { %v749_v5 = vadd.f32 %v5241_v2, %v748_v3  ;;  %v794_v6 = vadd.f32 %v5241_v2, %v793_v4  ;;  %v5697_v7 = vpop.f32.mrb[17].mxu0  ;;  %v5703_v8 = vpop.f32.mrb[17].mxu1 }
 0x27a   :  { %v751_v9 = vpop.f32.mrb[18].mxu0  ;;  %v796_v10 = vpop.f32.mrb[18].mxu1 }
 0x27b   :  { %754 = vst [vmem:[#allocation3] sm:$0x3] %v749_v5  ;;  %800 = vst [vmem:[#allocation3 + $0x2] sm:$0x3] %v794_v6  ;;  %v5698_v11 = vpop.f32.mrb[19].mxu0  ;;  %v5704_v12 = vpop.f32.mrb[19].mxu1 }
 0x280   :  { %v839_v13 = vpop.f32.mrb[20].mxu0  ;;  %v885_v14 = vpop.f32.mrb[20].mxu1 }
 0x281   :  { %v840_v15 = vadd.f32 %v5241_v2, %v839_v13  ;;  %v886_v16 = vadd.f32 %v5241_v2, %v885_v14  ;;  %v5709_v17 = vpop.f32.mrb[21].mxu0  ;;  %v5715_v18 = vpop.f32.mrb[21].mxu1 }
 0x282   :  { %v842_v24 = vpop.f32.mrb[22].mxu0  ;;  %v888_v25 = vpop.f32.mrb[22].mxu1 }
 0x283   :  { %846 = vst [vmem:[#allocation3 + $0x4] sm:$0x3] %v840_v15  ;;  %892 = vst [vmem:[#allocation3 + $0x6] sm:$0x3] %v886_v16  ;;  %v5710_v26 = vpop.f32.mrb[23].mxu0  ;;  %v5716_v27 = vpop.f32.mrb[23].mxu1 }
 0x288   :  { %v931_v28 = vpop.f32.mrb[24].mxu0  ;;  %v977_v29 = vpop.f32.mrb[24].mxu1 }
 0x289   :  { %v932_v30 = vadd.f32 %v5241_v2, %v931_v28  ;;  %v978_v31 = vadd.f32 %v5241_v2, %v977_v29  ;;  %v5721_v32 = vpop.f32.mrb[25].mxu0  ;;  %v5727_v33 = vpop.f32.mrb[25].mxu1 }
 0x28a   :  { %v934_v34 = vpop.f32.mrb[26].mxu0  ;;  %v980_v35 = vpop.f32.mrb[26].mxu1  ;;  %v1258_v32 = vld [vmem:[#allocation2 + $0x2] sm:$0x3] }
 0x28b   :  { %938 = vst [vmem:[#allocation3 + $0x8] sm:$0x3] %v932_v30  ;;  %984 = vst [vmem:[#allocation3 + $0xa] sm:$0x3] %v978_v31  ;;  %v5722_v36 = vpop.f32.mrb[27].mxu0  ;;  %v5728_v37 = vpop.f32.mrb[27].mxu1 }
 0x290   :  { %v1023_v38 = vpop.f32.mrb[28].mxu0  ;;  %v1069_v39 = vpop.f32.mrb[28].mxu1 }
 0x291   :  { %v1024_v40 = vadd.f32 %v5241_v2, %v1023_v38  ;;  %v1070_v41 = vadd.f32 %v5241_v2, %v1069_v39  ;;  %v5733_v42 = vpop.f32.mrb[29].mxu0  ;;  %v5739_v43 = vpop.f32.mrb[29].mxu1 }
 0x292   :  { %v1026_v44 = vpop.f32.mrb[30].mxu0  ;;  %v1072_v45 = vpop.f32.mrb[30].mxu1 }
 0x293   :  { %1030 = vst [vmem:[#allocation3 + $0xc] sm:$0x3] %v1024_v40  ;;  %1076 = vst [vmem:[#allocation3 + $0xe] sm:$0x3] %v1070_v41  ;;  %v5734_v46 = vpop.f32.mrb[31].mxu0  ;;  %v5740_v47 = vpop.f32.mrb[31].mxu1 }
 0x298   :  { %v1136_v49 = vpop.f32.mrb[32].mxu0  ;;  %v1214_v50 = vpop.f32.mrb[32].mxu1 }
 0x299   :  { %v1142_v51 = vadd.f32 %v1136_v49, %v1085_v48  ;;  %v5747_v52 = vpop.f32.mrb[33].mxu0  ;;  %v5755_v53 = vpop.f32.mrb[33].mxu1 }
 0x29a   :  { %v1167_v54 = vld [vmem:[#allocation3 + $0xe] sm:$0x3]  ;;  %v1139_v55 = vpop.f32.mrb[34].mxu0  ;;  %v1217_v56 = vpop.f32.mrb[34].mxu1  ;;  %v1331_v38 = vld [vmem:[#allocation3 + $0xc] sm:$0x3] }
 0x29b   :  { %v1220_v57 = vadd.f32 %v1214_v50, %v1167_v54  ;;  %v5748_v58 = vpop.f32.mrb[35].mxu0  ;;  %v5756_v59 = vpop.f32.mrb[35].mxu1  ;;  %6379 = vtanh.f32 %v1142_v51  ;;  %v5253_v62 = vmul.f32 -1.442695, %v1142_v51 }
 0x29d   :  { %6381 = vtanh.f32 %v1220_v57  ;;  %v5256_v63 = vmul.f32 -1.442695, %v1220_v57 }
 0x29e   :  { %6383 = vpow2.f32 %v5253_v62 }
 0x29f   :  { %6385 = vpow2.f32 %v5256_v63 }
 0x2a5   :  { %v6380_v60 = vpop.eup %6379 }
 0x2a6   :  { %1152 = vrot.lane.b32.xlu0 %v6380_v60, %s7106_s26 }
 0x2a7   :  { %v6382_v61 = vpop.eup %6381 }
 0x2a8   :  { %v6384_v1 = vpop.eup %6383 }
 0x2a9   :  { %v1146_v2 = vadd.f32 1.0, %v6384_v1  ;;  %v6386_v3 = vpop.eup %6385 }
 0x2aa   :  { %1230 = vrot.lane.b32.xlu0 %v6382_v61, %s7106_s26  ;;  %v1224_v4 = vadd.f32 1.0, %v6386_v3 }
 0x2ab   :  { %6387 = vrcp.f32 %v1146_v2 }
 0x2ac   :  { %6389 = vrcp.f32 %v1224_v4 }
 0x2b5   :  { %v6388_v5 = vpop.eup %6387 }
 0x2b6   :  { %v6390_v8 = vpop.eup %6389  ;;  %v1150_v11 = vmul.f32 0.0, %v6388_v5 }
 0x2b7   :  { %v1228_v14 = vmul.f32 0.0, %v6390_v8 }
 0x318   :  { %v1153_v6 = vpop.permute.xlu0 %1152 }
 0x319   :  { %v1155_v7 = vmul.f32 %v6388_v5, %v1153_v6 }
 0x31b   :  { %1157 = vrot.lane.b32.xlu1 %v1155_v7, %s7131_s12 }
 0x31c   :  { %v1231_v9 = vpop.permute.xlu0 %1230 }
 0x31d   :  { %v1233_v10 = vmul.f32 %v6390_v8, %v1231_v9 }
 0x31f   :  { %1235 = vrot.lane.b32.xlu1 %v1233_v10, %s7131_s12 }
 0x38d   :  { %v1158_v12 = vpop.permute.xlu1 %1157 }
 0x38e   :  { %v7609_v13 = vadd.f32 %v1158_v12, %v1150_v11  ;;  %v1416_v11 = vld [vmem:[#allocation2 + $0x4] sm:$0x3] }
 0x390   :  { %6391 = vtanh.f32 %v7609_v13 }
 0x391   :  { %v1236_v15 = vpop.permute.xlu1 %1235 }
 0x392   :  { %v7612_v16 = vadd.f32 %v1236_v15, %v1228_v14 }
 0x394   :  { %6393 = vtanh.f32 %v7612_v16 }
 0x39a   :  { %v6392_v17 = vpop.eup %6391 }
 0x39b   :  { %1163 = vrot.lane.b32.xlu0 %v6392_v17, %s7106_s26  ;;  %v1489_v17 = vld [vmem:[#allocation3 + $0xa] sm:$0x3] }
 0x39e   :  { %v6394_v18 = vpop.eup %6393 }
 0x39f   :  { %1241 = vrot.lane.b32.xlu1 %v6394_v18, %s7106_s26 }
 0x40d   :  { %v1164_v24 = vpop.permute.xlu0 %1163 }
 0x40e   :  { %v7617_v25 = vmul.f32 %v6388_v5, %v1164_v24 }
 0x410   :  { %v1259_v26 = vpack.c.bf16 %v7617_v25, %v7617_v25 }
 0x411   :  { %v1242_v27 = vpop.permute.xlu1 %1241 }
 0x412   :  { %v7621_v28 = vmul.f32 %v6390_v8, %v1242_v27  ;;  %1261 = vrot.lane.b32.xlu0 %v1259_v26, %s7131_s12 }
 0x414   :  { %v1332_v29 = vpack.c.bf16 %v7621_v28, %v7621_v28 }
 0x416   :  { %1334 = vrot.lane.b32.xlu1 %v1332_v29, %s7131_s12 }
 0x484   :  { %v1262_v30 = vpop.permute.xlu0 %1261 }
 0x485   :  { %5762 = vmatmul.mubr.msk.bf16.vlgmr.msra.gmra.mrb[36].mxu0 %vm1098_vm2, %v1262_v30 }
 0x486   :  { %5774 = vmatpush3.bf16.msra.mxu0 %v7569_v19  ;;  %5777 = vmatprep.mubr.msk.bf16.mxu0 %vm7129_vm0, %v7128_v0 }
 0x487   :  { %5775 = vmatprep.subr.bf16.mxu0 %v7128_v0 }
 0x488   :  { %v1335_v31 = vpop.permute.xlu1 %1334 }
 0x489   :  { %5770 = vmatmul.mubr.msk.bf16.vlgmr.msra.gmra.mrb[36].mxu1 %vm1098_vm2, %v1335_v31 }
 0x48a   :  { %5776 = vmatpush3.bf16.msra.mxu0 %v7577_v21  ;;  %5782 = vmatpush3.bf16.msra.mxu1 %v7571_v20 }
 0x48b   :  { %5783 = vmatprep.subr.bf16.mxu1 %v7128_v0  ;;  %5785 = vmatprep.mubr.msk.bf16.mxu1 %vm7129_vm0, %v7128_v0 }
 0x48c   :  { %5789 = vmatprep.subr.bf16.mxu0 %v7128_v0 }
 0x48e   :  { %5784 = vmatpush3.bf16.msra.mxu1 %v7579_v22 }
 0x48f   :  { %5797 = vmatprep.subr.bf16.mxu1 %v7128_v0 }
 0x558   :  { %v1300_v33 = vpop.f32.mrb[36].mxu0 }
 0x559   :  { %v1306_v34 = vadd.f32 %v1300_v33, %v1258_v32  ;;  %v5763_v35 = vpop.f32.mrb[37].mxu0 }
 0x55a   :  { %v1303_v36 = vpop.f32.mrb[38].mxu0 }
 0x55b   :  { %6395 = vtanh.f32 %v1306_v34  ;;  %v5764_v37 = vpop.f32.mrb[39].mxu0  ;;  %v5258_v46 = vmul.f32 -1.442695, %v1306_v34 }
 0x55c   :  { %v1373_v39 = vpop.f32.mrb[36].mxu1 }
 0x55d   :  { %v1379_v40 = vadd.f32 %v1373_v39, %v1331_v38  ;;  %v5771_v41 = vpop.f32.mrb[37].mxu1 }
 0x55e   :  { %v1376_v42 = vpop.f32.mrb[38].mxu1 }
 0x55f   :  { %6397 = vtanh.f32 %v1379_v40  ;;  %v5772_v43 = vpop.f32.mrb[39].mxu1  ;;  %v5260_v47 = vmul.f32 -1.442695, %v1379_v40 }
 0x560   :  { %6399 = vpow2.f32 %v5258_v46 }
 0x561   :  { %6401 = vpow2.f32 %v5260_v47 }
 0x565   :  { %v6396_v44 = vpop.eup %6395 }
 0x566   :  { %1316 = vrot.lane.b32.xlu0 %v6396_v44, %s7106_s26 }
 0x569   :  { %v6398_v45 = vpop.eup %6397 }
 0x56a   :  { %1389 = vrot.lane.b32.xlu1 %v6398_v45, %s7106_s26  ;;  %v6400_v48 = vpop.eup %6399 }
 0x56b   :  { %v1310_v49 = vadd.f32 1.0, %v6400_v48  ;;  %v6402_v50 = vpop.eup %6401 }
 0x56c   :  { %v1383_v51 = vadd.f32 1.0, %v6402_v50 }
 0x56d   :  { %6403 = vrcp.f32 %v1310_v49 }
 0x56e   :  { %6405 = vrcp.f32 %v1383_v51 }
 0x577   :  { %v6404_v52 = vpop.eup %6403 }
 0x578   :  { %v6406_v55 = vpop.eup %6405  ;;  %v1314_v58 = vmul.f32 %v6404_v52, %v7609_v13 }
 0x579   :  { %v1387_v61 = vmul.f32 %v6406_v55, %v7612_v16 }
 0x5d8   :  { %v1317_v53 = vpop.permute.xlu0 %1316 }
 0x5d9   :  { %v1319_v54 = vmul.f32 %v6404_v52, %v1317_v53 }
 0x5db   :  { %1321 = vrot.lane.b32.xlu0 %v1319_v54, %s7131_s12 }
 0x5dc   :  { %v1390_v56 = vpop.permute.xlu1 %1389 }
 0x5dd   :  { %v1392_v57 = vmul.f32 %v6406_v55, %v1390_v56 }
 0x5df   :  { %1394 = vrot.lane.b32.xlu1 %v1392_v57, %s7131_s12 }
 0x64d   :  { %v1322_v59 = vpop.permute.xlu0 %1321 }
 0x64e   :  { %v7646_v60 = vadd.f32 %v1322_v59, %v1314_v58 }
 0x650   :  { %6407 = vtanh.f32 %v7646_v60 }
 0x651   :  { %v1395_v62 = vpop.permute.xlu1 %1394 }
 0x652   :  { %v7650_v63 = vadd.f32 %v1395_v62, %v1387_v61 }
 0x654   :  { %6409 = vtanh.f32 %v7650_v63 }
 0x65a   :  { %v6408_v1 = vpop.eup %6407 }
 0x65b   :  { %1327 = vrot.lane.b32.xlu0 %v6408_v1, %s7106_s26 }
 0x65e   :  { %v6410_v2 = vpop.eup %6409 }
 0x65f   :  { %1400 = vrot.lane.b32.xlu1 %v6410_v2, %s7106_s26 }
 0x6cd   :  { %v1328_v3 = vpop.permute.xlu0 %1327 }
 0x6ce   :  { %v7655_v4 = vmul.f32 %v6404_v52, %v1328_v3  ;;  %v1647_v3 = vld [vmem:[#allocation3 + $0x8] sm:$0x3] }
 0x6d0   :  { %v1417_v5 = vpack.c.bf16 %v7655_v4, %v7655_v4 }
 0x6d1   :  { %v1401_v6 = vpop.permute.xlu1 %1400 }
 0x6d2   :  { %v7659_v7 = vmul.f32 %v6406_v55, %v1401_v6  ;;  %1419 = vrot.lane.b32.xlu0 %v1417_v5, %s7131_s12 }
 0x6d4   :  { %v1490_v8 = vpack.c.bf16 %v7659_v7, %v7659_v7 }
 0x6d6   :  { %1492 = vrot.lane.b32.xlu1 %v1490_v8, %s7131_s12 }
 0x744   :  { %v1420_v9 = vpop.permute.xlu0 %1419 }
 0x745   :  { %5778 = vmatmul.mubr.msk.bf16.vlgmr.msra.gmra.mrb[40].mxu0 %vm1098_vm2, %v1420_v9 }
 0x746   :  { %5790 = vmatpush3.bf16.msra.mxu0 %v7569_v19  ;;  %5793 = vmatprep.mubr.msk.bf16.mxu0 %vm7129_vm0, %v7128_v0 }
 0x747   :  { %5791 = vmatprep.subr.bf16.mxu0 %v7128_v0 }
 0x748   :  { %v1493_v10 = vpop.permute.xlu1 %1492 }
 0x749   :  { %5786 = vmatmul.mubr.msk.bf16.vlgmr.msra.gmra.mrb[40].mxu1 %vm1098_vm2, %v1493_v10 }
 0x74a   :  { %5792 = vmatpush3.bf16.msra.mxu0 %v7577_v21  ;;  %5798 = vmatpush3.bf16.msra.mxu1 %v7571_v20 }
 0x74b   :  { %5799 = vmatprep.subr.bf16.mxu1 %v7128_v0  ;;  %5801 = vmatprep.mubr.msk.bf16.mxu1 %vm7129_vm0, %v7128_v0 }
 0x74c   :  { %5805 = vmatprep.subr.bf16.mxu0 %v7128_v0 }
 0x74e   :  { %5800 = vmatpush3.bf16.msra.mxu1 %v7579_v22 }
 0x74f   :  { %5813 = vmatprep.subr.bf16.mxu1 %v7128_v0 }
 0x818   :  { %v1458_v12 = vpop.f32.mrb[40].mxu0 }
 0x819   :  { %v1464_v13 = vadd.f32 %v1458_v12, %v1416_v11  ;;  %v5779_v14 = vpop.f32.mrb[41].mxu0 }
 0x81a   :  { %v1461_v15 = vpop.f32.mrb[42].mxu0 }
 0x81b   :  { %6411 = vtanh.f32 %v1464_v13  ;;  %v5780_v16 = vpop.f32.mrb[43].mxu0  ;;  %v5262_v32 = vmul.f32 -1.442695, %v1464_v13 }
 0x81c   :  { %v1531_v18 = vpop.f32.mrb[40].mxu1 }
 0x81d   :  { %v1537_v24 = vadd.f32 %v1531_v18, %v1489_v17  ;;  %v5787_v26 = vpop.f32.mrb[41].mxu1 }
 0x81e   :  { %v1534_v27 = vpop.f32.mrb[42].mxu1 }
 0x81f   :  { %6413 = vtanh.f32 %v1537_v24  ;;  %v5788_v29 = vpop.f32.mrb[43].mxu1  ;;  %v5264_v33 = vmul.f32 -1.442695, %v1537_v24 }
 0x820   :  { %6415 = vpow2.f32 %v5262_v32 }
 0x821   :  { %6417 = vpow2.f32 %v5264_v33 }
 0x825   :  { %v6412_v30 = vpop.eup %6411 }
 0x826   :  { %1474 = vrot.lane.b32.xlu0 %v6412_v30, %s7106_s26 }
 0x829   :  { %v6414_v31 = vpop.eup %6413 }
 0x82a   :  { %1547 = vrot.lane.b32.xlu1 %v6414_v31, %s7106_s26  ;;  %v6416_v34 = vpop.eup %6415 }
 0x82b   :  { %v1468_v35 = vadd.f32 1.0, %v6416_v34  ;;  %v6418_v36 = vpop.eup %6417 }
 0x82c   :  { %v1541_v37 = vadd.f32 1.0, %v6418_v36 }
 0x82d   :  { %6419 = vrcp.f32 %v1468_v35 }
 0x82e   :  { %6421 = vrcp.f32 %v1541_v37 }
 0x837   :  { %v6420_v38 = vpop.eup %6419 }
 0x838   :  { %v6422_v41 = vpop.eup %6421  ;;  %v1472_v44 = vmul.f32 %v6420_v38, %v7646_v60  ;;  %v1574_v60 = vld [vmem:[#allocation2 + $0x6] sm:$0x3] }
 0x839   :  { %v1545_v47 = vmul.f32 %v6422_v41, %v7650_v63 }
 0x898   :  { %v1475_v39 = vpop.permute.xlu0 %1474 }
 0x899   :  { %v1477_v40 = vmul.f32 %v6420_v38, %v1475_v39 }
 0x89b   :  { %1479 = vrot.lane.b32.xlu0 %v1477_v40, %s7131_s12 }
 0x89c   :  { %v1548_v42 = vpop.permute.xlu1 %1547 }
 0x89d   :  { %v1550_v43 = vmul.f32 %v6422_v41, %v1548_v42 }
 0x89f   :  { %1552 = vrot.lane.b32.xlu1 %v1550_v43, %s7131_s12 }
 0x90d   :  { %v1480_v45 = vpop.permute.xlu0 %1479 }
 0x90e   :  { %v7684_v46 = vadd.f32 %v1480_v45, %v1472_v44 }
 0x910   :  { %6423 = vtanh.f32 %v7684_v46 }
 0x911   :  { %v1553_v48 = vpop.permute.xlu1 %1552 }
 0x912   :  { %v7688_v49 = vadd.f32 %v1553_v48, %v1545_v47  ;;  %v1732_v48 = vld [vmem:[#allocation2 + $0x8] sm:$0x3] }
 0x914   :  { %6425 = vtanh.f32 %v7688_v49 }
 0x91a   :  { %v6424_v50 = vpop.eup %6423 }
 0x91b   :  { %1485 = vrot.lane.b32.xlu0 %v6424_v50, %s7106_s26 }
 0x91e   :  { %v6426_v51 = vpop.eup %6425 }
 0x91f   :  { %1558 = vrot.lane.b32.xlu1 %v6426_v51, %s7106_s26 }
 0x98d   :  { %v1486_v52 = vpop.permute.xlu0 %1485 }
 0x98e   :  { %v7693_v53 = vmul.f32 %v6420_v38, %v1486_v52 }
 0x990   :  { %v1575_v54 = vpack.c.bf16 %v7693_v53, %v7693_v53 }
 0x991   :  { %v1559_v55 = vpop.permute.xlu1 %1558 }
 0x992   :  { %v7697_v56 = vmul.f32 %v6422_v41, %v1559_v55  ;;  %1577 = vrot.lane.b32.xlu0 %v1575_v54, %s7131_s12  ;;  %v1805_v55 = vld [vmem:[#allocation3 + $0x6] sm:$0x3] }
 0x994   :  { %v1648_v57 = vpack.c.bf16 %v7697_v56, %v7697_v56 }
 0x996   :  { %1650 = vrot.lane.b32.xlu1 %v1648_v57, %s7131_s12 }
 0xa04   :  { %v1578_v58 = vpop.permute.xlu0 %1577 }
 0xa05   :  { %5794 = vmatmul.mubr.msk.bf16.vlgmr.msra.gmra.mrb[44].mxu0 %vm1098_vm2, %v1578_v58 }
 0xa06   :  { %5806 = vmatpush3.bf16.msra.mxu0 %v7569_v19  ;;  %5809 = vmatprep.mubr.msk.bf16.mxu0 %vm7129_vm0, %v7128_v0 }
 0xa07   :  { %5807 = vmatprep.subr.bf16.mxu0 %v7128_v0 }
 0xa08   :  { %v1651_v59 = vpop.permute.xlu1 %1650 }
 0xa09   :  { %5802 = vmatmul.mubr.msk.bf16.vlgmr.msra.gmra.mrb[44].mxu1 %vm1098_vm2, %v1651_v59 }
 0xa0a   :  { %5808 = vmatpush3.bf16.msra.mxu0 %v7577_v21  ;;  %5814 = vmatpush3.bf16.msra.mxu1 %v7571_v20 }
 0xa0b   :  { %5815 = vmatprep.subr.bf16.mxu1 %v7128_v0  ;;  %5817 = vmatprep.mubr.msk.bf16.mxu1 %vm7129_vm0, %v7128_v0 }
 0xa0c   :  { %5821 = vmatprep.subr.bf16.mxu0 %v7128_v0 }
 0xa0e   :  { %5816 = vmatpush3.bf16.msra.mxu1 %v7579_v22 }
 0xa0f   :  { %5829 = vmatprep.subr.bf16.mxu1 %v7128_v0 }
 0xad8   :  { %v1616_v61 = vpop.f32.mrb[44].mxu0 }
 0xad9   :  { %v1622_v62 = vadd.f32 %v1616_v61, %v1574_v60  ;;  %v5795_v63 = vpop.f32.mrb[45].mxu0 }
 0xada   :  { %v1619_v1 = vpop.f32.mrb[46].mxu0 }
 0xadb   :  { %6427 = vtanh.f32 %v1622_v62  ;;  %v5796_v2 = vpop.f32.mrb[47].mxu0  ;;  %v5266_v13 = vmul.f32 -1.442695, %v1622_v62 }
 0xadc   :  { %v1689_v5 = vpop.f32.mrb[44].mxu1 }
 0xadd   :  { %v1695_v6 = vadd.f32 %v1689_v5, %v1647_v3  ;;  %v5803_v8 = vpop.f32.mrb[45].mxu1 }
 0xade   :  { %v1692_v9 = vpop.f32.mrb[46].mxu1 }
 0xadf   :  { %6429 = vtanh.f32 %v1695_v6  ;;  %v5804_v10 = vpop.f32.mrb[47].mxu1  ;;  %v5268_v14 = vmul.f32 -1.442695, %v1695_v6 }
 0xae0   :  { %6431 = vpow2.f32 %v5266_v13 }
 0xae1   :  { %6433 = vpow2.f32 %v5268_v14 }
 0xae5   :  { %v6428_v11 = vpop.eup %6427 }
 0xae6   :  { %1632 = vrot.lane.b32.xlu0 %v6428_v11, %s7106_s26 }
 0xae9   :  { %v6430_v12 = vpop.eup %6429 }
 0xaea   :  { %1705 = vrot.lane.b32.xlu1 %v6430_v12, %s7106_s26  ;;  %v6432_v15 = vpop.eup %6431 }
 0xaeb   :  { %v1626_v16 = vadd.f32 1.0, %v6432_v15  ;;  %v6434_v17 = vpop.eup %6433 }
 0xaec   :  { %v1699_v18 = vadd.f32 1.0, %v6434_v17 }
 0xaed   :  { %6435 = vrcp.f32 %v1626_v16 }
 0xaee   :  { %6437 = vrcp.f32 %v1699_v18 }
 0xaf7   :  { %v6436_v24 = vpop.eup %6435 }
 0xaf8   :  { %v6438_v29 = vpop.eup %6437  ;;  %v1630_v32 = vmul.f32 %v6436_v24, %v7684_v46 }
 0xaf9   :  { %v1703_v35 = vmul.f32 %v6438_v29, %v7688_v49 }
 0xb58   :  { %v1633_v26 = vpop.permute.xlu0 %1632 }
 0xb59   :  { %v1635_v27 = vmul.f32 %v6436_v24, %v1633_v26 }
 0xb5b   :  { %1637 = vrot.lane.b32.xlu0 %v1635_v27, %s7131_s12 }
 0xb5c   :  { %v1706_v30 = vpop.permute.xlu1 %1705 }
 0xb5d   :  { %v1708_v31 = vmul.f32 %v6438_v29, %v1706_v30 }
 0xb5f   :  { %1710 = vrot.lane.b32.xlu1 %v1708_v31, %s7131_s12 }
 0xbcd   :  { %v1638_v33 = vpop.permute.xlu0 %1637 }
 0xbce   :  { %v7722_v34 = vadd.f32 %v1638_v33, %v1630_v32 }
 0xbd0   :  { %6439 = vtanh.f32 %v7722_v34 }
 0xbd1   :  { %v1711_v36 = vpop.permute.xlu1 %1710 }
 0xbd2   :  { %v7726_v37 = vadd.f32 %v1711_v36, %v1703_v35 }
 0xbd4   :  { %6441 = vtanh.f32 %v7726_v37 }
 0xbda   :  { %v6440_v38 = vpop.eup %6439 }
 0xbdb   :  { %1643 = vrot.lane.b32.xlu0 %v6440_v38, %s7106_s26 }
 0xbde   :  { %v6442_v39 = vpop.eup %6441 }
 0xbdf   :  { %1716 = vrot.lane.b32.xlu1 %v6442_v39, %s7106_s26 }
 0xc4d   :  { %v1644_v40 = vpop.permute.xlu0 %1643 }
 0xc4e   :  { %v7731_v41 = vmul.f32 %v6436_v24, %v1644_v40 }
 0xc50   :  { %v1733_v42 = vpack.c.bf16 %v7731_v41, %v7731_v41 }
 0xc51   :  { %v1717_v43 = vpop.permute.xlu1 %1716 }
 0xc52   :  { %v7735_v44 = vmul.f32 %v6438_v29, %v1717_v43  ;;  %1735 = vrot.lane.b32.xlu0 %v1733_v42, %s7131_s12  ;;  %v1961_v43 = vld [vmem:[#allocation3 + $0x4] sm:$0x3] }
 0xc54   :  { %v1806_v45 = vpack.c.bf16 %v7735_v44, %v7735_v44 }
 0xc56   :  { %1808 = vrot.lane.b32.xlu1 %v1806_v45, %s7131_s12 }
 0xcc4   :  { %v1736_v46 = vpop.permute.xlu0 %1735 }
 0xcc5   :  { %5810 = vmatmul.mubr.msk.bf16.vlgmr.msra.gmra.mrb[48].mxu0 %vm1098_vm2, %v1736_v46 }
 0xcc6   :  { %5822 = vmatpush3.bf16.msra.mxu0 %v7569_v19  ;;  %5825 = vmatprep.mubr.msk.bf16.mxu0 %vm7129_vm0, %v7128_v0 }
 0xcc7   :  { %5823 = vmatprep.subr.bf16.mxu0 %v7128_v0 }
 0xcc8   :  { %v1809_v47 = vpop.permute.xlu1 %1808 }
 0xcc9   :  { %5818 = vmatmul.mubr.msk.bf16.vlgmr.msra.gmra.mrb[48].mxu1 %vm1098_vm2, %v1809_v47 }
 0xcca   :  { %5824 = vmatpush3.bf16.msra.mxu0 %v7577_v21  ;;  %5830 = vmatpush3.bf16.msra.mxu1 %v7571_v20 }
 0xccb   :  { %5831 = vmatprep.subr.bf16.mxu1 %v7128_v0  ;;  %5833 = vmatprep.mubr.msk.bf16.mxu1 %vm7129_vm0, %v7128_v0 }
 0xccc   :  { %5837 = vmatprep.subr.bf16.mxu0 %v7128_v0 }
 0xcce   :  { %5832 = vmatpush3.bf16.msra.mxu1 %v7579_v22 }
 0xccf   :  { %5845 = vmatprep.subr.bf16.mxu1 %v7128_v0 }
 0xd98   :  { %v1774_v49 = vpop.f32.mrb[48].mxu0 }
 0xd99   :  { %v1780_v50 = vadd.f32 %v1774_v49, %v1732_v48  ;;  %v5811_v51 = vpop.f32.mrb[49].mxu0 }
 0xd9a   :  { %v1777_v52 = vpop.f32.mrb[50].mxu0 }
 0xd9b   :  { %6443 = vtanh.f32 %v1780_v50  ;;  %v5812_v54 = vpop.f32.mrb[51].mxu0  ;;  %v5270_v1 = vmul.f32 -1.442695, %v1780_v50 }
 0xd9c   :  { %v1847_v57 = vpop.f32.mrb[48].mxu1 }
 0xd9d   :  { %v1853_v58 = vadd.f32 %v1847_v57, %v1805_v55  ;;  %v5819_v59 = vpop.f32.mrb[49].mxu1 }
 0xd9e   :  { %v1850_v60 = vpop.f32.mrb[50].mxu1 }
 0xd9f   :  { %6445 = vtanh.f32 %v1853_v58  ;;  %v5820_v61 = vpop.f32.mrb[51].mxu1  ;;  %v5272_v2 = vmul.f32 -1.442695, %v1853_v58 }
 0xda0   :  { %6447 = vpow2.f32 %v5270_v1 }
 0xda1   :  { %6449 = vpow2.f32 %v5272_v2 }
 0xda5   :  { %v6444_v62 = vpop.eup %6443 }
 0xda6   :  { %1790 = vrot.lane.b32.xlu0 %v6444_v62, %s7106_s26 }
 0xda9   :  { %v6446_v63 = vpop.eup %6445 }
 0xdaa   :  { %1863 = vrot.lane.b32.xlu1 %v6446_v63, %s7106_s26  ;;  %v6448_v3 = vpop.eup %6447 }
 0xdab   :  { %v1784_v5 = vadd.f32 1.0, %v6448_v3  ;;  %v6450_v6 = vpop.eup %6449 }
 0xdac   :  { %v1857_v8 = vadd.f32 1.0, %v6450_v6 }
 0xdad   :  { %6451 = vrcp.f32 %v1784_v5 }
 0xdae   :  { %6453 = vrcp.f32 %v1857_v8 }
 0xdb7   :  { %v6452_v9 = vpop.eup %6451 }
 0xdb8   :  { %v6454_v12 = vpop.eup %6453  ;;  %v1788_v15 = vmul.f32 %v6452_v9, %v7722_v34 }
 0xdb9   :  { %v1861_v18 = vmul.f32 %v6454_v12, %v7726_v37 }
 0xe18   :  { %v1791_v10 = vpop.permute.xlu0 %1790 }
 0xe19   :  { %v1793_v11 = vmul.f32 %v6452_v9, %v1791_v10 }
 0xe1b   :  { %1795 = vrot.lane.b32.xlu0 %v1793_v11, %s7131_s12 }
 0xe1c   :  { %v1864_v13 = vpop.permute.xlu1 %1863 }
 0xe1d   :  { %v1866_v14 = vmul.f32 %v6454_v12, %v1864_v13 }
 0xe1f   :  { %1868 = vrot.lane.b32.xlu1 %v1866_v14, %s7131_s12 }
 0xe8d   :  { %v1796_v16 = vpop.permute.xlu0 %1795 }
 0xe8e   :  { %v7760_v17 = vadd.f32 %v1796_v16, %v1788_v15 }
 0xe90   :  { %6455 = vtanh.f32 %v7760_v17 }
 0xe91   :  { %v1869_v24 = vpop.permute.xlu1 %1868 }
 0xe92   :  { %v7764_v26 = vadd.f32 %v1869_v24, %v1861_v18  ;;  %v6635_v18 = vld [vmem:[#allocation11] sm:$0xff]  }
 0xe94   :  { %6457 = vtanh.f32 %v7764_v26 }
 0xe9a   :  { %v6456_v27 = vpop.eup %6455 }
 0xe9b   :  { %1801 = vrot.lane.b32.xlu0 %v6456_v27, %s7106_s26  ;;  %v6637_v27 = vld [vmem:[#allocation15] sm:$0xff]  }
 0xe9e   :  { %v6458_v29 = vpop.eup %6457 }
 0xe9f   :  { %1874 = vrot.lane.b32.xlu1 %v6458_v29, %s7106_s26  ;;  %v6638_v29 = vld [vmem:[#allocation15 + $0x8] sm:$0xff]  }
 0xf0d   :  { %v1802_v30 = vpop.permute.xlu0 %1801 }
 0xf0e   :  { %v7769_v31 = vmul.f32 %v6452_v9, %v1802_v30  ;;  %v2044_v30 = vld [vmem:[#allocation2 + $0xc] sm:$0x3] }
 0xf10   :  { %v1889_v32 = vpack.c.bf16 %v7769_v31, %v7769_v31 }
 0xf11   :  { %v1875_v33 = vpop.permute.xlu1 %1874 }
 0xf12   :  { %v7773_v34 = vmul.f32 %v6454_v12, %v1875_v33  ;;  %1891 = vrot.lane.b32.xlu0 %v1889_v32, %s7131_s12 }
 0xf14   :  { %v1962_v35 = vpack.c.bf16 %v7773_v34, %v7773_v34 }
 0xf16   :  { %1964 = vrot.lane.b32.xlu1 %v1962_v35, %s7131_s12 }
 0xf84   :  { %v1892_v36 = vpop.permute.xlu0 %1891 }
 0xf85   :  { %5826 = vmatmul.mubr.msk.bf16.vlgmr.msra.gmra.mrb[52].mxu0 %vm1098_vm2, %v1892_v36 }
 0xf86   :  { %5838 = vmatpush3.bf16.msra.mxu0 %v7569_v19  ;;  %5841 = vmatprep.mubr.msk.bf16.mxu0 %vm7129_vm0, %v7128_v0  ;;  %v1888_v19 = vld [vmem:[#allocation2 + $0xa] sm:$0x3] }
 0xf87   :  { %5839 = vmatprep.subr.bf16.mxu0 %v7128_v0 }
 0xf88   :  { %v1965_v37 = vpop.permute.xlu1 %1964 }
 0xf89   :  { %5834 = vmatmul.mubr.msk.bf16.vlgmr.msra.gmra.mrb[52].mxu1 %vm1098_vm2, %v1965_v37 }
 0xf8a   :  { %5840 = vmatpush3.bf16.msra.mxu0 %v7577_v21  ;;  %5846 = vmatpush3.bf16.msra.mxu1 %v7571_v20 }
 0xf8b   :  { %5847 = vmatprep.subr.bf16.mxu1 %v7128_v0  ;;  %5849 = vmatprep.mubr.msk.bf16.mxu1 %vm7129_vm0, %v7128_v0 }
 0xf8c   :  { %5853 = vmatprep.subr.bf16.mxu0 %v7128_v0 }
 0xf8e   :  { %5848 = vmatpush3.bf16.msra.mxu1 %v7579_v22 }
 0xf8f   :  { %5861 = vmatprep.subr.bf16.mxu1 %v7128_v0 }
0x1058   :  { %v1930_v38 = vpop.f32.mrb[52].mxu0 }
0x1059   :  { %v1936_v39 = vadd.f32 %v1930_v38, %v1888_v19  ;;  %v5827_v40 = vpop.f32.mrb[53].mxu0  ;;  %v2117_v19 = vld [vmem:[#allocation3 + $0x2] sm:$0x3] }
0x105a   :  { %v1933_v42 = vpop.f32.mrb[54].mxu0 }
0x105b   :  { %6459 = vtanh.f32 %v1936_v39  ;;  %v5828_v21 = vpop.f32.mrb[55].mxu0  ;;  %v5274_v50 = vmul.f32 -1.442695, %v1936_v39 }
0x105c   :  { %v2003_v20 = vpop.f32.mrb[52].mxu1 }
0x105d   :  { %v2009_v45 = vadd.f32 %v2003_v20, %v1961_v43  ;;  %v5835_v46 = vpop.f32.mrb[53].mxu1 }
0x105e   :  { %v2006_v47 = vpop.f32.mrb[54].mxu1 }
0x105f   :  { %6461 = vtanh.f32 %v2009_v45  ;;  %v5836_v48 = vpop.f32.mrb[55].mxu1  ;;  %v5276_v51 = vmul.f32 -1.442695, %v2009_v45 }
0x1060   :  { %6463 = vpow2.f32 %v5274_v50 }
0x1061   :  { %6465 = vpow2.f32 %v5276_v51 }
0x1065   :  { %v6460_v49 = vpop.eup %6459 }
0x1066   :  { %1946 = vrot.lane.b32.xlu0 %v6460_v49, %s7106_s26 }
0x1069   :  { %v6462_v22 = vpop.eup %6461 }
0x106a   :  { %2019 = vrot.lane.b32.xlu1 %v6462_v22, %s7106_s26  ;;  %v6464_v52 = vpop.eup %6463 }
0x106b   :  { %v1940_v54 = vadd.f32 1.0, %v6464_v52  ;;  %v6466_v55 = vpop.eup %6465 }
0x106c   :  { %v2013_v57 = vadd.f32 1.0, %v6466_v55 }
0x106d   :  { %6467 = vrcp.f32 %v1940_v54 }
0x106e   :  { %6469 = vrcp.f32 %v2013_v57 }
0x1077   :  { %v6468_v58 = vpop.eup %6467 }
0x1078   :  { %v6470_v61 = vpop.eup %6469  ;;  %v1944_v1 = vmul.f32 %v6468_v58, %v7760_v17 }
0x1079   :  { %v2017_v5 = vmul.f32 %v6470_v61, %v7764_v26  ;;  %v6636_v26 = vld [vmem:[#allocation11 + $0x8] sm:$0xff]  }
0x10d8   :  { %v1947_v59 = vpop.permute.xlu0 %1946 }
0x10d9   :  { %v1949_v60 = vmul.f32 %v6468_v58, %v1947_v59 }
0x10db   :  { %1951 = vrot.lane.b32.xlu0 %v1949_v60, %s7131_s12 }
0x10dc   :  { %v2020_v62 = vpop.permute.xlu1 %2019 }
0x10dd   :  { %v2022_v63 = vmul.f32 %v6470_v61, %v2020_v62 }
0x10df   :  { %2024 = vrot.lane.b32.xlu1 %v2022_v63, %s7131_s12 }
0x114d   :  { %v1952_v2 = vpop.permute.xlu0 %1951 }
0x114e   :  { %v7798_v3 = vadd.f32 %v1952_v2, %v1944_v1 }
0x1150   :  { %6471 = vtanh.f32 %v7798_v3 }
0x1151   :  { %v2025_v6 = vpop.permute.xlu1 %2024 }
0x1152   :  { %v7802_v8 = vadd.f32 %v2025_v6, %v2017_v5 }
0x1154   :  { %6473 = vtanh.f32 %v7802_v8 }
0x115a   :  { %v6472_v9 = vpop.eup %6471 }
0x115b   :  { %1957 = vrot.lane.b32.xlu0 %v6472_v9, %s7106_s26 }
0x115e   :  { %v6474_v10 = vpop.eup %6473 }
0x115f   :  { %2030 = vrot.lane.b32.xlu1 %v6474_v10, %s7106_s26 }
0x11cd   :  { %v1958_v11 = vpop.permute.xlu0 %1957 }
0x11ce   :  { %v7807_v12 = vmul.f32 %v6468_v58, %v1958_v11 }
0x11d0   :  { %v2045_v13 = vpack.c.bf16 %v7807_v12, %v7807_v12 }
0x11d1   :  { %v2031_v14 = vpop.permute.xlu1 %2030 }
0x11d2   :  { %v7811_v15 = vmul.f32 %v6470_v61, %v2031_v14  ;;  %2047 = vrot.lane.b32.xlu0 %v2045_v13, %s7131_s12  ;;  %v2200_v14 = vld [vmem:[#allocation2 + $0xe] sm:$0x3] }
0x11d4   :  { %v2118_v16 = vpack.c.bf16 %v7811_v15, %v7811_v15 }
0x11d6   :  { %2120 = vrot.lane.b32.xlu1 %v2118_v16, %s7131_s12 }
0x1244   :  { %v2048_v17 = vpop.permute.xlu0 %2047 }
0x1245   :  { %5842 = vmatmul.mubr.msk.bf16.vlgmr.msra.gmra.mrb[56].mxu0 %vm1098_vm2, %v2048_v17 }
0x1246   :  { %5854 = vmatpush3.bf16.msra.mxu0 %v6635_v18  ;;  %5857 = vmatprep.mubr.msk.bf16.mxu0 %vm7129_vm0, %v7128_v0 }
0x1247   :  { %5855 = vmatprep.subr.bf16.mxu0 %v7128_v0 }
0x1248   :  { %v2121_v24 = vpop.permute.xlu1 %2120 }
0x1249   :  { %5850 = vmatmul.mubr.msk.bf16.vlgmr.msra.gmra.mrb[56].mxu1 %vm1098_vm2, %v2121_v24 }
0x124a   :  { %5856 = vmatpush3.bf16.msra.mxu0 %v6636_v26  ;;  %5862 = vmatpush3.bf16.msra.mxu1 %v6637_v27  ;;  %v2273_v27 = vld [vmem:[#allocation3] sm:$0x3] }
0x124b   :  { %5863 = vmatprep.subr.bf16.mxu1 %v7128_v0  ;;  %5865 = vmatprep.mubr.msk.bf16.mxu1 %vm7129_vm0, %v7128_v0 }
0x124c   :  { %5869 = vmatprep.subr.bf16.mxu0 %v7128_v0 }
0x124e   :  { %5864 = vmatpush3.bf16.msra.mxu1 %v6638_v29 }
0x124f   :  { %5881 = vmatprep.subr.bf16.mxu1 %v7128_v0 }
0x1318   :  { %v2086_v32 = vpop.f32.mrb[56].mxu0 }
0x1319   :  { %v2092_v33 = vadd.f32 %v2086_v32, %v2044_v30  ;;  %v5843_v35 = vpop.f32.mrb[57].mxu0 }
0x131a   :  { %v2089_v36 = vpop.f32.mrb[58].mxu0 }
0x131b   :  { %6475 = vtanh.f32 %v2092_v33  ;;  %v5844_v37 = vpop.f32.mrb[59].mxu0  ;;  %v5278_v45 = vmul.f32 -1.442695, %v2092_v33 }
0x131c   :  { %v2159_v38 = vpop.f32.mrb[56].mxu1 }
0x131d   :  { %v2165_v39 = vadd.f32 %v2159_v38, %v2117_v19  ;;  %v5851_v40 = vpop.f32.mrb[57].mxu1 }
0x131e   :  { %v2162_v42 = vpop.f32.mrb[58].mxu1 }
0x131f   :  { %6477 = vtanh.f32 %v2165_v39  ;;  %v5852_v21 = vpop.f32.mrb[59].mxu1  ;;  %v5280_v46 = vmul.f32 -1.442695, %v2165_v39 }
0x1320   :  { %6479 = vpow2.f32 %v5278_v45 }
0x1321   :  { %6481 = vpow2.f32 %v5280_v46 }
0x1325   :  { %v6476_v43 = vpop.eup %6475 }
0x1326   :  { %2102 = vrot.lane.b32.xlu0 %v6476_v43, %s7106_s26 }
0x1329   :  { %v6478_v20 = vpop.eup %6477 }
0x132a   :  { %2175 = vrot.lane.b32.xlu1 %v6478_v20, %s7106_s26  ;;  %v6480_v47 = vpop.eup %6479 }
0x132b   :  { %v2096_v48 = vadd.f32 1.0, %v6480_v47  ;;  %v6482_v49 = vpop.eup %6481 }
0x132c   :  { %v2169_v22 = vadd.f32 1.0, %v6482_v49 }
0x132d   :  { %6483 = vrcp.f32 %v2096_v48 }
0x132e   :  { %6485 = vrcp.f32 %v2169_v22 }
0x1337   :  { %v6484_v50 = vpop.eup %6483 }
0x1338   :  { %v6486_v54 = vpop.eup %6485  ;;  %v2100_v58 = vmul.f32 %v6484_v50, %v7798_v3 }
0x1339   :  { %v2173_v61 = vmul.f32 %v6486_v54, %v7802_v8 }
0x1398   :  { %v2103_v51 = vpop.permute.xlu0 %2102 }
0x1399   :  { %v2105_v52 = vmul.f32 %v6484_v50, %v2103_v51  ;;  %v7855_v51 = vld [vmem:[#allocation18] sm:$0xff]  }
0x139b   :  { %2107 = vrot.lane.b32.xlu0 %v2105_v52, %s7131_s12 }
0x139c   :  { %v2176_v55 = vpop.permute.xlu1 %2175 }
0x139d   :  { %v2178_v57 = vmul.f32 %v6486_v54, %v2176_v55 }
0x139f   :  { %2180 = vrot.lane.b32.xlu1 %v2178_v57, %s7131_s12  ;;  %v7861_v57 = vld [vmem:[#allocation18 + $0x8] sm:$0xff]  }
0x140d   :  { %v2108_v59 = vpop.permute.xlu0 %2107 }
0x140e   :  { %v2110_v60 = vadd.f32 %v2108_v59, %v2100_v58  ;;  %v7867_v58 = vld [vmem:[#allocation18 + $0x10] sm:$0xff]  }
0x1410   :  { %6487 = vtanh.f32 %v2110_v60 }
0x1411   :  { %v2181_v62 = vpop.permute.xlu1 %2180 }
0x1412   :  { %v2183_v63 = vadd.f32 %v2181_v62, %v2173_v61 }
0x1414   :  { %6489 = vtanh.f32 %v2183_v63 }
0x141a   :  { %v6488_v1 = vpop.eup %6487 }
0x141b   :  { %2113 = vrot.lane.b32.xlu0 %v6488_v1, %s7106_s26 }
0x141e   :  { %v6490_v2 = vpop.eup %6489 }
0x141f   :  { %2186 = vrot.lane.b32.xlu1 %v6490_v2, %s7106_s26 }
0x148d   :  { %v2114_v5 = vpop.permute.xlu0 %2113 }
0x148e   :  { %v7835_v6 = vmul.f32 %v6484_v50, %v2114_v5 }
0x1490   :  { %v2201_v3 = vpack.c.bf16 %v7835_v6, %v7835_v6 }
0x1491   :  { %v2187_v9 = vpop.permute.xlu1 %2186 }
0x1492   :  { %v7839_v10 = vmul.f32 %v6486_v54, %v2187_v9  ;;  %2203 = vrot.lane.b32.xlu0 %v2201_v3, %s7131_s12 }
0x1494   :  { %v2274_v8 = vpack.c.bf16 %v7839_v10, %v7839_v10 }
0x1496   :  { %2276 = vrot.lane.b32.xlu1 %v2274_v8, %s7131_s12 }
0x1504   :  { %v2204_v11 = vpop.permute.xlu0 %2203 }
0x1505   :  { %5858 = vmatmul.mubr.msk.bf16.vlgmr.msra.gmra.mrb[60].mxu0 %vm1098_vm2, %v2204_v11 }
0x1506   :  { %5877 = vmatprep.mubr.msk.bf16.mxu0 %vm7129_vm0, %v7128_v0  ;;  %5870 = vmatpush3.bf16.msra.mxu0 %v7855_v51 }
0x1507   :  { %5871 = vmatprep.subr.bf16.mxu0 %v7128_v0 }
0x1508   :  { %v2277_v13 = vpop.permute.xlu1 %2276 }
0x1509   :  { %5866 = vmatmul.mubr.msk.bf16.vlgmr.msra.gmra.mrb[60].mxu1 %vm1098_vm2, %v2277_v13 }
0x150a   :  { %5889 = vmatprep.mubr.msk.bf16.mxu1 %vm7129_vm0, %v7128_v0  ;;  %5882 = vmatpush3.bf16.msra.mxu1 %v7855_v51 }
0x150b   :  { %5883 = vmatprep.subr.bf16.mxu1 %v7128_v0  ;;  %5872 = vmatpush3.bf16.msra.mxu0 %v7861_v57 }
0x150c   :  { %5873 = vmatprep.subr.bf16.mxu0 %v7128_v0 }
0x150e   :  { %5884 = vmatpush3.bf16.msra.mxu1 %v7861_v57 }
0x150f   :  { %5885 = vmatprep.subr.bf16.mxu1 %v7128_v0  ;;  %5874 = vmatpush3.bf16.msra.mxu0 %v7867_v58 }
0x1510   :  { %5875 = vmatprep.subr.bf16.mxu0 %v7128_v0 }
0x1512   :  { %5886 = vmatpush3.bf16.msra.mxu1 %v7867_v58 }
0x1513   :  { %5887 = vmatprep.subr.bf16.mxu1 %v7128_v0 }
0x15d8   :  { %v2242_v16 = vpop.f32.mrb[60].mxu0 }
0x15d9   :  { %v2248_v17 = vadd.f32 %v2242_v16, %v2200_v14  ;;  %v5859_v18 = vpop.f32.mrb[61].mxu0  ;;  %v7955_v14 = vld [vmem:[#allocation23] sm:$0xff]  }
0x15da   :  { %v2245_v24 = vpop.f32.mrb[62].mxu0 }
0x15db   :  { %6491 = vtanh.f32 %v2248_v17  ;;  %v5860_v26 = vpop.f32.mrb[63].mxu0  ;;  %v5282_v19 = vmul.f32 -1.442695, %v2248_v17 }
0x15dc   :  { %v2315_v29 = vpop.f32.mrb[60].mxu1  ;;  %v7961_v26 = vld [vmem:[#allocation23 + $0x8] sm:$0xff]  }
0x15dd   :  { %v2321_v30 = vadd.f32 %v2315_v29, %v2273_v27  ;;  %v5867_v32 = vpop.f32.mrb[61].mxu1 }
0x15de   :  { %v2318_v33 = vpop.f32.mrb[62].mxu1  ;;  %v7980_v32 = vld [vmem:[#allocation23 + $0x18] sm:$0xff]  }
0x15df   :  { %6493 = vtanh.f32 %v2321_v30  ;;  %v5868_v35 = vpop.f32.mrb[63].mxu1  ;;  %v5284_v38 = vmul.f32 -1.442695, %v2321_v30  ;;  %v7971_v30 = vld [vmem:[#allocation23 + $0x10] sm:$0xff]  }
0x15e0   :  { %6495 = vpow2.f32 %v5282_v19 }
0x15e1   :  { %6497 = vpow2.f32 %v5284_v38 }
0x15e5   :  { %v6492_v36 = vpop.eup %6491 }
0x15e6   :  { %2258 = vrot.lane.b32.xlu0 %v6492_v36, %s7106_s26 }
0x15e9   :  { %v6494_v37 = vpop.eup %6493 }
0x15ea   :  { %2331 = vrot.lane.b32.xlu1 %v6494_v37, %s7106_s26  ;;  %v6496_v39 = vpop.eup %6495 }
0x15eb   :  { %v2252_v40 = vadd.f32 1.0, %v6496_v39  ;;  %v6498_v42 = vpop.eup %6497 }
0x15ec   :  { %v2325_v21 = vadd.f32 1.0, %v6498_v42 }
0x15ed   :  { %6499 = vrcp.f32 %v2252_v40 }
0x15ee   :  { %6501 = vrcp.f32 %v2325_v21 }
0x15f7   :  { %v6500_v43 = vpop.eup %6499 }
0x15f8   :  { %v6502_v46 = vpop.eup %6501  ;;  %v2256_v49 = vmul.f32 %v6500_v43, %v2110_v60  ;;  %v7873_v60 = vld [vmem:[#allocation18 + $0x18] sm:$0xff]  }
0x15f9   :  { %v2329_v52 = vmul.f32 %v6502_v46, %v2183_v63  ;;  %5888 = vmatpush3.bf16.msra.mxu1 %v7873_v60  ;;  %5876 = vmatpush3.bf16.msra.mxu0 %v7873_v60 }
0x15fa   :  { %5905 = vmatprep.subr.bf16.mxu1 %v7128_v0  ;;  %5893 = vmatprep.subr.bf16.mxu0 %v7128_v0 }
0x1658   :  { %v2259_v20 = vpop.permute.xlu0 %2258 }
0x1659   :  { %v2261_v45 = vmul.f32 %v6500_v43, %v2259_v20 }
0x165b   :  { %2263 = vrot.lane.b32.xlu0 %v2261_v45, %s7131_s12 }
0x165c   :  { %v2332_v47 = vpop.permute.xlu1 %2331 }
0x165d   :  { %v2334_v48 = vmul.f32 %v6502_v46, %v2332_v47 }
0x165f   :  { %2336 = vrot.lane.b32.xlu1 %v2334_v48, %s7131_s12 }
0x16cd   :  { %v2264_v22 = vpop.permute.xlu0 %2263 }
0x16ce   :  { %v2266_v50 = vadd.f32 %v2264_v22, %v2256_v49  ;;  %v8059_v49 = vld [vmem:[#allocation24 + $0x8] sm:$0xff]  }
0x16d0   :  { %6503 = vtanh.f32 %v2266_v50 }
0x16d1   :  { %v2337_v54 = vpop.permute.xlu1 %2336 }
0x16d2   :  { %v2339_v55 = vadd.f32 %v2337_v54, %v2329_v52 }
0x16d4   :  { %6505 = vtanh.f32 %v2339_v55  ;;  %v8097_v55 = vld [vmem:[#allocation21] ss:$0 sm:$0xff] }
0x16da   :  { %v6504_v59 = vpop.eup %6503 }
0x16db   :  { %2269 = vrot.lane.b32.xlu0 %v6504_v59, %s7106_s26 }
0x16de   :  { %v6506_v61 = vpop.eup %6505 }
0x16df   :  { %2342 = vrot.lane.b32.xlu1 %v6506_v61, %s7106_s26  ;;  %1405 = vrot.lane.b32.xlu0 %v7655_v4, %s7131_s12 }
0x16e3   :  { %2196 = vrot.lane.b32.xlu1 %v7839_v10, %s7106_s26  ;;  %1721 = vrot.lane.b32.xlu0 %v7731_v41, %s7131_s12 }
0x16e7   :  { %1884 = vrot.lane.b32.xlu1 %v7773_v34, %s7106_s26  ;;  %1569 = vrot.lane.b32.xlu0 %v7697_v56, %s7106_s26 }
0x16eb   :  { %2035 = vrot.lane.b32.xlu1 %v7807_v12, %s7131_s12  ;;  %1252 = vrot.lane.b32.xlu0 %v7621_v28, %s7106_s26 }
0x16ef   :  { %1246 = vrot.lane.b32.xlu1 %v7617_v25, %s7131_s12 }
0x174d   :  { %v2270_v4 = vpop.permute.xlu0 %2269 }
0x174e   :  { %v2272_v62 = vmul.f32 %v6500_v43, %v2270_v4 }
0x1750   :  { %2347 = vrot.lane.b32.xlu0 %v2272_v62, %s7131_s12  ;;  %v8109_v62 = vld [vmem:[#allocation20] sm:$0xff]  }
0x1751   :  { %v2343_v41 = vpop.permute.xlu1 %2342  ;;  %v1406_v63 = vpop.permute.xlu0 %1405 }
0x1752   :  { %v2345_v34 = vmul.f32 %v6502_v46, %v2343_v41  ;;  %1409 = vst.msk [vmem:[#allocation4 + $0x2] sm:$0x3] %vm1249_vm3, %v1406_v63  ;;  %v8052_v46 = vld [vmem:[#allocation24] sm:$0xff]   ;;  %v8114_v63 = vld [vmem:[#allocation20 + $0x8] sm:$0xff]  }
0x1754   :  { %2352 = vrot.lane.b32.xlu1 %v2345_v34, %s7106_s26  ;;  %1563 = vrot.lane.b32.xlu0 %v7693_v53, %s7131_s12 }
0x1755   :  { %v2197_v28 = vpop.permute.xlu1 %2196  ;;  %v1722_v56 = vpop.permute.xlu0 %1721 }
0x1756   :  { %2199 = vst.msk [vmem:[#allocation4 + $0x2] sm:$0x3] %vm1256_vm4, %v2197_v28 }
0x1757   :  { %1725 = vst.msk [vmem:[#allocation4 + $0x6] sm:$0x3] %vm1249_vm3, %v1722_v56 }
0x1758   :  { %2040 = vrot.lane.b32.xlu1 %v7811_v15, %s7106_s26  ;;  %1727 = vrot.lane.b32.xlu0 %v7735_v44, %s7106_s26 }
0x1759   :  { %v1885_v25 = vpop.permute.xlu1 %1884  ;;  %v1570_v12 = vpop.permute.xlu0 %1569 }
0x175a   :  { %1887 = vst.msk [vmem:[#allocation4 + $0x6] sm:$0x3] %vm1256_vm4, %v1885_v25  ;;  %1573 = vst.msk [vmem:[#allocation4 + $0xa] sm:$0x3] %vm1256_vm4, %v1570_v12 }
0x175c   :  { %1879 = vrot.lane.b32.xlu1 %v7769_v31, %s7131_s12  ;;  %1411 = vrot.lane.b32.xlu0 %v7659_v7, %s7106_s26 }
0x175d   :  { %v2036_v53 = vpop.permute.xlu1 %2035  ;;  %v1253_v1 = vpop.permute.xlu0 %1252  ;;  %v2442_v2 = vld [vmem:[#allocation4 + $0x2] sm:$0x3] }
0x175e   :  { %2038 = vst.msk [vmem:[#allocation4 + $0xa] sm:$0x3] %vm1249_vm3, %v2036_v53  ;;  %v2443_v44 = vpack.c.bf16 %v2442_v2, %v2442_v2  ;;  %v2849_v33 = vld [vmem:[#allocation4 + $0x2] sm:$0x3] }
0x175f   :  { %1257 = vst.msk [vmem:[#allocation4 + $0xe] sm:$0x3] %vm1256_vm4, %v1253_v1  ;;  %v2850_v35 = vpack.c.bf16 %v2849_v33, %v2849_v33 }
0x1760   :  { %2191 = vrot.lane.b32.xlu1 %v7835_v6, %s7131_s12  ;;  %5890 = vmatmul.mubr.msk.bf16.vlgmr.msra.gmra.mrb[64].mxu1 %vm2397_vm5, %v2443_v44 }
0x1761   :  { %5906 = vmatpush3.bf16.msra.mxu1 %v7855_v51  ;;  %v1247_v31 = vpop.permute.xlu1 %1246  ;;  %5913 = vmatprep.mubr.msk.bf16.mxu1 %vm7129_vm0, %v7128_v0  ;;  %v2534_v7 = vld [vmem:[#allocation4 + $0x6] sm:$0x3] }
0x1762   :  { %1250 = vst.msk [vmem:[#allocation4] sm:$0x3] %vm1249_vm3, %v1247_v31  ;;  %5907 = vmatprep.subr.bf16.mxu1 %v7128_v0  ;;  %v2535_v15 = vpack.c.bf16 %v2534_v7, %v2534_v7  ;;  %v2941_v19 = vld [vmem:[#allocation4 + $0x6] sm:$0x3] }
0x1763   :  { %v2942_v38 = vpack.c.bf16 %v2941_v19, %v2941_v19 }
0x1765   :  { %5908 = vmatpush3.bf16.msra.mxu1 %v7861_v57  ;;  %v2626_v5 = vld [vmem:[#allocation4 + $0xa] sm:$0x3] }
0x1766   :  { %5909 = vmatprep.subr.bf16.mxu1 %v7128_v0  ;;  %v2627_v6 = vpack.c.bf16 %v2626_v5, %v2626_v5  ;;  %v3033_v42 = vld [vmem:[#allocation4 + $0xa] sm:$0x3] }
0x1767   :  { %v3034_v21 = vpack.c.bf16 %v3033_v42, %v3033_v42 }
0x1769   :  { %5910 = vmatpush3.bf16.msra.mxu1 %v7867_v58 }
0x176a   :  { %5911 = vmatprep.subr.bf16.mxu1 %v7128_v0 }
0x176d   :  { %5912 = vmatpush3.bf16.msra.mxu1 %v7873_v60 }
0x176e   :  { %5929 = vmatprep.subr.bf16.mxu1 %v7128_v0 }
0x1770   :  { %5914 = vmatmul.mubr.msk.bf16.vlgmr.msra.gmra.mrb[68].mxu1 %vm2397_vm5, %v2535_v15 }
0x1771   :  { %5930 = vmatpush3.bf16.msra.mxu1 %v7855_v51  ;;  %5937 = vmatprep.mubr.msk.bf16.mxu1 %vm7129_vm0, %v7128_v0 }
0x1772   :  { %5931 = vmatprep.subr.bf16.mxu1 %v7128_v0 }
0x1775   :  { %5932 = vmatpush3.bf16.msra.mxu1 %v7861_v57 }
0x1776   :  { %5933 = vmatprep.subr.bf16.mxu1 %v7128_v0 }
0x1779   :  { %5934 = vmatpush3.bf16.msra.mxu1 %v7867_v58 }
0x177a   :  { %5935 = vmatprep.subr.bf16.mxu1 %v7128_v0 }
0x177d   :  { %5936 = vmatpush3.bf16.msra.mxu1 %v7873_v60 }
0x177e   :  { %5953 = vmatprep.subr.bf16.mxu1 %v7128_v0 }
0x1780   :  { %5938 = vmatmul.mubr.msk.bf16.vlgmr.msra.gmra.mrb[72].mxu1 %vm2397_vm5, %v2627_v6 }
0x1781   :  { %5954 = vmatpush3.bf16.msra.mxu1 %v7855_v51  ;;  %5961 = vmatprep.mubr.msk.bf16.mxu1 %vm7129_vm0, %v7128_v0 }
0x1782   :  { %5955 = vmatprep.subr.bf16.mxu1 %v7128_v0 }
0x1785   :  { %5956 = vmatpush3.bf16.msra.mxu1 %v7861_v57 }
0x1786   :  { %5957 = vmatprep.subr.bf16.mxu1 %v7128_v0 }
0x1789   :  { %5958 = vmatpush3.bf16.msra.mxu1 %v7867_v58 }
0x178a   :  { %5959 = vmatprep.subr.bf16.mxu1 %v7128_v0 }
0x178d   :  { %5960 = vmatpush3.bf16.msra.mxu1 %v7873_v60 }
0x178e   :  { %5977 = vmatprep.subr.bf16.mxu1 %v7128_v0 }
0x17c2   :  { %v2348_v3 = vpop.permute.xlu0 %2347 }
0x17c3   :  { %2350 = vst.msk [vmem:[#allocation4 + $0xe] sm:$0x3] %vm1249_vm3, %v2348_v3 }
0x17c6   :  { %v2353_v9 = vpop.permute.xlu1 %2352  ;;  %v1564_v10 = vpop.permute.xlu0 %1563 }
0x17c7   :  { %2355 = vst.msk [vmem:[#allocation4] sm:$0x3] %vm1256_vm4, %v2353_v9 }
0x17c8   :  { %1567 = vst.msk [vmem:[#allocation4 + $0x4] sm:$0x3] %vm1249_vm3, %v1564_v10 }
0x17ca   :  { %v2041_v8 = vpop.permute.xlu1 %2040  ;;  %v1728_v11 = vpop.permute.xlu0 %1727  ;;  %v2718_v13 = vld [vmem:[#allocation4 + $0xe] sm:$0x3] }
0x17cb   :  { %2043 = vst.msk [vmem:[#allocation4 + $0x4] sm:$0x3] %vm1256_vm4, %v2041_v8  ;;  %1731 = vst.msk [vmem:[#allocation4 + $0x8] sm:$0x3] %vm1256_vm4, %v1728_v11  ;;  %v2719_v16 = vpack.c.bf16 %v2718_v13, %v2718_v13  ;;  %v3125_v45 = vld [vmem:[#allocation4 + $0xe] sm:$0x3] }
0x17cc   :  { %v3126_v47 = vpack.c.bf16 %v3125_v45, %v3125_v45  ;;  %v8132_v13 = vld [vmem:[#allocation26] ss:$0 sm:$0xff] }
0x17cd   :  { %5962 = vmatmul.mubr.msk.bf16.vlgmr.msra.gmra.mrb[76].mxu1 %vm2397_vm5, %v2719_v16 }
0x17ce   :  { %5978 = vmatpush3.bf16.msra.mxu1 %v7955_v14  ;;  %v1880_v17 = vpop.permute.xlu1 %1879  ;;  %v1412_v18 = vpop.permute.xlu0 %1411  ;;  %v2365_v24 = vld [vmem:[#allocation4] sm:$0x3]  ;;  %5985 = vmatprep.mubr.msk.bf16.mxu1 %vm7129_vm0, %v7128_v0 }
0x17cf   :  { %1882 = vst.msk [vmem:[#allocation4 + $0x8] sm:$0x3] %vm1249_vm3, %v1880_v17  ;;  %5979 = vmatprep.subr.bf16.mxu1 %v7128_v0  ;;  %v2366_v27 = vpack.c.bf16 %v2365_v24, %v2365_v24  ;;  %v2773_v48 = vld [vmem:[#allocation4] sm:$0x3] }
0x17d0   :  { %1415 = vst.msk [vmem:[#allocation4 + $0xc] sm:$0x3] %vm1256_vm4, %v1412_v18  ;;  %v2774_v22 = vpack.c.bf16 %v2773_v48, %v2773_v48 }
0x17d1   :  { %5878 = vmatmul.mubr.msk.bf16.vlgmr.msra.gmra.mrb[64].mxu0 %vm2397_vm5, %v2366_v27 }
0x17d2   :  { %5894 = vmatpush3.bf16.msra.mxu0 %v7855_v51  ;;  %5980 = vmatpush3.bf16.msra.mxu1 %v7961_v26  ;;  %v2192_v29 = vpop.permute.xlu1 %2191  ;;  %v2488_v36 = vld [vmem:[#allocation4 + $0x4] sm:$0x3] }
0x17d3   :  { %2194 = vst.msk [vmem:[#allocation4 + $0xc] sm:$0x3] %vm1249_vm3, %v2192_v29  ;;  %5895 = vmatprep.subr.bf16.mxu0 %v7128_v0  ;;  %5981 = vmatprep.subr.bf16.mxu1 %v7128_v0  ;;  %v2489_v37 = vpack.c.bf16 %v2488_v36, %v2488_v36  ;;  %v2895_v50 = vld [vmem:[#allocation4 + $0x4] sm:$0x3] }
0x17d4   :  { %5901 = vmatprep.mubr.msk.bf16.mxu0 %vm7129_vm0, %v7128_v0 }
0x17d6   :  { %5896 = vmatpush3.bf16.msra.mxu0 %v7861_v57  ;;  %5982 = vmatpush3.bf16.msra.mxu1 %v7971_v30  ;;  %v2580_v39 = vld [vmem:[#allocation4 + $0x8] sm:$0x3] }
0x17d7   :  { %5897 = vmatprep.subr.bf16.mxu0 %v7128_v0  ;;  %5983 = vmatprep.subr.bf16.mxu1 %v7128_v0  ;;  %v2581_v40 = vpack.c.bf16 %v2580_v39, %v2580_v39  ;;  %v2987_v52 = vld [vmem:[#allocation4 + $0x8] sm:$0x3] }
0x17d8   :  { %v2988_v54 = vpack.c.bf16 %v2987_v52, %v2987_v52 }
0x17da   :  { %5898 = vmatpush3.bf16.msra.mxu0 %v7867_v58  ;;  %5984 = vmatpush3.bf16.msra.mxu1 %v7980_v32  ;;  %v2672_v43 = vld [vmem:[#allocation4 + $0xc] sm:$0x3] }
0x17db   :  { %5899 = vmatprep.subr.bf16.mxu0 %v7128_v0  ;;  %6001 = vmatprep.subr.bf16.mxu1 %v7128_v0  ;;  %v2673_v20 = vpack.c.bf16 %v2672_v43, %v2672_v43  ;;  %v3079_v4 = vld [vmem:[#allocation4 + $0xc] sm:$0x3] }
0x17dc   :  { %v3080_v41 = vpack.c.bf16 %v3079_v4, %v3079_v4 }
0x17dd   :  { %5986 = vmatmul.mubr.msk.bf16.vlgmr.msra.gmra.mrb[80].mxu1 %vm2397_vm5, %v2850_v35 }
0x17de   :  { %5900 = vmatpush3.bf16.msra.mxu0 %v7873_v60  ;;  %6002 = vmatpush3.bf16.msra.mxu1 %v7955_v14 }
0x17df   :  { %5917 = vmatprep.subr.bf16.mxu0 %v7128_v0  ;;  %6003 = vmatprep.subr.bf16.mxu1 %v7128_v0 }
0x17e0   :  { %6009 = vmatprep.mubr.msk.bf16.mxu1 %vm7129_vm0, %v7128_v0 }
0x17e1   :  { %5902 = vmatmul.mubr.msk.bf16.vlgmr.msra.gmra.mrb[68].mxu0 %vm2397_vm5, %v2489_v37 }
0x17e2   :  { %5918 = vmatpush3.bf16.msra.mxu0 %v7855_v51  ;;  %6004 = vmatpush3.bf16.msra.mxu1 %v7961_v26 }
0x17e3   :  { %5919 = vmatprep.subr.bf16.mxu0 %v7128_v0  ;;  %6005 = vmatprep.subr.bf16.mxu1 %v7128_v0 }
0x17e4   :  { %5925 = vmatprep.mubr.msk.bf16.mxu0 %vm7129_vm0, %v7128_v0 }
0x17e6   :  { %5920 = vmatpush3.bf16.msra.mxu0 %v7861_v57  ;;  %6006 = vmatpush3.bf16.msra.mxu1 %v7971_v30 }
0x17e7   :  { %5921 = vmatprep.subr.bf16.mxu0 %v7128_v0  ;;  %6007 = vmatprep.subr.bf16.mxu1 %v7128_v0 }
0x17ea   :  { %5922 = vmatpush3.bf16.msra.mxu0 %v7867_v58  ;;  %6008 = vmatpush3.bf16.msra.mxu1 %v7980_v32 }
0x17eb   :  { %5923 = vmatprep.subr.bf16.mxu0 %v7128_v0  ;;  %6025 = vmatprep.subr.bf16.mxu1 %v7128_v0 }
0x17ed   :  { %6010 = vmatmul.mubr.msk.bf16.vlgmr.msra.gmra.mrb[84].mxu1 %vm2397_vm5, %v2942_v38 }
0x17ee   :  { %5924 = vmatpush3.bf16.msra.mxu0 %v7873_v60  ;;  %6026 = vmatpush3.bf16.msra.mxu1 %v7955_v14 }
0x17ef   :  { %5941 = vmatprep.subr.bf16.mxu0 %v7128_v0  ;;  %6027 = vmatprep.subr.bf16.mxu1 %v7128_v0 }
0x17f0   :  { %6033 = vmatprep.mubr.msk.bf16.mxu1 %vm7129_vm0, %v7128_v0 }
0x17f1   :  { %5926 = vmatmul.mubr.msk.bf16.vlgmr.msra.gmra.mrb[72].mxu0 %vm2397_vm5, %v2581_v40 }
0x17f2   :  { %5942 = vmatpush3.bf16.msra.mxu0 %v7855_v51  ;;  %6028 = vmatpush3.bf16.msra.mxu1 %v7961_v26  ;;  %v2896_v51 = vpack.c.bf16 %v2895_v50, %v2895_v50 }
0x17f3   :  { %5943 = vmatprep.subr.bf16.mxu0 %v7128_v0  ;;  %6029 = vmatprep.subr.bf16.mxu1 %v7128_v0 }
0x17f4   :  { %5949 = vmatprep.mubr.msk.bf16.mxu0 %vm7129_vm0, %v7128_v0 }
0x17f6   :  { %5944 = vmatpush3.bf16.msra.mxu0 %v7861_v57  ;;  %6030 = vmatpush3.bf16.msra.mxu1 %v7971_v30 }
0x17f7   :  { %5945 = vmatprep.subr.bf16.mxu0 %v7128_v0  ;;  %6031 = vmatprep.subr.bf16.mxu1 %v7128_v0 }
0x17fa   :  { %5946 = vmatpush3.bf16.msra.mxu0 %v7867_v58  ;;  %6032 = vmatpush3.bf16.msra.mxu1 %v7980_v32 }
0x17fb   :  { %5947 = vmatprep.subr.bf16.mxu0 %v7128_v0  ;;  %6049 = vmatprep.subr.bf16.mxu1 %v7128_v0 }
0x17fd   :  { %6034 = vmatmul.mubr.msk.bf16.vlgmr.msra.gmra.mrb[88].mxu1 %vm2397_vm5, %v3034_v21 }
0x17fe   :  { %5948 = vmatpush3.bf16.msra.mxu0 %v7873_v60  ;;  %6050 = vmatpush3.bf16.msra.mxu1 %v7955_v14 }
0x17ff   :  { %5965 = vmatprep.subr.bf16.mxu0 %v7128_v0  ;;  %6051 = vmatprep.subr.bf16.mxu1 %v7128_v0 }
0x1800   :  { %6057 = vmatprep.mubr.msk.bf16.mxu1 %vm7129_vm0, %v7128_v0 }
0x1801   :  { %5950 = vmatmul.mubr.msk.bf16.vlgmr.msra.gmra.mrb[76].mxu0 %vm2397_vm5, %v2673_v20 }
0x1802   :  { %5966 = vmatpush3.bf16.msra.mxu0 %v7955_v14  ;;  %6052 = vmatpush3.bf16.msra.mxu1 %v7961_v26 }
0x1803   :  { %5967 = vmatprep.subr.bf16.mxu0 %v7128_v0  ;;  %6053 = vmatprep.subr.bf16.mxu1 %v7128_v0 }
0x1804   :  { %5973 = vmatprep.mubr.msk.bf16.mxu0 %vm7129_vm0, %v7128_v0 }
0x1806   :  { %5968 = vmatpush3.bf16.msra.mxu0 %v7961_v26  ;;  %6054 = vmatpush3.bf16.msra.mxu1 %v7971_v30 }
0x1807   :  { %5969 = vmatprep.subr.bf16.mxu0 %v7128_v0  ;;  %6055 = vmatprep.subr.bf16.mxu1 %v7128_v0 }
0x180a   :  { %5970 = vmatpush3.bf16.msra.mxu0 %v7971_v30  ;;  %6056 = vmatpush3.bf16.msra.mxu1 %v7980_v32 }
0x180b   :  { %5971 = vmatprep.subr.bf16.mxu0 %v7128_v0  ;;  %6069 = vmatprep.subr.bf16.mxu1 %v7128_v0 }
0x180d   :  { %6058 = vmatmul.mubr.msk.bf16.vlgmr.msra.gmra.mrb[92].mxu1 %vm2397_vm5, %v3126_v47 }
0x180e   :  { %5972 = vmatpush3.bf16.msra.mxu0 %v7980_v32  ;;  %6070 = vmatpush3.bf16.msra.mxu1 %v8052_v46 }
0x180f   :  { %5989 = vmatprep.subr.bf16.mxu0 %v7128_v0  ;;  %6071 = vmatprep.subr.bf16.mxu1 %v7128_v0 }
0x1810   :  { %6073 = vmatprep.mubr.msk.bf16.mxu1 %vm7129_vm0, %v7128_v0 }
0x1811   :  { %5974 = vmatmul.mubr.msk.bf16.vlgmr.msra.gmra.mrb[80].mxu0 %vm2397_vm5, %v2774_v22 }
0x1812   :  { %5990 = vmatpush3.bf16.msra.mxu0 %v7955_v14  ;;  %6072 = vmatpush3.bf16.msra.mxu1 %v8059_v49 }
0x1813   :  { %5991 = vmatprep.subr.bf16.mxu0 %v7128_v0  ;;  %5997 = vmatprep.mubr.msk.bf16.mxu0 %vm7129_vm0, %v7128_v0 }
0x1814   :  { %6085 = vmatprep.subr.bf16.mxu1 %v7128_v0 }
0x1815   :  { %6074 = vmatmul.mubr.bf16.vlgmr.msra.gmra.mrb[96].mxu1 %v7130_v23 }
0x1816   :  { %5992 = vmatpush3.bf16.msra.mxu0 %v7961_v26  ;;  %6086 = vmatpush3.bf16.msra.mxu1 %v8052_v46 }
0x1817   :  { %5993 = vmatprep.subr.bf16.mxu0 %v7128_v0  ;;  %6087 = vmatprep.subr.bf16.mxu1 %v7128_v0 }
0x1818   :  { %6089 = vmatprep.mubr.msk.bf16.mxu1 %vm7129_vm0, %v7128_v0 }
0x181a   :  { %5994 = vmatpush3.bf16.msra.mxu0 %v7971_v30  ;;  %6088 = vmatpush3.bf16.msra.mxu1 %v8059_v49 }
0x181b   :  { %5995 = vmatprep.subr.bf16.mxu0 %v7128_v0  ;;  %6101 = vmatprep.subr.bf16.mxu1 %v7128_v0 }
0x181e   :  { %5996 = vmatpush3.bf16.msra.mxu0 %v7980_v32 }
0x181f   :  { %6013 = vmatprep.subr.bf16.mxu0 %v7128_v0 }
0x1821   :  { %5998 = vmatmul.mubr.msk.bf16.vlgmr.msra.gmra.mrb[84].mxu0 %vm2397_vm5, %v2896_v51 }
0x1822   :  { %6014 = vmatpush3.bf16.msra.mxu0 %v7955_v14  ;;  %6021 = vmatprep.mubr.msk.bf16.mxu0 %vm7129_vm0, %v7128_v0 }
0x1823   :  { %6015 = vmatprep.subr.bf16.mxu0 %v7128_v0 }
0x1826   :  { %6016 = vmatpush3.bf16.msra.mxu0 %v7961_v26 }
0x1827   :  { %6017 = vmatprep.subr.bf16.mxu0 %v7128_v0 }
0x182a   :  { %6018 = vmatpush3.bf16.msra.mxu0 %v7971_v30 }
0x182b   :  { %6019 = vmatprep.subr.bf16.mxu0 %v7128_v0 }
0x182e   :  { %6020 = vmatpush3.bf16.msra.mxu0 %v7980_v32 }
0x182f   :  { %6037 = vmatprep.subr.bf16.mxu0 %v7128_v0 }
0x1831   :  { %6022 = vmatmul.mubr.msk.bf16.vlgmr.msra.gmra.mrb[88].mxu0 %vm2397_vm5, %v2988_v54 }
0x1832   :  { %6038 = vmatpush3.bf16.msra.mxu0 %v7955_v14  ;;  %6045 = vmatprep.mubr.msk.bf16.mxu0 %vm7129_vm0, %v7128_v0 }
0x1833   :  { %v2481_v57 = vpop.f32.mrb[64].mxu1  ;;  %6039 = vmatprep.subr.bf16.mxu0 %v7128_v0 }
0x1834   :  { %v2482_v58 = vadd.f32 %v8097_v55, %v2481_v57  ;;  %v5891_v59 = vpop.f32.mrb[65].mxu1 }
0x1835   :  { %v2484_v60 = vpop.f32.mrb[66].mxu1 }
0x1836   :  { %2487 = vst [vmem:[#allocation2 + $0x2] sm:$0x3] %v2482_v58  ;;  %6040 = vmatpush3.bf16.msra.mxu0 %v7961_v26  ;;  %v5892_v61 = vpop.f32.mrb[67].mxu1 }
0x1837   :  { %6041 = vmatprep.subr.bf16.mxu0 %v7128_v0 }
0x183a   :  { %6042 = vmatpush3.bf16.msra.mxu0 %v7971_v30 }
0x183b   :  { %6043 = vmatprep.subr.bf16.mxu0 %v7128_v0 }
0x183e   :  { %6044 = vmatpush3.bf16.msra.mxu0 %v7980_v32 }
0x183f   :  { %6061 = vmatprep.subr.bf16.mxu0 %v7128_v0 }
0x1841   :  { %6046 = vmatmul.mubr.msk.bf16.vlgmr.msra.gmra.mrb[92].mxu0 %vm2397_vm5, %v3080_v41 }
0x1842   :  { %6062 = vmatpush3.bf16.msra.mxu0 %v8109_v62  ;;  %6065 = vmatprep.mubr.msk.bf16.mxu0 %vm7129_vm0, %v7128_v0 }
0x1843   :  { %v2573_v34 = vpop.f32.mrb[68].mxu1  ;;  %6063 = vmatprep.subr.bf16.mxu0 %v7128_v0 }
0x1844   :  { %v2574_v28 = vadd.f32 %v8097_v55, %v2573_v34  ;;  %v5915_v56 = vpop.f32.mrb[69].mxu1 }
0x1845   :  { %v2576_v25 = vpop.f32.mrb[70].mxu1 }
0x1846   :  { %2579 = vst [vmem:[#allocation2 + $0x6] sm:$0x3] %v2574_v28  ;;  %v5916_v12 = vpop.f32.mrb[71].mxu1  ;;  %6064 = vmatpush3.bf16.msra.mxu0 %v8114_v63 }
0x1847   :  { %6077 = vmatprep.subr.bf16.mxu0 %v7128_v0 }
0x1849   :  { %6066 = vmatmul.mubr.bf16.vlgmr.msra.gmra.mrb[96].mxu0 %v7130_v23 }
0x184a   :  { %6078 = vmatpush3.bf16.msra.mxu0 %v8109_v62  ;;  %6081 = vmatprep.mubr.msk.bf16.mxu0 %vm7129_vm0, %v7128_v0 }
0x184b   :  { %6079 = vmatprep.subr.bf16.mxu0 %v7128_v0 }
0x184e   :  { %6080 = vmatpush3.bf16.msra.mxu0 %v8114_v63 }
0x184f   :  { %6093 = vmatprep.subr.bf16.mxu0 %v7128_v0 }
0x1853   :  { %v2665_v53 = vpop.f32.mrb[72].mxu1 }
0x1854   :  { %v2666_v1 = vadd.f32 %v8097_v55, %v2665_v53  ;;  %v5939_v2 = vpop.f32.mrb[73].mxu1 }
0x1855   :  { %v2668_v44 = vpop.f32.mrb[74].mxu1 }
0x1856   :  { %2671 = vst [vmem:[#allocation2 + $0xa] sm:$0x3] %v2666_v1  ;;  %v5940_v31 = vpop.f32.mrb[75].mxu1 }
0x18a0   :  { %v2757_v7 = vpop.f32.mrb[76].mxu1 }
0x18a1   :  { %v2758_v23 = vadd.f32 %v8097_v55, %v2757_v7  ;;  %v5963_v15 = vpop.f32.mrb[77].mxu1 }
0x18a2   :  { %v2760_v5 = vpop.f32.mrb[78].mxu1 }
0x18a3   :  { %2763 = vst [vmem:[#allocation2 + $0xe] sm:$0x3] %v2758_v23  ;;  %v5964_v6 = vpop.f32.mrb[79].mxu1 }
0x18a4   :  { %v2435_v3 = vpop.f32.mrb[64].mxu0 }
0x18a5   :  { %v2436_v9 = vadd.f32 %v8097_v55, %v2435_v3  ;;  %v5879_v10 = vpop.f32.mrb[65].mxu0 }
0x18a6   :  { %v2438_v8 = vpop.f32.mrb[66].mxu0 }
0x18a7   :  { %2441 = vst [vmem:[#allocation2] sm:$0x3] %v2436_v9  ;;  %v5880_v11 = vpop.f32.mrb[67].mxu0 }
0x18b0   :  { %v2888_v14 = vpop.f32.mrb[80].mxu1 }
0x18b1   :  { %v2889_v16 = vadd.f32 %v8132_v13, %v2888_v14  ;;  %v5987_v17 = vpop.f32.mrb[81].mxu1 }
0x18b2   :  { %v2891_v18 = vpop.f32.mrb[82].mxu1 }
0x18b3   :  { %2894 = vst [vmem:[#allocation3 + $0x2] sm:$0x3] %v2889_v16  ;;  %v5988_v24 = vpop.f32.mrb[83].mxu1 }
0x18b4   :  { %v2527_v26 = vpop.f32.mrb[68].mxu0  ;;  %v3179_v24 = vld [vmem:[#allocation2] sm:$0x3] }
0x18b5   :  { %v2528_v27 = vadd.f32 %v8097_v55, %v2527_v26  ;;  %v5903_v29 = vpop.f32.mrb[69].mxu0 }
0x18b6   :  { %v2530_v30 = vpop.f32.mrb[70].mxu0 }
0x18b7   :  { %2533 = vst [vmem:[#allocation2 + $0x4] sm:$0x3] %v2528_v27  ;;  %v5904_v32 = vpop.f32.mrb[71].mxu0 }
0x18c0   :  { %v2980_v33 = vpop.f32.mrb[84].mxu1 }
0x18c1   :  { %v2981_v35 = vadd.f32 %v8132_v13, %v2980_v33  ;;  %v6011_v36 = vpop.f32.mrb[85].mxu1 }
0x18c2   :  { %v2983_v37 = vpop.f32.mrb[86].mxu1 }
0x18c3   :  { %2986 = vst [vmem:[#allocation3 + $0x6] sm:$0x3] %v2981_v35  ;;  %v6012_v19 = vpop.f32.mrb[87].mxu1 }
0x18c4   :  { %v2619_v38 = vpop.f32.mrb[72].mxu0 }
0x18c5   :  { %v2620_v39 = vadd.f32 %v8097_v55, %v2619_v38  ;;  %v5927_v40 = vpop.f32.mrb[73].mxu0 }
0x18c6   :  { %v2622_v42 = vpop.f32.mrb[74].mxu0 }
0x18c7   :  { %2625 = vst [vmem:[#allocation2 + $0x8] sm:$0x3] %v2620_v39  ;;  %v5928_v21 = vpop.f32.mrb[75].mxu0 }
0x18d0   :  { %v3072_v43 = vpop.f32.mrb[88].mxu1 }
0x18d1   :  { %v3073_v20 = vadd.f32 %v8132_v13, %v3072_v43  ;;  %v6035_v45 = vpop.f32.mrb[89].mxu1 }
0x18d2   :  { %v3075_v47 = vpop.f32.mrb[90].mxu1 }
0x18d3   :  { %3078 = vst [vmem:[#allocation3 + $0xa] sm:$0x3] %v3073_v20  ;;  %v6036_v48 = vpop.f32.mrb[91].mxu1 }
0x18d4   :  { %v2711_v22 = vpop.f32.mrb[76].mxu0 }
0x18d5   :  { %v2712_v50 = vadd.f32 %v8097_v55, %v2711_v22  ;;  %v5951_v51 = vpop.f32.mrb[77].mxu0 }
0x18d6   :  { %v2714_v52 = vpop.f32.mrb[78].mxu0 }
0x18d7   :  { %2717 = vst [vmem:[#allocation2 + $0xc] sm:$0x3] %v2712_v50  ;;  %v5952_v54 = vpop.f32.mrb[79].mxu0 }
0x18e0   :  { %v3164_v57 = vpop.f32.mrb[92].mxu1 }
0x18e1   :  { %v3165_v58 = vadd.f32 %v8132_v13, %v3164_v57  ;;  %v6059_v59 = vpop.f32.mrb[93].mxu1 }
0x18e2   :  { %v3167_v60 = vpop.f32.mrb[94].mxu1 }
0x18e3   :  { %3170 = vst [vmem:[#allocation3 + $0xe] sm:$0x3] %v3165_v58  ;;  %v6060_v61 = vpop.f32.mrb[95].mxu1 }
0x18e4   :  { %v2842_v4 = vpop.f32.mrb[80].mxu0 }
0x18e5   :  { %v2843_v41 = vadd.f32 %v8132_v13, %v2842_v4  ;;  %v5975_v34 = vpop.f32.mrb[81].mxu0 }
0x18e6   :  { %v2845_v28 = vpop.f32.mrb[82].mxu0 }
0x18e7   :  { %2848 = vst [vmem:[#allocation3] sm:$0x3] %v2843_v41  ;;  %v5976_v56 = vpop.f32.mrb[83].mxu0 }
0x18e8   :  { %v3304_v25 = vpop.f32.mrb[96].mxu1 }
0x18e9   :  { %v6075_v55 = vpop.f32.mrb[97].mxu1 }
0x18ea   :  { %v3257_v12 = vld [vmem:[#allocation3 + $0xe] sm:$0x3]  ;;  %v3307_v53 = vpop.f32.mrb[98].mxu1 }
0x18eb   :  { %v3310_v1 = vadd.f32 %v3304_v25, %v3257_v12  ;;  %v6076_v2 = vpop.f32.mrb[99].mxu1 }
0x18ec   :  { %v3346_v2 = vld [vmem:[#allocation2 + $0x2] sm:$0x3] }
0x18ed   :  { %6507 = vtanh.f32 %v3310_v1  ;;  %v5316_v35 = vmul.f32 -1.442695, %v3310_v1 }
0x18f4   :  { %v2934_v44 = vpop.f32.mrb[84].mxu0 }
0x18f5   :  { %v2935_v31 = vadd.f32 %v8132_v13, %v2934_v44  ;;  %v5999_v7 = vpop.f32.mrb[85].mxu0 }
0x18f6   :  { %v2937_v23 = vpop.f32.mrb[86].mxu0 }
0x18f7   :  { %v6508_v15 = vpop.eup %6507  ;;  %2940 = vst [vmem:[#allocation3 + $0x4] sm:$0x3] %v2935_v31  ;;  %v6000_v5 = vpop.f32.mrb[87].mxu0 }
0x18f8   :  { %3320 = vrot.lane.b32.xlu0 %v6508_v15, %s7106_s26 }
0x1904   :  { %v3026_v6 = vpop.f32.mrb[88].mxu0 }
0x1905   :  { %v3027_v3 = vadd.f32 %v8132_v13, %v3026_v6  ;;  %v6023_v9 = vpop.f32.mrb[89].mxu0 }
0x1906   :  { %v3029_v10 = vpop.f32.mrb[90].mxu0 }
0x1907   :  { %3032 = vst [vmem:[#allocation3 + $0x8] sm:$0x3] %v3027_v3  ;;  %v6024_v8 = vpop.f32.mrb[91].mxu0 }
0x1914   :  { %v3118_v11 = vpop.f32.mrb[92].mxu0 }
0x1915   :  { %v3119_v14 = vadd.f32 %v8132_v13, %v3118_v11  ;;  %v6047_v16 = vpop.f32.mrb[93].mxu0 }
0x1916   :  { %v3121_v17 = vpop.f32.mrb[94].mxu0 }
0x1917   :  { %3124 = vst [vmem:[#allocation3 + $0xc] sm:$0x3] %v3119_v14  ;;  %v6048_v18 = vpop.f32.mrb[95].mxu0 }
0x191c   :  { %v3226_v26 = vpop.f32.mrb[96].mxu0 }
0x191d   :  { %v3232_v27 = vadd.f32 %v3226_v26, %v3179_v24  ;;  %v6067_v29 = vpop.f32.mrb[97].mxu0 }
0x191e   :  { %v3229_v30 = vpop.f32.mrb[98].mxu0  ;;  %v3419_v28 = vld [vmem:[#allocation3 + $0xc] sm:$0x3] }
0x191f   :  { %6509 = vtanh.f32 %v3232_v27  ;;  %v6068_v32 = vpop.f32.mrb[99].mxu0  ;;  %v5313_v39 = vmul.f32 -1.442695, %v3232_v27 }
0x1920   :  { %6511 = vpow2.f32 %v5316_v35 }
0x1929   :  { %v6510_v33 = vpop.eup %6509 }
0x192a   :  { %3242 = vrot.lane.b32.xlu1 %v6510_v33, %s7106_s26  ;;  %v6512_v36 = vpop.eup %6511 }
0x192b   :  { %v3314_v37 = vadd.f32 1.0, %v6512_v36 }
0x192d   :  { %6513 = vrcp.f32 %v3314_v37 }
0x192e   :  { %6515 = vpow2.f32 %v5313_v39 }
0x1937   :  { %v6514_v13 = vpop.eup %6513 }
0x1938   :  { %v6516_v40 = vpop.eup %6515  ;;  %v3318_v45 = vmul.f32 0.0, %v6514_v13 }
0x1939   :  { %v3236_v42 = vadd.f32 1.0, %v6516_v40 }
0x193b   :  { %6517 = vrcp.f32 %v3236_v42 }
0x1945   :  { %v6518_v21 = vpop.eup %6517 }
0x1946   :  { %v3240_v50 = vmul.f32 0.0, %v6518_v21 }
0x196a   :  { %v3321_v19 = vpop.permute.xlu0 %3320 }
0x196b   :  { %v3323_v38 = vmul.f32 %v6514_v13, %v3321_v19 }
0x196d   :  { %3325 = vrot.lane.b32.xlu0 %v3323_v38, %s7131_s12 }
0x199c   :  { %v3243_v43 = vpop.permute.xlu1 %3242 }
0x199d   :  { %v3245_v20 = vmul.f32 %v6518_v21, %v3243_v43 }
0x199f   :  { %3247 = vrot.lane.b32.xlu1 %v3245_v20, %s7131_s12  ;;  %v3577_v20 = vld [vmem:[#allocation3 + $0xa] sm:$0x3] }
0x19df   :  { %v3326_v47 = vpop.permute.xlu0 %3325 }
0x19e0   :  { %v8149_v48 = vadd.f32 %v3326_v47, %v3318_v45 }
0x19e2   :  { %6519 = vtanh.f32 %v8149_v48 }
0x19ec   :  { %v6520_v22 = vpop.eup %6519 }
0x19ed   :  { %3331 = vrot.lane.b32.xlu0 %v6520_v22, %s7106_s26 }
0x1a11   :  { %v3248_v51 = vpop.permute.xlu1 %3247 }
0x1a12   :  { %v8153_v52 = vadd.f32 %v3248_v51, %v3240_v50 }
0x1a14   :  { %6521 = vtanh.f32 %v8153_v52 }
0x1a1e   :  { %v6522_v54 = vpop.eup %6521 }
0x1a1f   :  { %3253 = vrot.lane.b32.xlu1 %v6522_v54, %s7106_s26 }
0x1a5f   :  { %v3332_v57 = vpop.permute.xlu0 %3331 }
0x1a60   :  { %v8157_v58 = vmul.f32 %v6514_v13, %v3332_v57 }
0x1a62   :  { %v3420_v59 = vpack.c.bf16 %v8157_v58, %v8157_v58 }
0x1a64   :  { %3422 = vrot.lane.b32.xlu0 %v3420_v59, %s7131_s12 }
0x1a91   :  { %v3254_v60 = vpop.permute.xlu1 %3253 }
0x1a92   :  { %v8162_v61 = vmul.f32 %v6518_v21, %v3254_v60 }
0x1a94   :  { %v3347_v4 = vpack.c.bf16 %v8162_v61, %v8162_v61 }
0x1a96   :  { %3349 = vrot.lane.b32.xlu1 %v3347_v4, %s7131_s12 }
0x1ad6   :  { %v3423_v41 = vpop.permute.xlu0 %3422 }
0x1ad7   :  { %6090 = vmatmul.mubr.msk.bf16.vlgmr.msra.gmra.mrb[100].mxu1 %vm1098_vm2, %v3423_v41 }
0x1ad8   :  { %6102 = vmatpush3.bf16.msra.mxu1 %v8052_v46  ;;  %6105 = vmatprep.mubr.msk.bf16.mxu1 %vm7129_vm0, %v7128_v0 }
0x1ad9   :  { %6103 = vmatprep.subr.bf16.mxu1 %v7128_v0 }
0x1adc   :  { %6104 = vmatpush3.bf16.msra.mxu1 %v8059_v49 }
0x1add   :  { %6117 = vmatprep.subr.bf16.mxu1 %v7128_v0 }
0x1b08   :  { %v3350_v34 = vpop.permute.xlu1 %3349 }
0x1b09   :  { %6082 = vmatmul.mubr.msk.bf16.vlgmr.msra.gmra.mrb[100].mxu0 %vm1098_vm2, %v3350_v34 }
0x1b0a   :  { %6094 = vmatpush3.bf16.msra.mxu0 %v8109_v62  ;;  %6097 = vmatprep.mubr.msk.bf16.mxu0 %vm7129_vm0, %v7128_v0 }
0x1b0b   :  { %6095 = vmatprep.subr.bf16.mxu0 %v7128_v0 }
0x1b0e   :  { %6096 = vmatpush3.bf16.msra.mxu0 %v8114_v63 }
0x1b0f   :  { %6109 = vmatprep.subr.bf16.mxu0 %v7128_v0 }
0x1baa   :  { %v3461_v56 = vpop.f32.mrb[100].mxu1 }
0x1bab   :  { %v3467_v25 = vadd.f32 %v3461_v56, %v3419_v28  ;;  %v6091_v55 = vpop.f32.mrb[101].mxu1 }
0x1bac   :  { %v3464_v12 = vpop.f32.mrb[102].mxu1 }
0x1bad   :  { %6523 = vtanh.f32 %v3467_v25  ;;  %v6092_v53 = vpop.f32.mrb[103].mxu1  ;;  %v5320_v6 = vmul.f32 -1.442695, %v3467_v25 }
0x1bb7   :  { %v6524_v1 = vpop.eup %6523 }
0x1bb8   :  { %3477 = vrot.lane.b32.xlu0 %v6524_v1, %s7106_s26 }
0x1bdc   :  { %v3388_v44 = vpop.f32.mrb[100].mxu0 }
0x1bdd   :  { %v3394_v31 = vadd.f32 %v3388_v44, %v3346_v2  ;;  %v6083_v7 = vpop.f32.mrb[101].mxu0 }
0x1bde   :  { %v3391_v23 = vpop.f32.mrb[102].mxu0 }
0x1bdf   :  { %6525 = vtanh.f32 %v3394_v31  ;;  %v6084_v15 = vpop.f32.mrb[103].mxu0  ;;  %v5318_v14 = vmul.f32 -1.442695, %v3394_v31 }
0x1be0   :  { %6527 = vpow2.f32 %v5320_v6 }
0x1be9   :  { %v6526_v5 = vpop.eup %6525 }
0x1bea   :  { %3404 = vrot.lane.b32.xlu1 %v6526_v5, %s7106_s26  ;;  %v6528_v3 = vpop.eup %6527 }
0x1beb   :  { %v3471_v9 = vadd.f32 1.0, %v6528_v3 }
0x1bed   :  { %6529 = vrcp.f32 %v3471_v9 }
0x1bee   :  { %6531 = vpow2.f32 %v5318_v14 }
0x1bf7   :  { %v6530_v10 = vpop.eup %6529 }
0x1bf8   :  { %v6532_v16 = vpop.eup %6531  ;;  %v3475_v27 = vmul.f32 %v6530_v10, %v8149_v48 }
0x1bf9   :  { %v3398_v17 = vadd.f32 1.0, %v6532_v16 }
0x1bfb   :  { %6533 = vrcp.f32 %v3398_v17 }
0x1c05   :  { %v6534_v18 = vpop.eup %6533 }
0x1c06   :  { %v3402_v33 = vmul.f32 %v6534_v18, %v8153_v52  ;;  %v3504_v52 = vld [vmem:[#allocation2 + $0x4] sm:$0x3] }
0x1c2a   :  { %v3478_v8 = vpop.permute.xlu0 %3477 }
0x1c2b   :  { %v3480_v11 = vmul.f32 %v6530_v10, %v3478_v8 }
0x1c2d   :  { %3482 = vrot.lane.b32.xlu0 %v3480_v11, %s7131_s12 }
0x1c5c   :  { %v3405_v24 = vpop.permute.xlu1 %3404 }
0x1c5d   :  { %v3407_v26 = vmul.f32 %v6534_v18, %v3405_v24 }
0x1c5f   :  { %3409 = vrot.lane.b32.xlu1 %v3407_v26, %s7131_s12 }
0x1c9f   :  { %v3483_v29 = vpop.permute.xlu0 %3482 }
0x1ca0   :  { %v8186_v30 = vadd.f32 %v3483_v29, %v3475_v27  ;;  %v3735_v29 = vld [vmem:[#allocation3 + $0x8] sm:$0x3] }
0x1ca2   :  { %6535 = vtanh.f32 %v8186_v30 }
0x1cac   :  { %v6536_v32 = vpop.eup %6535 }
0x1cad   :  { %3488 = vrot.lane.b32.xlu0 %v6536_v32, %s7106_s26 }
0x1cd1   :  { %v3410_v35 = vpop.permute.xlu1 %3409 }
0x1cd2   :  { %v8191_v36 = vadd.f32 %v3410_v35, %v3402_v33 }
0x1cd4   :  { %6537 = vtanh.f32 %v8191_v36 }
0x1cde   :  { %v6538_v37 = vpop.eup %6537 }
0x1cdf   :  { %3415 = vrot.lane.b32.xlu1 %v6538_v37, %s7106_s26 }
0x1d1f   :  { %v3489_v13 = vpop.permute.xlu0 %3488 }
0x1d20   :  { %v8195_v19 = vmul.f32 %v6530_v10, %v3489_v13  ;;  %v3662_v13 = vld [vmem:[#allocation2 + $0x6] sm:$0x3] }
0x1d22   :  { %v3578_v38 = vpack.c.bf16 %v8195_v19, %v8195_v19 }
0x1d24   :  { %3580 = vrot.lane.b32.xlu0 %v3578_v38, %s7131_s12 }
0x1d51   :  { %v3416_v39 = vpop.permute.xlu1 %3415 }
0x1d52   :  { %v8200_v40 = vmul.f32 %v6534_v18, %v3416_v39 }
0x1d54   :  { %v3505_v42 = vpack.c.bf16 %v8200_v40, %v8200_v40 }
0x1d56   :  { %3507 = vrot.lane.b32.xlu1 %v3505_v42, %s7131_s12 }
0x1d96   :  { %v3581_v21 = vpop.permute.xlu0 %3580 }
0x1d97   :  { %6106 = vmatmul.mubr.msk.bf16.vlgmr.msra.gmra.mrb[104].mxu1 %vm1098_vm2, %v3581_v21 }
0x1d98   :  { %6118 = vmatpush3.bf16.msra.mxu1 %v8052_v46  ;;  %6121 = vmatprep.mubr.msk.bf16.mxu1 %vm7129_vm0, %v7128_v0 }
0x1d99   :  { %6119 = vmatprep.subr.bf16.mxu1 %v7128_v0 }
0x1d9c   :  { %6120 = vmatpush3.bf16.msra.mxu1 %v8059_v49 }
0x1d9d   :  { %6133 = vmatprep.subr.bf16.mxu1 %v7128_v0 }
0x1dc8   :  { %v3508_v43 = vpop.permute.xlu1 %3507 }
0x1dc9   :  { %6098 = vmatmul.mubr.msk.bf16.vlgmr.msra.gmra.mrb[104].mxu0 %vm1098_vm2, %v3508_v43 }
0x1dca   :  { %6110 = vmatpush3.bf16.msra.mxu0 %v8109_v62  ;;  %6113 = vmatprep.mubr.msk.bf16.mxu0 %vm7129_vm0, %v7128_v0 }
0x1dcb   :  { %6111 = vmatprep.subr.bf16.mxu0 %v7128_v0 }
0x1dce   :  { %6112 = vmatpush3.bf16.msra.mxu0 %v8114_v63 }
0x1dcf   :  { %6125 = vmatprep.subr.bf16.mxu0 %v7128_v0 }
0x1e6a   :  { %v3619_v45 = vpop.f32.mrb[104].mxu1 }
0x1e6b   :  { %v3625_v47 = vadd.f32 %v3619_v45, %v3577_v20  ;;  %v6107_v48 = vpop.f32.mrb[105].mxu1 }
0x1e6c   :  { %v3622_v22 = vpop.f32.mrb[106].mxu1 }
0x1e6d   :  { %6539 = vtanh.f32 %v3625_v47  ;;  %v6108_v50 = vpop.f32.mrb[107].mxu1  ;;  %v5324_v34 = vmul.f32 -1.442695, %v3625_v47 }
0x1e77   :  { %v6540_v51 = vpop.eup %6539 }
0x1e78   :  { %3635 = vrot.lane.b32.xlu0 %v6540_v51, %s7106_s26 }
0x1e9c   :  { %v3546_v54 = vpop.f32.mrb[104].mxu0 }
0x1e9d   :  { %v3552_v57 = vadd.f32 %v3546_v54, %v3504_v52  ;;  %v6099_v59 = vpop.f32.mrb[105].mxu0 }
0x1e9e   :  { %v3549_v60 = vpop.f32.mrb[106].mxu0 }
0x1e9f   :  { %6541 = vtanh.f32 %v3552_v57  ;;  %v6100_v4 = vpop.f32.mrb[107].mxu0  ;;  %v5322_v53 = vmul.f32 -1.442695, %v3552_v57 }
0x1ea0   :  { %6543 = vpow2.f32 %v5324_v34 }
0x1ea9   :  { %v6542_v41 = vpop.eup %6541 }
0x1eaa   :  { %3562 = vrot.lane.b32.xlu1 %v6542_v41, %s7106_s26  ;;  %v6544_v28 = vpop.eup %6543 }
0x1eab   :  { %v3629_v56 = vadd.f32 1.0, %v6544_v28 }
0x1ead   :  { %6545 = vrcp.f32 %v3629_v56 }
0x1eae   :  { %6547 = vpow2.f32 %v5322_v53 }
0x1eb7   :  { %v6546_v25 = vpop.eup %6545 }
0x1eb8   :  { %v6548_v1 = vpop.eup %6547  ;;  %v3633_v23 = vmul.f32 %v6546_v25, %v8186_v30 }
0x1eb9   :  { %v3556_v2 = vadd.f32 1.0, %v6548_v1 }
0x1ebb   :  { %6549 = vrcp.f32 %v3556_v2 }
0x1ec5   :  { %v6550_v44 = vpop.eup %6549 }
0x1ec6   :  { %v3560_v3 = vmul.f32 %v6550_v44, %v8191_v36 }
0x1eea   :  { %v3636_v55 = vpop.permute.xlu0 %3635 }
0x1eeb   :  { %v3638_v12 = vmul.f32 %v6546_v25, %v3636_v55 }
0x1eed   :  { %3640 = vrot.lane.b32.xlu0 %v3638_v12, %s7131_s12 }
0x1f1c   :  { %v3563_v31 = vpop.permute.xlu1 %3562 }
0x1f1d   :  { %v3565_v7 = vmul.f32 %v6550_v44, %v3563_v31 }
0x1f1f   :  { %3567 = vrot.lane.b32.xlu1 %v3565_v7, %s7131_s12 }
0x1f5f   :  { %v3641_v15 = vpop.permute.xlu0 %3640 }
0x1f60   :  { %v8224_v5 = vadd.f32 %v3641_v15, %v3633_v23 }
0x1f62   :  { %6551 = vtanh.f32 %v8224_v5 }
0x1f6c   :  { %v6552_v6 = vpop.eup %6551 }
0x1f6d   :  { %3646 = vrot.lane.b32.xlu0 %v6552_v6, %s7106_s26  ;;  %v3893_v6 = vld [vmem:[#allocation3 + $0x6] sm:$0x3] }
0x1f91   :  { %v3568_v9 = vpop.permute.xlu1 %3567 }
0x1f92   :  { %v8229_v10 = vadd.f32 %v3568_v9, %v3560_v3 }
0x1f94   :  { %6553 = vtanh.f32 %v8229_v10 }
0x1f9e   :  { %v6554_v8 = vpop.eup %6553 }
0x1f9f   :  { %3573 = vrot.lane.b32.xlu1 %v6554_v8, %s7106_s26 }
0x1fdf   :  { %v3647_v11 = vpop.permute.xlu0 %3646 }
0x1fe0   :  { %v8233_v14 = vmul.f32 %v6546_v25, %v3647_v11 }
0x1fe2   :  { %v3736_v16 = vpack.c.bf16 %v8233_v14, %v8233_v14 }
0x1fe4   :  { %3738 = vrot.lane.b32.xlu0 %v3736_v16, %s7131_s12 }
0x2011   :  { %v3574_v17 = vpop.permute.xlu1 %3573 }
0x2012   :  { %v8238_v18 = vmul.f32 %v6550_v44, %v3574_v17  ;;  %v3820_v17 = vld [vmem:[#allocation2 + $0x8] sm:$0x3] }
0x2014   :  { %v3663_v24 = vpack.c.bf16 %v8238_v18, %v8238_v18 }
0x2016   :  { %3665 = vrot.lane.b32.xlu1 %v3663_v24, %s7131_s12 }
0x2056   :  { %v3739_v26 = vpop.permute.xlu0 %3738 }
0x2057   :  { %6122 = vmatmul.mubr.msk.bf16.vlgmr.msra.gmra.mrb[108].mxu1 %vm1098_vm2, %v3739_v26 }
0x2058   :  { %6134 = vmatpush3.bf16.msra.mxu1 %v8052_v46  ;;  %6137 = vmatprep.mubr.msk.bf16.mxu1 %vm7129_vm0, %v7128_v0 }
0x2059   :  { %6135 = vmatprep.subr.bf16.mxu1 %v7128_v0 }
0x205c   :  { %6136 = vmatpush3.bf16.msra.mxu1 %v8059_v49 }
0x205d   :  { %6149 = vmatprep.subr.bf16.mxu1 %v7128_v0 }
0x2088   :  { %v3666_v27 = vpop.permute.xlu1 %3665 }
0x2089   :  { %6114 = vmatmul.mubr.msk.bf16.vlgmr.msra.gmra.mrb[108].mxu0 %vm1098_vm2, %v3666_v27 }
0x208a   :  { %6126 = vmatpush3.bf16.msra.mxu0 %v8109_v62  ;;  %6129 = vmatprep.mubr.msk.bf16.mxu0 %vm7129_vm0, %v7128_v0 }
0x208b   :  { %6127 = vmatprep.subr.bf16.mxu0 %v7128_v0 }
0x208e   :  { %6128 = vmatpush3.bf16.msra.mxu0 %v8114_v63 }
0x208f   :  { %6141 = vmatprep.subr.bf16.mxu0 %v7128_v0 }
0x212a   :  { %v3777_v30 = vpop.f32.mrb[108].mxu1 }
0x212b   :  { %v3783_v32 = vadd.f32 %v3777_v30, %v3735_v29  ;;  %v6123_v33 = vpop.f32.mrb[109].mxu1 }
0x212c   :  { %v3780_v35 = vpop.f32.mrb[110].mxu1 }
0x212d   :  { %6555 = vtanh.f32 %v3783_v32  ;;  %v6124_v36 = vpop.f32.mrb[111].mxu1  ;;  %v5328_v45 = vmul.f32 -1.442695, %v3783_v32 }
0x2137   :  { %v6556_v37 = vpop.eup %6555 }
0x2138   :  { %3793 = vrot.lane.b32.xlu0 %v6556_v37, %s7106_s26 }
0x215c   :  { %v3704_v38 = vpop.f32.mrb[108].mxu0 }
0x215d   :  { %v3710_v39 = vadd.f32 %v3704_v38, %v3662_v13  ;;  %v6115_v42 = vpop.f32.mrb[109].mxu0 }
0x215e   :  { %v3707_v21 = vpop.f32.mrb[110].mxu0 }
0x215f   :  { %6557 = vtanh.f32 %v3710_v39  ;;  %v6116_v43 = vpop.f32.mrb[111].mxu0  ;;  %v5326_v52 = vmul.f32 -1.442695, %v3710_v39 }
0x2160   :  { %6559 = vpow2.f32 %v5328_v45 }
0x2169   :  { %v6558_v20 = vpop.eup %6557 }
0x216a   :  { %3720 = vrot.lane.b32.xlu1 %v6558_v20, %s7106_s26  ;;  %v6560_v47 = vpop.eup %6559 }
0x216b   :  { %v3787_v48 = vadd.f32 1.0, %v6560_v47 }
0x216d   :  { %6561 = vrcp.f32 %v3787_v48 }
0x216e   :  { %6563 = vpow2.f32 %v5326_v52 }
0x2177   :  { %v6562_v22 = vpop.eup %6561 }
0x2178   :  { %v6564_v54 = vpop.eup %6563  ;;  %v3791_v41 = vmul.f32 %v6562_v22, %v8224_v5 }
0x2179   :  { %v3714_v57 = vadd.f32 1.0, %v6564_v54 }
0x217b   :  { %6565 = vrcp.f32 %v3714_v57 }
0x2185   :  { %v6566_v59 = vpop.eup %6565 }
0x2186   :  { %v3718_v25 = vmul.f32 %v6566_v59, %v8229_v10 }
0x21aa   :  { %v3794_v50 = vpop.permute.xlu0 %3793 }
0x21ab   :  { %v3796_v51 = vmul.f32 %v6562_v22, %v3794_v50 }
0x21ad   :  { %3798 = vrot.lane.b32.xlu0 %v3796_v51, %s7131_s12 }
0x21dc   :  { %v3721_v60 = vpop.permute.xlu1 %3720 }
0x21dd   :  { %v3723_v4 = vmul.f32 %v6566_v59, %v3721_v60 }
0x21df   :  { %3725 = vrot.lane.b32.xlu1 %v3723_v4, %s7131_s12 }
0x221f   :  { %v3799_v34 = vpop.permute.xlu0 %3798 }
0x2220   :  { %v8262_v28 = vadd.f32 %v3799_v34, %v3791_v41 }
0x2222   :  { %6567 = vtanh.f32 %v8262_v28 }
0x222c   :  { %v6568_v56 = vpop.eup %6567 }
0x222d   :  { %3804 = vrot.lane.b32.xlu0 %v6568_v56, %s7106_s26 }
0x2251   :  { %v3726_v55 = vpop.permute.xlu1 %3725 }
0x2252   :  { %v8267_v12 = vadd.f32 %v3726_v55, %v3718_v25 }
0x2254   :  { %6569 = vtanh.f32 %v8267_v12 }
0x225e   :  { %v6570_v53 = vpop.eup %6569 }
0x225f   :  { %3731 = vrot.lane.b32.xlu1 %v6570_v53, %s7106_s26 }
0x229f   :  { %v3805_v1 = vpop.permute.xlu0 %3804 }
0x22a0   :  { %v8271_v2 = vmul.f32 %v6562_v22, %v3805_v1 }
0x22a2   :  { %v3894_v44 = vpack.c.bf16 %v8271_v2, %v8271_v2 }
0x22a4   :  { %3896 = vrot.lane.b32.xlu0 %v3894_v44, %s7131_s12 }
0x22d1   :  { %v3732_v31 = vpop.permute.xlu1 %3731 }
0x22d2   :  { %v8276_v7 = vmul.f32 %v6566_v59, %v3732_v31 }
0x22d4   :  { %v3821_v23 = vpack.c.bf16 %v8276_v7, %v8276_v7 }
0x22d6   :  { %3823 = vrot.lane.b32.xlu1 %v3821_v23, %s7131_s12 }
0x2316   :  { %v3897_v15 = vpop.permute.xlu0 %3896 }
0x2317   :  { %6138 = vmatmul.mubr.msk.bf16.vlgmr.msra.gmra.mrb[112].mxu1 %vm1098_vm2, %v3897_v15 }
0x2318   :  { %6150 = vmatpush3.bf16.msra.mxu1 %v8052_v46  ;;  %6153 = vmatprep.mubr.msk.bf16.mxu1 %vm7129_vm0, %v7128_v0 }
0x2319   :  { %6151 = vmatprep.subr.bf16.mxu1 %v7128_v0 }
0x231c   :  { %6152 = vmatpush3.bf16.msra.mxu1 %v8059_v49 }
0x231d   :  { %6165 = vmatprep.subr.bf16.mxu1 %v7128_v0 }
0x2348   :  { %v3824_v5 = vpop.permute.xlu1 %3823 }
0x2349   :  { %6130 = vmatmul.mubr.msk.bf16.vlgmr.msra.gmra.mrb[112].mxu0 %vm1098_vm2, %v3824_v5 }
0x234a   :  { %6142 = vmatpush3.bf16.msra.mxu0 %v8109_v62  ;;  %6145 = vmatprep.mubr.msk.bf16.mxu0 %vm7129_vm0, %v7128_v0 }
0x234b   :  { %6143 = vmatprep.subr.bf16.mxu0 %v7128_v0 }
0x234e   :  { %6144 = vmatpush3.bf16.msra.mxu0 %v8114_v63 }
0x234f   :  { %6157 = vmatprep.subr.bf16.mxu0 %v7128_v0 }
0x23ea   :  { %v3935_v3 = vpop.f32.mrb[112].mxu1 }
0x23eb   :  { %v3941_v9 = vadd.f32 %v3935_v3, %v3893_v6  ;;  %v6139_v10 = vpop.f32.mrb[113].mxu1 }
0x23ec   :  { %v3938_v8 = vpop.f32.mrb[114].mxu1 }
0x23ed   :  { %6571 = vtanh.f32 %v3941_v9  ;;  %v6140_v11 = vpop.f32.mrb[115].mxu1  ;;  %v5332_v33 = vmul.f32 -1.442695, %v3941_v9 }
0x23f7   :  { %v6572_v16 = vpop.eup %6571 }
0x23f8   :  { %3951 = vrot.lane.b32.xlu0 %v6572_v16, %s7106_s26 }
0x241c   :  { %v3862_v24 = vpop.f32.mrb[112].mxu0 }
0x241d   :  { %v3868_v26 = vadd.f32 %v3862_v24, %v3820_v17  ;;  %v6131_v27 = vpop.f32.mrb[113].mxu0 }
0x241e   :  { %v3865_v29 = vpop.f32.mrb[114].mxu0 }
0x241f   :  { %6573 = vtanh.f32 %v3868_v26  ;;  %v6132_v30 = vpop.f32.mrb[115].mxu0  ;;  %v5330_v39 = vmul.f32 -1.442695, %v3868_v26 }
0x2420   :  { %6575 = vpow2.f32 %v5332_v33 }
0x2429   :  { %v6574_v32 = vpop.eup %6573 }
0x242a   :  { %3878 = vrot.lane.b32.xlu1 %v6574_v32, %s7106_s26  ;;  %v6576_v35 = vpop.eup %6575 }
0x242b   :  { %v3945_v36 = vadd.f32 1.0, %v6576_v35 }
0x242d   :  { %6577 = vrcp.f32 %v3945_v36 }
0x242e   :  { %6579 = vpow2.f32 %v5330_v39 }
0x2437   :  { %v6578_v37 = vpop.eup %6577 }
0x2438   :  { %v6580_v42 = vpop.eup %6579  ;;  %v3949_v47 = vmul.f32 %v6578_v37, %v8262_v28 }
0x2439   :  { %v3872_v21 = vadd.f32 1.0, %v6580_v42 }
0x243b   :  { %6581 = vrcp.f32 %v3872_v21 }
0x2445   :  { %v6582_v43 = vpop.eup %6581 }
0x2446   :  { %v3876_v51 = vmul.f32 %v6582_v43, %v8267_v12 }
0x246a   :  { %v3952_v13 = vpop.permute.xlu0 %3951 }
0x246b   :  { %v3954_v38 = vmul.f32 %v6578_v37, %v3952_v13 }
0x246d   :  { %3956 = vrot.lane.b32.xlu0 %v3954_v38, %s7131_s12 }
0x249c   :  { %v3879_v20 = vpop.permute.xlu1 %3878 }
0x249d   :  { %v3881_v45 = vmul.f32 %v6582_v43, %v3879_v20 }
0x249f   :  { %3883 = vrot.lane.b32.xlu1 %v3881_v45, %s7131_s12 }
0x24df   :  { %v3957_v48 = vpop.permute.xlu0 %3956 }
0x24e0   :  { %v8300_v22 = vadd.f32 %v3957_v48, %v3949_v47 }
0x24e2   :  { %6583 = vtanh.f32 %v8300_v22 }
0x24ec   :  { %v6584_v50 = vpop.eup %6583 }
0x24ed   :  { %3962 = vrot.lane.b32.xlu0 %v6584_v50, %s7106_s26  ;;  %v6640_v50 = vld [vmem:[#allocation24 + $0x8] sm:$0xff]  }
0x2511   :  { %v3884_v52 = vpop.permute.xlu1 %3883 }
0x2512   :  { %v8305_v54 = vadd.f32 %v3884_v52, %v3876_v51  ;;  %v6641_v52 = vld [vmem:[#allocation20] sm:$0xff]  }
0x2514   :  { %6585 = vtanh.f32 %v8305_v54 }
0x251e   :  { %v6586_v57 = vpop.eup %6585 }
0x251f   :  { %3889 = vrot.lane.b32.xlu1 %v6586_v57, %s7106_s26  ;;  %v4205_v57 = vld [vmem:[#allocation3 + $0x2] sm:$0x3] }
0x255f   :  { %v3963_v59 = vpop.permute.xlu0 %3962 }
0x2560   :  { %v8309_v60 = vmul.f32 %v6578_v37, %v3963_v59 }
0x2562   :  { %v4050_v4 = vpack.c.bf16 %v8309_v60, %v8309_v60 }
0x2564   :  { %4052 = vrot.lane.b32.xlu0 %v4050_v4, %s7131_s12 }
0x2591   :  { %v3890_v41 = vpop.permute.xlu1 %3889 }
0x2592   :  { %v8314_v34 = vmul.f32 %v6582_v43, %v3890_v41 }
0x2594   :  { %v3977_v28 = vpack.c.bf16 %v8314_v34, %v8314_v34 }
0x2596   :  { %3979 = vrot.lane.b32.xlu1 %v3977_v28, %s7131_s12 }
0x25d6   :  { %v4053_v56 = vpop.permute.xlu0 %4052 }
0x25d7   :  { %6154 = vmatmul.mubr.msk.bf16.vlgmr.msra.gmra.mrb[116].mxu1 %vm1098_vm2, %v4053_v56 }
0x25d8   :  { %6166 = vmatpush3.bf16.msra.mxu1 %v8052_v46  ;;  %6169 = vmatprep.mubr.msk.bf16.mxu1 %vm7129_vm0, %v7128_v0  ;;  %v4049_v46 = vld [vmem:[#allocation3 + $0x4] sm:$0x3] }
0x25d9   :  { %6167 = vmatprep.subr.bf16.mxu1 %v7128_v0 }
0x25dc   :  { %6168 = vmatpush3.bf16.msra.mxu1 %v8059_v49 }
0x25dd   :  { %6181 = vmatprep.subr.bf16.mxu1 %v7128_v0 }
0x2608   :  { %v3980_v25 = vpop.permute.xlu1 %3979 }
0x2609   :  { %6146 = vmatmul.mubr.msk.bf16.vlgmr.msra.gmra.mrb[116].mxu0 %vm1098_vm2, %v3980_v25 }
0x260a   :  { %6158 = vmatpush3.bf16.msra.mxu0 %v8109_v62  ;;  %6161 = vmatprep.mubr.msk.bf16.mxu0 %vm7129_vm0, %v7128_v0  ;;  %v3976_v62 = vld [vmem:[#allocation2 + $0xa] sm:$0x3] }
0x260b   :  { %6159 = vmatprep.subr.bf16.mxu0 %v7128_v0 }
0x260e   :  { %6160 = vmatpush3.bf16.msra.mxu0 %v8114_v63 }
0x260f   :  { %6173 = vmatprep.subr.bf16.mxu0 %v7128_v0 }
0x26aa   :  { %v4091_v55 = vpop.f32.mrb[116].mxu1 }
0x26ab   :  { %v4097_v12 = vadd.f32 %v4091_v55, %v4049_v46  ;;  %v6155_v49 = vpop.f32.mrb[117].mxu1  ;;  %v4132_v46 = vld [vmem:[#allocation2 + $0xc] sm:$0x3] }
0x26ac   :  { %v4094_v53 = vpop.f32.mrb[118].mxu1 }
0x26ad   :  { %6587 = vtanh.f32 %v4097_v12  ;;  %v6156_v1 = vpop.f32.mrb[119].mxu1  ;;  %v5336_v3 = vmul.f32 -1.442695, %v4097_v12 }
0x26b7   :  { %v6588_v44 = vpop.eup %6587 }
0x26b8   :  { %4107 = vrot.lane.b32.xlu0 %v6588_v44, %s7106_s26 }
0x26dc   :  { %v4018_v31 = vpop.f32.mrb[116].mxu0 }
0x26dd   :  { %v4024_v23 = vadd.f32 %v4018_v31, %v3976_v62  ;;  %v6147_v15 = vpop.f32.mrb[117].mxu0 }
0x26de   :  { %v4021_v5 = vpop.f32.mrb[118].mxu0 }
0x26df   :  { %6589 = vtanh.f32 %v4024_v23  ;;  %v6148_v6 = vpop.f32.mrb[119].mxu0  ;;  %v5334_v17 = vmul.f32 -1.442695, %v4024_v23 }
0x26e0   :  { %6591 = vpow2.f32 %v5336_v3 }
0x26e9   :  { %v6590_v63 = vpop.eup %6589 }
0x26ea   :  { %4034 = vrot.lane.b32.xlu1 %v6590_v63, %s7106_s26  ;;  %v6592_v9 = vpop.eup %6591 }
0x26eb   :  { %v4101_v10 = vadd.f32 1.0, %v6592_v9 }
0x26ed   :  { %6593 = vrcp.f32 %v4101_v10 }
0x26ee   :  { %6595 = vpow2.f32 %v5334_v17 }
0x26f7   :  { %v6594_v8 = vpop.eup %6593 }
0x26f8   :  { %v6596_v24 = vpop.eup %6595  ;;  %v4105_v32 = vmul.f32 %v6594_v8, %v8300_v22  ;;  %v6639_v22 = vld [vmem:[#allocation24] sm:$0xff]  }
0x26f9   :  { %v4028_v26 = vadd.f32 1.0, %v6596_v24 }
0x26fb   :  { %6597 = vrcp.f32 %v4028_v26 }
0x2705   :  { %v6598_v27 = vpop.eup %6597 }
0x2706   :  { %v4032_v37 = vmul.f32 %v6598_v27, %v8305_v54  ;;  %v6642_v54 = vld [vmem:[#allocation20 + $0x8] sm:$0xff]  }
0x272a   :  { %v4108_v11 = vpop.permute.xlu0 %4107 }
0x272b   :  { %v4110_v16 = vmul.f32 %v6594_v8, %v4108_v11 }
0x272d   :  { %4112 = vrot.lane.b32.xlu0 %v4110_v16, %s7131_s12 }
0x275c   :  { %v4035_v29 = vpop.permute.xlu1 %4034 }
0x275d   :  { %v4037_v30 = vmul.f32 %v6598_v27, %v4035_v29 }
0x275f   :  { %4039 = vrot.lane.b32.xlu1 %v4037_v30, %s7131_s12 }
0x279f   :  { %v4113_v33 = vpop.permute.xlu0 %4112 }
0x27a0   :  { %v8338_v35 = vadd.f32 %v4113_v33, %v4105_v32 }
0x27a2   :  { %6599 = vtanh.f32 %v8338_v35 }
0x27ac   :  { %v6600_v36 = vpop.eup %6599 }
0x27ad   :  { %4118 = vrot.lane.b32.xlu0 %v6600_v36, %s7106_s26 }
0x27d1   :  { %v4040_v13 = vpop.permute.xlu1 %4039 }
0x27d2   :  { %v8343_v38 = vadd.f32 %v4040_v13, %v4032_v37 }
0x27d4   :  { %6601 = vtanh.f32 %v8343_v38 }
0x27de   :  { %v6602_v39 = vpop.eup %6601 }
0x27df   :  { %4045 = vrot.lane.b32.xlu1 %v6602_v39, %s7106_s26 }
0x281f   :  { %v4119_v42 = vpop.permute.xlu0 %4118 }
0x2820   :  { %v8347_v21 = vmul.f32 %v6594_v8, %v4119_v42 }
0x2822   :  { %v4206_v43 = vpack.c.bf16 %v8347_v21, %v8347_v21 }
0x2824   :  { %4208 = vrot.lane.b32.xlu0 %v4206_v43, %s7131_s12  ;;  %v4361_v43 = vld [vmem:[#allocation3] sm:$0x3] }
0x2851   :  { %v4046_v20 = vpop.permute.xlu1 %4045 }
0x2852   :  { %v8352_v45 = vmul.f32 %v6598_v27, %v4046_v20 }
0x2854   :  { %v4133_v47 = vpack.c.bf16 %v8352_v45, %v8352_v45 }
0x2856   :  { %4135 = vrot.lane.b32.xlu1 %v4133_v47, %s7131_s12 }
0x2896   :  { %v4209_v48 = vpop.permute.xlu0 %4208 }
0x2897   :  { %6170 = vmatmul.mubr.msk.bf16.vlgmr.msra.gmra.mrb[120].mxu1 %vm1098_vm2, %v4209_v48 }
0x2898   :  { %6182 = vmatpush3.bf16.msra.mxu1 %v6639_v22  ;;  %6185 = vmatprep.mubr.msk.bf16.mxu1 %vm7129_vm0, %v7128_v0 }
0x2899   :  { %6183 = vmatprep.subr.bf16.mxu1 %v7128_v0 }
0x289c   :  { %6184 = vmatpush3.bf16.msra.mxu1 %v6640_v50 }
0x289d   :  { %6201 = vmatprep.subr.bf16.mxu1 %v7128_v0 }
0x28c8   :  { %v4136_v51 = vpop.permute.xlu1 %4135 }
0x28c9   :  { %6162 = vmatmul.mubr.msk.bf16.vlgmr.msra.gmra.mrb[120].mxu0 %vm1098_vm2, %v4136_v51 }
0x28ca   :  { %6174 = vmatpush3.bf16.msra.mxu0 %v6641_v52  ;;  %6177 = vmatprep.mubr.msk.bf16.mxu0 %vm7129_vm0, %v7128_v0  ;;  %v4288_v52 = vld [vmem:[#allocation2 + $0xe] sm:$0x3] }
0x28cb   :  { %6175 = vmatprep.subr.bf16.mxu0 %v7128_v0 }
0x28ce   :  { %6176 = vmatpush3.bf16.msra.mxu0 %v6642_v54 }
0x28cf   :  { %6189 = vmatprep.subr.bf16.mxu0 %v7128_v0 }
0x296a   :  { %v4247_v59 = vpop.f32.mrb[120].mxu1 }
0x296b   :  { %v4253_v4 = vadd.f32 %v4247_v59, %v4205_v57  ;;  %v6171_v41 = vpop.f32.mrb[121].mxu1 }
0x296c   :  { %v4250_v28 = vpop.f32.mrb[122].mxu1 }
0x296d   :  { %6603 = vtanh.f32 %v4253_v4  ;;  %v6172_v56 = vpop.f32.mrb[123].mxu1  ;;  %v5340_v62 = vmul.f32 -1.442695, %v4253_v4 }
0x2977   :  { %v6604_v25 = vpop.eup %6603 }
0x2978   :  { %4263 = vrot.lane.b32.xlu0 %v6604_v25, %s7106_s26 }
0x299c   :  { %v4174_v55 = vpop.f32.mrb[120].mxu0 }
0x299d   :  { %v4180_v12 = vadd.f32 %v4174_v55, %v4132_v46  ;;  %v6163_v49 = vpop.f32.mrb[121].mxu0 }
0x299e   :  { %v4177_v53 = vpop.f32.mrb[122].mxu0 }
0x299f   :  { %6605 = vtanh.f32 %v4180_v12  ;;  %v6164_v1 = vpop.f32.mrb[123].mxu0  ;;  %v5338_v63 = vmul.f32 -1.442695, %v4180_v12 }
0x29a0   :  { %6607 = vpow2.f32 %v5340_v62 }
0x29a9   :  { %v6606_v44 = vpop.eup %6605 }
0x29aa   :  { %4190 = vrot.lane.b32.xlu1 %v6606_v44, %s7106_s26  ;;  %v6608_v31 = vpop.eup %6607 }
0x29ab   :  { %v4257_v23 = vadd.f32 1.0, %v6608_v31 }
0x29ad   :  { %6609 = vrcp.f32 %v4257_v23 }
0x29ae   :  { %6611 = vpow2.f32 %v5338_v63 }
0x29b7   :  { %v6610_v15 = vpop.eup %6609 }
0x29b8   :  { %v6612_v3 = vpop.eup %6611  ;;  %v4261_v16 = vmul.f32 %v6610_v15, %v8338_v35 }
0x29b9   :  { %v4184_v9 = vadd.f32 1.0, %v6612_v3  ;;  %v6345_v3 = vld [vmem:[#allocation27 + $0x20] sm:$0xff]  }
0x29bb   :  { %6613 = vrcp.f32 %v4184_v9  ;;  %v6348_v9 = vld [vmem:[#allocation27 + $0x38] sm:$0xff]  }
0x29c5   :  { %v6614_v10 = vpop.eup %6613 }
0x29c6   :  { %v4188_v27 = vmul.f32 %v6614_v10, %v8343_v38 }
0x29ea   :  { %v4264_v5 = vpop.permute.xlu0 %4263 }
0x29eb   :  { %v4266_v6 = vmul.f32 %v6610_v15, %v4264_v5 }
0x29ed   :  { %4268 = vrot.lane.b32.xlu0 %v4266_v6, %s7131_s12 }
0x2a1c   :  { %v4191_v8 = vpop.permute.xlu1 %4190 }
0x2a1d   :  { %v4193_v11 = vmul.f32 %v6614_v10, %v4191_v8  ;;  %v6354_v8 = vld [vmem:[#allocation27 + $0x18] sm:$0xff]  }
0x2a1f   :  { %4195 = vrot.lane.b32.xlu1 %v4193_v11, %s7131_s12 }
0x2a5f   :  { %v4269_v17 = vpop.permute.xlu0 %4268 }
0x2a60   :  { %v4271_v24 = vadd.f32 %v4269_v17, %v4261_v16 }
0x2a62   :  { %6615 = vtanh.f32 %v4271_v24 }
0x2a6c   :  { %v6616_v26 = vpop.eup %6615 }
0x2a6d   :  { %4274 = vrot.lane.b32.xlu0 %v6616_v26, %s7106_s26 }
0x2a91   :  { %v4196_v29 = vpop.permute.xlu1 %4195 }
0x2a92   :  { %v8374_v30 = vadd.f32 %v4196_v29, %v4188_v27 }
0x2a94   :  { %6617 = vtanh.f32 %v8374_v30 }
0x2a9e   :  { %v6618_v32 = vpop.eup %6617 }
0x2a9f   :  { %4201 = vrot.lane.b32.xlu1 %v6618_v32, %s7106_s26 }
0x2adf   :  { %v4275_v33 = vpop.permute.xlu0 %4274 }
0x2ae0   :  { %v8378_v36 = vmul.f32 %v6610_v15, %v4275_v33 }
0x2ae2   :  { %v4362_v35 = vpack.c.bf16 %v8378_v36, %v8378_v36 }
0x2ae4   :  { %4364 = vrot.lane.b32.xlu0 %v4362_v35, %s7131_s12 }
0x2b11   :  { %v4202_v37 = vpop.permute.xlu1 %4201 }
0x2b12   :  { %v8383_v13 = vmul.f32 %v6614_v10, %v4202_v37  ;;  %v6352_v10 = vld [vmem:[#allocation27 + $0x10] sm:$0xff]   ;;  %v6353_v37 = vld [vmem:[#allocation27 + $0x48] sm:$0xff]  }
0x2b14   :  { %v4289_v38 = vpack.c.bf16 %v8383_v13, %v8383_v13 }
0x2b16   :  { %4291 = vrot.lane.b32.xlu1 %v4289_v38, %s7131_s12  ;;  %v6356_v38 = vld [vmem:[#allocation27 + $0x58] sm:$0xff]  }
0x2b56   :  { %v4365_v39 = vpop.permute.xlu0 %4364 }
0x2b57   :  { %6186 = vmatmul.mubr.msk.bf16.vlgmr.msra.gmra.mrb[124].mxu1 %vm1098_vm2, %v4365_v39 }
0x2b58   :  { %6209 = vmatprep.mubr.msk.bf16.mxu1 %vm7129_vm0, %v7128_v0 }
0x2b88   :  { %v4292_v42 = vpop.permute.xlu1 %4291 }
0x2b89   :  { %6178 = vmatmul.mubr.msk.bf16.vlgmr.msra.gmra.mrb[124].mxu0 %vm1098_vm2, %v4292_v42 }
0x2b8a   :  { %6197 = vmatprep.mubr.msk.bf16.mxu0 %vm7129_vm0, %v7128_v0  ;;  %6190 = vmatpush3.bf16.msra.mxu0 %v6345_v3 }
0x2b8b   :  { %6191 = vmatprep.subr.bf16.mxu0 %v7128_v0 }
0x2c2a   :  { %v4403_v20 = vpop.f32.mrb[124].mxu1 }
0x2c2b   :  { %v4409_v47 = vadd.f32 %v4403_v20, %v4361_v43  ;;  %v6187_v48 = vpop.f32.mrb[125].mxu1 }
0x2c2c   :  { %v4406_v22 = vpop.f32.mrb[126].mxu1 }
0x2c2d   :  { %6619 = vtanh.f32 %v4409_v47  ;;  %v6188_v50 = vpop.f32.mrb[127].mxu1  ;;  %v5344_v56 = vmul.f32 -1.442695, %v4409_v47  ;;  %v6357_v47 = vld [vmem:[#allocation27 + $0x60] sm:$0xff]  }
0x2c37   :  { %v6620_v51 = vpop.eup %6619 }
0x2c38   :  { %4419 = vrot.lane.b32.xlu0 %v6620_v51, %s7106_s26  ;;  %v6358_v51 = vld [vmem:[#allocation27 + $0x68] sm:$0xff]  }
0x2c5c   :  { %v4330_v54 = vpop.f32.mrb[124].mxu0 }
0x2c5d   :  { %v4336_v57 = vadd.f32 %v4330_v54, %v4288_v52  ;;  %v6179_v59 = vpop.f32.mrb[125].mxu0  ;;  %v6359_v52 = vld [vmem:[#allocation27 + $0x80] sm:$0xff]  }
0x2c5e   :  { %v4333_v4 = vpop.f32.mrb[126].mxu0  ;;  %v6360_v59 = vld [vmem:[#allocation27 + $0x70] sm:$0xff]  }
0x2c5f   :  { %6621 = vtanh.f32 %v4336_v57  ;;  %v6180_v41 = vpop.f32.mrb[127].mxu0  ;;  %v5342_v53 = vmul.f32 -1.442695, %v4336_v57  ;;  %v6361_v4 = vld [vmem:[#allocation27 + $0x88] sm:$0xff]  }
0x2c60   :  { %6623 = vpow2.f32 %v5344_v56  ;;  %v6363_v56 = vld [vmem:[#allocation27 + $0x90] sm:$0xff]  }
0x2c69   :  { %v6622_v28 = vpop.eup %6621 }
0x2c6a   :  { %4346 = vrot.lane.b32.xlu1 %v6622_v28, %s7106_s26  ;;  %v6624_v25 = vpop.eup %6623  ;;  %v6362_v28 = vld [vmem:[#allocation27 + $0x78] sm:$0xff]  }
0x2c6b   :  { %v4413_v46 = vadd.f32 1.0, %v6624_v25 }
0x2c6d   :  { %6625 = vrcp.f32 %v4413_v46  ;;  %v6364_v46 = vld [vmem:[#allocation27 + $0x98] sm:$0xff]  }
0x2c6e   :  { %6627 = vpow2.f32 %v5342_v53  ;;  %v6366_v53 = vld [vmem:[#allocation27 + $0xa8] sm:$0xff]  }
0x2c77   :  { %v6626_v55 = vpop.eup %6625 }
0x2c78   :  { %v6628_v1 = vpop.eup %6627  ;;  %v4417_v15 = vmul.f32 %v6626_v55, %v4271_v24 }
0x2c79   :  { %v4340_v44 = vadd.f32 1.0, %v6628_v1  ;;  %v6367_v1 = vld [vmem:[#allocation27 + $0xc0] sm:$0xff]  }
0x2c7b   :  { %6629 = vrcp.f32 %v4340_v44 }
0x2c85   :  { %v8397_v62 = vpop.eup %6629 }
0x2caa   :  { %v4420_v12 = vpop.permute.xlu0 %4419 }
0x2cab   :  { %v4422_v49 = vmul.f32 %v6626_v55, %v4420_v12 }
0x2cad   :  { %4424 = vrot.lane.b32.xlu0 %v4422_v49, %s7131_s12 }
0x2cdc   :  { %v4347_v31 = vpop.permute.xlu1 %4346 }
0x2cdd   :  { %v4349_v23 = vmul.f32 %v8397_v62, %v4347_v31  ;;  %v6369_v31 = vld [vmem:[#allocation27 + $0xc8] sm:$0xff]  }
0x2cdf   :  { %4351 = vrot.lane.b32.xlu1 %v4349_v23, %s7131_s12  ;;  %v6370_v23 = vld [vmem:[#allocation27 + $0xb8] sm:$0xff]  }
0x2d1f   :  { %v4425_v5 = vpop.permute.xlu0 %4424 }
0x2d20   :  { %v4427_v6 = vadd.f32 %v4425_v5, %v4417_v15  ;;  %v6371_v15 = vld [vmem:[#allocation27 + $0xd0] sm:$0xff]  }
0x2d22   :  { %6631 = vtanh.f32 %v4427_v6  ;;  %v6372_v6 = vld [vmem:[#allocation27 + $0xd8] sm:$0xff]  }
0x2d2c   :  { %v6632_v63 = vpop.eup %6631 }
0x2d2d   :  { %4430 = vrot.lane.b32.xlu0 %v6632_v63, %s7106_s26  ;;  %v6373_v63 = vld [vmem:[#allocation27 + $0xe0] sm:$0xff]  }
0x2d31   :  { %3493 = vrot.lane.b32.xlu0 %v8200_v40, %s7131_s12 }
0x2d35   :  { %3336 = vrot.lane.b32.xlu0 %v8162_v61, %s7131_s12  ;;  %v4344_v61 = vmul.f32 %v8397_v62, %v8374_v30 }
0x2d39   :  { %3651 = vrot.lane.b32.xlu0 %v8238_v18, %s7131_s12 }
0x2d3d   :  { %3809 = vrot.lane.b32.xlu0 %v8276_v7, %s7131_s12  ;;  %v6346_v7 = vld [vmem:[#allocation27 + $0x28] sm:$0xff]  }
0x2d3e   :  { %6192 = vmatpush3.bf16.msra.mxu0 %v6346_v7  ;;  %v6375_v7 = vld [vmem:[#allocation27 + $0xf0] sm:$0xff]  }
0x2d3f   :  { %6193 = vmatprep.subr.bf16.mxu0 %v7128_v0 }
0x2d41   :  { %3815 = vrot.lane.b32.xlu0 %v8271_v2, %s7106_s26  ;;  %v6347_v2 = vld [vmem:[#allocation27 + $0x30] sm:$0xff]  }
0x2d42   :  { %6194 = vmatpush3.bf16.msra.mxu0 %v6347_v2 }
0x2d43   :  { %6195 = vmatprep.subr.bf16.mxu0 %v7128_v0 }
0x2d45   :  { %3657 = vrot.lane.b32.xlu0 %v8233_v14, %s7106_s26  ;;  %v6350_v14 = vld [vmem:[#allocation27 + $0x8] sm:$0xff]  }
0x2d46   :  { %6196 = vmatpush3.bf16.msra.mxu0 %v6348_v9  ;;  %v6376_v9 = vld [vmem:[#allocation27 + $0xf8] sm:$0xff]  }
0x2d47   :  { %6213 = vmatprep.subr.bf16.mxu0 %v7128_v0 }
0x2d49   :  { %3499 = vrot.lane.b32.xlu0 %v8195_v19, %s7106_s26 }
0x2d4d   :  { %3341 = vrot.lane.b32.xlu0 %v8157_v58, %s7106_s26  ;;  %v6349_v58 = vld [vmem:[#allocation27] sm:$0xff]  }
0x2d4e   :  { %6202 = vmatpush3.bf16.msra.mxu1 %v6349_v58 }
0x2d4f   :  { %6203 = vmatprep.subr.bf16.mxu1 %v7128_v0 }
0x2d51   :  { %v4352_v40 = vpop.permute.xlu1 %4351 }
0x2d52   :  { %v4354_v18 = vadd.f32 %v4352_v40, %v4344_v61  ;;  %6204 = vmatpush3.bf16.msra.mxu1 %v6350_v14  ;;  %v6374_v40 = vld [vmem:[#allocation27 + $0xe8] sm:$0xff]  }
0x2d53   :  { %6205 = vmatprep.subr.bf16.mxu1 %v7128_v0  ;;  %v6377_v14 = vld [vmem:[#allocation30] sm:$0xff]  }
0x2d54   :  { %6633 = vtanh.f32 %v4354_v18 }
0x2d56   :  { %6206 = vmatpush3.bf16.msra.mxu1 %v6352_v10  ;;  %v6378_v10 = vld [vmem:[#allocation30 + $0x8] sm:$0xff]  }
0x2d57   :  { %6207 = vmatprep.subr.bf16.mxu1 %v7128_v0 }
0x2d5a   :  { %6208 = vmatpush3.bf16.msra.mxu1 %v6354_v8  ;;  %v5149_v8 = vld [vmem:[#allocation33] sm:$0xf] }
0x2d5b   :  { %6225 = vmatprep.subr.bf16.mxu1 %v7128_v0 }
0x2d5e   :  { %v6634_v19 = vpop.eup %6633 }
0x2d5f   :  { %4357 = vrot.lane.b32.xlu1 %v6634_v19, %s7106_s26 }
0x2d63   :  { %4284 = vrot.lane.b32.xlu1 %v8378_v36, %s7106_s26  ;;  %v6351_v36 = vld [vmem:[#allocation27 + $0x40] sm:$0xff]  }
0x2d9f   :  { %v4431_v11 = vpop.permute.xlu0 %4430 }
0x2da0   :  { %v4433_v16 = vmul.f32 %v6626_v55, %v4431_v11  ;;  %v6365_v55 = vld [vmem:[#allocation27 + $0xa0] sm:$0xff]   ;;  %v5163_v11 = vsel %vm5161_vm6, %v5149_v8, 0 }
0x2da2   :  { %4440 = vrot.lane.b32.xlu1 %v4433_v16, %s7106_s26 }
0x2da3   :  { %v3494_v17 = vpop.permute.xlu0 %3493 }
0x2da4   :  { %3497 = vst.msk [vmem:[#allocation5 + $0x2] sm:$0x3] %vm1249_vm3, %v3494_v17 }
0x2da6   :  { %4128 = vrot.lane.b32.xlu1 %v8347_v21, %s7106_s26 }
0x2da7   :  { %v3337_v24 = vpop.permute.xlu0 %3336 }
0x2da8   :  { %3339 = vst.msk [vmem:[#allocation5] sm:$0x3] %vm1249_vm3, %v3337_v24 }
0x2daa   :  { %3972 = vrot.lane.b32.xlu1 %v8309_v60, %s7106_s26  ;;  %s7132_s26 = smov [#allocation36]  }
0x2dab   :  { %v3652_v26 = vpop.permute.xlu0 %3651  ;;  %s5213_s25 = sshll.u32 %s7132_s26, 4  ;;  %s5214_s25 = int_to_ptr.vmem [resolvable:$true] %s5213_s25 }
0x2dac   :  { %3655 = vst.msk [vmem:[#allocation5 + $0x4] sm:$0x3] %vm1249_vm3, %v3652_v26  ;;  %s7061_s28 = scalar_lea.vmem %s5214_s25, 32  ;;  %p7066_p13 = scmp.lt.s32.totalorder %s5214_s25, %s5214_s25 }
0x2dad   :  { %p7062_p12 = scmp.ne.s32.totalorder %s5214_s25, %s7061_s28  ;;  %p7067_p0 = scmp.lt.s32.totalorder %s7061_s28, %s7061_s28 }
0x2dae   :  { %3967 = vrot.lane.b32.xlu1 %v8314_v34, %s7131_s12 }
0x2daf   :  { %v3810_v27 = vpop.permute.xlu0 %3809  ;;  %p7068_p1 = por %p7067_p0, %p7066_p13 }
0x2db0   :  { %3813 = vst.msk [vmem:[#allocation5 + $0x6] sm:$0x3] %vm1249_vm3, %v3810_v27 }
0x2db1   :  { %p7069_p2 = pnand %p7068_p1, %p7062_p12 }
0x2db2   :  { %4123 = vrot.lane.b32.xlu1 %v8352_v45, %s7131_s12 }
0x2db3   :  { %v3816_v29 = vpop.permute.xlu0 %3815 }
0x2db4   :  { %3819 = vst.msk [vmem:[#allocation5 + $0x8] sm:$0x3] %vm1256_vm4, %v3816_v29 }
0x2db6   :  { %4279 = vrot.lane.b32.xlu1 %v8383_v13, %s7131_s12  ;;  %v6355_v13 = vld [vmem:[#allocation27 + $0x50] sm:$0xff]  }
0x2db7   :  { %v3658_v21 = vpop.permute.xlu0 %3657 }
0x2db8   :  { %3661 = vst.msk [vmem:[#allocation5 + $0xa] sm:$0x3] %vm1256_vm4, %v3658_v21 }
0x2dbb   :  { %v3500_v60 = vpop.permute.xlu0 %3499 }
0x2dbc   :  { %3503 = vst.msk [vmem:[#allocation5 + $0xc] sm:$0x3] %vm1256_vm4, %v3500_v60 }
0x2dbf   :  { %v3342_v30 = vpop.permute.xlu0 %3341 }
0x2dc0   :  { %3345 = vst.msk [vmem:[#allocation5 + $0xe] sm:$0x3] %vm1256_vm4, %v3342_v30 }
0x2dd1   :  { %v4358_v34 = vpop.permute.xlu1 %4357 }
0x2dd2   :  { %v4360_v32 = vmul.f32 %v8397_v62, %v4358_v34  ;;  %v6368_v62 = vld [vmem:[#allocation27 + $0xb0] sm:$0xff]  }
0x2dd4   :  { %4435 = vrot.lane.b32.xlu1 %v4360_v32, %s7131_s12 }
0x2dd5   :  { %v4285_v45 = vpop.permute.xlu1 %4284 }
0x2dd6   :  { %4287 = vst.msk [vmem:[#allocation5 + $0x2] sm:$0x3] %vm1256_vm4, %v4285_v45 }
0x2ddd   :  { %v4454_v33 = vld [vmem:[#allocation5 + $0x2] sm:$0x3] }
0x2dde   :  { %v4455_v35 = vpack.c.bf16 %v4454_v33, %v4454_v33 }
0x2de0   :  { %6198 = vmatmul.mubr.msk.bf16.vlgmr.msra.gmra.mrb[128].mxu0 %vm2397_vm5, %v4455_v35 }
0x2de1   :  { %6214 = vmatpush3.bf16.msra.mxu0 %v6351_v36  ;;  %6221 = vmatprep.mubr.msk.bf16.mxu0 %vm7129_vm0, %v7128_v0 }
0x2de2   :  { %6215 = vmatprep.subr.bf16.mxu0 %v7128_v0 }
0x2de5   :  { %6216 = vmatpush3.bf16.msra.mxu0 %v6353_v37 }
0x2de6   :  { %6217 = vmatprep.subr.bf16.mxu0 %v7128_v0 }
0x2de9   :  { %6218 = vmatpush3.bf16.msra.mxu0 %v6355_v13 }
0x2dea   :  { %6219 = vmatprep.subr.bf16.mxu0 %v7128_v0 }
0x2ded   :  { %6220 = vmatpush3.bf16.msra.mxu0 %v6356_v38 }
0x2dee   :  { %6237 = vmatprep.subr.bf16.mxu0 %v7128_v0 }
0x2e14   :  { %v4441_v39 = vpop.permute.xlu1 %4440 }
0x2e15   :  { %4443 = vst.msk [vmem:[#allocation5] sm:$0x3] %vm1256_vm4, %v4441_v39 }
0x2e18   :  { %v4129_v42 = vpop.permute.xlu1 %4128 }
0x2e19   :  { %4131 = vst.msk [vmem:[#allocation5 + $0x4] sm:$0x3] %vm1256_vm4, %v4129_v42 }
0x2e1c   :  { %v3973_v43 = vpop.permute.xlu1 %3972  ;;  %v4444_v20 = vld [vmem:[#allocation5] sm:$0x3] }
0x2e1d   :  { %3975 = vst.msk [vmem:[#allocation5 + $0x6] sm:$0x3] %vm1256_vm4, %v3973_v43  ;;  %v4445_v48 = vpack.c.bf16 %v4444_v20, %v4444_v20 }
0x2e1f   :  { %6210 = vmatmul.mubr.msk.bf16.vlgmr.msra.gmra.mrb[128].mxu1 %vm2397_vm5, %v4445_v48 }
0x2e20   :  { %6226 = vmatpush3.bf16.msra.mxu1 %v6357_v47  ;;  %v3968_v22 = vpop.permute.xlu1 %3967  ;;  %v4599_v50 = vld [vmem:[#allocation5 + $0x4] sm:$0x3]  ;;  %6233 = vmatprep.mubr.msk.bf16.mxu1 %vm7129_vm0, %v7128_v0 }
0x2e21   :  { %3970 = vst.msk [vmem:[#allocation5 + $0x8] sm:$0x3] %vm1249_vm3, %v3968_v22  ;;  %6227 = vmatprep.subr.bf16.mxu1 %v7128_v0  ;;  %v4600_v54 = vpack.c.bf16 %v4599_v50, %v4599_v50 }
0x2e23   :  { %6222 = vmatmul.mubr.msk.bf16.vlgmr.msra.gmra.mrb[132].mxu0 %vm2397_vm5, %v4600_v54 }
0x2e24   :  { %6228 = vmatpush3.bf16.msra.mxu1 %v6358_v51  ;;  %6238 = vmatpush3.bf16.msra.mxu0 %v6359_v52  ;;  %v4124_v57 = vpop.permute.xlu1 %4123  ;;  %v4678_v25 = vld [vmem:[#allocation5 + $0x6] sm:$0x3] }
0x2e25   :  { %4126 = vst.msk [vmem:[#allocation5 + $0xa] sm:$0x3] %vm1249_vm3, %v4124_v57  ;;  %6229 = vmatprep.subr.bf16.mxu1 %v7128_v0  ;;  %6239 = vmatprep.subr.bf16.mxu0 %v7128_v0  ;;  %v4679_v12 = vpack.c.bf16 %v4678_v25, %v4678_v25 }
0x2e26   :  { %6245 = vmatprep.mubr.msk.bf16.mxu0 %vm7129_vm0, %v7128_v0 }
0x2e28   :  { %6230 = vmatpush3.bf16.msra.mxu1 %v6360_v59  ;;  %6240 = vmatpush3.bf16.msra.mxu0 %v6361_v4  ;;  %v4280_v41 = vpop.permute.xlu1 %4279  ;;  %v4757_v49 = vld [vmem:[#allocation5 + $0x8] sm:$0x3] }
0x2e29   :  { %4282 = vst.msk [vmem:[#allocation5 + $0xc] sm:$0x3] %vm1249_vm3, %v4280_v41  ;;  %6231 = vmatprep.subr.bf16.mxu1 %v7128_v0  ;;  %6241 = vmatprep.subr.bf16.mxu0 %v7128_v0  ;;  %v4758_v44 = vpack.c.bf16 %v4757_v49, %v4757_v49 }
0x2e2c   :  { %6232 = vmatpush3.bf16.msra.mxu1 %v6362_v28  ;;  %6242 = vmatpush3.bf16.msra.mxu0 %v6363_v56  ;;  %v4836_v5 = vld [vmem:[#allocation5 + $0xa] sm:$0x3]  ;;  %v5385_v56 = vld [vmem:[#allocation29] ss:$0 sm:$0xff] }
0x2e2d   :  { %6243 = vmatprep.subr.bf16.mxu0 %v7128_v0  ;;  %6249 = vmatprep.subr.bf16.mxu1 %v7128_v0  ;;  %v4837_v3 = vpack.c.bf16 %v4836_v5, %v4836_v5 }
0x2e2f   :  { %6234 = vmatmul.mubr.msk.bf16.vlgmr.msra.gmra.mrb[132].mxu1 %vm2397_vm5, %v4679_v12 }
0x2e30   :  { %6244 = vmatpush3.bf16.msra.mxu0 %v6364_v46  ;;  %6250 = vmatpush3.bf16.msra.mxu1 %v6365_v55  ;;  %v4915_v61 = vld [vmem:[#allocation5 + $0xc] sm:$0x3] }
0x2e31   :  { %6251 = vmatprep.subr.bf16.mxu1 %v7128_v0  ;;  %6261 = vmatprep.subr.bf16.mxu0 %v7128_v0  ;;  %v4916_v18 = vpack.c.bf16 %v4915_v61, %v4915_v61 }
0x2e32   :  { %6257 = vmatprep.mubr.msk.bf16.mxu1 %vm7129_vm0, %v7128_v0 }
0x2e33   :  { %6246 = vmatmul.mubr.msk.bf16.vlgmr.msra.gmra.mrb[136].mxu0 %vm2397_vm5, %v4758_v44 }
0x2e34   :  { %6252 = vmatpush3.bf16.msra.mxu1 %v6366_v53  ;;  %6262 = vmatpush3.bf16.msra.mxu0 %v6367_v1  ;;  %v5386_v1 = vld [vmem:[#allocation32] ss:$0 sm:$0xff] }
0x2e35   :  { %6253 = vmatprep.subr.bf16.mxu1 %v7128_v0  ;;  %6263 = vmatprep.subr.bf16.mxu0 %v7128_v0 }
0x2e36   :  { %6269 = vmatprep.mubr.msk.bf16.mxu0 %vm7129_vm0, %v7128_v0 }
0x2e38   :  { %6254 = vmatpush3.bf16.msra.mxu1 %v6368_v62  ;;  %6264 = vmatpush3.bf16.msra.mxu0 %v6369_v31 }
0x2e39   :  { %6255 = vmatprep.subr.bf16.mxu1 %v7128_v0  ;;  %6265 = vmatprep.subr.bf16.mxu0 %v7128_v0 }
0x2e3c   :  { %6256 = vmatpush3.bf16.msra.mxu1 %v6370_v23  ;;  %6266 = vmatpush3.bf16.msra.mxu0 %v6371_v15 }
0x2e3d   :  { %6267 = vmatprep.subr.bf16.mxu0 %v7128_v0  ;;  %6273 = vmatprep.subr.bf16.mxu1 %v7128_v0 }
0x2e3f   :  { %6258 = vmatmul.mubr.msk.bf16.vlgmr.msra.gmra.mrb[136].mxu1 %vm2397_vm5, %v4837_v3 }
0x2e40   :  { %6268 = vmatpush3.bf16.msra.mxu0 %v6372_v6  ;;  %6274 = vmatpush3.bf16.msra.mxu1 %v6373_v63  ;;  %v5390_v6 = vld [vmem:[#allocation35] ss:$0 sm:$0xff] }
0x2e41   :  { %6275 = vmatprep.subr.bf16.mxu1 %v7128_v0  ;;  %6281 = vmatprep.mubr.msk.bf16.mxu1 %vm7129_vm0, %v7128_v0 }
0x2e42   :  { %6285 = vmatprep.subr.bf16.mxu0 %v7128_v0 }
0x2e43   :  { %6270 = vmatmul.mubr.msk.bf16.vlgmr.msra.gmra.mrb[140].mxu0 %vm2397_vm5, %v4916_v18 }
0x2e44   :  { %6276 = vmatpush3.bf16.msra.mxu1 %v6374_v40  ;;  %6289 = vmatprep.mubr.msk.bf16.mxu0 %vm7129_vm0, %v7128_v0 }
0x2e45   :  { %6277 = vmatprep.subr.bf16.mxu1 %v7128_v0  ;;  %6286 = vmatpush3.bf16.msra.mxu0 %v6377_v14 }
0x2e46   :  { %v4436_v2 = vpop.permute.xlu1 %4435  ;;  %6287 = vmatprep.subr.bf16.mxu0 %v7128_v0 }
0x2e47   :  { %4438 = vst.msk [vmem:[#allocation5 + $0xe] sm:$0x3] %vm1249_vm3, %v4436_v2 }
0x2e48   :  { %6278 = vmatpush3.bf16.msra.mxu1 %v6375_v7 }
0x2e49   :  { %6279 = vmatprep.subr.bf16.mxu1 %v7128_v0  ;;  %6288 = vmatpush3.bf16.msra.mxu0 %v6378_v10 }
0x2e4c   :  { %6280 = vmatpush3.bf16.msra.mxu1 %v6376_v9 }
0x2e4d   :  { %6293 = vmatprep.subr.bf16.mxu1 %v7128_v0 }
0x2e4e   :  { %v4994_v19 = vld [vmem:[#allocation5 + $0xe] sm:$0x3] }
0x2e4f   :  { %v4995_v58 = vpack.c.bf16 %v4994_v19, %v4994_v19 }
0x2e51   :  { %6282 = vmatmul.mubr.msk.bf16.vlgmr.msra.gmra.mrb[140].mxu1 %vm2397_vm5, %v4995_v58 }
0x2e52   :  { %6295 = vmatprep.mubr.msk.bf16.mxu1 %vm7129_vm0, %v7128_v0  ;;  %6294 = vmatpush3.bf16.msra.mxu1 %v5163_v11 }
0x2eb3   :  { %v4526_v16 = vpop.f32.mrb[128].mxu0 }
0x2eb4   :  { %v6199_v17 = vpop.f32.mrb[129].mxu0 }
0x2eb5   :  { %v4529_v24 = vpop.f32.mrb[130].mxu0 }
0x2eb6   :  { %v6200_v26 = vpop.f32.mrb[131].mxu0 }
0x2ef2   :  { %v4593_v27 = vpop.f32.mrb[128].mxu1 }
0x2ef3   :  { %v4594_v29 = vadd.f32 %v4593_v27, %v4526_v16  ;;  %v6211_v21 = vpop.f32.mrb[129].mxu1 }
0x2ef4   :  { %v4596_v60 = vpop.f32.mrb[130].mxu1 }
0x2ef5   :  { %v6212_v30 = vpop.f32.mrb[131].mxu1 }
0x2ef6   :  { %v4671_v34 = vpop.f32.mrb[132].mxu0 }
0x2ef7   :  { %v4677_v32 = vadd.f32 %v4671_v34, %v4594_v29  ;;  %v6223_v45 = vpop.f32.mrb[133].mxu0 }
0x2ef8   :  { %v4674_v33 = vpop.f32.mrb[134].mxu0 }
0x2ef9   :  { %v6224_v0 = vpop.f32.mrb[135].mxu0 }
0x2f02   :  { %v4750_v36 = vpop.f32.mrb[132].mxu1 }
0x2f03   :  { %v4756_v35 = vadd.f32 %v4750_v36, %v4677_v32  ;;  %v6235_v37 = vpop.f32.mrb[133].mxu1 }
0x2f04   :  { %v4753_v13 = vpop.f32.mrb[134].mxu1 }
0x2f05   :  { %v6236_v38 = vpop.f32.mrb[135].mxu1 }
0x2f06   :  { %v4829_v39 = vpop.f32.mrb[136].mxu0 }
0x2f07   :  { %v4835_v42 = vadd.f32 %v4829_v39, %v4756_v35  ;;  %v6247_v43 = vpop.f32.mrb[137].mxu0 }
0x2f08   :  { %v4832_v20 = vpop.f32.mrb[138].mxu0 }
0x2f09   :  { %v6248_v47 = vpop.f32.mrb[139].mxu0 }
0x2f12   :  { %v4908_v48 = vpop.f32.mrb[136].mxu1 }
0x2f13   :  { %v4914_v22 = vadd.f32 %v4908_v48, %v4835_v42  ;;  %v6259_v50 = vpop.f32.mrb[137].mxu1 }
0x2f14   :  { %v4911_v51 = vpop.f32.mrb[138].mxu1 }
0x2f15   :  { %v6260_v52 = vpop.f32.mrb[139].mxu1 }
0x2f16   :  { %v4987_v54 = vpop.f32.mrb[140].mxu0 }
0x2f17   :  { %v4993_v57 = vadd.f32 %v4987_v54, %v4914_v22  ;;  %v6271_v59 = vpop.f32.mrb[141].mxu0 }
0x2f18   :  { %v4990_v4 = vpop.f32.mrb[142].mxu0 }
0x2f19   :  { %v6272_v41 = vpop.f32.mrb[143].mxu0 }
0x2f24   :  { %v5066_v28 = vpop.f32.mrb[140].mxu1 }
0x2f25   :  { %v5072_v25 = vadd.f32 %v5066_v28, %v4993_v57  ;;  %v6283_v46 = vpop.f32.mrb[141].mxu1 }
0x2f26   :  { %v5069_v55 = vpop.f32.mrb[142].mxu1 }
0x2f27   :  { %v5080_v12 = vadd.f32 %v5385_v56, %v5072_v25  ;;  %v6284_v49 = vpop.f32.mrb[143].mxu1 }
0x2f29   :  { %v5081_v53 = vpack.c.bf16 %v5080_v12, %v5080_v12 }
0x2f2b   :  { %6290 = vmatmul.mubr.msk.bf16.vlgmr.msra.gmra.mrb[144].mxu0 %vm1098_vm2, %v5081_v53 }
0x2ffe   :  { %v5142_v44 = vpop.f32.mrb[144].mxu0 }
0x2fff   :  { %v5143_v62 = vadd.f32 %v5386_v1, %v5142_v44  ;;  %v6291_v31 = vpop.f32.mrb[145].mxu0 }
0x3000   :  { %v5145_v23 = vpop.f32.mrb[146].mxu0 }
0x3001   :  { %v5148_v15 = vpack.c.bf16 %v5143_v62, %v5143_v62  ;;  %v6292_v5 = vpop.f32.mrb[147].mxu0 }
0x3003   :  { %6296 = vmatmul.mubr.msk.bf16.vlgmr.msra.gmra.mrb[144].mxu1 %vm5157_vm7, %v5148_v15 }
0x30d6   :  { %v5199_v63 = vpop.f32.mrb[144].mxu1 }
0x30d7   :  { %v5200_v3 = vadd.f32 %v5390_v6, %v5199_v63  ;;  %v6297_v61 = vpop.f32.mrb[145].mxu1 }
0x30d8   :  { %v5202_v40 = vpop.f32.mrb[146].mxu1 }
0x30d9   :  { %v6298_v18 = vpop.f32.mrb[147].mxu1  ;;  %5206 = vst.msk [vmem:[#allocation36] sm:$0x3] %vm5205_vm8, %v5200_v3 }
0x30da   :  { %7072 = shalt.err (!%p7069_p2)
}
0x30db   :  { %s8562_s15 = sld [smem:[#allocation54_spill]] }
0x30e1   :  { %s7073_s11 = scalar_lea.hbm %s8562_s15, 32 }
0x30e2   :  { %p7074_p3 = scmp.ne.s32.totalorder %s8562_s15, %s7073_s11  ;;  %p7077_p4 = scmp.lt.u32.totalorder %s7073_s11, %s8562_s15 }
0x30e4   :  { %p7079_p5 = pnand %p7077_p4, %p7074_p3 }
0x30e6   :  { %7082 = shalt.err (!%p7079_p5)
}
0x30e7   :  { %5216 = dma.vmem_to_hbm [thread:$0]  %s5214_s25, 32, %s8562_s15, [#allocation8]  }
0x30e8   :  { %7103 = dma.done.wait [#allocation8], 32  }
0x30e9   :  { %7104 = vsyncadd [#allocation8], 4294967264 }
0x30ea   :  { %5220 = vsyncpa [#allocation7], 1 }
0x30eb   :  { %5221 = vsyncpa [#allocation10], 1 }
0x30ec   :  { %5222 = vsyncpa [#allocation13], 1 }
0x30ed   :  { %5223 = vsyncpa [#allocation16], 1 }
0x30ee   :  { %5224 = vsyncpa [#allocation19], 1 }
0x30ef   :  { %5225 = vsyncpa [#allocation22], 1 }
0x30f0   :  { %5226 = vsyncpa [#allocation25], 1 }
0x30f1   :  { %5227 = vsyncpa [#allocation28], 1 }
0x30f2   :  { %5228 = vsyncpa [#allocation31], 1 }
0x30f3   :  { %5229 = vsyncpa [#allocation34], 1 }
0x30f4   :  { %5230 = vsyncpa [#allocation8], 1 }

</bundles_post_ra>
